<compile_context>
chip_gen: v7x
topology: tpu7x:2x2x1
jax: 0.10.0
libtpu: 0.0.40
codegen_flags: <defaults>
</compile_context>

<pallas_src>
import math

import jax
import jax.numpy as jnp
import numpy as np
from jax.experimental import pallas as pl
from jax.experimental.pallas import tpu as pltpu

# ---- small hyper-params consistent with the module's forward (scaled down) ----
INPUT_DIM = 2          # nn.Linear(input_dim, d_model)
SEQ_LEN = 8
D_MODEL = 32
NHEAD = 4
HEAD_DIM = D_MODEL // NHEAD
DIM_FF = 64            # TransformerEncoderLayer feed-forward width
NUM_LAYERS = 2
NUM_CLASSES = 2
LN_EPS = 1e-5

TB = 16                # batch elements per grid step  -> M = TB*SEQ_LEN = 128
LANE = 128

# ---- packed-parameter slab layout ----
# weight slab: (NUM_LAYERS, W_ROWS, 128)
W_ROWS = 3 * D_MODEL + DIM_FF          # 160 (qkv_w | attn_ow | ff1_w | ff2_w stacked on rows)
# per-layer vector slab rows: (NUM_LAYERS, 8, 128)
#   0: qkv_b  1: attn_ob  2: ln1_g  3: ln1_b  4: ff1_b  5: ff2_b  6: ln2_g  7: ln2_b
# misc slab: (MISC_ROWS, 128)
ROW_B_IN = 0
ROW_FC_B = 1
ROW_W_IN = 2                           # rows [2, 2+INPUT_DIM)
ROW_FC_W = 8                           # rows [8, 8+D_MODEL)
MISC_ROWS = ROW_FC_W + D_MODEL         # 40


def _layer_norm(x, gamma, beta):
    mu = jnp.mean(x, axis=-1, keepdims=True)
    var = jnp.mean(jnp.square(x - mu), axis=-1, keepdims=True)
    return (x - mu) * jax.lax.rsqrt(var + LN_EPS) * gamma + beta


def transformer_kernel(x_ref, w_ref, vec_ref, misc_ref, out_ref):
    m = x_ref.shape[0]                 # TB * SEQ_LEN (static)
    tb = m // SEQ_LEN
    scale = 1.0 / math.sqrt(HEAD_DIM)

    x = x_ref[...]                     # (m, INPUT_DIM)

    # ---- input_proj: K=INPUT_DIM=2, do it on the VPU (broadcast mul-add), not the MXU ----
    h = misc_ref[ROW_B_IN:ROW_B_IN + 1, 0:D_MODEL]                       # (1, D) bias
    for c in range(INPUT_DIM):
        h = h + x[:, c:c + 1] * misc_ref[ROW_W_IN + c:ROW_W_IN + c + 1, 0:D_MODEL]
    # h: (m, D_MODEL)

    def split_heads(t):                # (m, D_MODEL) -> (NHEAD*tb, SEQ_LEN, HEAD_DIM)
        cols = [t[:, i * HEAD_DIM:(i + 1) * HEAD_DIM] for i in range(NHEAD)]
        return jnp.stack(cols, axis=0).reshape(NHEAD * tb, SEQ_LEN, HEAD_DIM)

    for l in range(NUM_LAYERS):
        qkv_w   = w_ref[l, 0:D_MODEL, 0:3 * D_MODEL]                     # (D, 3D)
        attn_ow = w_ref[l, D_MODEL:2 * D_MODEL, 0:D_MODEL]               # (D, D)
        ff1_w   = w_ref[l, 2 * D_MODEL:3 * D_MODEL, 0:DIM_FF]            # (D, FF)
        ff2_w   = w_ref[l, 3 * D_MODEL:3 * D_MODEL + DIM_FF, 0:D_MODEL]  # (FF, D)

        qkv_b   = vec_ref[l, 0:1, 0:3 * D_MODEL]
        attn_ob = vec_ref[l, 1:2, 0:D_MODEL]
        ln1_g   = vec_ref[l, 2:3, 0:D_MODEL]
        ln1_b   = vec_ref[l, 3:4, 0:D_MODEL]
        ff1_b   = vec_ref[l, 4:5, 0:DIM_FF]
        ff2_b   = vec_ref[l, 5:6, 0:D_MODEL]
        ln2_g   = vec_ref[l, 6:7, 0:D_MODEL]
        ln2_b   = vec_ref[l, 7:8, 0:D_MODEL]

        # ---------- multi-head self-attention (all heads in one batched contraction) ----------
        qkv = jnp.dot(h, qkv_w, preferred_element_type=jnp.float32) + qkv_b        # (m, 3D)
        q = split_heads(qkv[:, 0:D_MODEL])                                         # (H*tb, S, d)
        k = split_heads(qkv[:, D_MODEL:2 * D_MODEL])
        v = split_heads(qkv[:, 2 * D_MODEL:3 * D_MODEL])

        s = jnp.einsum("gqd,gkd->gqk", q, k,
                       preferred_element_type=jnp.float32) * scale                 # (H*tb, S, S)
        s = s - jnp.max(s, axis=-1, keepdims=True)
        p = jnp.exp(s)
        p = p / jnp.sum(p, axis=-1, keepdims=True)
        a = jnp.einsum("gqk,gkd->gqd", p, v,
                       preferred_element_type=jnp.float32)                         # (H*tb, S, d)
        a = a.reshape(NHEAD, m, HEAD_DIM)
        attn = jnp.concatenate([a[i] for i in range(NHEAD)], axis=-1)              # (m, D)
        attn = jnp.dot(attn, attn_ow, preferred_element_type=jnp.float32) + attn_ob
        h = _layer_norm(h + attn, ln1_g, ln1_b)

        # ---------- feed-forward (ReLU, post-norm) ----------
        ff = jnp.maximum(jnp.dot(h, ff1_w, preferred_element_type=jnp.float32) + ff1_b, 0.0)
        ff = jnp.dot(ff, ff2_w, preferred_element_type=jnp.float32) + ff2_b
        h = _layer_norm(h + ff, ln2_g, ln2_b)

    # ---- mean over sequence, final fc -> (tb, 2) lane-aligned block write ----
    pooled = jnp.mean(h.reshape(tb, SEQ_LEN, D_MODEL), axis=1)                     # (tb, D)
    fc_w = misc_ref[ROW_FC_W:ROW_FC_W + D_MODEL, 0:NUM_CLASSES]                    # (D, 2)
    fc_b = misc_ref[ROW_FC_B:ROW_FC_B + 1, 0:NUM_CLASSES]                          # (1, 2)
    out_ref[...] = jnp.dot(pooled, fc_w, preferred_element_type=jnp.float32) + fc_b


def pack_params(params):
    """Pack the 17 small parameter arrays into 3 resident VMEM slabs."""
    w_slab = jnp.zeros((NUM_LAYERS, W_ROWS, LANE), jnp.float32)
    w_slab = w_slab.at[:, 0:D_MODEL, 0:3 * D_MODEL].set(params["qkv_w"])
    w_slab = w_slab.at[:, D_MODEL:2 * D_MODEL, 0:D_MODEL].set(params["attn_ow"])
    w_slab = w_slab.at[:, 2 * D_MODEL:3 * D_MODEL, 0:DIM_FF].set(params["ff1_w"])
    w_slab = w_slab.at[:, 3 * D_MODEL:3 * D_MODEL + DIM_FF, 0:D_MODEL].set(params["ff2_w"])

    vec = jnp.zeros((NUM_LAYERS, 8, LANE), jnp.float32)
    vec = vec.at[:, 0, 0:3 * D_MODEL].set(params["qkv_b"])
    vec = vec.at[:, 1, 0:D_MODEL].set(params["attn_ob"])
    vec = vec.at[:, 2, 0:D_MODEL].set(params["ln1_g"])
    vec = vec.at[:, 3, 0:D_MODEL].set(params["ln1_b"])
    vec = vec.at[:, 4, 0:DIM_FF].set(params["ff1_b"])
    vec = vec.at[:, 5, 0:D_MODEL].set(params["ff2_b"])
    vec = vec.at[:, 6, 0:D_MODEL].set(params["ln2_g"])
    vec = vec.at[:, 7, 0:D_MODEL].set(params["ln2_b"])

    misc = jnp.zeros((MISC_ROWS, LANE), jnp.float32)
    misc = misc.at[ROW_B_IN, 0:D_MODEL].set(params["b_in"])
    misc = misc.at[ROW_FC_B, 0:NUM_CLASSES].set(params["fc_b"])
    misc = misc.at[ROW_W_IN:ROW_W_IN + INPUT_DIM, 0:D_MODEL].set(params["w_in"])
    misc = misc.at[ROW_FC_W:ROW_FC_W + D_MODEL, 0:NUM_CLASSES].set(params["fc_w"])
    return w_slab, vec, misc


def transformer_forward(x_ncl, params, tb=TB):
    # glue: PyTorch NCL -> (B, S, C), pad batch to a multiple of tb, flatten to (B*S, C).
    x = jnp.transpose(x_ncl, (0, 2, 1)).astype(jnp.float32)           # (B, S, C)
    B = x.shape[0]
    b_pad = ((B + tb - 1) // tb) * tb
    if b_pad != B:
        x = jnp.pad(x, ((0, b_pad - B), (0, 0), (0, 0)))
    x_flat = x.reshape(b_pad * SEQ_LEN, INPUT_DIM)

    w_slab, vec_slab, misc_slab = pack_params(params)
    m = tb * SEQ_LEN
    grid = (b_pad // tb,)

    out = pl.pallas_call(
        transformer_kernel,
        out_shape=jax.ShapeDtypeStruct((b_pad, NUM_CLASSES), jnp.float32),
        grid_spec=pltpu.PrefetchScalarGridSpec(
            num_scalar_prefetch=0,
            grid=grid,
            in_specs=[
                pl.BlockSpec((m, INPUT_DIM), lambda i: (i, 0)),        # batch block of inputs
                pl.BlockSpec(w_slab.shape, lambda i: (0, 0, 0)),       # resident weight slab
                pl.BlockSpec(vec_slab.shape, lambda i: (0, 0, 0)),     # resident per-layer vectors
                pl.BlockSpec(misc_slab.shape, lambda i: (0, 0)),       # resident misc slab
            ],
            out_specs=pl.BlockSpec((tb, NUM_CLASSES), lambda i: (i, 0)),
        ),
        compiler_params=pltpu.CompilerParams(dimension_semantics=("parallel",)),
    )(x_flat, w_slab, vec_slab, misc_slab)
    return out[:B]                                                     # (B, 2)


# ---------------- deterministic parameter init (PyTorch Linear-style bounds) ----------------
def init_params(key):
    keys = iter(jax.random.split(key, 64))

    def lin(fan_in, shape):
        bound = 1.0 / math.sqrt(fan_in)
        return jax.random.uniform(next(keys), shape, jnp.float32, -bound, bound)

    def stack(fn):
        return jnp.stack([fn() for _ in range(NUM_LAYERS)], axis=0)

    return {
        "w_in": lin(INPUT_DIM, (INPUT_DIM, D_MODEL)),
        "b_in": lin(INPUT_DIM, (D_MODEL,)),
        "qkv_w": stack(lambda: lin(D_MODEL, (D_MODEL, 3 * D_MODEL))),
        "qkv_b": stack(lambda: lin(D_MODEL, (3 * D_MODEL,))),
        "attn_ow": stack(lambda: lin(D_MODEL, (D_MODEL, D_MODEL))),
        "attn_ob": stack(lambda: lin(D_MODEL, (D_MODEL,))),
        "ln1_g": jnp.ones((NUM_LAYERS, D_MODEL), jnp.float32),
        "ln1_b": jnp.zeros((NUM_LAYERS, D_MODEL), jnp.float32),
        "ff1_w": stack(lambda: lin(D_MODEL, (D_MODEL, DIM_FF))),
        "ff1_b": stack(lambda: lin(D_MODEL, (DIM_FF,))),
        "ff2_w": stack(lambda: lin(DIM_FF, (DIM_FF, D_MODEL))),
        "ff2_b": stack(lambda: lin(DIM_FF, (D_MODEL,))),
        "ln2_g": jnp.ones((NUM_LAYERS, D_MODEL), jnp.float32),
        "ln2_b": jnp.zeros((NUM_LAYERS, D_MODEL), jnp.float32),
        "fc_w": lin(D_MODEL, (D_MODEL, NUM_CLASSES)),
        "fc_b": lin(D_MODEL, (NUM_CLASSES,)),
    }


# ---------------- pure-JAX reference (for correctness check) ----------------
def reference_forward(x_ncl, params):
    x = jnp.transpose(x_ncl, (0, 2, 1)).astype(jnp.float32)            # (B, S, C)
    h = x @ params["w_in"] + params["b_in"]
    B, S, D = h.shape
    for l in range(NUM_LAYERS):
        qkv = h @ params["qkv_w"][l] + params["qkv_b"][l]
        q, k, v = jnp.split(qkv, 3, axis=-1)
        qh = q.reshape(B, S, NHEAD, HEAD_DIM).transpose(0, 2, 1, 3)
        kh = k.reshape(B, S, NHEAD, HEAD_DIM).transpose(0, 2, 1, 3)
        vh = v.reshape(B, S, NHEAD, HEAD_DIM).transpose(0, 2, 1, 3)
        s = jnp.einsum("bhqd,bhkd->bhqk", qh, kh) / math.sqrt(HEAD_DIM)
        p = jax.nn.softmax(s, axis=-1)
        a = jnp.einsum("bhqk,bhkd->bhqd", p, vh).transpose(0, 2, 1, 3).reshape(B, S, D)
        a = a @ params["attn_ow"][l] + params["attn_ob"][l]
        h = _layer_norm(h + a, params["ln1_g"][l], params["ln1_b"][l])
        ff = jnp.maximum(h @ params["ff1_w"][l] + params["ff1_b"][l], 0.0)
        ff = ff @ params["ff2_w"][l] + params["ff2_b"][l]
        h = _layer_norm(h + ff, params["ln2_g"][l], params["ln2_b"][l])
    pooled = jnp.mean(h, axis=1)
    return pooled @ params["fc_w"] + params["fc_b"]


if __name__ == "__main__":
    key = jax.random.PRNGKey(0)
    k_param, k_x = jax.random.split(key)
    params = init_params(k_param)

    B = 32                                                             # grid of 2 batch blocks
    x = jax.random.normal(k_x, (B, INPUT_DIM, SEQ_LEN), jnp.float32)   # PyTorch-style (B, C, L)

    out = jax.block_until_ready(transformer_forward(x, params))
    ref = reference_forward(x, params)

    assert out.shape == (B, NUM_CLASSES)
    np.testing.assert_allclose(np.asarray(out), np.asarray(ref), rtol=1e-4, atol=1e-4)

    print("KERNEL_OK")
</pallas_src>

<mosaic_0001>
module attributes {stable_mosaic.version = 11 : i64} {
  func.func @transformer_kernel(%arg0: i32, %arg1: memref<128x2xf32, #tpu.memory_space<vmem>>, %arg2: memref<2x160x128xf32, #tpu.memory_space<vmem>>, %arg3: memref<2x8x128xf32, #tpu.memory_space<vmem>>, %arg4: memref<40x128xf32, #tpu.memory_space<vmem>>, %arg5: memref<16x2xf32, #tpu.memory_space<vmem>>) attributes {dimension_semantics = [#tpu.dimension_semantics<parallel>], iteration_bounds = array<i64: 2>, scalar_prefetch = 0 : i64, scratch_operands = 0 : i64, tpu.core_type = #tpu.core_type<tc>, window_params = [{transform_indices = @transform_0, window_bounds = array<i64: 128, 2>}, {pipeline_mode = #tpu.pipeline_mode<synchronous>, transform_indices = @transform_1, window_bounds = array<i64: 2, 160, 128>}, {pipeline_mode = #tpu.pipeline_mode<synchronous>, transform_indices = @transform_2, window_bounds = array<i64: 2, 8, 128>}, {pipeline_mode = #tpu.pipeline_mode<synchronous>, transform_indices = @transform_3, window_bounds = array<i64: 40, 128>}, {transform_indices = @transform_4, window_bounds = array<i64: 16, 2>}]} {
    %c0 = arith.constant 0 : index
    %c0_0 = arith.constant 0 : index
    %0 = vector.load %arg1[%c0, %c0_0] : memref<128x2xf32, #tpu.memory_space<vmem>>, vector<128x2xf32>
    %c0_1 = arith.constant 0 : index
    %c0_2 = arith.constant 0 : index
    %1 = vector.load %arg4[%c0_1, %c0_2] : memref<40x128xf32, #tpu.memory_space<vmem>>, vector<1x32xf32>
    %2 = vector.extract_strided_slice %0 {offsets = [0, 0], sizes = [128, 1], strides = [1, 1]} : vector<128x2xf32> to vector<128x1xf32>
    %c2 = arith.constant 2 : index
    %c0_3 = arith.constant 0 : index
    %3 = vector.load %arg4[%c2, %c0_3] : memref<40x128xf32, #tpu.memory_space<vmem>>, vector<1x32xf32>
    %4 = vector.broadcast %2 : vector<128x1xf32> to vector<128x32xf32>
    %5 = vector.broadcast %3 : vector<1x32xf32> to vector<128x32xf32>
    %6 = arith.mulf %4, %5 : vector<128x32xf32>
    %7 = vector.broadcast %1 : vector<1x32xf32> to vector<128x32xf32>
    %8 = arith.addf %7, %6 : vector<128x32xf32>
    %9 = vector.extract_strided_slice %0 {offsets = [0, 1], sizes = [128, 1], strides = [1, 1]} : vector<128x2xf32> to vector<128x1xf32>
    %c3 = arith.constant 3 : index
    %c0_4 = arith.constant 0 : index
    %10 = vector.load %arg4[%c3, %c0_4] : memref<40x128xf32, #tpu.memory_space<vmem>>, vector<1x32xf32>
    %11 = vector.broadcast %9 : vector<128x1xf32> to vector<128x32xf32>
    %12 = vector.broadcast %10 : vector<1x32xf32> to vector<128x32xf32>
    %13 = arith.mulf %11, %12 : vector<128x32xf32>
    %14 = arith.addf %8, %13 : vector<128x32xf32>
    %c0_5 = arith.constant 0 : index
    %c0_6 = arith.constant 0 : index
    %c0_7 = arith.constant 0 : index
    %15 = vector.load %arg2[%c0_5, %c0_6, %c0_7] : memref<2x160x128xf32, #tpu.memory_space<vmem>>, vector<1x32x96xf32>
    %16 = vector.shape_cast %15 : vector<1x32x96xf32> to vector<32x96xf32>
    %c0_8 = arith.constant 0 : index
    %c32 = arith.constant 32 : index
    %c0_9 = arith.constant 0 : index
    %17 = vector.load %arg2[%c0_8, %c32, %c0_9] : memref<2x160x128xf32, #tpu.memory_space<vmem>>, vector<1x32x32xf32>
    %18 = vector.shape_cast %17 : vector<1x32x32xf32> to vector<32x32xf32>
    %c0_10 = arith.constant 0 : index
    %c64 = arith.constant 64 : index
    %c0_11 = arith.constant 0 : index
    %19 = vector.load %arg2[%c0_10, %c64, %c0_11] : memref<2x160x128xf32, #tpu.memory_space<vmem>>, vector<1x32x64xf32>
    %20 = vector.shape_cast %19 : vector<1x32x64xf32> to vector<32x64xf32>
    %c0_12 = arith.constant 0 : index
    %c96 = arith.constant 96 : index
    %c0_13 = arith.constant 0 : index
    %21 = vector.load %arg2[%c0_12, %c96, %c0_13] : memref<2x160x128xf32, #tpu.memory_space<vmem>>, vector<1x64x32xf32>
    %22 = vector.shape_cast %21 : vector<1x64x32xf32> to vector<64x32xf32>
    %c0_14 = arith.constant 0 : index
    %c0_15 = arith.constant 0 : index
    %c0_16 = arith.constant 0 : index
    %23 = vector.load %arg3[%c0_14, %c0_15, %c0_16] : memref<2x8x128xf32, #tpu.memory_space<vmem>>, vector<1x1x96xf32>
    %24 = vector.shape_cast %23 : vector<1x1x96xf32> to vector<1x96xf32>
    %c0_17 = arith.constant 0 : index
    %c1 = arith.constant 1 : index
    %c0_18 = arith.constant 0 : index
    %25 = vector.load %arg3[%c0_17, %c1, %c0_18] : memref<2x8x128xf32, #tpu.memory_space<vmem>>, vector<1x1x32xf32>
    %26 = vector.shape_cast %25 : vector<1x1x32xf32> to vector<1x32xf32>
    %c0_19 = arith.constant 0 : index
    %c2_20 = arith.constant 2 : index
    %c0_21 = arith.constant 0 : index
    %27 = vector.load %arg3[%c0_19, %c2_20, %c0_21] : memref<2x8x128xf32, #tpu.memory_space<vmem>>, vector<1x1x32xf32>
    %28 = vector.shape_cast %27 : vector<1x1x32xf32> to vector<1x32xf32>
    %c0_22 = arith.constant 0 : index
    %c3_23 = arith.constant 3 : index
    %c0_24 = arith.constant 0 : index
    %29 = vector.load %arg3[%c0_22, %c3_23, %c0_24] : memref<2x8x128xf32, #tpu.memory_space<vmem>>, vector<1x1x32xf32>
    %30 = vector.shape_cast %29 : vector<1x1x32xf32> to vector<1x32xf32>
    %c0_25 = arith.constant 0 : index
    %c4 = arith.constant 4 : index
    %c0_26 = arith.constant 0 : index
    %31 = vector.load %arg3[%c0_25, %c4, %c0_26] : memref<2x8x128xf32, #tpu.memory_space<vmem>>, vector<1x1x64xf32>
    %32 = vector.shape_cast %31 : vector<1x1x64xf32> to vector<1x64xf32>
    %c0_27 = arith.constant 0 : index
    %c5 = arith.constant 5 : index
    %c0_28 = arith.constant 0 : index
    %33 = vector.load %arg3[%c0_27, %c5, %c0_28] : memref<2x8x128xf32, #tpu.memory_space<vmem>>, vector<1x1x32xf32>
    %34 = vector.shape_cast %33 : vector<1x1x32xf32> to vector<1x32xf32>
    %c0_29 = arith.constant 0 : index
    %c6 = arith.constant 6 : index
    %c0_30 = arith.constant 0 : index
    %35 = vector.load %arg3[%c0_29, %c6, %c0_30] : memref<2x8x128xf32, #tpu.memory_space<vmem>>, vector<1x1x32xf32>
    %36 = vector.shape_cast %35 : vector<1x1x32xf32> to vector<1x32xf32>
    %c0_31 = arith.constant 0 : index
    %c7 = arith.constant 7 : index
    %c0_32 = arith.constant 0 : index
    %37 = vector.load %arg3[%c0_31, %c7, %c0_32] : memref<2x8x128xf32, #tpu.memory_space<vmem>>, vector<1x1x32xf32>
    %38 = vector.shape_cast %37 : vector<1x1x32xf32> to vector<1x32xf32>
    %cst = arith.constant dense<0.000000e+00> : vector<128x96xf32>
    %39 = tpu.matmul %14, %16, %cst {dimension_numbers = #tpu.dot_dimension_numbers<[1], [0], [0], [1], [0, 0, 1, 1], [], []>} : vector<128x32xf32>, vector<32x96xf32>, vector<128x96xf32> -> vector<128x96xf32>
    %40 = vector.broadcast %24 : vector<1x96xf32> to vector<128x96xf32>
    %41 = arith.addf %39, %40 : vector<128x96xf32>
    %42 = vector.extract_strided_slice %41 {offsets = [0, 0], sizes = [128, 32], strides = [1, 1]} : vector<128x96xf32> to vector<128x32xf32>
    %43 = vector.extract_strided_slice %42 {offsets = [0, 0], sizes = [128, 8], strides = [1, 1]} : vector<128x32xf32> to vector<128x8xf32>
    %44 = vector.extract_strided_slice %42 {offsets = [0, 8], sizes = [128, 8], strides = [1, 1]} : vector<128x32xf32> to vector<128x8xf32>
    %45 = vector.extract_strided_slice %42 {offsets = [0, 16], sizes = [128, 8], strides = [1, 1]} : vector<128x32xf32> to vector<128x8xf32>
    %46 = vector.extract_strided_slice %42 {offsets = [0, 24], sizes = [128, 8], strides = [1, 1]} : vector<128x32xf32> to vector<128x8xf32>
    %47 = vector.shape_cast %43 : vector<128x8xf32> to vector<1x128x8xf32>
    %48 = vector.shape_cast %44 : vector<128x8xf32> to vector<1x128x8xf32>
    %49 = vector.shape_cast %45 : vector<128x8xf32> to vector<1x128x8xf32>
    %50 = vector.shape_cast %46 : vector<128x8xf32> to vector<1x128x8xf32>
    %51 = tpu.concatenate %47, %48, %49, %50 in 0 : vector<1x128x8xf32>, vector<1x128x8xf32>, vector<1x128x8xf32>, vector<1x128x8xf32> -> vector<4x128x8xf32>
    %52 = vector.shape_cast %51 : vector<4x128x8xf32> to vector<64x8x8xf32>
    %53 = vector.extract_strided_slice %41 {offsets = [0, 32], sizes = [128, 32], strides = [1, 1]} : vector<128x96xf32> to vector<128x32xf32>
    %54 = vector.extract_strided_slice %53 {offsets = [0, 0], sizes = [128, 8], strides = [1, 1]} : vector<128x32xf32> to vector<128x8xf32>
    %55 = vector.extract_strided_slice %53 {offsets = [0, 8], sizes = [128, 8], strides = [1, 1]} : vector<128x32xf32> to vector<128x8xf32>
    %56 = vector.extract_strided_slice %53 {offsets = [0, 16], sizes = [128, 8], strides = [1, 1]} : vector<128x32xf32> to vector<128x8xf32>
    %57 = vector.extract_strided_slice %53 {offsets = [0, 24], sizes = [128, 8], strides = [1, 1]} : vector<128x32xf32> to vector<128x8xf32>
    %58 = vector.shape_cast %54 : vector<128x8xf32> to vector<1x128x8xf32>
    %59 = vector.shape_cast %55 : vector<128x8xf32> to vector<1x128x8xf32>
    %60 = vector.shape_cast %56 : vector<128x8xf32> to vector<1x128x8xf32>
    %61 = vector.shape_cast %57 : vector<128x8xf32> to vector<1x128x8xf32>
    %62 = tpu.concatenate %58, %59, %60, %61 in 0 : vector<1x128x8xf32>, vector<1x128x8xf32>, vector<1x128x8xf32>, vector<1x128x8xf32> -> vector<4x128x8xf32>
    %63 = vector.shape_cast %62 : vector<4x128x8xf32> to vector<64x8x8xf32>
    %64 = vector.extract_strided_slice %41 {offsets = [0, 64], sizes = [128, 32], strides = [1, 1]} : vector<128x96xf32> to vector<128x32xf32>
    %65 = vector.extract_strided_slice %64 {offsets = [0, 0], sizes = [128, 8], strides = [1, 1]} : vector<128x32xf32> to vector<128x8xf32>
    %66 = vector.extract_strided_slice %64 {offsets = [0, 8], sizes = [128, 8], strides = [1, 1]} : vector<128x32xf32> to vector<128x8xf32>
    %67 = vector.extract_strided_slice %64 {offsets = [0, 16], sizes = [128, 8], strides = [1, 1]} : vector<128x32xf32> to vector<128x8xf32>
    %68 = vector.extract_strided_slice %64 {offsets = [0, 24], sizes = [128, 8], strides = [1, 1]} : vector<128x32xf32> to vector<128x8xf32>
    %69 = vector.shape_cast %65 : vector<128x8xf32> to vector<1x128x8xf32>
    %70 = vector.shape_cast %66 : vector<128x8xf32> to vector<1x128x8xf32>
    %71 = vector.shape_cast %67 : vector<128x8xf32> to vector<1x128x8xf32>
    %72 = vector.shape_cast %68 : vector<128x8xf32> to vector<1x128x8xf32>
    %73 = tpu.concatenate %69, %70, %71, %72 in 0 : vector<1x128x8xf32>, vector<1x128x8xf32>, vector<1x128x8xf32>, vector<1x128x8xf32> -> vector<4x128x8xf32>
    %74 = vector.shape_cast %73 : vector<4x128x8xf32> to vector<64x8x8xf32>
    "tpu.trace_start"() <{level = 10 : i32, message = "gqd,gkd->gqk"}> : () -> ()
    %cst_33 = arith.constant dense<0.000000e+00> : vector<64x8x8xf32>
    %75 = tpu.matmul %52, %63, %cst_33 {dimension_numbers = #tpu.dot_dimension_numbers<[2], [2], [1], [1], [0, 0, 0, 1, 1, 1], [0], [0]>} : vector<64x8x8xf32>, vector<64x8x8xf32>, vector<64x8x8xf32> -> vector<64x8x8xf32>
    "tpu.trace_stop"() : () -> ()
    %cst_34 = arith.constant 0.353553385 : f32
    %76 = vector.broadcast %cst_34 : f32 to vector<64x8x8xf32>
    %77 = arith.mulf %75, %76 : vector<64x8x8xf32>
    %cst_35 = arith.constant dense<0xFF800000> : vector<64x8xf32>
    %78 = vector.multi_reduction <maximumf>, %77, %cst_35 [2] : vector<64x8x8xf32> to vector<64x8xf32>
    %79 = vector.shape_cast %78 : vector<64x8xf32> to vector<64x8x1xf32>
    %80 = vector.broadcast %79 : vector<64x8x1xf32> to vector<64x8x8xf32>
    %81 = arith.subf %77, %80 : vector<64x8x8xf32>
    %82 = math.exp %81 : vector<64x8x8xf32>
    %cst_36 = arith.constant dense<0.000000e+00> : vector<64x8xf32>
    %83 = vector.multi_reduction <add>, %82, %cst_36 [2] : vector<64x8x8xf32> to vector<64x8xf32>
    %84 = vector.shape_cast %83 : vector<64x8xf32> to vector<64x8x1xf32>
    %85 = vector.broadcast %84 : vector<64x8x1xf32> to vector<64x8x8xf32>
    %86 = arith.divf %82, %85 : vector<64x8x8xf32>
    "tpu.trace_start"() <{level = 10 : i32, message = "gqk,gkd->gqd"}> : () -> ()
    %cst_37 = arith.constant dense<0.000000e+00> : vector<64x8x8xf32>
    %87 = tpu.matmul %86, %74, %cst_37 {dimension_numbers = #tpu.dot_dimension_numbers<[2], [1], [1], [2], [0, 0, 0, 1, 1, 2], [0], [0]>} : vector<64x8x8xf32>, vector<64x8x8xf32>, vector<64x8x8xf32> -> vector<64x8x8xf32>
    "tpu.trace_stop"() : () -> ()
    %88 = vector.shape_cast %87 : vector<64x8x8xf32> to vector<4x128x8xf32>
    %89 = vector.extract_strided_slice %88 {offsets = [0, 0, 0], sizes = [1, 128, 8], strides = [1, 1, 1]} : vector<4x128x8xf32> to vector<1x128x8xf32>
    %90 = vector.shape_cast %89 : vector<1x128x8xf32> to vector<128x8xf32>
    %91 = vector.extract_strided_slice %88 {offsets = [1, 0, 0], sizes = [1, 128, 8], strides = [1, 1, 1]} : vector<4x128x8xf32> to vector<1x128x8xf32>
    %92 = vector.shape_cast %91 : vector<1x128x8xf32> to vector<128x8xf32>
    %93 = vector.extract_strided_slice %88 {offsets = [2, 0, 0], sizes = [1, 128, 8], strides = [1, 1, 1]} : vector<4x128x8xf32> to vector<1x128x8xf32>
    %94 = vector.shape_cast %93 : vector<1x128x8xf32> to vector<128x8xf32>
    %95 = vector.extract_strided_slice %88 {offsets = [3, 0, 0], sizes = [1, 128, 8], strides = [1, 1, 1]} : vector<4x128x8xf32> to vector<1x128x8xf32>
    %96 = vector.shape_cast %95 : vector<1x128x8xf32> to vector<128x8xf32>
    %97 = tpu.concatenate %90, %92, %94, %96 in 1 : vector<128x8xf32>, vector<128x8xf32>, vector<128x8xf32>, vector<128x8xf32> -> vector<128x32xf32>
    %cst_38 = arith.constant dense<0.000000e+00> : vector<128x32xf32>
    %98 = tpu.matmul %97, %18, %cst_38 {dimension_numbers = #tpu.dot_dimension_numbers<[1], [0], [0], [1], [0, 0, 1, 1], [], []>} : vector<128x32xf32>, vector<32x32xf32>, vector<128x32xf32> -> vector<128x32xf32>
    %99 = vector.broadcast %26 : vector<1x32xf32> to vector<128x32xf32>
    %100 = arith.addf %98, %99 : vector<128x32xf32>
    %101 = arith.addf %14, %100 : vector<128x32xf32>
    %cst_39 = arith.constant dense<0.000000e+00> : vector<128xf32>
    %102 = vector.multi_reduction <add>, %101, %cst_39 [1] : vector<128x32xf32> to vector<128xf32>
    %103 = vector.shape_cast %102 : vector<128xf32> to vector<128x1xf32>
    %cst_40 = arith.constant 3.200000e+01 : f32
    %104 = vector.broadcast %cst_40 : f32 to vector<128x1xf32>
    %105 = arith.divf %103, %104 : vector<128x1xf32>
    %106 = vector.broadcast %105 : vector<128x1xf32> to vector<128x32xf32>
    %107 = arith.subf %101, %106 : vector<128x32xf32>
    %108 = arith.mulf %107, %107 : vector<128x32xf32>
    %cst_41 = arith.constant dense<0.000000e+00> : vector<128xf32>
    %109 = vector.multi_reduction <add>, %108, %cst_41 [1] : vector<128x32xf32> to vector<128xf32>
    %110 = vector.shape_cast %109 : vector<128xf32> to vector<128x1xf32>
    %cst_42 = arith.constant 3.200000e+01 : f32
    %111 = vector.broadcast %cst_42 : f32 to vector<128x1xf32>
    %112 = arith.divf %110, %111 : vector<128x1xf32>
    %113 = vector.broadcast %105 : vector<128x1xf32> to vector<128x32xf32>
    %114 = arith.subf %101, %113 : vector<128x32xf32>
    %cst_43 = arith.constant 9.99999974E-6 : f32
    %115 = vector.broadcast %cst_43 : f32 to vector<128x1xf32>
    %116 = arith.addf %112, %115 : vector<128x1xf32>
    %117 = math.rsqrt %116 : vector<128x1xf32>
    %118 = vector.broadcast %117 : vector<128x1xf32> to vector<128x32xf32>
    %119 = arith.mulf %114, %118 : vector<128x32xf32>
    %120 = vector.broadcast %28 : vector<1x32xf32> to vector<128x32xf32>
    %121 = arith.mulf %119, %120 : vector<128x32xf32>
    %122 = vector.broadcast %30 : vector<1x32xf32> to vector<128x32xf32>
    %123 = arith.addf %121, %122 : vector<128x32xf32>
    %cst_44 = arith.constant dense<0.000000e+00> : vector<128x64xf32>
    %124 = tpu.matmul %123, %20, %cst_44 {dimension_numbers = #tpu.dot_dimension_numbers<[1], [0], [0], [1], [0, 0, 1, 1], [], []>} : vector<128x32xf32>, vector<32x64xf32>, vector<128x64xf32> -> vector<128x64xf32>
    %125 = vector.broadcast %32 : vector<1x64xf32> to vector<128x64xf32>
    %126 = arith.addf %124, %125 : vector<128x64xf32>
    %cst_45 = arith.constant 0.000000e+00 : f32
    %127 = vector.broadcast %cst_45 : f32 to vector<128x64xf32>
    %128 = arith.maximumf %126, %127 : vector<128x64xf32>
    %cst_46 = arith.constant dense<0.000000e+00> : vector<128x32xf32>
    %129 = tpu.matmul %128, %22, %cst_46 {dimension_numbers = #tpu.dot_dimension_numbers<[1], [0], [0], [1], [0, 0, 1, 1], [], []>} : vector<128x64xf32>, vector<64x32xf32>, vector<128x32xf32> -> vector<128x32xf32>
    %130 = vector.broadcast %34 : vector<1x32xf32> to vector<128x32xf32>
    %131 = arith.addf %129, %130 : vector<128x32xf32>
    %132 = arith.addf %123, %131 : vector<128x32xf32>
    %cst_47 = arith.constant dense<0.000000e+00> : vector<128xf32>
    %133 = vector.multi_reduction <add>, %132, %cst_47 [1] : vector<128x32xf32> to vector<128xf32>
    %134 = vector.shape_cast %133 : vector<128xf32> to vector<128x1xf32>
    %cst_48 = arith.constant 3.200000e+01 : f32
    %135 = vector.broadcast %cst_48 : f32 to vector<128x1xf32>
    %136 = arith.divf %134, %135 : vector<128x1xf32>
    %137 = vector.broadcast %136 : vector<128x1xf32> to vector<128x32xf32>
    %138 = arith.subf %132, %137 : vector<128x32xf32>
    %139 = arith.mulf %138, %138 : vector<128x32xf32>
    %cst_49 = arith.constant dense<0.000000e+00> : vector<128xf32>
    %140 = vector.multi_reduction <add>, %139, %cst_49 [1] : vector<128x32xf32> to vector<128xf32>
    %141 = vector.shape_cast %140 : vector<128xf32> to vector<128x1xf32>
    %cst_50 = arith.constant 3.200000e+01 : f32
    %142 = vector.broadcast %cst_50 : f32 to vector<128x1xf32>
    %143 = arith.divf %141, %142 : vector<128x1xf32>
    %144 = vector.broadcast %136 : vector<128x1xf32> to vector<128x32xf32>
    %145 = arith.subf %132, %144 : vector<128x32xf32>
    %cst_51 = arith.constant 9.99999974E-6 : f32
    %146 = vector.broadcast %cst_51 : f32 to vector<128x1xf32>
    %147 = arith.addf %143, %146 : vector<128x1xf32>
    %148 = math.rsqrt %147 : vector<128x1xf32>
    %149 = vector.broadcast %148 : vector<128x1xf32> to vector<128x32xf32>
    %150 = arith.mulf %145, %149 : vector<128x32xf32>
    %151 = vector.broadcast %36 : vector<1x32xf32> to vector<128x32xf32>
    %152 = arith.mulf %150, %151 : vector<128x32xf32>
    %153 = vector.broadcast %38 : vector<1x32xf32> to vector<128x32xf32>
    %154 = arith.addf %152, %153 : vector<128x32xf32>
    %c1_52 = arith.constant 1 : index
    %c0_53 = arith.constant 0 : index
    %c0_54 = arith.constant 0 : index
    %155 = vector.load %arg2[%c1_52, %c0_53, %c0_54] : memref<2x160x128xf32, #tpu.memory_space<vmem>>, vector<1x32x96xf32>
    %156 = vector.shape_cast %155 : vector<1x32x96xf32> to vector<32x96xf32>
    %c1_55 = arith.constant 1 : index
    %c32_56 = arith.constant 32 : index
    %c0_57 = arith.constant 0 : index
    %157 = vector.load %arg2[%c1_55, %c32_56, %c0_57] : memref<2x160x128xf32, #tpu.memory_space<vmem>>, vector<1x32x32xf32>
    %158 = vector.shape_cast %157 : vector<1x32x32xf32> to vector<32x32xf32>
    %c1_58 = arith.constant 1 : index
    %c64_59 = arith.constant 64 : index
    %c0_60 = arith.constant 0 : index
    %159 = vector.load %arg2[%c1_58, %c64_59, %c0_60] : memref<2x160x128xf32, #tpu.memory_space<vmem>>, vector<1x32x64xf32>
    %160 = vector.shape_cast %159 : vector<1x32x64xf32> to vector<32x64xf32>
    %c1_61 = arith.constant 1 : index
    %c96_62 = arith.constant 96 : index
    %c0_63 = arith.constant 0 : index
    %161 = vector.load %arg2[%c1_61, %c96_62, %c0_63] : memref<2x160x128xf32, #tpu.memory_space<vmem>>, vector<1x64x32xf32>
    %162 = vector.shape_cast %161 : vector<1x64x32xf32> to vector<64x32xf32>
    %c1_64 = arith.constant 1 : index
    %c0_65 = arith.constant 0 : index
    %c0_66 = arith.constant 0 : index
    %163 = vector.load %arg3[%c1_64, %c0_65, %c0_66] : memref<2x8x128xf32, #tpu.memory_space<vmem>>, vector<1x1x96xf32>
    %164 = vector.shape_cast %163 : vector<1x1x96xf32> to vector<1x96xf32>
    %c1_67 = arith.constant 1 : index
    %c1_68 = arith.constant 1 : index
    %c0_69 = arith.constant 0 : index
    %165 = vector.load %arg3[%c1_67, %c1_68, %c0_69] : memref<2x8x128xf32, #tpu.memory_space<vmem>>, vector<1x1x32xf32>
    %166 = vector.shape_cast %165 : vector<1x1x32xf32> to vector<1x32xf32>
    %c1_70 = arith.constant 1 : index
    %c2_71 = arith.constant 2 : index
    %c0_72 = arith.constant 0 : index
    %167 = vector.load %arg3[%c1_70, %c2_71, %c0_72] : memref<2x8x128xf32, #tpu.memory_space<vmem>>, vector<1x1x32xf32>
    %168 = vector.shape_cast %167 : vector<1x1x32xf32> to vector<1x32xf32>
    %c1_73 = arith.constant 1 : index
    %c3_74 = arith.constant 3 : index
    %c0_75 = arith.constant 0 : index
    %169 = vector.load %arg3[%c1_73, %c3_74, %c0_75] : memref<2x8x128xf32, #tpu.memory_space<vmem>>, vector<1x1x32xf32>
    %170 = vector.shape_cast %169 : vector<1x1x32xf32> to vector<1x32xf32>
    %c1_76 = arith.constant 1 : index
    %c4_77 = arith.constant 4 : index
    %c0_78 = arith.constant 0 : index
    %171 = vector.load %arg3[%c1_76, %c4_77, %c0_78] : memref<2x8x128xf32, #tpu.memory_space<vmem>>, vector<1x1x64xf32>
    %172 = vector.shape_cast %171 : vector<1x1x64xf32> to vector<1x64xf32>
    %c1_79 = arith.constant 1 : index
    %c5_80 = arith.constant 5 : index
    %c0_81 = arith.constant 0 : index
    %173 = vector.load %arg3[%c1_79, %c5_80, %c0_81] : memref<2x8x128xf32, #tpu.memory_space<vmem>>, vector<1x1x32xf32>
    %174 = vector.shape_cast %173 : vector<1x1x32xf32> to vector<1x32xf32>
    %c1_82 = arith.constant 1 : index
    %c6_83 = arith.constant 6 : index
    %c0_84 = arith.constant 0 : index
    %175 = vector.load %arg3[%c1_82, %c6_83, %c0_84] : memref<2x8x128xf32, #tpu.memory_space<vmem>>, vector<1x1x32xf32>
    %176 = vector.shape_cast %175 : vector<1x1x32xf32> to vector<1x32xf32>
    %c1_85 = arith.constant 1 : index
    %c7_86 = arith.constant 7 : index
    %c0_87 = arith.constant 0 : index
    %177 = vector.load %arg3[%c1_85, %c7_86, %c0_87] : memref<2x8x128xf32, #tpu.memory_space<vmem>>, vector<1x1x32xf32>
    %178 = vector.shape_cast %177 : vector<1x1x32xf32> to vector<1x32xf32>
    %cst_88 = arith.constant dense<0.000000e+00> : vector<128x96xf32>
    %179 = tpu.matmul %154, %156, %cst_88 {dimension_numbers = #tpu.dot_dimension_numbers<[1], [0], [0], [1], [0, 0, 1, 1], [], []>} : vector<128x32xf32>, vector<32x96xf32>, vector<128x96xf32> -> vector<128x96xf32>
    %180 = vector.broadcast %164 : vector<1x96xf32> to vector<128x96xf32>
    %181 = arith.addf %179, %180 : vector<128x96xf32>
    %182 = vector.extract_strided_slice %181 {offsets = [0, 0], sizes = [128, 32], strides = [1, 1]} : vector<128x96xf32> to vector<128x32xf32>
    %183 = vector.extract_strided_slice %182 {offsets = [0, 0], sizes = [128, 8], strides = [1, 1]} : vector<128x32xf32> to vector<128x8xf32>
    %184 = vector.extract_strided_slice %182 {offsets = [0, 8], sizes = [128, 8], strides = [1, 1]} : vector<128x32xf32> to vector<128x8xf32>
    %185 = vector.extract_strided_slice %182 {offsets = [0, 16], sizes = [128, 8], strides = [1, 1]} : vector<128x32xf32> to vector<128x8xf32>
    %186 = vector.extract_strided_slice %182 {offsets = [0, 24], sizes = [128, 8], strides = [1, 1]} : vector<128x32xf32> to vector<128x8xf32>
    %187 = vector.shape_cast %183 : vector<128x8xf32> to vector<1x128x8xf32>
    %188 = vector.shape_cast %184 : vector<128x8xf32> to vector<1x128x8xf32>
    %189 = vector.shape_cast %185 : vector<128x8xf32> to vector<1x128x8xf32>
    %190 = vector.shape_cast %186 : vector<128x8xf32> to vector<1x128x8xf32>
    %191 = tpu.concatenate %187, %188, %189, %190 in 0 : vector<1x128x8xf32>, vector<1x128x8xf32>, vector<1x128x8xf32>, vector<1x128x8xf32> -> vector<4x128x8xf32>
    %192 = vector.shape_cast %191 : vector<4x128x8xf32> to vector<64x8x8xf32>
    %193 = vector.extract_strided_slice %181 {offsets = [0, 32], sizes = [128, 32], strides = [1, 1]} : vector<128x96xf32> to vector<128x32xf32>
    %194 = vector.extract_strided_slice %193 {offsets = [0, 0], sizes = [128, 8], strides = [1, 1]} : vector<128x32xf32> to vector<128x8xf32>
    %195 = vector.extract_strided_slice %193 {offsets = [0, 8], sizes = [128, 8], strides = [1, 1]} : vector<128x32xf32> to vector<128x8xf32>
    %196 = vector.extract_strided_slice %193 {offsets = [0, 16], sizes = [128, 8], strides = [1, 1]} : vector<128x32xf32> to vector<128x8xf32>
    %197 = vector.extract_strided_slice %193 {offsets = [0, 24], sizes = [128, 8], strides = [1, 1]} : vector<128x32xf32> to vector<128x8xf32>
    %198 = vector.shape_cast %194 : vector<128x8xf32> to vector<1x128x8xf32>
    %199 = vector.shape_cast %195 : vector<128x8xf32> to vector<1x128x8xf32>
    %200 = vector.shape_cast %196 : vector<128x8xf32> to vector<1x128x8xf32>
    %201 = vector.shape_cast %197 : vector<128x8xf32> to vector<1x128x8xf32>
    %202 = tpu.concatenate %198, %199, %200, %201 in 0 : vector<1x128x8xf32>, vector<1x128x8xf32>, vector<1x128x8xf32>, vector<1x128x8xf32> -> vector<4x128x8xf32>
    %203 = vector.shape_cast %202 : vector<4x128x8xf32> to vector<64x8x8xf32>
    %204 = vector.extract_strided_slice %181 {offsets = [0, 64], sizes = [128, 32], strides = [1, 1]} : vector<128x96xf32> to vector<128x32xf32>
    %205 = vector.extract_strided_slice %204 {offsets = [0, 0], sizes = [128, 8], strides = [1, 1]} : vector<128x32xf32> to vector<128x8xf32>
    %206 = vector.extract_strided_slice %204 {offsets = [0, 8], sizes = [128, 8], strides = [1, 1]} : vector<128x32xf32> to vector<128x8xf32>
    %207 = vector.extract_strided_slice %204 {offsets = [0, 16], sizes = [128, 8], strides = [1, 1]} : vector<128x32xf32> to vector<128x8xf32>
    %208 = vector.extract_strided_slice %204 {offsets = [0, 24], sizes = [128, 8], strides = [1, 1]} : vector<128x32xf32> to vector<128x8xf32>
    %209 = vector.shape_cast %205 : vector<128x8xf32> to vector<1x128x8xf32>
    %210 = vector.shape_cast %206 : vector<128x8xf32> to vector<1x128x8xf32>
    %211 = vector.shape_cast %207 : vector<128x8xf32> to vector<1x128x8xf32>
    %212 = vector.shape_cast %208 : vector<128x8xf32> to vector<1x128x8xf32>
    %213 = tpu.concatenate %209, %210, %211, %212 in 0 : vector<1x128x8xf32>, vector<1x128x8xf32>, vector<1x128x8xf32>, vector<1x128x8xf32> -> vector<4x128x8xf32>
    %214 = vector.shape_cast %213 : vector<4x128x8xf32> to vector<64x8x8xf32>
    "tpu.trace_start"() <{level = 10 : i32, message = "gqd,gkd->gqk"}> : () -> ()
    %cst_89 = arith.constant dense<0.000000e+00> : vector<64x8x8xf32>
    %215 = tpu.matmul %192, %203, %cst_89 {dimension_numbers = #tpu.dot_dimension_numbers<[2], [2], [1], [1], [0, 0, 0, 1, 1, 1], [0], [0]>} : vector<64x8x8xf32>, vector<64x8x8xf32>, vector<64x8x8xf32> -> vector<64x8x8xf32>
    "tpu.trace_stop"() : () -> ()
    %cst_90 = arith.constant 0.353553385 : f32
    %216 = vector.broadcast %cst_90 : f32 to vector<64x8x8xf32>
    %217 = arith.mulf %215, %216 : vector<64x8x8xf32>
    %cst_91 = arith.constant dense<0xFF800000> : vector<64x8xf32>
    %218 = vector.multi_reduction <maximumf>, %217, %cst_91 [2] : vector<64x8x8xf32> to vector<64x8xf32>
    %219 = vector.shape_cast %218 : vector<64x8xf32> to vector<64x8x1xf32>
    %220 = vector.broadcast %219 : vector<64x8x1xf32> to vector<64x8x8xf32>
    %221 = arith.subf %217, %220 : vector<64x8x8xf32>
    %222 = math.exp %221 : vector<64x8x8xf32>
    %cst_92 = arith.constant dense<0.000000e+00> : vector<64x8xf32>
    %223 = vector.multi_reduction <add>, %222, %cst_92 [2] : vector<64x8x8xf32> to vector<64x8xf32>
    %224 = vector.shape_cast %223 : vector<64x8xf32> to vector<64x8x1xf32>
    %225 = vector.broadcast %224 : vector<64x8x1xf32> to vector<64x8x8xf32>
    %226 = arith.divf %222, %225 : vector<64x8x8xf32>
    "tpu.trace_start"() <{level = 10 : i32, message = "gqk,gkd->gqd"}> : () -> ()
    %cst_93 = arith.constant dense<0.000000e+00> : vector<64x8x8xf32>
    %227 = tpu.matmul %226, %214, %cst_93 {dimension_numbers = #tpu.dot_dimension_numbers<[2], [1], [1], [2], [0, 0, 0, 1, 1, 2], [0], [0]>} : vector<64x8x8xf32>, vector<64x8x8xf32>, vector<64x8x8xf32> -> vector<64x8x8xf32>
    "tpu.trace_stop"() : () -> ()
    %228 = vector.shape_cast %227 : vector<64x8x8xf32> to vector<4x128x8xf32>
    %229 = vector.extract_strided_slice %228 {offsets = [0, 0, 0], sizes = [1, 128, 8], strides = [1, 1, 1]} : vector<4x128x8xf32> to vector<1x128x8xf32>
    %230 = vector.shape_cast %229 : vector<1x128x8xf32> to vector<128x8xf32>
    %231 = vector.extract_strided_slice %228 {offsets = [1, 0, 0], sizes = [1, 128, 8], strides = [1, 1, 1]} : vector<4x128x8xf32> to vector<1x128x8xf32>
    %232 = vector.shape_cast %231 : vector<1x128x8xf32> to vector<128x8xf32>
    %233 = vector.extract_strided_slice %228 {offsets = [2, 0, 0], sizes = [1, 128, 8], strides = [1, 1, 1]} : vector<4x128x8xf32> to vector<1x128x8xf32>
    %234 = vector.shape_cast %233 : vector<1x128x8xf32> to vector<128x8xf32>
    %235 = vector.extract_strided_slice %228 {offsets = [3, 0, 0], sizes = [1, 128, 8], strides = [1, 1, 1]} : vector<4x128x8xf32> to vector<1x128x8xf32>
    %236 = vector.shape_cast %235 : vector<1x128x8xf32> to vector<128x8xf32>
    %237 = tpu.concatenate %230, %232, %234, %236 in 1 : vector<128x8xf32>, vector<128x8xf32>, vector<128x8xf32>, vector<128x8xf32> -> vector<128x32xf32>
    %cst_94 = arith.constant dense<0.000000e+00> : vector<128x32xf32>
    %238 = tpu.matmul %237, %158, %cst_94 {dimension_numbers = #tpu.dot_dimension_numbers<[1], [0], [0], [1], [0, 0, 1, 1], [], []>} : vector<128x32xf32>, vector<32x32xf32>, vector<128x32xf32> -> vector<128x32xf32>
    %239 = vector.broadcast %166 : vector<1x32xf32> to vector<128x32xf32>
    %240 = arith.addf %238, %239 : vector<128x32xf32>
    %241 = arith.addf %154, %240 : vector<128x32xf32>
    %cst_95 = arith.constant dense<0.000000e+00> : vector<128xf32>
    %242 = vector.multi_reduction <add>, %241, %cst_95 [1] : vector<128x32xf32> to vector<128xf32>
    %243 = vector.shape_cast %242 : vector<128xf32> to vector<128x1xf32>
    %cst_96 = arith.constant 3.200000e+01 : f32
    %244 = vector.broadcast %cst_96 : f32 to vector<128x1xf32>
    %245 = arith.divf %243, %244 : vector<128x1xf32>
    %246 = vector.broadcast %245 : vector<128x1xf32> to vector<128x32xf32>
    %247 = arith.subf %241, %246 : vector<128x32xf32>
    %248 = arith.mulf %247, %247 : vector<128x32xf32>
    %cst_97 = arith.constant dense<0.000000e+00> : vector<128xf32>
    %249 = vector.multi_reduction <add>, %248, %cst_97 [1] : vector<128x32xf32> to vector<128xf32>
    %250 = vector.shape_cast %249 : vector<128xf32> to vector<128x1xf32>
    %cst_98 = arith.constant 3.200000e+01 : f32
    %251 = vector.broadcast %cst_98 : f32 to vector<128x1xf32>
    %252 = arith.divf %250, %251 : vector<128x1xf32>
    %253 = vector.broadcast %245 : vector<128x1xf32> to vector<128x32xf32>
    %254 = arith.subf %241, %253 : vector<128x32xf32>
    %cst_99 = arith.constant 9.99999974E-6 : f32
    %255 = vector.broadcast %cst_99 : f32 to vector<128x1xf32>
    %256 = arith.addf %252, %255 : vector<128x1xf32>
    %257 = math.rsqrt %256 : vector<128x1xf32>
    %258 = vector.broadcast %257 : vector<128x1xf32> to vector<128x32xf32>
    %259 = arith.mulf %254, %258 : vector<128x32xf32>
    %260 = vector.broadcast %168 : vector<1x32xf32> to vector<128x32xf32>
    %261 = arith.mulf %259, %260 : vector<128x32xf32>
    %262 = vector.broadcast %170 : vector<1x32xf32> to vector<128x32xf32>
    %263 = arith.addf %261, %262 : vector<128x32xf32>
    %cst_100 = arith.constant dense<0.000000e+00> : vector<128x64xf32>
    %264 = tpu.matmul %263, %160, %cst_100 {dimension_numbers = #tpu.dot_dimension_numbers<[1], [0], [0], [1], [0, 0, 1, 1], [], []>} : vector<128x32xf32>, vector<32x64xf32>, vector<128x64xf32> -> vector<128x64xf32>
    %265 = vector.broadcast %172 : vector<1x64xf32> to vector<128x64xf32>
    %266 = arith.addf %264, %265 : vector<128x64xf32>
    %cst_101 = arith.constant 0.000000e+00 : f32
    %267 = vector.broadcast %cst_101 : f32 to vector<128x64xf32>
    %268 = arith.maximumf %266, %267 : vector<128x64xf32>
    %cst_102 = arith.constant dense<0.000000e+00> : vector<128x32xf32>
    %269 = tpu.matmul %268, %162, %cst_102 {dimension_numbers = #tpu.dot_dimension_numbers<[1], [0], [0], [1], [0, 0, 1, 1], [], []>} : vector<128x64xf32>, vector<64x32xf32>, vector<128x32xf32> -> vector<128x32xf32>
    %270 = vector.broadcast %174 : vector<1x32xf32> to vector<128x32xf32>
    %271 = arith.addf %269, %270 : vector<128x32xf32>
    %272 = arith.addf %263, %271 : vector<128x32xf32>
    %cst_103 = arith.constant dense<0.000000e+00> : vector<128xf32>
    %273 = vector.multi_reduction <add>, %272, %cst_103 [1] : vector<128x32xf32> to vector<128xf32>
    %274 = vector.shape_cast %273 : vector<128xf32> to vector<128x1xf32>
    %cst_104 = arith.constant 3.200000e+01 : f32
    %275 = vector.broadcast %cst_104 : f32 to vector<128x1xf32>
    %276 = arith.divf %274, %275 : vector<128x1xf32>
    %277 = vector.broadcast %276 : vector<128x1xf32> to vector<128x32xf32>
    %278 = arith.subf %272, %277 : vector<128x32xf32>
    %279 = arith.mulf %278, %278 : vector<128x32xf32>
    %cst_105 = arith.constant dense<0.000000e+00> : vector<128xf32>
    %280 = vector.multi_reduction <add>, %279, %cst_105 [1] : vector<128x32xf32> to vector<128xf32>
    %281 = vector.shape_cast %280 : vector<128xf32> to vector<128x1xf32>
    %cst_106 = arith.constant 3.200000e+01 : f32
    %282 = vector.broadcast %cst_106 : f32 to vector<128x1xf32>
    %283 = arith.divf %281, %282 : vector<128x1xf32>
    %284 = vector.broadcast %276 : vector<128x1xf32> to vector<128x32xf32>
    %285 = arith.subf %272, %284 : vector<128x32xf32>
    %cst_107 = arith.constant 9.99999974E-6 : f32
    %286 = vector.broadcast %cst_107 : f32 to vector<128x1xf32>
    %287 = arith.addf %283, %286 : vector<128x1xf32>
    %288 = math.rsqrt %287 : vector<128x1xf32>
    %289 = vector.broadcast %288 : vector<128x1xf32> to vector<128x32xf32>
    %290 = arith.mulf %285, %289 : vector<128x32xf32>
    %291 = vector.broadcast %176 : vector<1x32xf32> to vector<128x32xf32>
    %292 = arith.mulf %290, %291 : vector<128x32xf32>
    %293 = vector.broadcast %178 : vector<1x32xf32> to vector<128x32xf32>
    %294 = arith.addf %292, %293 : vector<128x32xf32>
    %295 = vector.shape_cast %294 : vector<128x32xf32> to vector<16x8x32xf32>
    %cst_108 = arith.constant dense<0.000000e+00> : vector<16x32xf32>
    %296 = vector.multi_reduction <add>, %295, %cst_108 [1] : vector<16x8x32xf32> to vector<16x32xf32>
    %cst_109 = arith.constant 8.000000e+00 : f32
    %297 = vector.broadcast %cst_109 : f32 to vector<16x32xf32>
    %298 = arith.divf %296, %297 : vector<16x32xf32>
    %c8 = arith.constant 8 : index
    %c0_110 = arith.constant 0 : index
    %299 = vector.load %arg4[%c8, %c0_110] : memref<40x128xf32, #tpu.memory_space<vmem>>, vector<32x2xf32>
    %c1_111 = arith.constant 1 : index
    %c0_112 = arith.constant 0 : index
    %300 = vector.load %arg4[%c1_111, %c0_112] : memref<40x128xf32, #tpu.memory_space<vmem>>, vector<1x2xf32>
    %cst_113 = arith.constant dense<0.000000e+00> : vector<16x2xf32>
    %301 = tpu.matmul %298, %299, %cst_113 {dimension_numbers = #tpu.dot_dimension_numbers<[1], [0], [0], [1], [0, 0, 1, 1], [], []>} : vector<16x32xf32>, vector<32x2xf32>, vector<16x2xf32> -> vector<16x2xf32>
    %302 = vector.broadcast %300 : vector<1x2xf32> to vector<16x2xf32>
    %303 = arith.addf %301, %302 : vector<16x2xf32>
    %c0_114 = arith.constant 0 : index
    %c0_115 = arith.constant 0 : index
    %304 = vector.load %arg5[%c0_114, %c0_115] : memref<16x2xf32, #tpu.memory_space<vmem>>, vector<16x2xf32>
    tpu.vector_store %arg5[%c0_114, %c0_115], %303 {strides = array<i32>} : memref<16x2xf32, #tpu.memory_space<vmem>>, vector<16x2xf32>,
    return
  }
  func.func @transform_0(%arg0: i32) -> (i32, i32) {
    %c0_i32 = arith.constant 0 : i32
    %c0_i32_0 = arith.constant 0 : i32
    return %arg0, %c0_i32 : i32, i32
  }
  func.func @transform_1(%arg0: i32) -> (i32, i32, i32) {
    %c0_i32 = arith.constant 0 : i32
    %c0_i32_0 = arith.constant 0 : i32
    %c0_i32_1 = arith.constant 0 : i32
    %c0_i32_2 = arith.constant 0 : i32
    return %c0_i32, %c0_i32_0, %c0_i32_1 : i32, i32, i32
  }
  func.func @transform_2(%arg0: i32) -> (i32, i32, i32) {
    %c0_i32 = arith.constant 0 : i32
    %c0_i32_0 = arith.constant 0 : i32
    %c0_i32_1 = arith.constant 0 : i32
    %c0_i32_2 = arith.constant 0 : i32
    return %c0_i32, %c0_i32_0, %c0_i32_1 : i32, i32, i32
  }
  func.func @transform_3(%arg0: i32) -> (i32, i32) {
    %c0_i32 = arith.constant 0 : i32
    %c0_i32_0 = arith.constant 0 : i32
    %c0_i32_1 = arith.constant 0 : i32
    return %c0_i32, %c0_i32_0 : i32, i32
  }
  func.func @transform_4(%arg0: i32) -> (i32, i32) {
    %c0_i32 = arith.constant 0 : i32
    %c0_i32_0 = arith.constant 0 : i32
    return %arg0, %c0_i32 : i32, i32
  }
}

</mosaic_0001>

<bundles_post_ra>
// kernel: tpu_custom_call.1
= control target key start
LH: loop header
LB: loop body
LE: loop exit
PB: predicated region body
PF: predicated region fallthrough
CT: control target
= control target key end

     0   :  { %9 = vsyncpa [#allocation3], 0  ;;  %s28870_s15 = smov 0   ;;  %s35137_s0 = inlined_call_operand.vmem [shape: f32[256,2], index: 0, kind: input, shape index: {}]   ;;  %s35138_s1 = inlined_call_operand.hbm [shape: f32[2,160,128], index: 1, kind: input, shape index: {}]   ;;  %s35139_s2 = inlined_call_operand.vmem [shape: f32[2,8,128], index: 2, kind: input, shape index: {}]   ;;  %s35140_s3 = inlined_call_operand.vmem [shape: f32[40,128], index: 3, kind: input, shape index: {}]   ;;  %s35141_s4 = inlined_call_operand.vmem [shape: f32[32,2], index: 4, kind: output, shape index: {}]  }
   0x1 LB: > { %s28876_s16 = sadd.s32 4294967295, %s28828_s15   ;;  %p25206_p0 = scmp.ge.s32.totalorder %s28828_s15, 1  ;;  %s28828_s15 = sphi %s28870_s15, %s15_s15  }
   0x2   : > { %p135_p1 = scmp.lt.s32.totalorder %s28828_s15, 3  ;;  %s28830_s17 = smov [#allocation2]  }
   0x3   : > { %s147_s18 = sshll.u32 %s28830_s17, 4  ;;  %p35142_p3 = scmp.eq.s32.totalorder %s28876_s16, 0  ;;  %s148_s18 = int_to_ptr.vmem [resolvable:$true] %s147_s18 }
   0x4   : > { %p28880_p2 = pnand %p25206_p0, %p135_p1  ;;  %s28790_s23 = scalar_lea.hbm %s35138_s1, 5120 }
   0x5   : > { %p28791_p6 = scmp.ne.s32.totalorder %s35138_s1, %s28790_s23  ;;  %p28797_p10 = scmp.lt.u32.totalorder %s28790_s23, %s35138_s1 }
   0x6   : > { %s35307_s19 = scalar_select %p28880_p2, 1, 0 }
   0x7   : > { %p28104_p4 = pneg %p28880_p2 }
   0x9   : > { %p28889_p5 = pnand %p35142_p3, %p28104_p4 }
   0xb   : > { %p28792_p7 = pneg %p28889_p5 }
   0xd   : > { %p28793_p8 = pnand %p28792_p7, %p28791_p6 }
   0xf   : > { %p28794_p9 = pneg %p28793_p8 }
  0x11   : > { %p28799_p11 = pnand %p28797_p10, %p28794_p9 }
  0x13   : > { %28802 = shalt.err (!%p28799_p11)
}
  0x14   : > { %s28803_s28 = scalar_lea.vmem %s148_s18, 5120  ;;  %p28811_p1 = scmp.lt.s32.totalorder %s148_s18, %s148_s18 }
  0x15   : > { %p28804_p12 = scmp.ne.s32.totalorder %s148_s18, %s28803_s28  ;;  %p28812_p4 = scmp.lt.s32.totalorder %s28803_s28, %s28803_s28 }
  0x17   : > { %p28806_p13 = pnand %p28804_p12, %p28792_p7  ;;  %p28813_p3 = por %p28812_p4, %p28811_p1 }
  0x19   : > { %p28807_p0 = pneg %p28806_p13 }
  0x1b   : > { %p28814_p2 = pnand %p28813_p3, %p28807_p0 }
  0x1d   : > { %28817 = shalt.err (!%p28814_p2)
}
  0x1e   : > { %s28831_s29 = smov 128   ;;  %s28832_s30 = smov 8  }
  0x1f   : > { %28107 = dma.hbm_to_vmem [thread:$0]  (!%p28889_p5), %s35138_s1, 5120, %s148_s18, [#allocation3], %s28831_s29, %s28831_s29, %s28832_s30  }
  0x20   : > { %p35309_p6 = scmp.ne.s32.totalorder %s35307_s19, 0 }
  0x22   : > { %178 = sbr.rel (%p35309_p6) target bundleno = 6976 (0x1b40), region = 36 }
  0x29   : > { %p35310_p8 = scmp.eq.s32.totalorder %s28876_s16, 0 }
  0x2b   : > { %28823 = dma.done.wait (%p35310_p8), [#allocation3], 5120   ;;  %p35311_p7 = pmov %p35310_p8 }
  0x2c   : > { %s25211_s7 = sshll.u32 %s28876_s16, 4  ;;  %v28833_v0 = vmov 1   ;;  %v28834_v1 = vmov 0   ;;  %v455_v4 = vld [vmem:[#allocation2] sm:$0xff]  ;;  %v456_v6 = vld [vmem:[#allocation2 + $0x8] sm:$0xff]  ;;  %v457_v7 = vld [vmem:[#allocation2 + $0x10] sm:$0xff] }
  0x2d   : > { %28825 = vsyncadd (%p35311_p7), [#allocation3], 4294962176  ;;  %28134 = vset.pattern.permute.xlu1 %v28833_v0  ;;  %28133 = vset.pattern.permute.xlu0 %v28834_v1  ;;  %p205_p2 = scmp.lt.s32.totalorder %s25211_s7, 31  ;;  %v28008_v9 = vpack.c.bf16 %v456_v6, %v455_v4  ;;  %v458_v10 = vld [vmem:[#allocation2 + $0x18] sm:$0xff]  ;;  %v28957_v24 = vld [vmem:[%s35140_s3 + $0x2] ss:$0 sm:$0xff] }
  0x2e   : > { %v28012_v11 = vpack.c.bf16 %v458_v10, %v457_v7  ;;  %v28962_v25 = vld [vmem:[%s35140_s3 + $0x3] ss:$0 sm:$0xff]  ;;  %v28967_v28 = vld [vmem:[%s35140_s3] ss:$0 sm:$0xff]  ;;  %vm487_vm0 = vcmask 261120   ;;  %vm28836_vm1 = vmmov 0  }
  0x2f   : > { %s35787_s7 = smov (!%p205_p2, %s25211_s7), 31  ;;  %28009 = vmatprep.subr.bf16.mxu0 %v28008_v9  ;;  %s28837_s22 = smov 64   ;;  %vm795_vm2 = vcmask 64512   ;;  %vm11515_vm3 = vcmask 195584   ;;  %vm11498_vm4 = vcmask 130048   ;;  %vm12211_vm5 = vcmask 523264  }
  0x30   : > { %s25212_s8 = sshll.u32 %s35787_s7, 3  ;;  %28011 = vmatpush3.bf16.msra.mxu0 %v28008_v9  ;;  %s28838_s23 = smov 120   ;;  %vm25033_vm6 = vcmask 1041409   ;;  %vm25035_vm7 = vcmask 1042434   ;;  %vm25037_vm8 = vcmask 1043459   ;;  %vm25039_vm9 = vcmask 1044484  }
  0x31   : > { %s28921_s11 = scalar_lea.vmem %s35137_s0, %s25212_s8  ;;  %28013 = vmatprep.subr.bf16.mxu0 %v28012_v11  ;;  %s28839_s24 = smov 96   ;;  %vm25041_vm10 = vcmask 1045509   ;;  %vm25043_vm11 = vcmask 1046534   ;;  %vm25045_vm12 = vcmask 1047559   ;;  %vm25133_vm13 = vcmask 15360  }
  0x32   : > { %v216_v2 = vld [vmem:[%s28921_s11] sm:$0xff]  ;;  %v217_v3 = vld [vmem:[%s28921_s11 + $0x8] sm:$0xff]  ;;  %v218_v5 = vld [vmem:[%s28921_s11 + $0x10] sm:$0xff]  ;;  %s28840_s25 = smov 112   ;;  %s28841_s26 = smov 104  }
  0x33   : > { %356 = vperm.xlu1 %28134, %v216_v2   ;;  %236 = vperm.xlu0 %28133, %v216_v2   ;;  %v219_v8 = vld [vmem:[%s28921_s11 + $0x18] sm:$0xff]  ;;  %v221_v12 = vld [vmem:[%s28921_s11 + $0x28] sm:$0xff]  ;;  %v222_v13 = vld [vmem:[%s28921_s11 + $0x30] sm:$0xff]  ;;  %s28842_s27 = smov 8   ;;  %s28843_s28 = smov 16  }
  0x34   : > { %28015 = vmatpush3.bf16.msra.mxu0 %v28012_v11  ;;  %v220_v14 = vld [vmem:[%s28921_s11 + $0x20] sm:$0xff]  ;;  %v225_v15 = vld [vmem:[%s28921_s11 + $0x48] sm:$0xff]  ;;  %v226_v16 = vld [vmem:[%s28921_s11 + $0x50] sm:$0xff]  ;;  %s28844_s29 = smov 24   ;;  %s25213_s20 = sshll.u32 %s28876_s16, 1 }
  0x35   : > { %v229_v17 = vld [vmem:[%s28921_s11 + $0x68] sm:$0xff]  ;;  %v230_v18 = vld [vmem:[%s28921_s11 + $0x70] sm:$0xff]  ;;  %v223_v19 = vld [vmem:[%s28921_s11 + $0x38] sm:$0xff]  ;;  %p211_p3 = scmp.lt.s32.totalorder %s25213_s20, 3 }
  0x36   : > { %v224_v20 = vld [vmem:[%s28921_s11 + $0x40] sm:$0xff]  ;;  %v227_v21 = vld [vmem:[%s28921_s11 + $0x58] sm:$0xff] }
  0x37   : > { %360 = vperm.xlu1 %28134, %v217_v3   ;;  %241 = vperm.xlu0 %28133, %v217_v3   ;;  %v228_v22 = vld [vmem:[%s28921_s11 + $0x60] sm:$0xff]  ;;  %v231_v23 = vld [vmem:[%s28921_s11 + $0x78] sm:$0xff]  ;;  %s35789_s20 = smov (!%p211_p3, %s25213_s20), 3 }
  0x38   : > { %s25214_s21 = sshll.u32 %s35789_s20, 3 }
  0x3b   : > { %28135 = vset.pattern.permute.xlu1 %v28834_v1  ;;  %246 = vperm.xlu0 %28133, %v218_v5  }
  0x3c   : > { %251 = vperm.xlu1 %28135, %v219_v8  }
  0x3f   : > { %261 = vperm.xlu0 %28133, %v221_v12  }
  0x40   : > { %28136 = vset.pattern.permute.xlu1 %v28833_v0 }
  0x41   : > { %368 = vperm.xlu1 %28136, %v219_v8  }
  0x43   : > { %266 = vperm.xlu0 %28133, %v222_v13  }
  0x45   : > { %28137 = vset.pattern.permute.xlu1 %v28834_v1 }
  0x46   : > { %256 = vperm.xlu1 %28137, %v220_v14  }
  0x47   : > { %281 = vperm.xlu0 %28133, %v225_v15  }
  0x4a   : > { %28138 = vset.pattern.permute.xlu1 %v28833_v0 }
  0x4b   : > { %372 = vperm.xlu1 %28138, %v220_v14   ;;  %286 = vperm.xlu0 %28133, %v226_v16  }
  0x4f   : > { %376 = vperm.xlu1 %28138, %v221_v12   ;;  %301 = vperm.xlu0 %28133, %v229_v17  }
  0x53   : > { %28139 = vset.pattern.permute.xlu1 %v28834_v1  ;;  %306 = vperm.xlu0 %28133, %v230_v18  }
  0x54   : > { %271 = vperm.xlu1 %28139, %v223_v19  }
  0x57   : > { %28147 = vset.pattern.permute.xlu0 %v28833_v0 }
  0x58   : > { %28140 = vset.pattern.permute.xlu1 %v28833_v0  ;;  %364 = vperm.xlu0 %28147, %v218_v5  }
  0x59   : > { %384 = vperm.xlu1 %28140, %v223_v19  }
  0x5c   : > { %380 = vperm.xlu0 %28147, %v222_v13  }
  0x5d   : > { %28141 = vset.pattern.permute.xlu1 %v28834_v1 }
  0x5e   : > { %276 = vperm.xlu1 %28141, %v224_v20  }
  0x60   : > { %396 = vperm.xlu0 %28147, %v226_v16  }
  0x62   : > { %28142 = vset.pattern.permute.xlu1 %v28833_v0 }
  0x63   : > { %388 = vperm.xlu1 %28142, %v224_v20  }
  0x64   : > { %412 = vperm.xlu0 %28147, %v230_v18  }
  0x67   : > { %392 = vperm.xlu1 %28142, %v225_v15  }
  0x6b   : > { %28143 = vset.pattern.permute.xlu1 %v28834_v1 }
  0x6c   : > { %291 = vperm.xlu1 %28143, %v227_v21  }
  0x70   : > { %28144 = vset.pattern.permute.xlu1 %v28833_v0 }
  0x71   : > { %400 = vperm.xlu1 %28144, %v227_v21  }
  0x75   : > { %28145 = vset.pattern.permute.xlu1 %v28834_v1 }
  0x76   : > { %296 = vperm.xlu1 %28145, %v228_v22  }
  0x7a   : > { %28146 = vset.pattern.permute.xlu1 %v28833_v0 }
  0x7b   : > { %404 = vperm.xlu1 %28146, %v228_v22  }
  0x7f   : > { %408 = vperm.xlu1 %28146, %v229_v17  }
  0x83   : > { %28148 = vset.pattern.permute.xlu1 %v28834_v1 }
  0x84   : > { %311 = vperm.xlu1 %28148, %v231_v23  }
  0x88   : > { %28149 = vset.pattern.permute.xlu1 %v28833_v0 }
  0x89   : > { %416 = vperm.xlu1 %28149, %v231_v23  }
  0xb2   : > { %v237_v26 = vpop.permute.xlu0 %236  ;;  %v357_v27 = vpop.permute.xlu1 %356 }
  0xb3   : > { %v318_v29 = vmul.f32 %v28957_v24, %v237_v26  ;;  %v423_v30 = vmul.f32 %v28962_v25, %v357_v27 }
  0xb5   : > { %v338_v31 = vadd.f32 %v28967_v28, %v318_v29 }
  0xb6   : > { %v242_v32 = vpop.permute.xlu0 %241  ;;  %v361_v33 = vpop.permute.xlu1 %360 }
  0xb7   : > { %v319_v34 = vmul.f32 %v28957_v24, %v242_v32  ;;  %v424_v35 = vmul.f32 %v28962_v25, %v361_v33  ;;  %v28974_v36 = vadd.f32 %v423_v30, %v338_v31 }
  0xb9   : > { %35312 = vst [vmem:[#allocation5_spill] sm:$0xff] %v28974_v36  ;;  %v339_v37 = vadd.f32 %v28967_v28, %v319_v34  ;;  %26453 = vmatprep.mubr.msk.f32.mxu0 %vm487_vm0, %v28974_v36 }
  0xba   : > { %v247_v38 = vpop.permute.xlu0 %246 }
  0xbb   : > { %v28979_v39 = vadd.f32 %v424_v35, %v339_v37  ;;  %v252_v40 = vpop.permute.xlu1 %251  ;;  %v320_v54 = vmul.f32 %v28957_v24, %v247_v38 }
  0xbc   : > { %v321_v52 = vmul.f32 %v28957_v24, %v252_v40 }
  0xbd   : > { %35313 = vst [vmem:[#allocation6_spill] sm:$0xff] %v28979_v39  ;;  %26454 = vmatmul.mubr.msk.f32.vlgmr.msra.gmra.mrb[0].mxu0 %vm487_vm0, %v28979_v39  ;;  %v340_v60 = vadd.f32 %v28967_v28, %v320_v54 }
  0xbe   : > { %v262_v41 = vpop.permute.xlu0 %261  ;;  %v341_v57 = vadd.f32 %v28967_v28, %v321_v52 }
  0xbf   : > { %v323_v63 = vmul.f32 %v28957_v24, %v262_v41 }
  0xc0   : > { %v369_v42 = vpop.permute.xlu1 %368 }
  0xc1   : > { %v426_v58 = vmul.f32 %v28962_v25, %v369_v42  ;;  %v343_v8 = vadd.f32 %v28967_v28, %v323_v63 }
  0xc2   : > { %v267_v43 = vpop.permute.xlu0 %266 }
  0xc3   : > { %v324_v1 = vmul.f32 %v28957_v24, %v267_v43  ;;  %v29003_v4 = vadd.f32 %v426_v58, %v341_v57 }
  0xc5   : > { %v257_v44 = vpop.permute.xlu1 %256  ;;  %35316 = vst [vmem:[#allocation9_spill] sm:$0xff] %v29003_v4  ;;  %v344_v12 = vadd.f32 %v28967_v28, %v324_v1  ;;  %v29092_v1 = vld [vmem:[%s35139_s2] ss:$0 sm:$0xff] }
  0xc6   : > { %v282_v45 = vpop.permute.xlu0 %281  ;;  %v322_v50 = vmul.f32 %v28957_v24, %v257_v44 }
  0xc7   : > { %v327_v19 = vmul.f32 %v28957_v24, %v282_v45 }
  0xc8   : > { %v342_v55 = vadd.f32 %v28967_v28, %v322_v50 }
  0xc9   : > { %v347_v29 = vadd.f32 %v28967_v28, %v327_v19 }
  0xca   : > { %v373_v46 = vpop.permute.xlu1 %372  ;;  %v287_v47 = vpop.permute.xlu0 %286 }
  0xcb   : > { %v427_v56 = vmul.f32 %v28962_v25, %v373_v46  ;;  %v328_v22 = vmul.f32 %v28957_v24, %v287_v47 }
  0xcd   : > { %v28999_v2 = vadd.f32 %v427_v56, %v342_v55  ;;  %v348_v31 = vadd.f32 %v28967_v28, %v328_v22 }
  0xce   : > { %v28983_v48 = vpop.permute.xlu0 %301  ;;  %v377_v49 = vpop.permute.xlu1 %376 }
  0xcf   : > { %35314 = vst [vmem:[#allocation7_spill] sm:$0xff] %v28999_v2  ;;  %v428_v5 = vmul.f32 %v28962_v25, %v377_v49  ;;  %v331_v46 = vmul.f32 %v28957_v24, %v28983_v48 }
  0xd1   : > { %v29018_v14 = vadd.f32 %v428_v5, %v343_v8  ;;  %v351_v55 = vadd.f32 %v28967_v28, %v331_v46 }
  0xd2   : > { %v28986_v51 = vpop.permute.xlu0 %306 }
  0xd3   : > { %v272_v53 = vpop.permute.xlu1 %271  ;;  %35317 = vst [vmem:[#allocation10_spill] sm:$0xff] %v29018_v14  ;;  %v332_v50 = vmul.f32 %v28957_v24, %v28986_v51 }
  0xd4   : > { %v325_v0 = vmul.f32 %v28957_v24, %v272_v53 }
  0xd5   : > { %v352_v48 = vadd.f32 %v28967_v28, %v332_v50 }
  0xd6   : > { %v345_v9 = vadd.f32 %v28967_v28, %v325_v0  ;;  %v35151_v0 = vmov 0.0  }
  0xd7   : > { %v365_v59 = vpop.permute.xlu0 %364  ;;  %26477 = vmatprep.subr.mxu1 %v35151_v0  ;;  %26522 = vmatprep.subr.mxu0 %v35151_v0 }
  0xd8   : > { %v425_v61 = vmul.f32 %v28962_v25, %v365_v59  ;;  %v385_v62 = vpop.permute.xlu1 %384  ;;  %26479 = vmatprep.mubr.msk.f32.mxu1 %vm28836_vm1, %v35151_v0 }
  0xd9   : > { %v430_v10 = vmul.f32 %v28962_v25, %v385_v62 }
  0xda   : > { %v29001_v3 = vadd.f32 %v425_v61, %v340_v60 }
  0xdb   : > { %v381_v6 = vpop.permute.xlu0 %380  ;;  %v29022_v16 = vadd.f32 %v430_v10, %v345_v9 }
  0xdc   : > { %35315 = vst [vmem:[#allocation8_spill] sm:$0xff] %v29001_v3  ;;  %v429_v7 = vmul.f32 %v28962_v25, %v381_v6  ;;  %26456 = vmatprep.mubr.msk.f32.mxu0 %vm487_vm0, %v29001_v3 }
  0xdd   : > { %26457 = vmatmul.mubr.msk.f32.gmra.mrb[2].mxu0 %vm487_vm0, %v29003_v4  ;;  %v277_v11 = vpop.permute.xlu1 %276  ;;  %35319 = vst [vmem:[#allocation12_spill] sm:$0xff] %v29022_v16 }
  0xde   : > { %v326_v13 = vmul.f32 %v28957_v24, %v277_v11  ;;  %26459 = vmatprep.mubr.msk.f32.mxu0 %vm487_vm0, %v28999_v2  ;;  %v29020_v15 = vadd.f32 %v429_v7, %v344_v12 }
  0xdf   : > { %v397_v20 = vpop.permute.xlu0 %396 }
  0xe0   : > { %35318 = vst [vmem:[#allocation11_spill] sm:$0xff] %v29020_v15  ;;  %v346_v17 = vadd.f32 %v28967_v28, %v326_v13  ;;  %v433_v26 = vmul.f32 %v28962_v25, %v397_v20 }
  0xe1   : > { %26460 = vmatmul.mubr.msk.f32.gmra.mrb[4].mxu0 %vm487_vm0, %v29018_v14 }
  0xe2   : > { %v389_v18 = vpop.permute.xlu1 %388  ;;  %26462 = vmatprep.mubr.msk.f32.mxu0 %vm487_vm0, %v29020_v15  ;;  %v29044_v33 = vadd.f32 %v433_v26, %v348_v31  ;;  %v35375_v15 = vmov 0.0  }
  0xe3   : > { %v431_v21 = vmul.f32 %v28962_v25, %v389_v18  ;;  %v413_v47 = vpop.permute.xlu0 %412 }
  0xe4   : > { %35322 = vst [vmem:[#allocation15_spill] sm:$0xff] %v29044_v33  ;;  %v437_v53 = vmul.f32 %v28962_v25, %v413_v47 }
  0xe5   : > { %v29032_v23 = vadd.f32 %v431_v21, %v346_v17  ;;  %26463 = vmatmul.mubr.msk.f32.gmra.mrb[6].mxu0 %vm487_vm0, %v29022_v16 }
  0xe6   : > { %v393_v27 = vpop.permute.xlu1 %392  ;;  %v29074_v58 = vadd.f32 %v437_v53, %v352_v48 }
  0xe7   : > { %35320 = vst [vmem:[#allocation13_spill] sm:$0xff] %v29032_v23  ;;  %v432_v30 = vmul.f32 %v28962_v25, %v393_v27  ;;  %26465 = vmatprep.mubr.msk.f32.mxu0 %vm487_vm0, %v29032_v23 }
  0xe8   : > { %35326 = vst [vmem:[#allocation19_spill] sm:$0xff] %v29074_v58 }
  0xe9   : > { %v29042_v32 = vadd.f32 %v432_v30, %v347_v29 }
  0xeb   : > { %35321 = vst [vmem:[#allocation14_spill] sm:$0xff] %v29042_v32  ;;  %26466 = vmatmul.mubr.msk.f32.gmra.mrb[8].mxu0 %vm487_vm0, %v29042_v32  ;;  %v292_v34 = vpop.permute.xlu1 %291 }
  0xec   : > { %26468 = vmatprep.mubr.msk.f32.mxu0 %vm487_vm0, %v29044_v33  ;;  %v329_v35 = vmul.f32 %v28957_v24, %v292_v34 }
  0xee   : > { %v349_v37 = vadd.f32 %v28967_v28, %v329_v35 }
  0xf0   : > { %v401_v38 = vpop.permute.xlu1 %400 }
  0xf1   : > { %v434_v40 = vmul.f32 %v28962_v25, %v401_v38 }
  0xf3   : > { %v29053_v41 = vadd.f32 %v434_v40, %v349_v37 }
  0xf5   : > { %35323 = vst [vmem:[#allocation16_spill] sm:$0xff] %v29053_v41  ;;  %v297_v42 = vpop.permute.xlu1 %296  ;;  %26469 = vmatmul.mubr.msk.f32.gmra.mrb[10].mxu0 %vm487_vm0, %v29053_v41 }
  0xf6   : > { %v330_v43 = vmul.f32 %v28957_v24, %v297_v42 }
  0xf8   : > { %v350_v44 = vadd.f32 %v28967_v28, %v330_v43 }
  0xfa   : > { %v405_v45 = vpop.permute.xlu1 %404 }
  0xfb   : > { %v435_v49 = vmul.f32 %v28962_v25, %v405_v45 }
  0xfd   : > { %v29064_v52 = vadd.f32 %v435_v49, %v350_v44 }
  0xfe   : > { %v409_v54 = vpop.permute.xlu1 %408 }
  0xff   : > { %35324 = vst [vmem:[#allocation17_spill] sm:$0xff] %v29064_v52  ;;  %v436_v56 = vmul.f32 %v28962_v25, %v409_v54  ;;  %26471 = vmatprep.mubr.msk.f32.mxu0 %vm487_vm0, %v29064_v52 }
 0x101   : > { %v29072_v57 = vadd.f32 %v436_v56, %v351_v55 }
 0x103   : > { %35325 = vst [vmem:[#allocation18_spill] sm:$0xff] %v29072_v57  ;;  %26472 = vmatmul.mubr.msk.f32.gmra.mrb[12].mxu0 %vm487_vm0, %v29072_v57  ;;  %v312_v51 = vpop.permute.xlu1 %311 }
 0x104   : > { %26474 = vmatprep.mubr.msk.f32.mxu0 %vm487_vm0, %v29074_v58  ;;  %v333_v59 = vmul.f32 %v28957_v24, %v312_v51 }
 0x106   : > { %v353_v60 = vadd.f32 %v28967_v28, %v333_v59 }
 0x108   : > { %v417_v61 = vpop.permute.xlu1 %416 }
 0x109   : > { %v438_v62 = vmul.f32 %v28962_v25, %v417_v61 }
 0x10b   : > { %v29083_v63 = vadd.f32 %v438_v62, %v353_v60 }
 0x10d   : > { %35327 = vst [vmem:[#allocation20_spill] sm:$0xff] %v29083_v63  ;;  %26475 = vmatmul.mubr.msk.f32.gmra.mrb[14].mxu0 %vm487_vm0, %v29083_v63 }
 0x10e   : > { %26524 = vmatprep.mubr.msk.f32.mxu0 %vm28836_vm1, %v35151_v0 }
 0x190   : > { %v26455_v24 = vpop.f32.mrb[0].mxu0 }
 0x191   : > { %v29099_v25 = vadd.f32 %v26455_v24, %v29092_v1  ;;  %v602_v28 = vpop.f32.mrb[1].mxu0 }
 0x192   : > { %v29106_v5 = vadd.f32 %v29092_v1, %v602_v28 }
 0x193   : > { %6502 = vrot.lane.b32.xlu1 %v29099_v25, %s28837_s22  ;;  %699 = vrot.lane.b32.xlu0 %v29099_v25, %s28838_s23 }
 0x197   : > { %870 = vrot.lane.b32.xlu0 %v29099_v25, %s28839_s24  ;;  %697 = vrot.lane.b32.xlu1 %v29106_v5, %s28838_s23 }
 0x19b   : > { %731 = vrot.lane.b32.xlu0 %v29099_v25, %s28840_s25  ;;  %793 = vrot.lane.b32.xlu1 %v29106_v5, %s28839_s24 }
 0x19f   : > { %763 = vrot.lane.b32.xlu0 %v29099_v25, %s28841_s26  ;;  %729 = vrot.lane.b32.xlu1 %v29106_v5, %s28840_s25 }
 0x1a3   : > { %6426 = vrot.lane.b32.xlu0 %v29106_v5, %s28837_s22  ;;  %761 = vrot.lane.b32.xlu1 %v29106_v5, %s28841_s26 }
 0x1b0   : > { %v26458_v6 = vpop.f32.mrb[2].mxu0 }
 0x1b1   : > { %v29125_v7 = vadd.f32 %v26458_v6, %v29092_v1  ;;  %v612_v8 = vpop.f32.mrb[3].mxu0 }
 0x1b2   : > { %v29136_v12 = vadd.f32 %v29092_v1, %v612_v8 }
 0x1b3   : > { %735 = vrot.lane.b32.xlu1 %v29125_v7, %s28840_s25  ;;  %703 = vrot.lane.b32.xlu0 %v29125_v7, %s28838_s23 }
 0x1b4   : > { %v26461_v9 = vpop.f32.mrb[4].mxu0 }
 0x1b5   : > { %v622_v10 = vpop.f32.mrb[5].mxu0  ;;  %v29151_v19 = vadd.f32 %v26461_v9, %v29092_v1 }
 0x1b6   : > { %v29158_v21 = vadd.f32 %v29092_v1, %v622_v10 }
 0x1b7   : > { %6654 = vrot.lane.b32.xlu1 %v29125_v7, %s28837_s22  ;;  %1022 = vrot.lane.b32.xlu0 %v29125_v7, %s28839_s24 }
 0x1b8   : > { %v26464_v11 = vpop.f32.mrb[6].mxu0 }
 0x1b9   : > { %v632_v13 = vpop.f32.mrb[7].mxu0  ;;  %v29177_v29 = vadd.f32 %v26464_v11, %v29092_v1 }
 0x1ba   : > { %v29190_v31 = vadd.f32 %v29092_v1, %v632_v13 }
 0x1bb   : > { %767 = vrot.lane.b32.xlu0 %v29125_v7, %s28841_s26  ;;  %701 = vrot.lane.b32.xlu1 %v29136_v12, %s28838_s23 }
 0x1be   : > { %v26467_v17 = vpop.f32.mrb[8].mxu0 }
 0x1bf   : > { %733 = vrot.lane.b32.xlu0 %v29136_v12, %s28840_s25  ;;  %946 = vrot.lane.b32.xlu1 %v29136_v12, %s28839_s24  ;;  %v642_v18 = vpop.f32.mrb[9].mxu0  ;;  %v29207_v35 = vadd.f32 %v26467_v17, %v29092_v1 }
 0x1c0   : > { %v29214_v37 = vadd.f32 %v29092_v1, %v642_v18 }
 0x1c3   : > { %6578 = vrot.lane.b32.xlu0 %v29136_v12, %s28837_s22  ;;  %765 = vrot.lane.b32.xlu1 %v29136_v12, %s28841_s26 }
 0x1c7   : > { %707 = vrot.lane.b32.xlu0 %v29151_v19, %s28838_s23  ;;  %6806 = vrot.lane.b32.xlu1 %v29151_v19, %s28837_s22 }
 0x1c8   : > { %v26470_v20 = vpop.f32.mrb[10].mxu0 }
 0x1c9   : > { %v652_v22 = vpop.f32.mrb[11].mxu0  ;;  %v29233_v38 = vadd.f32 %v26470_v20, %v29092_v1 }
 0x1ca   : > { %v29246_v42 = vadd.f32 %v29092_v1, %v652_v22 }
 0x1cb   : > { %1174 = vrot.lane.b32.xlu0 %v29151_v19, %s28839_s24  ;;  %705 = vrot.lane.b32.xlu1 %v29158_v21, %s28838_s23 }
 0x1cf   : > { %739 = vrot.lane.b32.xlu0 %v29151_v19, %s28840_s25  ;;  %1098 = vrot.lane.b32.xlu1 %v29158_v21, %s28839_s24 }
 0x1d3   : > { %771 = vrot.lane.b32.xlu0 %v29151_v19, %s28841_s26  ;;  %737 = vrot.lane.b32.xlu1 %v29158_v21, %s28840_s25 }
 0x1d6   : > { %v26473_v26 = vpop.f32.mrb[12].mxu0 }
 0x1d7   : > { %6730 = vrot.lane.b32.xlu0 %v29158_v21, %s28837_s22  ;;  %769 = vrot.lane.b32.xlu1 %v29158_v21, %s28841_s26  ;;  %v662_v27 = vpop.f32.mrb[13].mxu0  ;;  %v29273_v47 = vadd.f32 %v26473_v26, %v29092_v1 }
 0x1d8   : > { %v29286_v50 = vadd.f32 %v29092_v1, %v662_v27 }
 0x1db   : > { %1326 = vrot.lane.b32.xlu0 %v29177_v29, %s28839_s24  ;;  %711 = vrot.lane.b32.xlu1 %v29177_v29, %s28838_s23 }
 0x1df   : > { %743 = vrot.lane.b32.xlu0 %v29177_v29, %s28840_s25  ;;  %6958 = vrot.lane.b32.xlu1 %v29177_v29, %s28837_s22 }
 0x1e0   : > { %v29187_v30 = vpop.f32.mrb[14].mxu0 }
 0x1e1   : > { %v29192_v34 = vpop.f32.mrb[15].mxu0  ;;  %v29318_v59 = vadd.f32 %v29187_v30, %v29092_v1 }
 0x1e3   : > { %775 = vrot.lane.b32.xlu0 %v29177_v29, %s28841_s26  ;;  %1250 = vrot.lane.b32.xlu1 %v29190_v31, %s28839_s24 }
 0x1e7   : > { %741 = vrot.lane.b32.xlu1 %v29190_v31, %s28840_s25  ;;  %709 = vrot.lane.b32.xlu0 %v29190_v31, %s28838_s23 }
 0x1eb   : > { %773 = vrot.lane.b32.xlu1 %v29190_v31, %s28841_s26  ;;  %6882 = vrot.lane.b32.xlu0 %v29190_v31, %s28837_s22 }
 0x1ef   : > { %7110 = vrot.lane.b32.xlu1 %v29207_v35, %s28837_s22  ;;  %715 = vrot.lane.b32.xlu0 %v29207_v35, %s28838_s23 }
 0x1f3   : > { %713 = vrot.lane.b32.xlu1 %v29214_v37, %s28838_s23  ;;  %1478 = vrot.lane.b32.xlu0 %v29207_v35, %s28839_s24 }
 0x1f7   : > { %1402 = vrot.lane.b32.xlu1 %v29214_v37, %s28839_s24  ;;  %747 = vrot.lane.b32.xlu0 %v29207_v35, %s28840_s25 }
 0x1fb   : > { %745 = vrot.lane.b32.xlu1 %v29214_v37, %s28840_s25  ;;  %779 = vrot.lane.b32.xlu0 %v29207_v35, %s28841_s26 }
 0x1ff   : > { %777 = vrot.lane.b32.xlu1 %v29214_v37, %s28841_s26  ;;  %7034 = vrot.lane.b32.xlu0 %v29214_v37, %s28837_s22 }
 0x203   : > { %1630 = vrot.lane.b32.xlu0 %v29233_v38, %s28839_s24  ;;  %719 = vrot.lane.b32.xlu1 %v29233_v38, %s28838_s23 }
 0x205   : > { %v29239_v40 = vpop.permute.xlu1 %6502  ;;  %v29248_v43 = vpop.permute.xlu0 %699 }
 0x206   : > { %35328 = vst [vmem:[#allocation21_spill] sm:$0xff] %v29239_v40 }
 0x207   : > { %751 = vrot.lane.b32.xlu0 %v29233_v38, %s28840_s25  ;;  %7262 = vrot.lane.b32.xlu1 %v29233_v38, %s28837_s22 }
 0x209   : > { %v29250_v44 = vpop.permute.xlu1 %697  ;;  %v871_v46 = vpop.permute.xlu0 %870 }
 0x20b   : > { %783 = vrot.lane.b32.xlu0 %v29233_v38, %s28841_s26  ;;  %1554 = vrot.lane.b32.xlu1 %v29246_v42, %s28839_s24 }
 0x20d   : > { %v794_v45 = vpop.permute.xlu1 %793  ;;  %v29275_v49 = vpop.permute.xlu0 %731 }
 0x20e   : > { %26478 = vmatpush3.xpose.msk.msra.mxu1 %vm795_vm2, %v794_v45  ;;  %35329 = vst [vmem:[#allocation22_spill] sm:$0xff] %v29275_v49 }
 0x20f   : > { %749 = vrot.lane.b32.xlu1 %v29246_v42, %s28840_s25  ;;  %717 = vrot.lane.b32.xlu0 %v29246_v42, %s28838_s23 }
 0x210   : > { %26482 = vmatprep.subr.mxu1 %v35151_v0 }
 0x211   : > { %26480 = vmatmul.mubr.msk.f32.vlgmr.msra.gmra.mrb[0].mxu1 %vm795_vm2, %v29106_v5  ;;  %v29288_v53 = vpop.permute.xlu1 %729  ;;  %v29290_v54 = vpop.permute.xlu0 %763 }
 0x212   : > { %26483 = vmatpush3.xpose.msk.msra.mxu1 %vm795_vm2, %v871_v46  ;;  %26484 = vmatprep.mubr.msk.f32.mxu1 %vm28836_vm1, %v35151_v0  ;;  %35330 = vst [vmem:[#allocation23_spill] sm:$0xff] %v29288_v53  ;;  %35331 = vst [vmem:[#allocation24_spill] sm:$0xff] %v29290_v54 }
 0x213   : > { %781 = vrot.lane.b32.xlu1 %v29246_v42, %s28841_s26  ;;  %7186 = vrot.lane.b32.xlu0 %v29246_v42, %s28837_s22 }
 0x214   : > { %26487 = vmatprep.subr.mxu1 %v35151_v0 }
 0x215   : > { %26485 = vmatmul.mubr.msk.f32.vlgmr.msra.gmra.mrb[2].mxu1 %vm795_vm2, %v29099_v25  ;;  %v29300_v55 = vpop.permute.xlu1 %761  ;;  %v29302_v56 = vpop.permute.xlu0 %6426  ;;  %v29336_v25 = vadd.f32 %v29092_v1, %v29192_v34 }
 0x216   : > { %26489 = vmatprep.mubr.msk.f32.mxu1 %vm28836_vm1, %v35151_v0  ;;  %35332 = vst [vmem:[#allocation25_spill] sm:$0xff] %v29300_v55  ;;  %35333 = vst [vmem:[#allocation26_spill] sm:$0xff] %v29302_v56 }
 0x217   : > { %7414 = vrot.lane.b32.xlu1 %v29273_v47, %s28837_s22  ;;  %723 = vrot.lane.b32.xlu0 %v29273_v47, %s28838_s23 }
 0x21b   : > { %721 = vrot.lane.b32.xlu1 %v29286_v50, %s28838_s23  ;;  %1782 = vrot.lane.b32.xlu0 %v29273_v47, %s28839_s24 }
 0x21f   : > { %1706 = vrot.lane.b32.xlu1 %v29286_v50, %s28839_s24  ;;  %755 = vrot.lane.b32.xlu0 %v29273_v47, %s28840_s25 }
 0x223   : > { %753 = vrot.lane.b32.xlu1 %v29286_v50, %s28840_s25  ;;  %787 = vrot.lane.b32.xlu0 %v29273_v47, %s28841_s26 }
 0x225   : > { %v29308_v48 = vpop.permute.xlu1 %735  ;;  %v29310_v51 = vpop.permute.xlu0 %703 }
 0x226   : > { %35334 = vst [vmem:[#allocation27_spill] sm:$0xff] %v29308_v48 }
 0x227   : > { %785 = vrot.lane.b32.xlu1 %v29286_v50, %s28841_s26  ;;  %7338 = vrot.lane.b32.xlu0 %v29286_v50, %s28837_s22 }
 0x229   : > { %v29320_v60 = vpop.permute.xlu1 %6654  ;;  %v1023_v61 = vpop.permute.xlu0 %1022 }
 0x22a   : > { %35335 = vst [vmem:[#allocation28_spill] sm:$0xff] %v29320_v60 }
 0x22b   : > { %1934 = vrot.lane.b32.xlu0 %v29318_v59, %s28839_s24  ;;  %727 = vrot.lane.b32.xlu1 %v29318_v59, %s28838_s23 }
 0x22d   : > { %v29326_v62 = vpop.permute.xlu1 %701  ;;  %v29328_v24 = vpop.permute.xlu0 %767 }
 0x22e   : > { %35336 = vst [vmem:[#allocation29_spill] sm:$0xff] %v29328_v24 }
 0x22f   : > { %759 = vrot.lane.b32.xlu0 %v29318_v59, %s28840_s25  ;;  %7566 = vrot.lane.b32.xlu1 %v29318_v59, %s28837_s22 }
 0x231   : > { %v947_v28 = vpop.permute.xlu1 %946  ;;  %v29338_v5 = vpop.permute.xlu0 %733 }
 0x232   : > { %35337 = vst [vmem:[#allocation30_spill] sm:$0xff] %v29338_v5  ;;  %26488 = vmatpush3.xpose.msk.msra.mxu1 %vm795_vm2, %v947_v28 }
 0x233   : > { %791 = vrot.lane.b32.xlu0 %v29318_v59, %s28841_s26  ;;  %1858 = vrot.lane.b32.xlu1 %v29336_v25, %s28839_s24 }
 0x234   : > { %26492 = vmatprep.subr.mxu1 %v35151_v0 }
 0x235   : > { %v29346_v6 = vpop.permute.xlu1 %765  ;;  %26490 = vmatmul.mubr.msk.f32.vlgmr.msra.gmra.mrb[4].mxu1 %vm795_vm2, %v29136_v12  ;;  %v29350_v1 = vpop.permute.xlu0 %6578 }
 0x236   : > { %35338 = vst [vmem:[#allocation31_spill] sm:$0xff] %v29346_v6  ;;  %35339 = vst [vmem:[#allocation32_spill] sm:$0xff] %v29350_v1  ;;  %26493 = vmatpush3.xpose.msk.msra.mxu1 %vm795_vm2, %v1023_v61  ;;  %26494 = vmatprep.mubr.msk.f32.mxu1 %vm28836_vm1, %v35151_v0 }
 0x237   : > { %757 = vrot.lane.b32.xlu1 %v29336_v25, %s28840_s25  ;;  %725 = vrot.lane.b32.xlu0 %v29336_v25, %s28838_s23 }
 0x238   : > { %26497 = vmatprep.subr.mxu1 %v35151_v0 }
 0x239   : > { %v29360_v8 = vpop.permute.xlu1 %6806  ;;  %26495 = vmatmul.mubr.msk.f32.vlgmr.msra.gmra.mrb[6].mxu1 %vm795_vm2, %v29125_v7  ;;  %v29364_v9 = vpop.permute.xlu0 %707 }
 0x23a   : > { %35340 = vst [vmem:[#allocation33_spill] sm:$0xff] %v29360_v8  ;;  %35341 = vst [vmem:[#allocation34_spill] sm:$0xff] %v29364_v9  ;;  %26499 = vmatprep.mubr.msk.f32.mxu1 %vm28836_vm1, %v35151_v0 }
 0x23b   : > { %789 = vrot.lane.b32.xlu1 %v29336_v25, %s28841_s26  ;;  %7490 = vrot.lane.b32.xlu0 %v29336_v25, %s28837_s22 }
 0x23d   : > { %v29372_v10 = vpop.permute.xlu1 %705  ;;  %v1175_v11 = vpop.permute.xlu0 %1174 }
 0x23e   : > { %35342 = vst [vmem:[#allocation35_spill] sm:$0xff] %v29372_v10 }
 0x23f   : > { %7718 = vrot.lane.b32.xlu1 %v29248_v43, %s28837_s22  ;;  %2086 = vrot.lane.b32.xlu0 %v29248_v43, %s28839_s24 }
 0x241   : > { %v1099_v7 = vpop.permute.xlu1 %1098  ;;  %v29378_v12 = vpop.permute.xlu0 %739 }
 0x242   : > { %35343 = vst [vmem:[#allocation36_spill] sm:$0xff] %v29378_v12  ;;  %26498 = vmatpush3.xpose.msk.msra.mxu1 %vm795_vm2, %v1099_v7 }
 0x243   : > { %2010 = vrot.lane.b32.xlu1 %v29250_v44, %s28839_s24  ;;  %3302 = vrot.lane.b32.xlu0 %v29275_v49, %s28839_s24 }
 0x244   : > { %26502 = vmatprep.subr.mxu1 %v35151_v0 }
 0x245   : > { %v29386_v13 = vpop.permute.xlu1 %737  ;;  %26500 = vmatmul.mubr.msk.f32.vlgmr.msra.gmra.mrb[8].mxu1 %vm795_vm2, %v29158_v21  ;;  %v29390_v17 = vpop.permute.xlu0 %771 }
 0x246   : > { %35344 = vst [vmem:[#allocation37_spill] sm:$0xff] %v29386_v13  ;;  %35345 = vst [vmem:[#allocation38_spill] sm:$0xff] %v29390_v17  ;;  %26503 = vmatpush3.xpose.msk.msra.mxu1 %vm795_vm2, %v1175_v11  ;;  %26504 = vmatprep.mubr.msk.f32.mxu1 %vm28836_vm1, %v35151_v0 }
 0x247   : > { %3226 = vrot.lane.b32.xlu1 %v29288_v53, %s28839_s24  ;;  %4518 = vrot.lane.b32.xlu0 %v29290_v54, %s28839_s24 }
 0x248   : > { %26507 = vmatprep.subr.mxu1 %v35151_v0 }
 0x249   : > { %v29400_v18 = vpop.permute.xlu1 %769  ;;  %26505 = vmatmul.mubr.msk.f32.vlgmr.msra.gmra.mrb[10].mxu1 %vm795_vm2, %v29151_v19  ;;  %v29404_v20 = vpop.permute.xlu0 %6730 }
 0x24a   : > { %35346 = vst [vmem:[#allocation39_spill] sm:$0xff] %v29400_v18  ;;  %35347 = vst [vmem:[#allocation40_spill] sm:$0xff] %v29404_v20  ;;  %26509 = vmatprep.mubr.msk.f32.mxu1 %vm28836_vm1, %v35151_v0 }
 0x24b   : > { %4442 = vrot.lane.b32.xlu1 %v29300_v55, %s28839_s24  ;;  %7642 = vrot.lane.b32.xlu0 %v29250_v44, %s28837_s22 }
 0x24d   : > { %v29412_v21 = vpop.permute.xlu1 %711  ;;  %v1327_v22 = vpop.permute.xlu0 %1326 }
 0x24e   : > { %35348 = vst [vmem:[#allocation41_spill] sm:$0xff] %v29412_v21 }
 0x24f   : > { %2162 = vrot.lane.b32.xlu1 %v29326_v62, %s28839_s24  ;;  %2238 = vrot.lane.b32.xlu0 %v29310_v51, %s28839_s24 }
 0x251   : > { %v29418_v19 = vpop.permute.xlu1 %6958  ;;  %v29420_v26 = vpop.permute.xlu0 %743 }
 0x252   : > { %35349 = vst [vmem:[#allocation42_spill] sm:$0xff] %v29418_v19  ;;  %35350 = vst [vmem:[#allocation43_spill] sm:$0xff] %v29420_v26 }
 0x253   : > { %3454 = vrot.lane.b32.xlu0 %v29308_v48, %s28839_s24  ;;  %3378 = vrot.lane.b32.xlu1 %v29338_v5, %s28839_s24 }
 0x255   : > { %v1251_v27 = vpop.permute.xlu1 %1250  ;;  %v29426_v30 = vpop.permute.xlu0 %775 }
 0x256   : > { %35351 = vst [vmem:[#allocation44_spill] sm:$0xff] %v29426_v30  ;;  %26508 = vmatpush3.xpose.msk.msra.mxu1 %vm795_vm2, %v1251_v27 }
 0x257   : > { %4670 = vrot.lane.b32.xlu0 %v29328_v24, %s28839_s24  ;;  %4594 = vrot.lane.b32.xlu1 %v29346_v6, %s28839_s24 }
 0x258   : > { %26512 = vmatprep.subr.mxu1 %v35151_v0 }
 0x259   : > { %v29434_v34 = vpop.permute.xlu1 %741  ;;  %26510 = vmatmul.mubr.msk.f32.vlgmr.msra.gmra.mrb[12].mxu1 %vm795_vm2, %v29190_v31  ;;  %v29438_v45 = vpop.permute.xlu0 %709 }
 0x25a   : > { %35352 = vst [vmem:[#allocation45_spill] sm:$0xff] %v29434_v34  ;;  %35353 = vst [vmem:[#allocation46_spill] sm:$0xff] %v29438_v45  ;;  %26513 = vmatpush3.xpose.msk.msra.mxu1 %vm795_vm2, %v1327_v22  ;;  %26514 = vmatprep.mubr.msk.f32.mxu1 %vm28836_vm1, %v35151_v0 }
 0x25b   : > { %2314 = vrot.lane.b32.xlu1 %v29372_v10, %s28839_s24  ;;  %2390 = vrot.lane.b32.xlu0 %v29364_v9, %s28839_s24 }
 0x25c   : > { %26517 = vmatprep.subr.mxu1 %v35151_v0 }
 0x25d   : > { %v29448_v46 = vpop.permute.xlu1 %773  ;;  %26515 = vmatmul.mubr.msk.f32.vlgmr.msra.gmra.mrb[14].mxu1 %vm795_vm2, %v29177_v29  ;;  %v29452_v31 = vpop.permute.xlu0 %6882 }
 0x25e   : > { %35354 = vst [vmem:[#allocation47_spill] sm:$0xff] %v29448_v46  ;;  %35355 = vst [vmem:[#allocation48_spill] sm:$0xff] %v29452_v31  ;;  %26519 = vmatprep.mubr.msk.f32.mxu1 %vm28836_vm1, %v35151_v0 }
 0x25f   : > { %3530 = vrot.lane.b32.xlu1 %v29386_v13, %s28839_s24  ;;  %3606 = vrot.lane.b32.xlu0 %v29378_v12, %s28839_s24 }
 0x261   : > { %v29460_v61 = vpop.permute.xlu1 %7110  ;;  %v29462_v28 = vpop.permute.xlu0 %715 }
 0x262   : > { %35356 = vst [vmem:[#allocation49_spill] sm:$0xff] %v29460_v61  ;;  %35357 = vst [vmem:[#allocation50_spill] sm:$0xff] %v29462_v28 }
 0x263   : > { %4746 = vrot.lane.b32.xlu1 %v29400_v18, %s28839_s24  ;;  %4822 = vrot.lane.b32.xlu0 %v29390_v17, %s28839_s24 }
 0x265   : > { %v29468_v29 = vpop.permute.xlu1 %713  ;;  %v1479_v11 = vpop.permute.xlu0 %1478 }
 0x266   : > { %35358 = vst [vmem:[#allocation51_spill] sm:$0xff] %v29468_v29  ;;  %26523 = vmatpush3.xpose.msk.msra.mxu0 %vm795_vm2, %v1479_v11 }
 0x267   : > { %2542 = vrot.lane.b32.xlu0 %v29412_v21, %s28839_s24  ;;  %2466 = vrot.lane.b32.xlu1 %v29438_v45, %s28839_s24 }
 0x268   : > { %26532 = vmatprep.subr.mxu0 %v35151_v0 }
 0x269   : > { %v1403_v7 = vpop.permute.xlu1 %1402  ;;  %26525 = vmatmul.mubr.msk.f32.vlgmr.msra.gmra.mrb[16].mxu0 %vm795_vm2, %v29207_v35  ;;  %v29478_v22 = vpop.permute.xlu0 %747 }
 0x26a   : > { %35359 = vst [vmem:[#allocation52_spill] sm:$0xff] %v29478_v22  ;;  %26518 = vmatpush3.xpose.msk.msra.mxu1 %vm795_vm2, %v1403_v7  ;;  %26534 = vmatprep.mubr.msk.f32.mxu0 %vm28836_vm1, %v35151_v0 }
 0x26b   : > { %3758 = vrot.lane.b32.xlu0 %v29420_v26, %s28839_s24  ;;  %3682 = vrot.lane.b32.xlu1 %v29434_v34, %s28839_s24 }
 0x26c   : > { %26527 = vmatprep.subr.mxu1 %v35151_v0 }
 0x26d   : > { %v29488_v27 = vpop.permute.xlu1 %745  ;;  %26520 = vmatmul.mubr.msk.f32.vlgmr.msra.gmra.mrb[16].mxu1 %vm795_vm2, %v29214_v37  ;;  %v29492_v35 = vpop.permute.xlu0 %779 }
 0x26e   : > { %35360 = vst [vmem:[#allocation53_spill] sm:$0xff] %v29488_v27  ;;  %35361 = vst [vmem:[#allocation54_spill] sm:$0xff] %v29492_v35  ;;  %26529 = vmatprep.mubr.msk.f32.mxu1 %vm28836_vm1, %v35151_v0 }
 0x26f   : > { %4974 = vrot.lane.b32.xlu0 %v29426_v30, %s28839_s24  ;;  %4898 = vrot.lane.b32.xlu1 %v29448_v46, %s28839_s24 }
 0x271   : > { %v29500_v11 = vpop.permute.xlu1 %777  ;;  %v29502_v7 = vpop.permute.xlu0 %7034 }
 0x272   : > { %35362 = vst [vmem:[#allocation55_spill] sm:$0xff] %v29500_v11  ;;  %35363 = vst [vmem:[#allocation56_spill] sm:$0xff] %v29502_v7 }
 0x273   : > { %2618 = vrot.lane.b32.xlu1 %v29468_v29, %s28839_s24  ;;  %2694 = vrot.lane.b32.xlu0 %v29462_v28, %s28839_s24 }
 0x275   : > { %v29508_v37 = vpop.permute.xlu1 %719  ;;  %v1631_v58 = vpop.permute.xlu0 %1630 }
 0x276   : > { %35364 = vst [vmem:[#allocation57_spill] sm:$0xff] %v29508_v37  ;;  %26533 = vmatpush3.xpose.msk.msra.mxu0 %vm795_vm2, %v1631_v58 }
 0x277   : > { %3834 = vrot.lane.b32.xlu1 %v29488_v27, %s28839_s24  ;;  %3910 = vrot.lane.b32.xlu0 %v29478_v22, %s28839_s24 }
 0x278   : > { %26542 = vmatprep.subr.mxu0 %v35151_v0 }
 0x279   : > { %v29516_v63 = vpop.permute.xlu1 %7262  ;;  %26535 = vmatmul.mubr.msk.f32.vlgmr.msra.gmra.mrb[18].mxu0 %vm795_vm2, %v29233_v38  ;;  %v29520_v52 = vpop.permute.xlu0 %751 }
 0x27a   : > { %35365 = vst [vmem:[#allocation58_spill] sm:$0xff] %v29516_v63  ;;  %35366 = vst [vmem:[#allocation59_spill] sm:$0xff] %v29520_v52  ;;  %26544 = vmatprep.mubr.msk.f32.mxu0 %vm28836_vm1, %v35151_v0 }
 0x27b   : > { %5050 = vrot.lane.b32.xlu1 %v29500_v11, %s28839_s24  ;;  %5126 = vrot.lane.b32.xlu0 %v29492_v35, %s28839_s24 }
 0x27d   : > { %v1555_v58 = vpop.permute.xlu1 %1554  ;;  %v29528_v57 = vpop.permute.xlu0 %783 }
 0x27e   : > { %35367 = vst [vmem:[#allocation60_spill] sm:$0xff] %v29528_v57  ;;  %26528 = vmatpush3.xpose.msk.msra.mxu1 %vm795_vm2, %v1555_v58 }
 0x27f   : > { %2846 = vrot.lane.b32.xlu0 %v29508_v37, %s28839_s24  ;;  %26537 = vmatprep.subr.mxu1 %v35151_v0 }
 0x281   : > { %v29534_v38 = vpop.permute.xlu1 %749  ;;  %26530 = vmatmul.mubr.msk.f32.vlgmr.msra.gmra.mrb[18].mxu1 %vm795_vm2, %v29246_v42  ;;  %v29538_v33 = vpop.permute.xlu0 %717 }
 0x282   : > { %35368 = vst [vmem:[#allocation61_spill] sm:$0xff] %v29534_v38  ;;  %35369 = vst [vmem:[#allocation62_spill] sm:$0xff] %v29538_v33  ;;  %2770 = vrot.lane.b32.xlu1 %v29538_v33, %s28839_s24  ;;  %26539 = vmatprep.mubr.msk.f32.mxu1 %vm28836_vm1, %v35151_v0 }
 0x283   : > { %4062 = vrot.lane.b32.xlu0 %v29520_v52, %s28839_s24 }
 0x285   : > { %v29546_v58 = vpop.permute.xlu1 %781  ;;  %v29548_v41 = vpop.permute.xlu0 %7186 }
 0x286   : > { %35370 = vst [vmem:[#allocation63_spill] sm:$0xff] %v29546_v58  ;;  %35371 = vst [vmem:[#allocation64_spill] sm:$0xff] %v29548_v41  ;;  %3986 = vrot.lane.b32.xlu1 %v29534_v38, %s28839_s24 }
 0x287   : > { %5278 = vrot.lane.b32.xlu0 %v29528_v57, %s28839_s24 }
 0x289   : > { %v29554_v42 = vpop.permute.xlu1 %7414  ;;  %v29556_v23 = vpop.permute.xlu0 %723 }
 0x28a   : > { %35372 = vst [vmem:[#allocation65_spill] sm:$0xff] %v29554_v42  ;;  %35373 = vst [vmem:[#allocation66_spill] sm:$0xff] %v29556_v23  ;;  %5202 = vrot.lane.b32.xlu1 %v29546_v58, %s28839_s24 }
 0x28b   : > { %2998 = vrot.lane.b32.xlu0 %v29556_v23, %s28839_s24 }
 0x28d   : > { %v29562_v0 = vpop.permute.xlu1 %721  ;;  %v1783_v32 = vpop.permute.xlu0 %1782 }
 0x28e   : > { %35374 = vst [vmem:[#allocation67_spill] sm:$0xff] %v29562_v0  ;;  %2922 = vrot.lane.b32.xlu1 %v29562_v0, %s28839_s24  ;;  %26543 = vmatpush3.xpose.msk.msra.mxu0 %vm795_vm2, %v1783_v32 }
 0x28f   : > { %26552 = vmatprep.subr.mxu0 %v35375_v15 }
 0x291   : > { %v1707_v16 = vpop.permute.xlu1 %1706  ;;  %26545 = vmatmul.mubr.msk.f32.vlgmr.msra.gmra.mrb[20].mxu0 %vm795_vm2, %v29273_v47  ;;  %v29570_v2 = vpop.permute.xlu0 %755 }
 0x292   : > { %35376 = vst [vmem:[#allocation68_spill] sm:$0xff] %v29570_v2  ;;  %26538 = vmatpush3.xpose.msk.msra.mxu1 %vm795_vm2, %v1707_v16  ;;  %4214 = vrot.lane.b32.xlu0 %v29570_v2, %s28839_s24 }
 0x293   : > { %26554 = vmatprep.mubr.msk.f32.mxu0 %vm28836_vm1, %v35375_v15  ;;  %26547 = vmatprep.subr.mxu1 %v35375_v15 }
 0x295   : > { %v29578_v14 = vpop.permute.xlu1 %753  ;;  %26540 = vmatmul.mubr.msk.f32.vlgmr.msra.gmra.mrb[20].mxu1 %vm795_vm2, %v29286_v50  ;;  %v29582_v32 = vpop.permute.xlu0 %787 }
 0x296   : > { %35377 = vst [vmem:[#allocation69_spill] sm:$0xff] %v29578_v14  ;;  %35378 = vst [vmem:[#allocation70_spill] sm:$0xff] %v29582_v32  ;;  %4138 = vrot.lane.b32.xlu1 %v29578_v14, %s28839_s24  ;;  %5430 = vrot.lane.b32.xlu0 %v29582_v32, %s28839_s24 }
 0x297   : > { %26549 = vmatprep.mubr.msk.f32.mxu1 %vm28836_vm1, %v35375_v15 }
 0x299   : > { %v29590_v16 = vpop.permute.xlu1 %785  ;;  %v29592_v47 = vpop.permute.xlu0 %7338 }
 0x29a   : > { %35379 = vst [vmem:[#allocation71_spill] sm:$0xff] %v29590_v16  ;;  %35380 = vst [vmem:[#allocation72_spill] sm:$0xff] %v29592_v47  ;;  %5354 = vrot.lane.b32.xlu1 %v29590_v16, %s28839_s24 }
 0x29d   : > { %v29596_v3 = vpop.permute.xlu1 %727  ;;  %v1935_v50 = vpop.permute.xlu0 %1934 }
 0x29e   : > { %35381 = vst [vmem:[#allocation73_spill] sm:$0xff] %v29596_v3  ;;  %7870 = vrot.lane.b32.xlu1 %v29310_v51, %s28837_s22  ;;  %3150 = vrot.lane.b32.xlu0 %v29596_v3, %s28839_s24 }
 0x29f   : > { %26553 = vmatpush3.xpose.msk.msra.mxu0 %vm795_vm2, %v1935_v50 }
 0x2a0   : > { %26562 = vmatprep.subr.mxu0 %v35375_v15 }
 0x2a1   : > { %v29604_v4 = vpop.permute.xlu1 %7566  ;;  %v29606_v36 = vpop.permute.xlu0 %759 }
 0x2a2   : > { %35382 = vst [vmem:[#allocation74_spill] sm:$0xff] %v29604_v4  ;;  %35383 = vst [vmem:[#allocation75_spill] sm:$0xff] %v29606_v36  ;;  %26555 = vmatmul.mubr.msk.f32.vlgmr.msra.gmra.mrb[22].mxu0 %vm795_vm2, %v29318_v59  ;;  %4366 = vrot.lane.b32.xlu0 %v29606_v36, %s28839_s24 }
 0x2a3   : > { %26564 = vmatprep.mubr.msk.f32.mxu0 %vm28836_vm1, %v35375_v15 }
 0x2a5   : > { %v1859_v39 = vpop.permute.xlu1 %1858  ;;  %v29614_v42 = vpop.permute.xlu0 %791 }
 0x2a6   : > { %35384 = vst [vmem:[#allocation76_spill] sm:$0xff] %v29614_v42  ;;  %26548 = vmatpush3.xpose.msk.msra.mxu1 %vm795_vm2, %v1859_v39  ;;  %5582 = vrot.lane.b32.xlu0 %v29614_v42, %s28839_s24 }
 0x2a7   : > { %26557 = vmatprep.subr.mxu1 %v35375_v15 }
 0x2a9   : > { %v29620_v50 = vpop.permute.xlu1 %757  ;;  %26550 = vmatmul.mubr.msk.f32.vlgmr.msra.gmra.mrb[22].mxu1 %vm795_vm2, %v29336_v25  ;;  %v29624_v59 = vpop.permute.xlu0 %725 }
 0x2aa   : > { %35385 = vst [vmem:[#allocation77_spill] sm:$0xff] %v29620_v50  ;;  %35386 = vst [vmem:[#allocation78_spill] sm:$0xff] %v29624_v59  ;;  %7794 = vrot.lane.b32.xlu0 %v29326_v62, %s28837_s22  ;;  %3074 = vrot.lane.b32.xlu1 %v29624_v59, %s28839_s24 }
 0x2ab   : > { %26559 = vmatprep.mubr.msk.f32.mxu1 %vm28836_vm1, %v35375_v15 }
 0x2ad   : > { %v29632_v39 = vpop.permute.xlu1 %789  ;;  %v29634_v4 = vpop.permute.xlu0 %7490 }
 0x2ae   : > { %35387 = vst [vmem:[#allocation79_spill] sm:$0xff] %v29632_v39  ;;  %35388 = vst [vmem:[#allocation80_spill] sm:$0xff] %v29634_v4  ;;  %4290 = vrot.lane.b32.xlu1 %v29620_v50, %s28839_s24 }
 0x2b1   : > { %v29638_v47 = vpop.permute.xlu1 %7718  ;;  %v2087_v25 = vpop.permute.xlu0 %2086 }
 0x2b2   : > { %35389 = vst [vmem:[#allocation81_spill] sm:$0xff] %v29638_v47  ;;  %5506 = vrot.lane.b32.xlu1 %v29632_v39, %s28839_s24  ;;  %26563 = vmatpush3.xpose.msk.msra.mxu0 %vm795_vm2, %v2087_v25 }
 0x2b3   : > { %26572 = vmatprep.subr.mxu0 %v35375_v15 }
 0x2b5   : > { %v2011_v63 = vpop.permute.xlu1 %2010  ;;  %26565 = vmatmul.mubr.msk.f32.vlgmr.msra.gmra.mrb[24].mxu0 %vm795_vm2, %v29248_v43  ;;  %v29646_v41 = vpop.permute.xlu0 %3302 }
 0x2b6   : > { %26558 = vmatpush3.xpose.msk.msra.mxu1 %vm795_vm2, %v2011_v63  ;;  %26574 = vmatprep.mubr.msk.f32.mxu0 %vm28836_vm1, %v35375_v15 }
 0x2b7   : > { %26567 = vmatprep.subr.mxu1 %v35375_v15 }
 0x2b9   : > { %v29652_v47 = vpop.permute.xlu1 %3226  ;;  %26560 = vmatmul.mubr.msk.f32.vlgmr.msra.gmra.mrb[24].mxu1 %vm795_vm2, %v29250_v44  ;;  %v29656_v25 = vpop.permute.xlu0 %4518 }
 0x2ba   : > { %26569 = vmatprep.mubr.msk.f32.mxu1 %vm28836_vm1, %v35375_v15 }
 0x2bd   : > { %v29660_v43 = vpop.permute.xlu1 %4442  ;;  %v29662_v4 = vpop.permute.xlu0 %7642 }
 0x2be   : > { %35390 = vst [vmem:[#allocation82_spill] sm:$0xff] %v29662_v4 }
 0x2c1   : > { %v2163_v63 = vpop.permute.xlu1 %2162  ;;  %v2239_v61 = vpop.permute.xlu0 %2238 }
 0x2c2   : > { %26568 = vmatpush3.xpose.msk.msra.mxu1 %vm795_vm2, %v2163_v63  ;;  %26573 = vmatpush3.xpose.msk.msra.mxu0 %vm795_vm2, %v2239_v61 }
 0x2c3   : > { %26577 = vmatprep.subr.mxu1 %v35375_v15  ;;  %26582 = vmatprep.subr.mxu0 %v35375_v15 }
 0x2c5   : > { %v29668_v44 = vpop.permute.xlu1 %3378  ;;  %26570 = vmatmul.mubr.msk.f32.vlgmr.msra.gmra.mrb[26].mxu1 %vm795_vm2, %v29326_v62  ;;  %26575 = vmatmul.mubr.msk.f32.vlgmr.msra.gmra.mrb[26].mxu0 %vm795_vm2, %v29310_v51  ;;  %v29674_v7 = vpop.permute.xlu0 %3454 }
 0x2c6   : > { %26579 = vmatprep.mubr.msk.f32.mxu1 %vm28836_vm1, %v35375_v15  ;;  %26584 = vmatprep.mubr.msk.f32.mxu0 %vm28836_vm1, %v35375_v15 }
 0x2c9   : > { %v29680_v61 = vpop.permute.xlu1 %4594  ;;  %v29682_v63 = vpop.permute.xlu0 %4670 }
 0x2cd   : > { %v2315_v4 = vpop.permute.xlu1 %2314  ;;  %v2391_v19 = vpop.permute.xlu0 %2390 }
 0x2ce   : > { %26578 = vmatpush3.xpose.msk.msra.mxu1 %vm795_vm2, %v2315_v4  ;;  %26583 = vmatpush3.xpose.msk.msra.mxu0 %vm795_vm2, %v2391_v19 }
 0x2cf   : > { %26587 = vmatprep.subr.mxu1 %v35375_v15  ;;  %26592 = vmatprep.subr.mxu0 %v35375_v15 }
 0x2d1   : > { %v29688_v51 = vpop.permute.xlu1 %3530  ;;  %26580 = vmatmul.mubr.msk.f32.vlgmr.msra.gmra.mrb[28].mxu1 %vm795_vm2, %v29372_v10  ;;  %26585 = vmatmul.mubr.msk.f32.vlgmr.msra.gmra.mrb[28].mxu0 %vm795_vm2, %v29364_v9  ;;  %v29694_v62 = vpop.permute.xlu0 %3606 }
 0x2d2   : > { %26589 = vmatprep.mubr.msk.f32.mxu1 %vm28836_vm1, %v35375_v15  ;;  %26594 = vmatprep.mubr.msk.f32.mxu0 %vm28836_vm1, %v35375_v15 }
 0x2d5   : > { %v29700_v4 = vpop.permute.xlu1 %4746  ;;  %v29702_v19 = vpop.permute.xlu0 %4822 }
 0x2d9   : > { %v2467_v31 = vpop.permute.xlu1 %2466  ;;  %v2543_v8 = vpop.permute.xlu0 %2542 }
 0x2da   : > { %26588 = vmatpush3.xpose.msk.msra.mxu1 %vm795_vm2, %v2467_v31  ;;  %26593 = vmatpush3.xpose.msk.msra.mxu0 %vm795_vm2, %v2543_v8 }
 0x2db   : > { %26597 = vmatprep.subr.mxu1 %v35375_v15  ;;  %26602 = vmatprep.subr.mxu0 %v35375_v15 }
 0x2dd   : > { %26590 = vmatmul.mubr.msk.f32.vlgmr.msra.gmra.mrb[30].mxu1 %vm795_vm2, %v29438_v45  ;;  %v29710_v20 = vpop.permute.xlu1 %3682  ;;  %26595 = vmatmul.mubr.msk.f32.vlgmr.msra.gmra.mrb[30].mxu0 %vm795_vm2, %v29412_v21  ;;  %v29714_v9 = vpop.permute.xlu0 %3758 }
 0x2de   : > { %26599 = vmatprep.mubr.msk.f32.mxu1 %vm28836_vm1, %v35375_v15  ;;  %26604 = vmatprep.mubr.msk.f32.mxu0 %vm28836_vm1, %v35375_v15 }
 0x2e1   : > { %v29720_v8 = vpop.permute.xlu1 %4898  ;;  %v29722_v31 = vpop.permute.xlu0 %4974 }
 0x2e4   : > { %v866_v60 = vpop.f32.mrb[0].mxu1 }
 0x2e5   : > { %v29724_v10 = vmul.f32 0.35355338, %v866_v60  ;;  %v26481_v45 = vpop.f32.mrb[1].mxu1  ;;  %v2619_v1 = vpop.permute.xlu1 %2618 }
 0x2e6   : > { %v2695_v56 = vpop.permute.xlu0 %2694  ;;  %26598 = vmatpush3.xpose.msk.msra.mxu1 %vm795_vm2, %v2619_v1 }
 0x2e7   : > { %35391 = vst [vmem:[#allocation83_spill] sm:$0xff] %v29724_v10  ;;  %26603 = vmatpush3.xpose.msk.msra.mxu0 %vm795_vm2, %v2695_v56  ;;  %v5722_v21 = vsel %vm795_vm2, %v29724_v10, -inf  ;;  %26607 = vmatprep.subr.mxu1 %v35375_v15 }
 0x2e8   : > { %v942_v39 = vpop.f32.mrb[2].mxu1  ;;  %5723 = vmax.xlane.f32.xlu1 %v5722_v21  ;;  %26612 = vmatprep.subr.mxu0 %v35375_v15 }
 0x2e9   : > { %v29732_v16 = vmul.f32 0.35355338, %v942_v39  ;;  %v26486_v60 = vpop.f32.mrb[3].mxu1  ;;  %26600 = vmatmul.mubr.msk.f32.vlgmr.msra.gmra.mrb[32].mxu1 %vm795_vm2, %v29468_v29  ;;  %v29736_v45 = vpop.permute.xlu1 %3834 }
 0x2ea   : > { %26605 = vmatmul.mubr.msk.f32.vlgmr.msra.gmra.mrb[32].mxu0 %vm795_vm2, %v29462_v28  ;;  %v29740_v56 = vpop.permute.xlu0 %3910  ;;  %26609 = vmatprep.mubr.msk.f32.mxu1 %vm28836_vm1, %v35375_v15 }
 0x2eb   : > { %35392 = vst [vmem:[#allocation84_spill] sm:$0xff] %v29732_v16  ;;  %v5725_v1 = vsel %vm795_vm2, %v29732_v16, -inf  ;;  %26614 = vmatprep.mubr.msk.f32.mxu0 %vm28836_vm1, %v35375_v15 }
 0x2ec   : > { %5726 = vmax.xlane.f32.xlu0 %v5725_v1 }
 0x2ed   : > { %v29750_v39 = vpop.permute.xlu1 %5050 }
 0x2ee   : > { %v29748_v21 = vpop.permute.xlu0 %5126  ;;  %35393 = vst [vmem:[#allocation85_spill] sm:$0xff] %v29750_v39 }
 0x2f2   : > { %v2847_v60 = vpop.permute.xlu0 %2846 }
 0x2f3   : > { %26613 = vmatpush3.xpose.msk.msra.mxu0 %vm795_vm2, %v2847_v60 }
 0x2f4   : > { %v2771_v28 = vpop.permute.xlu1 %2770  ;;  %26622 = vmatprep.subr.mxu0 %v35375_v15 }
 0x2f5   : > { %26608 = vmatpush3.xpose.msk.msra.mxu1 %vm795_vm2, %v2771_v28 }
 0x2f6   : > { %26615 = vmatmul.mubr.msk.f32.vlgmr.msra.gmra.mrb[34].mxu0 %vm795_vm2, %v29508_v37  ;;  %v29757_v29 = vpop.permute.xlu0 %4062  ;;  %26617 = vmatprep.subr.mxu1 %v35375_v15 }
 0x2f7   : > { %26624 = vmatprep.mubr.msk.f32.mxu0 %vm28836_vm1, %v35375_v15 }
 0x2f8   : > { %26610 = vmatmul.mubr.msk.f32.vlgmr.msra.gmra.mrb[34].mxu1 %vm795_vm2, %v29538_v33  ;;  %v29764_v1 = vpop.permute.xlu1 %3986 }
 0x2f9   : > { %26619 = vmatprep.mubr.msk.f32.mxu1 %vm28836_vm1, %v35375_v15 }
 0x2fa   : > { %v29768_v60 = vpop.permute.xlu0 %5278 }
 0x2fc   : > { %v29770_v28 = vpop.permute.xlu1 %5202 }
 0x2fd   : > { %35394 = vst [vmem:[#allocation86_spill] sm:$0xff] %v29770_v28 }
 0x2fe   : > { %v2999_v37 = vpop.permute.xlu0 %2998 }
 0x2ff   : > { %26623 = vmatpush3.xpose.msk.msra.mxu0 %vm795_vm2, %v2999_v37 }
 0x300   : > { %v2923_v16 = vpop.permute.xlu1 %2922  ;;  %26632 = vmatprep.subr.mxu0 %v35375_v15 }
 0x301   : > { %26618 = vmatpush3.xpose.msk.msra.mxu1 %vm795_vm2, %v2923_v16 }
 0x302   : > { %26625 = vmatmul.mubr.msk.f32.vlgmr.msra.gmra.mrb[36].mxu0 %vm795_vm2, %v29556_v23  ;;  %26627 = vmatprep.subr.mxu1 %v35375_v15 }
 0x303   : > { %26634 = vmatprep.mubr.msk.f32.mxu0 %vm28836_vm1, %v35375_v15 }
 0x304   : > { %26620 = vmatmul.mubr.msk.f32.vlgmr.msra.gmra.mrb[36].mxu1 %vm795_vm2, %v29562_v0  ;;  %v29784_v37 = vpop.permute.xlu0 %4214 }
 0x305   : > { %26629 = vmatprep.mubr.msk.f32.mxu1 %vm28836_vm1, %v35375_v15 }
 0x308   : > { %v1018_v33 = vpop.f32.mrb[4].mxu1  ;;  %v29788_v58 = vpop.permute.xlu1 %4138 }
 0x309   : > { %v29786_v10 = vmul.f32 0.35355338, %v1018_v33  ;;  %v26491_v16 = vpop.f32.mrb[5].mxu1  ;;  %v29792_v40 = vpop.permute.xlu0 %5430 }
 0x30b   : > { %v5728_v23 = vsel %vm795_vm2, %v29786_v10, -inf }
 0x30c   : > { %v1094_v28 = vpop.f32.mrb[6].mxu1  ;;  %5729 = vmax.xlane.f32.xlu0 %v5728_v23  ;;  %v29799_v33 = vpop.permute.xlu1 %5354 }
 0x30d   : > { %v29794_v42 = vmul.f32 0.35355338, %v1094_v28  ;;  %v26496_v0 = vpop.f32.mrb[7].mxu1 }
 0x30f   : > { %v5731_v11 = vsel %vm795_vm2, %v29794_v42, -inf }
 0x310   : > { %5732 = vmax.xlane.f32.xlu1 %v5731_v11  ;;  %v3151_v39 = vpop.permute.xlu0 %3150  ;;  %v29809_v23 = vpop.permute.xlu1 %7870 }
 0x311   : > { %26633 = vmatpush3.xpose.msk.msra.mxu0 %vm795_vm2, %v3151_v39 }
 0x312   : > { %26642 = vmatprep.subr.mxu0 %v35375_v15 }
 0x314   : > { %26635 = vmatmul.mubr.msk.f32.vlgmr.msra.gmra.mrb[38].mxu0 %vm795_vm2, %v29596_v3 }
 0x315   : > { %26643 = vmatpush3.xpose.msk.msra.mxu0 %vm795_vm2, %v29646_v41  ;;  %26644 = vmatprep.mubr.msk.f32.mxu0 %vm28836_vm1, %v35375_v15 }
 0x316   : > { %26652 = vmatprep.subr.mxu0 %v35375_v15 }
 0x318   : > { %v1170_v0 = vpop.f32.mrb[8].mxu1  ;;  %26645 = vmatmul.mubr.msk.f32.vlgmr.msra.gmra.mrb[40].mxu0 %vm795_vm2, %v29275_v49 }
 0x319   : > { %v29813_v11 = vmul.f32 0.35355338, %v1170_v0  ;;  %v26501_v39 = vpop.f32.mrb[9].mxu1  ;;  %26653 = vmatpush3.xpose.msk.msra.mxu0 %vm795_vm2, %v29674_v7  ;;  %26654 = vmatprep.mubr.msk.f32.mxu0 %vm28836_vm1, %v35375_v15 }
 0x31a   : > { %26662 = vmatprep.subr.mxu0 %v35375_v15 }
 0x31b   : > { %v5734_v41 = vsel %vm795_vm2, %v29813_v11, -inf }
 0x31c   : > { %v29822_v28 = vpop.f32.mrb[10].mxu1  ;;  %5735 = vmax.xlane.f32.xlu0 %v5734_v41  ;;  %v3075_v16 = vpop.permute.xlu1 %3074  ;;  %26655 = vmatmul.mubr.msk.f32.vlgmr.msra.gmra.mrb[42].mxu0 %vm795_vm2, %v29308_v48 }
 0x31d   : > { %v26506_v0 = vpop.f32.mrb[11].mxu1  ;;  %26628 = vmatpush3.xpose.msk.msra.mxu1 %vm795_vm2, %v3075_v16  ;;  %26663 = vmatpush3.xpose.msk.msra.mxu0 %vm795_vm2, %v29694_v62  ;;  %v35396_v16 = vld [vmem:[#allocation55_spill] sm:$0xff] }
 0x31e   : > { %26664 = vmatprep.mubr.msk.f32.mxu0 %vm28836_vm1, %v35375_v15  ;;  %26637 = vmatprep.subr.mxu1 %v35375_v15  ;;  %v35397_v0 = vld [vmem:[#allocation76_spill] sm:$0xff] }
 0x31f   : > { %26672 = vmatprep.subr.mxu0 %v35375_v15 }
 0x320   : > { %26630 = vmatmul.mubr.msk.f32.vlgmr.msra.gmra.mrb[38].mxu1 %vm795_vm2, %v29624_v59  ;;  %26665 = vmatmul.mubr.msk.f32.vlgmr.msra.gmra.mrb[44].mxu0 %vm795_vm2, %v29378_v12 }
 0x321   : > { %26638 = vmatpush3.xpose.msk.msra.mxu1 %vm795_vm2, %v29652_v47  ;;  %26673 = vmatpush3.xpose.msk.msra.mxu0 %vm795_vm2, %v29714_v9 }
 0x322   : > { %26639 = vmatprep.mubr.msk.f32.mxu1 %vm28836_vm1, %v35375_v15  ;;  %26674 = vmatprep.mubr.msk.f32.mxu0 %vm28836_vm1, %v35375_v15 }
 0x323   : > { %26647 = vmatprep.subr.mxu1 %v35375_v15  ;;  %26682 = vmatprep.subr.mxu0 %v35375_v15 }
 0x324   : > { %26640 = vmatmul.mubr.msk.f32.vlgmr.msra.gmra.mrb[40].mxu1 %vm795_vm2, %v29288_v53  ;;  %26675 = vmatmul.mubr.msk.f32.vlgmr.msra.gmra.mrb[46].mxu0 %vm795_vm2, %v29420_v26 }
 0x325   : > { %26648 = vmatpush3.xpose.msk.msra.mxu1 %vm795_vm2, %v29668_v44  ;;  %26683 = vmatpush3.xpose.msk.msra.mxu0 %vm795_vm2, %v29740_v56 }
 0x326   : > { %26649 = vmatprep.mubr.msk.f32.mxu1 %vm28836_vm1, %v35375_v15  ;;  %26684 = vmatprep.mubr.msk.f32.mxu0 %vm28836_vm1, %v35375_v15 }
 0x327   : > { %26657 = vmatprep.subr.mxu1 %v35375_v15  ;;  %26692 = vmatprep.subr.mxu0 %v35375_v15 }
 0x328   : > { %26650 = vmatmul.mubr.msk.f32.vlgmr.msra.gmra.mrb[42].mxu1 %vm795_vm2, %v29338_v5  ;;  %26685 = vmatmul.mubr.msk.f32.vlgmr.msra.gmra.mrb[48].mxu0 %vm795_vm2, %v29478_v22 }
 0x329   : > { %26658 = vmatpush3.xpose.msk.msra.mxu1 %vm795_vm2, %v29688_v51  ;;  %26693 = vmatpush3.xpose.msk.msra.mxu0 %vm795_vm2, %v29757_v29 }
 0x32a   : > { %26659 = vmatprep.mubr.msk.f32.mxu1 %vm28836_vm1, %v35375_v15  ;;  %26694 = vmatprep.mubr.msk.f32.mxu0 %vm28836_vm1, %v35375_v15 }
 0x32b   : > { %26667 = vmatprep.subr.mxu1 %v35375_v15  ;;  %26702 = vmatprep.subr.mxu0 %v35375_v15 }
 0x32c   : > { %v1322_v9 = vpop.f32.mrb[12].mxu1  ;;  %26660 = vmatmul.mubr.msk.f32.vlgmr.msra.gmra.mrb[44].mxu1 %vm795_vm2, %v29386_v13  ;;  %26695 = vmatmul.mubr.msk.f32.vlgmr.msra.gmra.mrb[50].mxu0 %vm795_vm2, %v29520_v52 }
 0x32d   : > { %v29879_v7 = vmul.f32 0.35355338, %v1322_v9  ;;  %v26511_v29 = vpop.f32.mrb[13].mxu1  ;;  %26668 = vmatpush3.xpose.msk.msra.mxu1 %vm795_vm2, %v29710_v20  ;;  %26703 = vmatpush3.xpose.msk.msra.mxu0 %vm795_vm2, %v29784_v37  ;;  %v4367_v20 = vpop.permute.xlu0 %4366  ;;  %v35398_v9 = vld [vmem:[#allocation86_spill] sm:$0xff] }
 0x32e   : > { %26669 = vmatprep.mubr.msk.f32.mxu1 %vm28836_vm1, %v35375_v15  ;;  %26704 = vmatprep.mubr.msk.f32.mxu0 %vm28836_vm1, %v35375_v15 }
 0x32f   : > { %v5740_v47 = vsel %vm795_vm2, %v29879_v7, -inf  ;;  %26677 = vmatprep.subr.mxu1 %v35375_v15  ;;  %26712 = vmatprep.subr.mxu0 %v35375_v15 }
 0x330   : > { %v29893_v44 = vpop.f32.mrb[14].mxu1  ;;  %5741 = vmax.xlane.f32.xlu0 %v5740_v47  ;;  %26670 = vmatmul.mubr.msk.f32.vlgmr.msra.gmra.mrb[46].mxu1 %vm795_vm2, %v29434_v34  ;;  %v35399_v47 = vld [vmem:[#allocation21_spill] sm:$0xff] }
 0x331   : > { %26705 = vmatmul.mubr.msk.f32.vlgmr.msra.gmra.mrb[52].mxu0 %vm795_vm2, %v29570_v2  ;;  %v26516_v51 = vpop.f32.mrb[15].mxu1  ;;  %26678 = vmatpush3.xpose.msk.msra.mxu1 %vm795_vm2, %v29736_v45 }
 0x332   : > { %26713 = vmatpush3.xpose.msk.msra.mxu0 %vm795_vm2, %v4367_v20  ;;  %26679 = vmatprep.mubr.msk.f32.mxu1 %vm28836_vm1, %v35375_v15  ;;  %v35400_v20 = vld [vmem:[#allocation63_spill] sm:$0xff] }
 0x333   : > { %26714 = vmatprep.mubr.msk.f32.mxu0 %vm28836_vm1, %v35375_v15  ;;  %26687 = vmatprep.subr.mxu1 %v35375_v15 }
 0x334   : > { %26680 = vmatmul.mubr.msk.f32.vlgmr.msra.gmra.mrb[48].mxu1 %vm795_vm2, %v29488_v27  ;;  %26722 = vmatprep.subr.mxu0 %v35375_v15 }
 0x335   : > { %26715 = vmatmul.mubr.msk.f32.vlgmr.msra.gmra.mrb[54].mxu0 %vm795_vm2, %v29606_v36  ;;  %26688 = vmatpush3.xpose.msk.msra.mxu1 %vm795_vm2, %v29764_v1 }
 0x336   : > { %26723 = vmatpush3.xpose.msk.msra.mxu0 %vm795_vm2, %v29656_v25  ;;  %26689 = vmatprep.mubr.msk.f32.mxu1 %vm28836_vm1, %v35375_v15  ;;  %v4291_v25 = vpop.permute.xlu1 %4290 }
 0x337   : > { %26724 = vmatprep.mubr.msk.f32.mxu0 %vm28836_vm1, %v35375_v15  ;;  %26697 = vmatprep.subr.mxu1 %v35375_v15 }
 0x338   : > { %26690 = vmatmul.mubr.msk.f32.vlgmr.msra.gmra.mrb[50].mxu1 %vm795_vm2, %v29534_v38  ;;  %26732 = vmatprep.subr.mxu0 %v35375_v15 }
 0x339   : > { %26725 = vmatmul.mubr.msk.f32.vlgmr.msra.gmra.mrb[56].mxu0 %vm795_vm2, %v29290_v54  ;;  %26698 = vmatpush3.xpose.msk.msra.mxu1 %vm795_vm2, %v29788_v58 }
 0x33a   : > { %26733 = vmatpush3.xpose.msk.msra.mxu0 %vm795_vm2, %v29682_v63  ;;  %26699 = vmatprep.mubr.msk.f32.mxu1 %vm28836_vm1, %v35375_v15  ;;  %v5507_v51 = vpop.permute.xlu1 %5506 }
 0x33b   : > { %26734 = vmatprep.mubr.msk.f32.mxu0 %vm28836_vm1, %v35375_v15  ;;  %26707 = vmatprep.subr.mxu1 %v35375_v15 }
 0x33c   : > { %v1550_v62 = vpop.f32.mrb[16].mxu0  ;;  %26700 = vmatmul.mubr.msk.f32.vlgmr.msra.gmra.mrb[52].mxu1 %vm795_vm2, %v29578_v14  ;;  %26742 = vmatprep.subr.mxu0 %v35375_v15 }
 0x33d   : > { %v29938_v45 = vmul.f32 0.35355338, %v1550_v62  ;;  %26735 = vmatmul.mubr.msk.f32.vlgmr.msra.gmra.mrb[58].mxu0 %vm795_vm2, %v29328_v24  ;;  %v26526_v58 = vpop.f32.mrb[17].mxu0  ;;  %26708 = vmatpush3.xpose.msk.msra.mxu1 %vm795_vm2, %v4291_v25  ;;  %v35401_v25 = vld [vmem:[#allocation71_spill] sm:$0xff] }
 0x33e   : > { %26743 = vmatpush3.xpose.msk.msra.mxu0 %vm795_vm2, %v29702_v19  ;;  %26709 = vmatprep.mubr.msk.f32.mxu1 %vm28836_vm1, %v35375_v15  ;;  %v35402_v62 = vld [vmem:[#allocation79_spill] sm:$0xff] }
 0x33f   : > { %26744 = vmatprep.mubr.msk.f32.mxu0 %vm28836_vm1, %v35375_v15  ;;  %v5749_v63 = vsel %vm795_vm2, %v29938_v45, -inf  ;;  %26717 = vmatprep.subr.mxu1 %v35375_v15 }
 0x340   : > { %v1474_v56 = vpop.f32.mrb[16].mxu1  ;;  %5750 = vmax.xlane.f32.xlu1 %v5749_v63  ;;  %26710 = vmatmul.mubr.msk.f32.vlgmr.msra.gmra.mrb[54].mxu1 %vm795_vm2, %v29620_v50 }
 0x341   : > { %v29954_v1 = vmul.f32 0.35355338, %v1474_v56  ;;  %26745 = vmatmul.mubr.msk.f32.vlgmr.msra.gmra.mrb[60].mxu0 %vm795_vm2, %v29390_v17  ;;  %26752 = vmatprep.subr.mxu0 %v35375_v15  ;;  %v26521_v19 = vpop.f32.mrb[17].mxu1 }
 0x342   : > { %26718 = vmatpush3.xpose.msk.msra.mxu1 %vm795_vm2, %v29660_v43  ;;  %26753 = vmatpush3.xpose.msk.msra.mxu0 %vm795_vm2, %v29722_v31 }
 0x343   : > { %26719 = vmatprep.mubr.msk.f32.mxu1 %vm28836_vm1, %v35375_v15  ;;  %26754 = vmatprep.mubr.msk.f32.mxu0 %vm28836_vm1, %v35375_v15  ;;  %v5746_v37 = vsel %vm795_vm2, %v29954_v1, -inf }
 0x344   : > { %5747 = vmax.xlane.f32.xlu0 %v5746_v37  ;;  %26727 = vmatprep.subr.mxu1 %v35375_v15 }
 0x345   : > { %26720 = vmatmul.mubr.msk.f32.vlgmr.msra.gmra.mrb[56].mxu1 %vm795_vm2, %v29300_v55  ;;  %26755 = vmatmul.mubr.msk.f32.vlgmr.msra.gmra.mrb[62].mxu0 %vm795_vm2, %v29426_v30 }
 0x346   : > { %26762 = vmatprep.subr.mxu0 %v35375_v15  ;;  %26728 = vmatpush3.xpose.msk.msra.mxu1 %vm795_vm2, %v29680_v61 }
 0x347   : > { %26763 = vmatpush3.xpose.msk.msra.mxu0 %vm795_vm2, %v29748_v21  ;;  %26729 = vmatprep.mubr.msk.f32.mxu1 %vm28836_vm1, %v35375_v15  ;;  %v30014_v21 = vmul.f32 0.35355338, %v29822_v28 }
 0x348   : > { %26764 = vmatprep.mubr.msk.f32.mxu0 %vm28836_vm1, %v35375_v15  ;;  %26737 = vmatprep.subr.mxu1 %v35375_v15 }
 0x349   : > { %26730 = vmatmul.mubr.msk.f32.vlgmr.msra.gmra.mrb[58].mxu1 %vm795_vm2, %v29346_v6  ;;  %26772 = vmatprep.subr.mxu0 %v35375_v15  ;;  %v5737_v39 = vsel %vm795_vm2, %v30014_v21, -inf }
 0x34a   : > { %26765 = vmatmul.mubr.msk.f32.vlgmr.msra.gmra.mrb[64].mxu0 %vm795_vm2, %v29492_v35  ;;  %26738 = vmatpush3.xpose.msk.msra.mxu1 %vm795_vm2, %v29700_v4 }
 0x34b   : > { %26773 = vmatpush3.xpose.msk.msra.mxu0 %vm795_vm2, %v29768_v60  ;;  %26739 = vmatprep.mubr.msk.f32.mxu1 %vm28836_vm1, %v35375_v15 }
 0x34c   : > { %26774 = vmatprep.mubr.msk.f32.mxu0 %vm28836_vm1, %v35375_v15  ;;  %v1702_v43 = vpop.f32.mrb[18].mxu0  ;;  %26747 = vmatprep.subr.mxu1 %v35375_v15 }
 0x34d   : > { %v29998_v61 = vmul.f32 0.35355338, %v1702_v43  ;;  %26740 = vmatmul.mubr.msk.f32.vlgmr.msra.gmra.mrb[60].mxu1 %vm795_vm2, %v29400_v18  ;;  %26782 = vmatprep.subr.mxu0 %v35375_v15  ;;  %v26536_v4 = vpop.f32.mrb[19].mxu0 }
 0x34e   : > { %26775 = vmatmul.mubr.msk.f32.vlgmr.msra.gmra.mrb[66].mxu0 %vm795_vm2, %v29528_v57  ;;  %26748 = vmatpush3.xpose.msk.msra.mxu1 %vm795_vm2, %v29720_v8  ;;  %v5583_v8 = vpop.permute.xlu0 %5582 }
 0x34f   : > { %26783 = vmatpush3.xpose.msk.msra.mxu0 %vm795_vm2, %v29792_v40  ;;  %26749 = vmatprep.mubr.msk.f32.mxu1 %vm28836_vm1, %v35375_v15  ;;  %v5755_v31 = vsel %vm795_vm2, %v29998_v61, -inf  ;;  %v35395_v40 = vld [vmem:[#allocation85_spill] sm:$0xff] }
 0x350   : > { %26784 = vmatprep.mubr.msk.f32.mxu0 %vm28836_vm1, %v35375_v15  ;;  %5756 = vmax.xlane.f32.xlu1 %v5755_v31 }
 0x351   : > { %26750 = vmatmul.mubr.msk.f32.vlgmr.msra.gmra.mrb[62].mxu1 %vm795_vm2, %v29448_v46  ;;  %26757 = vmatprep.subr.mxu1 %v35375_v15 }
 0x352   : > { %26785 = vmatmul.mubr.msk.f32.vlgmr.msra.gmra.mrb[68].mxu0 %vm795_vm2, %v29582_v32  ;;  %26792 = vmatprep.subr.mxu0 %v35375_v15 }
 0x353   : > { %26758 = vmatpush3.xpose.msk.msra.mxu1 %vm795_vm2, %v35395_v40  ;;  %26793 = vmatpush3.xpose.msk.msra.mxu0 %vm795_vm2, %v5583_v8 }
 0x354   : > { %26759 = vmatprep.mubr.msk.f32.mxu1 %vm28836_vm1, %v35375_v15  ;;  %26794 = vmatprep.mubr.msk.f32.mxu0 %vm28836_vm1, %v35375_v15  ;;  %v1626_v60 = vpop.f32.mrb[18].mxu1 }
 0x355   : > { %v30033_v41 = vmul.f32 0.35355338, %v1626_v60  ;;  %5738 = vmax.xlane.f32.xlu1 %v5737_v39  ;;  %26767 = vmatprep.subr.mxu1 %v35375_v15  ;;  %v26531_v28 = vpop.f32.mrb[19].mxu1  ;;  %v30082_v39 = vmul.f32 0.35355338, %v29893_v44 }
 0x356   : > { %26760 = vmatmul.mubr.msk.f32.vlgmr.msra.gmra.mrb[64].mxu1 %vm795_vm2, %v35396_v16  ;;  %26795 = vmatmul.mubr.msk.f32.vlgmr.msra.gmra.mrb[70].mxu0 %vm795_vm2, %v35397_v0 }
 0x357   : > { %26802 = vmatprep.subr.mxu0 %v35375_v15  ;;  %26768 = vmatpush3.xpose.msk.msra.mxu1 %vm795_vm2, %v35398_v9  ;;  %v5752_v29 = vsel %vm795_vm2, %v30033_v41, -inf }
 0x358   : > { %26803 = vmatpush3.msra.mxu0 %v35399_v47  ;;  %26769 = vmatprep.mubr.msk.f32.mxu1 %vm28836_vm1, %v35375_v15 }
 0x359   : > { %5753 = vmax.xlane.f32.xlu0 %v5752_v29  ;;  %26777 = vmatprep.subr.mxu1 %v35375_v15  ;;  %v5743_v29 = vsel %vm795_vm2, %v30082_v39, -inf }
 0x35a   : > { %26770 = vmatmul.mubr.msk.f32.vlgmr.msra.gmra.mrb[66].mxu1 %vm795_vm2, %v35400_v20  ;;  %26804 = vmatprep.mubr.msk.f32.mxu0 %vm28836_vm1, %v35375_v15 }
 0x35b   : > { %26778 = vmatpush3.xpose.msk.msra.mxu1 %vm795_vm2, %v29799_v33  ;;  %26779 = vmatprep.mubr.msk.f32.mxu1 %vm28836_vm1, %v35375_v15  ;;  %v35403_v33 = vld [vmem:[#allocation26_spill] sm:$0xff] }
 0x35c   : > { %26787 = vmatprep.subr.mxu1 %v35375_v15  ;;  %26812 = vmatprep.subr.mxu0 %v35375_v15 }
 0x35e   : > { %26780 = vmatmul.mubr.msk.f32.vlgmr.msra.gmra.mrb[68].mxu1 %vm795_vm2, %v35401_v25 }
 0x35f   : > { %26788 = vmatpush3.xpose.msk.msra.mxu1 %vm795_vm2, %v5507_v51  ;;  %26789 = vmatprep.mubr.msk.f32.mxu1 %vm28836_vm1, %v35375_v15 }
 0x360   : > { %26797 = vmatprep.subr.mxu1 %v35375_v15 }
 0x362   : > { %26790 = vmatmul.mubr.msk.f32.vlgmr.msra.gmra.mrb[70].mxu1 %vm795_vm2, %v35402_v62 }
 0x363   : > { %26798 = vmatpush3.msra.mxu1 %v35403_v33  ;;  %26799 = vmatprep.mubr.msk.f32.mxu1 %vm28836_vm1, %v35375_v15 }
 0x364   : > { %v1854_v58 = vpop.f32.mrb[20].mxu0  ;;  %26807 = vmatprep.subr.mxu1 %v35375_v15 }
 0x365   : > { %v30071_v63 = vmul.f32 0.35355338, %v1854_v58  ;;  %v26546_v56 = vpop.f32.mrb[21].mxu0 }
 0x367   : > { %v5761_v19 = vsel %vm795_vm2, %v30071_v63, -inf }
 0x368   : > { %v1778_v37 = vpop.f32.mrb[20].mxu1  ;;  %5762 = vmax.xlane.f32.xlu1 %v5761_v19 }
 0x369   : > { %v30075_v43 = vmul.f32 0.35355338, %v1778_v37  ;;  %v26541_v4 = vpop.f32.mrb[21].mxu1 }
 0x36b   : > { %v5758_v31 = vsel %vm795_vm2, %v30075_v43, -inf }
 0x36c   : > { %5759 = vmax.xlane.f32.xlu0 %v5758_v31 }
 0x375   : > { %v2006_v8 = vpop.f32.mrb[22].mxu0 }
 0x376   : > { %v30079_v40 = vmul.f32 0.35355338, %v2006_v8  ;;  %v26556_v60 = vpop.f32.mrb[23].mxu0 }
 0x378   : > { %v5767_v28 = vsel %vm795_vm2, %v30079_v40, -inf }
 0x379   : > { %5768 = vmax.xlane.f32.xlu1 %v5767_v28 }
 0x37c   : > { %v1930_v9 = vpop.f32.mrb[22].mxu1 }
 0x37d   : > { %v30088_v47 = vmul.f32 0.35355338, %v1930_v9  ;;  %5744 = vmax.xlane.f32.xlu1 %v5743_v29  ;;  %v26551_v51 = vpop.f32.mrb[23].mxu1 }
 0x37f   : > { %v5764_v33 = vsel %vm795_vm2, %v30088_v47, -inf }
 0x380   : > { %5765 = vmax.xlane.f32.xlu0 %v5764_v33 }
 0x388   : > { %v2158_v58 = vpop.f32.mrb[24].mxu0 }
 0x389   : > { %v30092_v56 = vmul.f32 0.35355338, %v2158_v58  ;;  %v26566_v44 = vpop.f32.mrb[25].mxu0 }
 0x38b   : > { %v5773_v19 = vsel %vm795_vm2, %v30092_v56, -inf }
 0x38c   : > { %v2082_v37 = vpop.f32.mrb[24].mxu1  ;;  %5774 = vmax.xlane.f32.xlu1 %v5773_v19 }
 0x38d   : > { %v30096_v4 = vmul.f32 0.35355338, %v2082_v37  ;;  %v26561_v31 = vpop.f32.mrb[25].mxu1 }
 0x38f   : > { %v5770_v8 = vsel %vm795_vm2, %v30096_v4, -inf }
 0x390   : > { %5771 = vmax.xlane.f32.xlu0 %v5770_v8 }
 0x398   : > { %v2234_v60 = vpop.f32.mrb[26].mxu1  ;;  %v2310_v28 = vpop.f32.mrb[26].mxu0 }
 0x399   : > { %v30100_v9 = vmul.f32 0.35355338, %v2234_v60  ;;  %v30102_v29 = vmul.f32 0.35355338, %v2310_v28  ;;  %v26571_v51 = vpop.f32.mrb[27].mxu1  ;;  %v26576_v33 = vpop.f32.mrb[27].mxu0 }
 0x39b   : > { %v5776_v58 = vsel %vm795_vm2, %v30100_v9, -inf  ;;  %v5779_v44 = vsel %vm795_vm2, %v30102_v29, -inf }
 0x39c   : > { %5777 = vmax.xlane.f32.xlu0 %v5776_v58  ;;  %5780 = vmax.xlane.f32.xlu1 %v5779_v44 }
 0x3a4   : > { %v2386_v19 = vpop.f32.mrb[28].mxu1  ;;  %v2462_v37 = vpop.f32.mrb[28].mxu0 }
 0x3a5   : > { %v30108_v31 = vmul.f32 0.35355338, %v2386_v19  ;;  %v30110_v8 = vmul.f32 0.35355338, %v2462_v37  ;;  %v26581_v60 = vpop.f32.mrb[29].mxu1  ;;  %v26586_v62 = vpop.f32.mrb[29].mxu0 }
 0x3a7   : > { %v5782_v28 = vsel %vm795_vm2, %v30108_v31, -inf  ;;  %v5785_v51 = vsel %vm795_vm2, %v30110_v8, -inf }
 0x3a8   : > { %5783 = vmax.xlane.f32.xlu0 %v5782_v28  ;;  %5786 = vmax.xlane.f32.xlu1 %v5785_v51 }
 0x3b0   : > { %v2538_v33 = vpop.f32.mrb[30].mxu1  ;;  %v2614_v25 = vpop.f32.mrb[30].mxu0 }
 0x3b1   : > { %v30116_v58 = vmul.f32 0.35355338, %v2538_v33  ;;  %v30118_v44 = vmul.f32 0.35355338, %v2614_v25  ;;  %v26591_v19 = vpop.f32.mrb[31].mxu1  ;;  %v26596_v0 = vpop.f32.mrb[31].mxu0 }
 0x3b3   : > { %v5788_v37 = vsel %vm795_vm2, %v30116_v58, -inf  ;;  %v5791_v62 = vsel %vm795_vm2, %v30118_v44, -inf }
 0x3b4   : > { %5789 = vmax.xlane.f32.xlu0 %v5788_v37  ;;  %5792 = vmax.xlane.f32.xlu1 %v5791_v62 }
 0x3bc   : > { %v2690_v60 = vpop.f32.mrb[32].mxu1 }
 0x3bd   : > { %v30124_v20 = vmul.f32 0.35355338, %v2690_v60  ;;  %v2766_v28 = vpop.f32.mrb[32].mxu0  ;;  %v26601_v51 = vpop.f32.mrb[33].mxu1 }
 0x3be   : > { %v30126_v32 = vmul.f32 0.35355338, %v2766_v28  ;;  %v26606_v33 = vpop.f32.mrb[33].mxu0 }
 0x3bf   : > { %v5794_v25 = vsel %vm795_vm2, %v30124_v20, -inf }
 0x3c0   : > { %5795 = vmax.xlane.f32.xlu0 %v5794_v25  ;;  %v5797_v0 = vsel %vm795_vm2, %v30126_v32, -inf }
 0x3c1   : > { %5798 = vmax.xlane.f32.xlu1 %v5797_v0 }
 0x3c9   : > { %v2918_v19 = vpop.f32.mrb[34].mxu0 }
 0x3ca   : > { %v30132_v16 = vmul.f32 0.35355338, %v2918_v19  ;;  %v26616_v37 = vpop.f32.mrb[35].mxu0 }
 0x3cb   : > { %v2842_v62 = vpop.f32.mrb[34].mxu1 }
 0x3cc   : > { %v30134_v60 = vmul.f32 0.35355338, %v2842_v62  ;;  %v26611_v57 = vpop.f32.mrb[35].mxu1  ;;  %v5803_v28 = vsel %vm795_vm2, %v30132_v16, -inf }
 0x3cd   : > { %5804 = vmax.xlane.f32.xlu1 %v5803_v28  ;;  %v5724_v28 = vpop.xlane.xlu1 %5723 }
 0x3ce   : > { %v5800_v51 = vsel %vm795_vm2, %v30134_v60, -inf }
 0x3cf   : > { %5801 = vmax.xlane.f32.xlu0 %v5800_v51 }
 0x3d5   : > { %v3070_v33 = vpop.f32.mrb[36].mxu0 }
 0x3d6   : > { %v30140_v25 = vmul.f32 0.35355338, %v3070_v33  ;;  %v26626_v0 = vpop.f32.mrb[37].mxu0  ;;  %v35404_v33 = vld [vmem:[#allocation83_spill] sm:$0xff] }
 0x3d7   : > { %v2994_v46 = vpop.f32.mrb[36].mxu1  ;;  %v5914_v30 = vsub.f32 %v35404_v33, %v5724_v28  ;;  %v30151_v0 = vpop.permute.xlu0 %7794  ;;  %v35405_v33 = vld [vmem:[#allocation84_spill] sm:$0xff] }
 0x3d8   : > { %v30142_v19 = vmul.f32 0.35355338, %v2994_v46  ;;  %v26621_v37 = vpop.f32.mrb[37].mxu1  ;;  %v5809_v62 = vsel %vm795_vm2, %v30140_v25, -inf }
 0x3d9   : > { %5810 = vmax.xlane.f32.xlu1 %v5809_v62  ;;  %v5978_v17 = vmul.f32 1.442695, %v5914_v30 }
 0x3da   : > { %v5806_v57 = vsel %vm795_vm2, %v30142_v19, -inf }
 0x3db   : > { %5807 = vmax.xlane.f32.xlu0 %v5806_v57  ;;  %v5727_v6 = vpop.xlane.xlu0 %5726  ;;  %28150 = vpow2.f32 %v5978_v17 }
 0x3dc   : > { %v5915_v54 = vsub.f32 %v35405_v33, %v5727_v6 }
 0x3df   : > { %v5730_v2 = vpop.xlane.xlu0 %5729 }
 0x3e7   : > { %v3222_v35 = vpop.f32.mrb[38].mxu0 }
 0x3e8   : > { %v30148_v18 = vmul.f32 0.35355338, %v3222_v35  ;;  %v26636_v51 = vpop.f32.mrb[39].mxu0 }
 0x3ea   : > { %v5815_v46 = vsel %vm795_vm2, %v30148_v18, -inf }
 0x3eb   : > { %5816 = vmax.xlane.f32.xlu1 %v5815_v46  ;;  %v3374_v37 = vpop.f32.mrb[40].mxu0 }
 0x3ec   : > { %v30155_v24 = vmul.f32 0.35355338, %v3374_v37  ;;  %v26646_v62 = vpop.f32.mrb[41].mxu0 }
 0x3ee   : > { %v5821_v57 = vsel %vm795_vm2, %v30155_v24, -inf }
 0x3ef   : > { %5822 = vmax.xlane.f32.xlu1 %v5821_v57  ;;  %v3526_v35 = vpop.f32.mrb[42].mxu0  ;;  %v5980_v57 = vmul.f32 1.442695, %v5915_v54 }
 0x3f0   : > { %v30159_v51 = vmul.f32 0.35355338, %v3526_v35  ;;  %v26656_v28 = vpop.f32.mrb[43].mxu0 }
 0x3f1   : > { %28152 = vpow2.f32 %v5980_v57 }
 0x3f2   : > { %v5827_v46 = vsel %vm795_vm2, %v30159_v51, -inf }
 0x3f3   : > { %v3146_v55 = vpop.f32.mrb[38].mxu1  ;;  %5828 = vmax.xlane.f32.xlu1 %v5827_v46  ;;  %v3678_v37 = vpop.f32.mrb[44].mxu0 }
 0x3f4   : > { %v30164_v62 = vmul.f32 0.35355338, %v3146_v55  ;;  %v30166_v30 = vmul.f32 0.35355338, %v3678_v37  ;;  %v26631_v36 = vpop.f32.mrb[39].mxu1  ;;  %v26666_v50 = vpop.f32.mrb[45].mxu0 }
 0x3f5   : > { %v5916_v36 = vsub.f32 %v29786_v10, %v5730_v2  ;;  %v5733_v46 = vpop.xlane.xlu1 %5732 }
 0x3f6   : > { %v5812_v35 = vsel %vm795_vm2, %v30164_v62, -inf  ;;  %v5833_v6 = vsel %vm795_vm2, %v30166_v30, -inf  ;;  %v5917_v10 = vsub.f32 %v29794_v42, %v5733_v46  ;;  %v5736_v46 = vpop.xlane.xlu0 %5735 }
 0x3f7   : > { %5813 = vmax.xlane.f32.xlu0 %v5812_v35  ;;  %v3298_v17 = vpop.f32.mrb[40].mxu1  ;;  %5834 = vmax.xlane.f32.xlu1 %v5833_v6  ;;  %v3830_v28 = vpop.f32.mrb[46].mxu0  ;;  %v5982_v2 = vmul.f32 1.442695, %v5916_v36 }
 0x3f8   : > { %v30172_v33 = vmul.f32 0.35355338, %v3298_v17  ;;  %v30174_v55 = vmul.f32 0.35355338, %v3830_v28  ;;  %v26641_v50 = vpop.f32.mrb[41].mxu1  ;;  %v26676_v54 = vpop.f32.mrb[47].mxu0 }
 0x3f9   : > { %v30181_v35 = vpop.eup %28150  ;;  %v5751_v50 = vpop.xlane.xlu1 %5750  ;;  %28154 = vpow2.f32 %v5982_v2  ;;  %v5984_v36 = vmul.f32 1.442695, %v5917_v10 }
 0x3fa   : > { %v5818_v37 = vsel %vm795_vm2, %v30172_v33, -inf  ;;  %v5839_v14 = vsel %vm795_vm2, %v30174_v55, -inf  ;;  %v6106_v22 = vsel %vm795_vm2, %v30181_v35, 0.0  ;;  %v5923_v42 = vsub.f32 %v29938_v45, %v5751_v50 }
 0x3fb   : > { %5819 = vmax.xlane.f32.xlu0 %v5818_v37  ;;  %v3450_v6 = vpop.f32.mrb[42].mxu1  ;;  %5840 = vmax.xlane.f32.xlu1 %v5839_v14  ;;  %v3982_v17 = vpop.f32.mrb[48].mxu0  ;;  %28156 = vpow2.f32 %v5984_v36  ;;  %v5918_v45 = vsub.f32 %v29813_v11, %v5736_v46 }
 0x3fc   : > { %v30183_v28 = vmul.f32 0.35355338, %v3450_v6  ;;  %v26651_v57 = vpop.f32.mrb[43].mxu1  ;;  %v26686_v52 = vpop.f32.mrb[49].mxu0  ;;  %v30186_v54 = vmul.f32 0.35355338, %v3982_v17 }
 0x3fd   : > { %v30199_v26 = vpop.eup %28152  ;;  %v5996_v10 = vmul.f32 1.442695, %v5923_v42  ;;  %v5986_v36 = vmul.f32 1.442695, %v5918_v45 }
 0x3fe   : > { %35406 = vst [vmem:[#allocation85_spill] sm:$0xff] %v30186_v54  ;;  %v5824_v38 = vsel %vm795_vm2, %v30183_v28, -inf  ;;  %v5845_v27 = vsel %vm795_vm2, %v30186_v54, -inf  ;;  %v6109_v12 = vsel %vm795_vm2, %v30199_v26, 0.0 }
 0x3ff   : > { %5825 = vmax.xlane.f32.xlu0 %v5824_v38  ;;  %v3602_v37 = vpop.f32.mrb[44].mxu1  ;;  %6107 = vadd.xlane.f32.xlu1 %v6106_v22  ;;  %v4134_v14 = vpop.f32.mrb[50].mxu0  ;;  %28158 = vpow2.f32 %v5996_v10 }
 0x400   : > { %v30192_v6 = vmul.f32 0.35355338, %v3602_v37  ;;  %v26661_v57 = vpop.f32.mrb[45].mxu1  ;;  %v26696_v52 = vpop.f32.mrb[51].mxu0  ;;  %28160 = vpow2.f32 %v5986_v36 }
 0x401   : > { %v5757_v38 = vpop.xlane.xlu1 %5756  ;;  %v30204_v52 = vmul.f32 0.35355338, %v4134_v14 }
 0x402   : > { %v5830_v17 = vsel %vm795_vm2, %v30192_v6, -inf  ;;  %v5925_v11 = vsub.f32 %v29998_v61, %v5757_v38 }
 0x403   : > { %5831 = vmax.xlane.f32.xlu0 %v5830_v17  ;;  %v3754_v22 = vpop.f32.mrb[46].mxu1  ;;  %5846 = vmax.xlane.f32.xlu1 %v5845_v27  ;;  %35408 = vst [vmem:[#allocation21_spill] sm:$0xff] %v30204_v52  ;;  %v30217_v13 = vpop.eup %28154 }
 0x404   : > { %v30201_v37 = vmul.f32 0.35355338, %v3754_v22  ;;  %v4286_v57 = vpop.f32.mrb[52].mxu0  ;;  %v26671_v2 = vpop.f32.mrb[47].mxu1  ;;  %v6000_v10 = vmul.f32 1.442695, %v5925_v11 }
 0x405   : > { %v26706_v50 = vpop.f32.mrb[53].mxu0  ;;  %v5739_v14 = vpop.xlane.xlu1 %5738 }
 0x406   : > { %35407 = vst [vmem:[#allocation86_spill] sm:$0xff] %v30201_v37  ;;  %v5836_v34 = vsel %vm795_vm2, %v30201_v37, -inf  ;;  %v5851_v50 = vsel %vm795_vm2, %v30204_v52, -inf  ;;  %v5919_v61 = vsub.f32 %v30014_v21, %v5739_v14  ;;  %v30228_v5 = vpop.eup %28156  ;;  %28162 = vpow2.f32 %v6000_v10  ;;  %v5742_v14 = vpop.xlane.xlu0 %5741 }
 0x407   : > { %5837 = vmax.xlane.f32.xlu0 %v5836_v34  ;;  %v3906_v17 = vpop.f32.mrb[48].mxu1  ;;  %6110 = vadd.xlane.f32.xlu1 %v6109_v12  ;;  %v6115_v49 = vsel %vm795_vm2, %v30228_v5, 0.0 }
 0x408   : > { %v30210_v27 = vmul.f32 0.35355338, %v3906_v17  ;;  %v4438_v22 = vpop.f32.mrb[54].mxu0  ;;  %v26681_v2 = vpop.f32.mrb[49].mxu1  ;;  %v5988_v21 = vmul.f32 1.442695, %v5919_v61 }
 0x409   : > { %v26716_v42 = vpop.f32.mrb[55].mxu0  ;;  %v5763_v2 = vpop.xlane.xlu1 %5762 }
 0x40a   : > { %35409 = vst [vmem:[#allocation26_spill] sm:$0xff] %v30210_v27  ;;  %v5842_v46 = vsel %vm795_vm2, %v30210_v27, -inf  ;;  %v30222_v42 = vmul.f32 0.35355338, %v4286_v57  ;;  %v5927_v11 = vsub.f32 %v30071_v63, %v5763_v2  ;;  %v5920_v63 = vsub.f32 %v29879_v7, %v5742_v14 }
 0x40b   : > { %5843 = vmax.xlane.f32.xlu0 %v5842_v46  ;;  %v4058_v12 = vpop.f32.mrb[50].mxu1  ;;  %5852 = vmax.xlane.f32.xlu1 %v5851_v50  ;;  %v6112_v46 = vsel %vm795_vm2, %v30217_v13, 0.0  ;;  %28164 = vpow2.f32 %v5988_v21 }
 0x40c   : > { %v30219_v34 = vmul.f32 0.35355338, %v4058_v12  ;;  %v4590_v17 = vpop.f32.mrb[56].mxu0  ;;  %v26691_v45 = vpop.f32.mrb[51].mxu1  ;;  %35411 = vst [vmem:[#allocation84_spill] sm:$0xff] %v30222_v42 }
 0x40d   : > { %v26726_v38 = vpop.f32.mrb[57].mxu0  ;;  %v6004_v2 = vmul.f32 1.442695, %v5927_v11 }
 0x40e   : > { %35410 = vst [vmem:[#allocation83_spill] sm:$0xff] %v30219_v34  ;;  %v5848_v48 = vsel %vm795_vm2, %v30219_v34, -inf  ;;  %v5857_v38 = vsel %vm795_vm2, %v30222_v42, -inf }
 0x40f   : > { %5849 = vmax.xlane.f32.xlu0 %v5848_v48  ;;  %v4210_v50 = vpop.f32.mrb[52].mxu1  ;;  %6113 = vadd.xlane.f32.xlu1 %v6112_v46  ;;  %v30239_v48 = vpop.eup %28158  ;;  %28166 = vpow2.f32 %v6004_v2 }
 0x410   : > { %v30230_v12 = vpop.f32.mrb[58].mxu0  ;;  %v26701_v36 = vpop.f32.mrb[53].mxu1  ;;  %v30233_v45 = vmul.f32 0.35355338, %v4210_v50  ;;  %v6133_v42 = vsel %vm795_vm2, %v30239_v48, 0.0 }
 0x411   : > { %v26736_v57 = vpop.f32.mrb[59].mxu0  ;;  %v5769_v46 = vpop.xlane.xlu1 %5768  ;;  %v30244_v36 = vmul.f32 0.35355338, %v4438_v22 }
 0x412   : > { %35412 = vst [vmem:[#allocation87_spill] sm:$0xff] %v30233_v45  ;;  %v5854_v57 = vsel %vm795_vm2, %v30233_v45, -inf  ;;  %v30250_v3 = vpop.eup %28160  ;;  %v5929_v7 = vsub.f32 %v30079_v40, %v5769_v46 }
 0x413   : > { %v4362_v53 = vpop.f32.mrb[54].mxu1  ;;  %5858 = vmax.xlane.f32.xlu0 %v5857_v38  ;;  %6116 = vadd.xlane.f32.xlu1 %v6115_v49  ;;  %35413 = vst [vmem:[#allocation88_spill] sm:$0xff] %v30244_v36  ;;  %v6118_v45 = vsel %vm795_vm2, %v30250_v3, 0.0 }
 0x414   : > { %v30241_v10 = vpop.f32.mrb[60].mxu0  ;;  %v26711_v61 = vpop.f32.mrb[55].mxu1  ;;  %v30255_v14 = vmul.f32 0.35355338, %v4362_v53 }
 0x415   : > { %v26746_v50 = vpop.f32.mrb[61].mxu0  ;;  %v5990_v61 = vmul.f32 1.442695, %v5920_v63  ;;  %v5745_v11 = vpop.xlane.xlu1 %5744  ;;  %v6008_v63 = vmul.f32 1.442695, %v5929_v7 }
 0x416   : > { %35414 = vst [vmem:[#allocation89_spill] sm:$0xff] %v30255_v14  ;;  %v5863_v50 = vsel %vm795_vm2, %v30244_v36, -inf  ;;  %v5921_v40 = vsub.f32 %v30082_v39, %v5745_v11  ;;  %v5748_v53 = vpop.xlane.xlu0 %5747  ;;  %v5860_v36 = vsel %vm795_vm2, %v30255_v14, -inf }
 0x417   : > { %5855 = vmax.xlane.f32.xlu0 %v5854_v57  ;;  %6134 = vadd.xlane.f32.xlu1 %v6133_v42  ;;  %v30261_v57 = vpop.eup %28162  ;;  %28168 = vpow2.f32 %v5990_v61  ;;  %v5922_v39 = vsub.f32 %v29954_v1, %v5748_v53 }
 0x418   : > { %v4514_v49 = vpop.f32.mrb[56].mxu1  ;;  %v30252_v38 = vpop.f32.mrb[62].mxu0  ;;  %v6139_v59 = vsel %vm795_vm2, %v30261_v57, 0.0  ;;  %28170 = vpow2.f32 %v6008_v63  ;;  %v5992_v61 = vmul.f32 1.442695, %v5921_v40 }
 0x419   : > { %v26721_v21 = vpop.f32.mrb[57].mxu1  ;;  %v26756_v22 = vpop.f32.mrb[63].mxu0  ;;  %v5994_v1 = vmul.f32 1.442695, %v5922_v39 }
 0x41a   : > { %v30266_v21 = vmul.f32 0.35355338, %v4590_v17  ;;  %v5754_v11 = vpop.xlane.xlu0 %5753  ;;  %28172 = vpow2.f32 %v5992_v61 }
 0x41b   : > { %5864 = vmax.xlane.f32.xlu0 %v5863_v50  ;;  %6119 = vadd.xlane.f32.xlu1 %v6118_v45  ;;  %v30272_v50 = vpop.eup %28164  ;;  %v5924_v63 = vsub.f32 %v30033_v41, %v5754_v11  ;;  %28174 = vpow2.f32 %v5994_v1 }
 0x41c   : > { %v4666_v42 = vpop.f32.mrb[58].mxu1  ;;  %35415 = vst [vmem:[#allocation90_spill] sm:$0xff] %v30266_v21  ;;  %v5869_v14 = vsel %vm795_vm2, %v30266_v21, -inf  ;;  %v6121_v34 = vsel %vm795_vm2, %v30272_v50, 0.0 }
 0x41d   : > { %v30264_v46 = vpop.f32.mrb[64].mxu0  ;;  %v26731_v2 = vpop.f32.mrb[59].mxu1  ;;  %v5998_v41 = vmul.f32 1.442695, %v5924_v63  ;;  %v30311_v63 = vmul.f32 0.35355338, %v30241_v10 }
 0x41e   : > { %v26766_v22 = vpop.f32.mrb[65].mxu0  ;;  %v30277_v2 = vmul.f32 0.35355338, %v4514_v49  ;;  %v5760_v53 = vpop.xlane.xlu0 %5759 }
 0x41f   : > { %5861 = vmax.xlane.f32.xlu0 %v5860_v36  ;;  %6140 = vadd.xlane.f32.xlu1 %v6139_v59  ;;  %v30283_v36 = vpop.eup %28166  ;;  %v5926_v39 = vsub.f32 %v30075_v43, %v5760_v53  ;;  %28176 = vpow2.f32 %v5998_v41  ;;  %35419 = vst [vmem:[#allocation94_spill] sm:$0xff] %v30311_v63  ;;  %v5881_v10 = vsel %vm795_vm2, %v30311_v63, -inf }
 0x420   : > { %v4818_v45 = vpop.f32.mrb[60].mxu1  ;;  %35416 = vst [vmem:[#allocation91_spill] sm:$0xff] %v30277_v2  ;;  %v5866_v21 = vsel %vm795_vm2, %v30277_v2, -inf }
 0x421   : > { %v30275_v7 = vpop.f32.mrb[66].mxu0  ;;  %v26741_v17 = vpop.f32.mrb[61].mxu1  ;;  %v6002_v43 = vmul.f32 1.442695, %v5926_v39  ;;  %v30319_v41 = vmul.f32 0.35355338, %v4818_v45 }
 0x422   : > { %v26776_v22 = vpop.f32.mrb[67].mxu0  ;;  %v30289_v17 = vmul.f32 0.35355338, %v30230_v12  ;;  %v30302_v12 = vmul.f32 0.35355338, %v4666_v42 }
 0x423   : > { %5870 = vmax.xlane.f32.xlu0 %v5869_v14  ;;  %6122 = vadd.xlane.f32.xlu1 %v6121_v34  ;;  %v6145_v14 = vsel %vm795_vm2, %v30283_v36, 0.0  ;;  %v30295_v34 = vpop.eup %28168  ;;  %28178 = vpow2.f32 %v6002_v43  ;;  %35420 = vst [vmem:[#allocation95_spill] sm:$0xff] %v30319_v41  ;;  %v5878_v45 = vsel %vm795_vm2, %v30319_v41, -inf }
 0x424   : > { %v4970_v59 = vpop.f32.mrb[62].mxu1  ;;  %35417 = vst [vmem:[#allocation92_spill] sm:$0xff] %v30289_v17  ;;  %35418 = vst [vmem:[#allocation93_spill] sm:$0xff] %v30302_v12  ;;  %v5875_v2 = vsel %vm795_vm2, %v30289_v17, -inf  ;;  %v6124_v52 = vsel %vm795_vm2, %v30295_v34, 0.0  ;;  %v5872_v42 = vsel %vm795_vm2, %v30302_v12, -inf  ;;  %v5775_v17 = vpop.xlane.xlu1 %5774 }
 0x425   : > { %v30286_v40 = vpop.f32.mrb[68].mxu0  ;;  %v26751_v49 = vpop.f32.mrb[63].mxu1  ;;  %v30338_v27 = vmul.f32 0.35355338, %v4970_v59 }
 0x426   : > { %v26786_v22 = vpop.f32.mrb[69].mxu0 }
 0x427   : > { %5867 = vmax.xlane.f32.xlu0 %v5866_v21  ;;  %6146 = vadd.xlane.f32.xlu1 %v6145_v14  ;;  %v30308_v21 = vpop.eup %28170  ;;  %35422 = vst [vmem:[#allocation97_spill] sm:$0xff] %v30338_v27 }
 0x428   : > { %v6151_v53 = vsel %vm795_vm2, %v30308_v21, 0.0  ;;  %v30317_v14 = vpop.eup %28172 }
 0x429   : > { %v30298_v61 = vpop.f32.mrb[64].mxu1  ;;  %v30300_v11 = vpop.f32.mrb[70].mxu0 }
 0x42a   : > { %v26761_v49 = vpop.f32.mrb[65].mxu1  ;;  %v26796_v22 = vpop.f32.mrb[71].mxu0 }
 0x42b   : > { %5876 = vmax.xlane.f32.xlu0 %v5875_v2  ;;  %6125 = vadd.xlane.f32.xlu1 %v6124_v52  ;;  %v5766_v52 = vpop.xlane.xlu0 %5765  ;;  %v6127_v22 = vsel %vm795_vm2, %v30317_v14, 0.0  ;;  %v30325_v12 = vpop.eup %28174 }
 0x42c   : > { %v30334_v63 = vpop.eup %28176 }
 0x42d   : > { %v5274_v1 = vpop.f32.mrb[66].mxu1  ;;  %v6136_v41 = vsel %vm795_vm2, %v30334_v63, 0.0  ;;  %v30344_v37 = vpop.eup %28178 }
 0x42e   : > { %v26771_v49 = vpop.f32.mrb[67].mxu1  ;;  %v30350_v59 = vmul.f32 0.35355338, %v5274_v1 }
 0x42f   : > { %5873 = vmax.xlane.f32.xlu0 %v5872_v42  ;;  %6152 = vadd.xlane.f32.xlu1 %v6151_v53  ;;  %v30328_v42 = vmul.f32 0.35355338, %v30252_v38  ;;  %v5772_v43 = vpop.xlane.xlu0 %5771  ;;  %v5781_v38 = vpop.xlane.xlu1 %5780 }
 0x430   : > { %35424 = vst [vmem:[#allocation99_spill] sm:$0xff] %v30350_v59 }
 0x431   : > { %v5426_v2 = vpop.f32.mrb[68].mxu1  ;;  %35421 = vst [vmem:[#allocation96_spill] sm:$0xff] %v30328_v42 }
 0x432   : > { %v26781_v39 = vpop.f32.mrb[69].mxu1 }
 0x433   : > { %5882 = vmax.xlane.f32.xlu0 %v5881_v10  ;;  %6128 = vadd.xlane.f32.xlu1 %v6127_v22  ;;  %v6130_v39 = vsel %vm795_vm2, %v30325_v12, 0.0  ;;  %v5928_v10 = vsub.f32 %v30088_v47, %v5766_v52  ;;  %v5931_v22 = vsub.f32 %v30092_v56, %v5775_v17  ;;  %v5778_v54 = vpop.xlane.xlu0 %5777  ;;  %v5933_v47 = vsub.f32 %v30102_v29, %v5781_v38 }
 0x434   : > { %v30348_v56 = vmul.f32 0.35355338, %v30264_v46  ;;  %v5884_v52 = vsel %vm795_vm2, %v30338_v27, -inf  ;;  %v30358_v29 = vmul.f32 0.35355338, %v30298_v61  ;;  %v5896_v38 = vsel %vm795_vm2, %v30350_v59, -inf }
 0x435   : > { %v5578_v49 = vpop.f32.mrb[70].mxu1  ;;  %v30360_v46 = vmul.f32 0.35355338, %v5426_v2  ;;  %v30369_v61 = vmul.f32 0.35355338, %v30275_v7 }
 0x436   : > { %v26791_v53 = vpop.f32.mrb[71].mxu1  ;;  %35423 = vst [vmem:[#allocation98_spill] sm:$0xff] %v30348_v56  ;;  %35425 = vst [vmem:[#allocation100_spill] sm:$0xff] %v30358_v29  ;;  %v30371_v2 = vmul.f32 0.35355338, %v5578_v49 }
 0x437   : > { %5879 = vmax.xlane.f32.xlu0 %v5878_v45  ;;  %6131 = vadd.xlane.f32.xlu1 %v6130_v39  ;;  %v5887_v53 = vsel %vm795_vm2, %v30328_v42, -inf  ;;  %v6006_v45 = vmul.f32 1.442695, %v5928_v10  ;;  %v6012_v39 = vmul.f32 1.442695, %v5931_v22  ;;  %v5784_v17 = vpop.xlane.xlu0 %5783  ;;  %v6142_v42 = vsel %vm795_vm2, %v30344_v37, 0.0 }
 0x438   : > { %v5934_v10 = vsub.f32 %v30108_v31, %v5784_v17  ;;  %35426 = vst [vmem:[#allocation101_spill] sm:$0xff] %v30360_v46  ;;  %v5893_v22 = vsel %vm795_vm2, %v30348_v56, -inf  ;;  %35427 = vst [vmem:[#allocation102_spill] sm:$0xff] %v30369_v61  ;;  %v5899_v7 = vsel %vm795_vm2, %v30369_v61, -inf  ;;  %v5908_v49 = vsel %vm795_vm2, %v30371_v2, -inf  ;;  %v35437_v56 = vld [vmem:[#allocation40_spill] sm:$0xff] }
 0x439   : > { %28180 = vpow2.f32 %v6006_v45  ;;  %35428 = vst [vmem:[#allocation103_spill] sm:$0xff] %v30371_v2  ;;  %v5890_v45 = vsel %vm795_vm2, %v30358_v29, -inf }
 0x43a   : > { %28182 = vpow2.f32 %v6012_v39  ;;  %v5902_v39 = vsel %vm795_vm2, %v30360_v46, -inf }
 0x43b   : > { %5888 = vmax.xlane.f32.xlu0 %v5887_v53  ;;  %6137 = vadd.xlane.f32.xlu1 %v6136_v41  ;;  %v6016_v41 = vmul.f32 1.442695, %v5933_v47  ;;  %v6018_v53 = vmul.f32 1.442695, %v5934_v10 }
 0x43d   : > { %28184 = vpow2.f32 %v6016_v41 }
 0x43e   : > { %28186 = vpow2.f32 %v6018_v53 }
 0x43f   : > { %5885 = vmax.xlane.f32.xlu0 %v5884_v52  ;;  %6143 = vadd.xlane.f32.xlu1 %v6142_v42  ;;  %v5930_v42 = vsub.f32 %v30096_v4, %v5772_v43  ;;  %v5932_v4 = vsub.f32 %v30100_v9, %v5778_v54  ;;  %v30388_v54 = vmul.f32 0.35355338, %v30286_v40  ;;  %v30399_v40 = vmul.f32 0.35355338, %v30300_v11 }
 0x441   : > { %v5790_v1 = vpop.xlane.xlu0 %5789  ;;  %v6010_v47 = vmul.f32 1.442695, %v5930_v42  ;;  %v6014_v41 = vmul.f32 1.442695, %v5932_v4  ;;  %35429 = vst [vmem:[#allocation104_spill] sm:$0xff] %v30388_v54  ;;  %35430 = vst [vmem:[#allocation105_spill] sm:$0xff] %v30399_v40 }
 0x442   : > { %v5936_v31 = vsub.f32 %v30116_v58, %v5790_v1  ;;  %v5787_v58 = vpop.xlane.xlu1 %5786  ;;  %v5911_v11 = vsel %vm795_vm2, %v30399_v40, -inf }
 0x443   : > { %5894 = vmax.xlane.f32.xlu0 %v5893_v22  ;;  %5897 = vmax.xlane.f32.xlu1 %v5896_v38  ;;  %v30378_v17 = vpop.eup %28180  ;;  %28188 = vpow2.f32 %v6010_v47  ;;  %v5935_v10 = vsub.f32 %v30110_v8, %v5787_v58  ;;  %v5905_v47 = vsel %vm795_vm2, %v30388_v54, -inf }
 0x444   : > { %v6022_v43 = vmul.f32 1.442695, %v5936_v31  ;;  %v30384_v52 = vpop.eup %28182  ;;  %v6148_v42 = vsel %vm795_vm2, %v30378_v17, 0.0 }
 0x445   : > { %v6157_v38 = vsel %vm795_vm2, %v30384_v52, 0.0  ;;  %v6020_v8 = vmul.f32 1.442695, %v5935_v10 }
 0x446   : > { %28190 = vpow2.f32 %v6022_v43  ;;  %v5793_v1 = vpop.xlane.xlu1 %5792 }
 0x447   : > { %5891 = vmax.xlane.f32.xlu0 %v5890_v45  ;;  %5903 = vmax.xlane.f32.xlu1 %v5902_v39  ;;  %v30395_v53 = vpop.eup %28184  ;;  %28192 = vpow2.f32 %v6014_v41  ;;  %v5937_v45 = vsub.f32 %v30118_v44, %v5793_v1 }
 0x448   : > { %v30405_v4 = vpop.eup %28186 }
 0x449   : > { %v6024_v43 = vmul.f32 1.442695, %v5937_v45 }
 0x44b   : > { %5900 = vmax.xlane.f32.xlu0 %v5899_v7  ;;  %5909 = vmax.xlane.f32.xlu1 %v5908_v49  ;;  %v6166_v7 = vsel %vm795_vm2, %v30405_v4, 0.0 }
 0x44d   : > { %v5796_v9 = vpop.xlane.xlu0 %5795  ;;  %v30408_v44 = vpop.eup %28188 }
 0x44e   : > { %v5938_v22 = vsub.f32 %v30124_v20, %v5796_v9  ;;  %v5799_v39 = vpop.xlane.xlu1 %5798  ;;  %v6163_v20 = vsel %vm795_vm2, %v30395_v53, 0.0  ;;  %v6154_v9 = vsel %vm795_vm2, %v30408_v44, 0.0 }
 0x44f   : > { %6158 = vadd.xlane.f32.xlu1 %v6157_v38  ;;  %6149 = vadd.xlane.f32.xlu0 %v6148_v42  ;;  %v5939_v58 = vsub.f32 %v30126_v32, %v5799_v39 }
 0x450   : > { %v6026_v31 = vmul.f32 1.442695, %v5938_v22  ;;  %v30414_v49 = vpop.eup %28190 }
 0x451   : > { %v6028_v41 = vmul.f32 1.442695, %v5939_v58  ;;  %v6172_v32 = vsel %vm795_vm2, %v30414_v49, 0.0  ;;  %v30420_v1 = vpop.eup %28192 }
 0x452   : > { %28194 = vpow2.f32 %v6026_v31  ;;  %v6160_v39 = vsel %vm795_vm2, %v30420_v1, 0.0 }
 0x453   : > { %6164 = vadd.xlane.f32.xlu1 %v6163_v20  ;;  %5906 = vmax.xlane.f32.xlu0 %v5905_v47  ;;  %28196 = vpow2.f32 %v6020_v8 }
 0x454   : > { %28198 = vpow2.f32 %v6024_v43 }
 0x455   : > { %28200 = vpow2.f32 %v6028_v41 }
 0x457   : > { %5912 = vmax.xlane.f32.xlu0 %v5911_v11  ;;  %6167 = vadd.xlane.f32.xlu1 %v6166_v7 }
 0x45a   : > { %v5805_v10 = vpop.xlane.xlu1 %5804 }
 0x45b   : > { %v5941_v22 = vsub.f32 %v30132_v16, %v5805_v10  ;;  %6155 = vadd.xlane.f32.xlu0 %v6154_v9  ;;  %6173 = vadd.xlane.f32.xlu1 %v6172_v32 }
 0x45c   : > { %v30423_v38 = vpop.eup %28194  ;;  %v5802_v42 = vpop.xlane.xlu0 %5801 }
 0x45d   : > { %v6032_v31 = vmul.f32 1.442695, %v5941_v22  ;;  %v5940_v8 = vsub.f32 %v30134_v60, %v5802_v42  ;;  %v6178_v45 = vsel %vm795_vm2, %v30423_v38, 0.0  ;;  %v30430_v20 = vpop.eup %28196 }
 0x45e   : > { %v6169_v16 = vsel %vm795_vm2, %v30430_v20, 0.0  ;;  %v30434_v43 = vpop.eup %28198 }
 0x45f   : > { %v6030_v47 = vmul.f32 1.442695, %v5940_v8  ;;  %6161 = vadd.xlane.f32.xlu0 %v6160_v39  ;;  %6179 = vadd.xlane.f32.xlu1 %v6178_v45  ;;  %28202 = vpow2.f32 %v6032_v31  ;;  %v6175_v58 = vsel %vm795_vm2, %v30434_v43, 0.0  ;;  %v30438_v11 = vpop.eup %28200 }
 0x460   : > { %v6181_v22 = vsel %vm795_vm2, %v30438_v11, 0.0 }
 0x461   : > { %28204 = vpow2.f32 %v6030_v47 }
 0x463   : > { %6170 = vadd.xlane.f32.xlu0 %v6169_v16 }
 0x466   : > { %v5811_v60 = vpop.xlane.xlu1 %5810 }
 0x467   : > { %v5943_v7 = vsub.f32 %v30140_v25, %v5811_v60  ;;  %6176 = vadd.xlane.f32.xlu0 %v6175_v58 }
 0x468   : > { %v5808_v41 = vpop.xlane.xlu0 %5807 }
 0x469   : > { %v6036_v10 = vmul.f32 1.442695, %v5943_v7  ;;  %v5942_v9 = vsub.f32 %v30142_v19, %v5808_v41  ;;  %v30442_v32 = vpop.eup %28202 }
 0x46a   : > { %v6187_v25 = vsel %vm795_vm2, %v30442_v32, 0.0 }
 0x46b   : > { %v30446_v42 = vpop.eup %28204  ;;  %28206 = vpow2.f32 %v6036_v10  ;;  %v6034_v31 = vmul.f32 1.442695, %v5942_v9  ;;  %6182 = vadd.xlane.f32.xlu0 %v6181_v22 }
 0x46c   : > { %v6184_v8 = vsel %vm795_vm2, %v30446_v42, 0.0 }
 0x46d   : > { %28208 = vpow2.f32 %v6034_v31  ;;  %6185 = vadd.xlane.f32.xlu1 %v6184_v8 }
 0x46f   : > { %6188 = vadd.xlane.f32.xlu0 %v6187_v25 }
 0x475   : > { %v30452_v19 = vpop.eup %28206 }
 0x476   : > { %v6193_v45 = vsel %vm795_vm2, %v30452_v19, 0.0 }
 0x477   : > { %v30456_v39 = vpop.eup %28208  ;;  %6194 = vadd.xlane.f32.xlu0 %v6193_v45 }
 0x478   : > { %v5817_v47 = vpop.xlane.xlu1 %5816  ;;  %v6190_v16 = vsel %vm795_vm2, %v30456_v39, 0.0 }
 0x479   : > { %v5945_v60 = vsub.f32 %v30148_v18, %v5817_v47  ;;  %6191 = vadd.xlane.f32.xlu1 %v6190_v16 }
 0x47b   : > { %v6040_v58 = vmul.f32 1.442695, %v5945_v60 }
 0x47c   : > { %v5823_v7 = vpop.xlane.xlu1 %5822 }
 0x47d   : > { %28210 = vpow2.f32 %v6040_v58  ;;  %v5947_v41 = vsub.f32 %v30155_v24, %v5823_v7 }
 0x47f   : > { %v6044_v10 = vmul.f32 1.442695, %v5947_v41 }
 0x480   : > { %v30462_v9 = vpop.xlane.xlu1 %5828 }
 0x481   : > { %28212 = vpow2.f32 %v6044_v10 }
 0x484   : > { %v30464_v22 = vpop.xlane.xlu1 %5834  ;;  %v5814_v31 = vpop.xlane.xlu0 %5813 }
 0x485   : > { %v5944_v8 = vsub.f32 %v30164_v62, %v5814_v31 }
 0x487   : > { %v30467_v25 = vpop.eup %28210  ;;  %v6038_v45 = vmul.f32 1.442695, %v5944_v8 }
 0x488   : > { %v30469_v2 = vpop.xlane.xlu1 %5840  ;;  %v5820_v18 = vpop.xlane.xlu0 %5819  ;;  %v6199_v47 = vsel %vm795_vm2, %v30467_v25, 0.0 }
 0x489   : > { %v5946_v24 = vsub.f32 %v30172_v33, %v5820_v18  ;;  %6200 = vadd.xlane.f32.xlu0 %v6199_v47  ;;  %28214 = vpow2.f32 %v6038_v45 }
 0x48b   : > { %v30474_v16 = vpop.eup %28212  ;;  %v6042_v60 = vmul.f32 1.442695, %v5946_v24 }
 0x48c   : > { %35431 = vst [vmem:[#allocation106_spill] sm:$0xff] %v30474_v16  ;;  %v6108_v58 = vpop.xlane.xlu1 %6107  ;;  %v30476_v7 = vpop.xlane.xlu0 %5825  ;;  %v6205_v62 = vsel %vm795_vm2, %v30474_v16, 0.0 }
 0x48d   : > { %6206 = vadd.xlane.f32.xlu0 %v6205_v62  ;;  %28216 = vpow2.f32 %v6042_v60 }
 0x48e   : > { %28218 = vrcp.f32 %v6108_v58 }
 0x490   : > { %v30480_v41 = vpop.xlane.xlu1 %5846  ;;  %v30482_v10 = vpop.xlane.xlu0 %5831 }
 0x493   : > { %v30484_v31 = vpop.eup %28214 }
 0x494   : > { %v6111_v33 = vpop.xlane.xlu1 %6110  ;;  %v30486_v8 = vpop.xlane.xlu0 %5837  ;;  %v6196_v45 = vsel %vm795_vm2, %v30484_v31, 0.0 }
 0x495   : > { %6197 = vadd.xlane.f32.xlu1 %v6196_v45  ;;  %28220 = vrcp.f32 %v6111_v33  ;;  %v35433_v45 = vld [vmem:[#allocation32_spill] sm:$0xff] }
 0x497   : > { %v30490_v18 = vpop.eup %28216 }
 0x498   : > { %35432 = vst [vmem:[#allocation107_spill] sm:$0xff] %v30490_v18  ;;  %v30492_v47 = vpop.xlane.xlu1 %5852  ;;  %v30494_v24 = vpop.xlane.xlu0 %5843  ;;  %v6202_v58 = vsel %vm795_vm2, %v30490_v18, 0.0 }
 0x499   : > { %v28219_v60 = vpop.eup %28218  ;;  %6203 = vadd.xlane.f32.xlu1 %v6202_v58 }
 0x49a   : > { %v6299_v62 = vmul.f32 %v28219_v60, %v30181_v35  ;;  %v35434_v60 = vld [vmem:[#allocation35_spill] sm:$0xff] }
 0x49c   : > { %26800 = vmatmul.mubr.msk.f32.vlgmr.msra.gmra.mrb[72].mxu1 %vm795_vm2, %v6299_v62  ;;  %v6114_v40 = vpop.xlane.xlu1 %6113  ;;  %v30500_v46 = vpop.xlane.xlu0 %5849 }
 0x49d   : > { %26808 = vmatpush3.msra.mxu1 %v35433_v45  ;;  %26809 = vmatprep.mubr.msk.f32.mxu1 %vm28836_vm1, %v35375_v15  ;;  %28222 = vrcp.f32 %v6114_v40  ;;  %v35435_v45 = vld [vmem:[#allocation28_spill] sm:$0xff] }
 0x49e   : > { %26817 = vmatprep.subr.mxu1 %v35375_v15 }
 0x49f   : > { %v28221_v59 = vpop.eup %28220 }
 0x4a0   : > { %v6117_v33 = vpop.xlane.xlu1 %6116  ;;  %v30506_v54 = vpop.xlane.xlu0 %5858  ;;  %v6301_v35 = vmul.f32 %v28221_v59, %v30199_v26  ;;  %v35436_v59 = vld [vmem:[#allocation34_spill] sm:$0xff] }
 0x4a1   : > { %28224 = vrcp.f32 %v6117_v33 }
 0x4a2   : > { %26805 = vmatmul.mubr.msk.f32.vlgmr.msra.gmra.mrb[72].mxu0 %vm795_vm2, %v6301_v35 }
 0x4a3   : > { %7946 = vrot.lane.b32.xlu0 %v35434_v60, %s28837_s22  ;;  %26813 = vmatpush3.msra.mxu0 %v35435_v45  ;;  %v5949_v60 = vsub.f32 %v30159_v51, %v30462_v9 }
 0x4a4   : > { %v6135_v58 = vpop.xlane.xlu1 %6134  ;;  %v30512_v62 = vpop.xlane.xlu0 %5855  ;;  %26814 = vmatprep.mubr.msk.f32.mxu0 %vm28836_vm1, %v35375_v15  ;;  %26822 = vmatprep.subr.mxu0 %v35375_v15 }
 0x4a7   : > { %v28223_v33 = vpop.eup %28222 }
 0x4a8   : > { %v6120_v40 = vpop.xlane.xlu1 %6119  ;;  %v30518_v61 = vpop.xlane.xlu0 %5864  ;;  %v6303_v26 = vmul.f32 %v28223_v33, %v30217_v13  ;;  %v6048_v13 = vmul.f32 1.442695, %v5949_v60  ;;  %v5948_v60 = vsub.f32 %v30183_v28, %v30476_v7 }
 0x4a9   : > { %28226 = vrcp.f32 %v6120_v40  ;;  %v35438_v40 = vld [vmem:[#allocation33_spill] sm:$0xff] }
 0x4aa   : > { %8022 = vrot.lane.b32.xlu1 %v35436_v59, %s28837_s22  ;;  %26810 = vmatmul.mubr.msk.f32.vlgmr.msra.gmra.mrb[74].mxu1 %vm795_vm2, %v6303_v26 }
 0x4ab   : > { %v28225_v35 = vpop.eup %28224  ;;  %26818 = vmatpush3.msra.mxu1 %v35437_v56  ;;  %26819 = vmatprep.mubr.msk.f32.mxu1 %vm28836_vm1, %v35375_v15 }
 0x4ac   : > { %v6141_v45 = vpop.xlane.xlu1 %6140  ;;  %v30526_v29 = vpop.xlane.xlu0 %5861  ;;  %v6305_v27 = vmul.f32 %v28225_v35, %v30228_v5  ;;  %26827 = vmatprep.subr.mxu1 %v35375_v15 }
 0x4ae   : > { %26815 = vmatmul.mubr.msk.f32.vlgmr.msra.gmra.mrb[74].mxu0 %vm795_vm2, %v6305_v27  ;;  %v35439_v27 = vld [vmem:[#allocation48_spill] sm:$0xff] }
 0x4af   : > { %26823 = vmatpush3.msra.mxu0 %v35438_v40  ;;  %26824 = vmatprep.mubr.msk.f32.mxu0 %vm28836_vm1, %v35375_v15 }
 0x4b0   : > { %v6123_v51 = vpop.xlane.xlu1 %6122  ;;  %v30535_v9 = vpop.xlane.xlu0 %5870  ;;  %26832 = vmatprep.subr.mxu0 %v35375_v15 }
 0x4b1   : > { %28228 = vrcp.f32 %v6123_v51 }
 0x4b2   : > { %28230 = vpow2.f32 %v6048_v13 }
 0x4b3   : > { %v28227_v5 = vpop.eup %28226 }
 0x4b4   : > { %v6147_v56 = vpop.xlane.xlu1 %6146  ;;  %v30540_v33 = vpop.xlane.xlu0 %5867  ;;  %v6307_v26 = vmul.f32 %v28227_v5, %v30250_v3  ;;  %v6046_v3 = vmul.f32 1.442695, %v5948_v60 }
 0x4b6   : > { %26820 = vmatmul.mubr.msk.f32.vlgmr.msra.gmra.mrb[76].mxu1 %vm795_vm2, %v6307_v26 }
 0x4b7   : > { %26828 = vmatpush3.msra.mxu1 %v35439_v27  ;;  %26829 = vmatprep.mubr.msk.f32.mxu1 %vm28836_vm1, %v35375_v15  ;;  %v35440_v27 = vld [vmem:[#allocation42_spill] sm:$0xff] }
 0x4b8   : > { %v6126_v59 = vpop.xlane.xlu1 %6125  ;;  %v30545_v35 = vpop.xlane.xlu0 %5876  ;;  %26837 = vmatprep.subr.mxu1 %v35375_v15 }
 0x4b9   : > { %28232 = vrcp.f32 %v6126_v59 }
 0x4ba   : > { %28234 = vpow2.f32 %v6046_v3 }
 0x4bb   : > { %v28229_v13 = vpop.eup %28228 }
 0x4bc   : > { %v6153_v40 = vpop.xlane.xlu1 %6152  ;;  %v30552_v51 = vpop.xlane.xlu0 %5873  ;;  %v6309_v5 = vmul.f32 %v28229_v13, %v30272_v50  ;;  %v35441_v13 = vld [vmem:[#allocation56_spill] sm:$0xff] }
 0x4bd   : > { %v30555_v26 = vpop.eup %28230 }
 0x4be   : > { %26825 = vmatmul.mubr.msk.f32.vlgmr.msra.gmra.mrb[76].mxu0 %vm795_vm2, %v6309_v5  ;;  %v6211_v28 = vsel %vm795_vm2, %v30555_v26, 0.0 }
 0x4bf   : > { %26833 = vmatpush3.msra.mxu0 %v35440_v27  ;;  %26834 = vmatprep.mubr.msk.f32.mxu0 %vm28836_vm1, %v35375_v15 }
 0x4c0   : > { %v6129_v16 = vpop.xlane.xlu1 %6128  ;;  %v30559_v18 = vpop.xlane.xlu0 %5882  ;;  %26842 = vmatprep.subr.mxu0 %v35375_v15 }
 0x4c1   : > { %28236 = vrcp.f32 %v6129_v16 }
 0x4c2   : > { %6212 = vadd.xlane.f32.xlu0 %v6211_v28  ;;  %28238 = vrcp.f32 %v6135_v58 }
 0x4c3   : > { %v28233_v50 = vpop.eup %28232 }
 0x4c4   : > { %v6132_v7 = vpop.xlane.xlu1 %6131  ;;  %v30566_v59 = vpop.xlane.xlu0 %5879  ;;  %v6311_v60 = vmul.f32 %v28233_v50, %v30295_v34 }
 0x4c5   : > { %28240 = vrcp.f32 %v6132_v7  ;;  %v30576_v16 = vpop.eup %28234 }
 0x4c6   : > { %26830 = vmatmul.mubr.msk.f32.vlgmr.msra.gmra.mrb[78].mxu1 %vm795_vm2, %v6311_v60  ;;  %28242 = vrcp.f32 %v6141_v45  ;;  %v6208_v50 = vsel %vm795_vm2, %v30576_v16, 0.0  ;;  %v35442_v60 = vld [vmem:[#allocation49_spill] sm:$0xff] }
 0x4c7   : > { %26838 = vmatpush3.msra.mxu1 %v35441_v13  ;;  %26839 = vmatprep.mubr.msk.f32.mxu1 %vm28836_vm1, %v35375_v15 }
 0x4c8   : > { %v6138_v3 = vpop.xlane.xlu1 %6137  ;;  %v30571_v5 = vpop.xlane.xlu0 %5888  ;;  %26847 = vmatprep.subr.mxu1 %v35375_v15 }
 0x4c9   : > { %28244 = vrcp.f32 %v6138_v3 }
 0x4ca   : > { %28246 = vrcp.f32 %v6147_v56 }
 0x4cb   : > { %v28237_v58 = vpop.eup %28236 }
 0x4cc   : > { %v6144_v27 = vpop.xlane.xlu1 %6143  ;;  %v30578_v34 = vpop.xlane.xlu0 %5885  ;;  %v6313_v45 = vmul.f32 %v28237_v58, %v30317_v14 }
 0x4cd   : > { %v28239_v28 = vpop.eup %28238  ;;  %28248 = vrcp.f32 %v6144_v27 }
 0x4ce   : > { %26835 = vmatmul.mubr.msk.f32.vlgmr.msra.gmra.mrb[78].mxu0 %vm795_vm2, %v6313_v45  ;;  %6209 = vadd.xlane.f32.xlu1 %v6208_v50  ;;  %28250 = vrcp.f32 %v6153_v40  ;;  %v6317_v56 = vmul.f32 %v28239_v28, %v30239_v48  ;;  %v35444_v45 = vld [vmem:[#allocation64_spill] sm:$0xff]  ;;  %v35445_v50 = vld [vmem:[#allocation58_spill] sm:$0xff] }
 0x4cf   : > { %v28241_v7 = vpop.eup %28240  ;;  %26843 = vmatpush3.msra.mxu0 %v35442_v60  ;;  %26844 = vmatprep.mubr.msk.f32.mxu0 %vm28836_vm1, %v35375_v15 }
 0x4d0   : > { %v30585_v13 = vpop.xlane.xlu1 %5897  ;;  %v30587_v3 = vpop.xlane.xlu0 %5894  ;;  %26852 = vmatprep.subr.mxu0 %v35375_v15  ;;  %v6315_v14 = vmul.f32 %v28241_v7, %v30325_v12  ;;  %v35446_v7 = vld [vmem:[#allocation72_spill] sm:$0xff] }
 0x4d1   : > { %35443 = vst [vmem:[#allocation32_spill] sm:$0xff] %v30585_v13  ;;  %v28243_v58 = vpop.eup %28242 }
 0x4d2   : > { %26840 = vmatmul.mubr.msk.f32.vlgmr.msra.gmra.mrb[80].mxu1 %vm795_vm2, %v6315_v14  ;;  %26845 = vmatmul.mubr.msk.f32.vlgmr.msra.gmra.mrb[80].mxu0 %vm795_vm2, %v6317_v56  ;;  %v6321_v12 = vmul.f32 %v28243_v58, %v30261_v57  ;;  %v35447_v14 = vld [vmem:[#allocation65_spill] sm:$0xff]  ;;  %v35448_v57 = vld [vmem:[#allocation46_spill] sm:$0xff] }
 0x4d3   : > { %v28245_v27 = vpop.eup %28244  ;;  %26848 = vmatpush3.msra.mxu1 %v35444_v45  ;;  %26853 = vmatpush3.msra.mxu0 %v35445_v50  ;;  %v35449_v50 = vld [vmem:[#allocation80_spill] sm:$0xff] }
 0x4d4   : > { %v30598_v60 = vpop.xlane.xlu1 %5903  ;;  %v30600_v13 = vpop.xlane.xlu0 %5891  ;;  %26849 = vmatprep.mubr.msk.f32.mxu1 %vm28836_vm1, %v35375_v15  ;;  %26854 = vmatprep.mubr.msk.f32.mxu0 %vm28836_vm1, %v35375_v15  ;;  %v6319_v48 = vmul.f32 %v28245_v27, %v30334_v63 }
 0x4d5   : > { %26857 = vmatprep.subr.mxu1 %v35375_v15  ;;  %26862 = vmatprep.subr.mxu0 %v35375_v15  ;;  %v28247_v40 = vpop.eup %28246 }
 0x4d6   : > { %26850 = vmatmul.mubr.msk.f32.vlgmr.msra.gmra.mrb[82].mxu1 %vm795_vm2, %v6319_v48  ;;  %26855 = vmatmul.mubr.msk.f32.vlgmr.msra.gmra.mrb[82].mxu0 %vm795_vm2, %v6321_v12  ;;  %v6325_v58 = vmul.f32 %v28247_v40, %v30283_v36  ;;  %v35451_v36 = vld [vmem:[#allocation41_spill] sm:$0xff] }
 0x4d7   : > { %v28249_v28 = vpop.eup %28248  ;;  %26858 = vmatpush3.msra.mxu1 %v35446_v7  ;;  %26863 = vmatpush3.msra.mxu0 %v35447_v14  ;;  %v35450_v7 = vld [vmem:[#allocation74_spill] sm:$0xff]  ;;  %v35452_v14 = vld [vmem:[#allocation81_spill] sm:$0xff] }
 0x4d8   : > { %v30614_v56 = vpop.xlane.xlu1 %5909  ;;  %v30616_v45 = vpop.xlane.xlu0 %5900  ;;  %8098 = vrot.lane.b32.xlu0 %v35448_v57, %s28837_s22  ;;  %26859 = vmatprep.mubr.msk.f32.mxu1 %vm28836_vm1, %v35375_v15  ;;  %v6323_v63 = vmul.f32 %v28249_v28, %v30344_v37 }
 0x4d9   : > { %26864 = vmatprep.mubr.msk.f32.mxu0 %vm28836_vm1, %v35375_v15  ;;  %26867 = vmatprep.subr.mxu1 %v35375_v15  ;;  %v28251_v27 = vpop.eup %28250 }
 0x4da   : > { %26872 = vmatprep.subr.mxu0 %v35375_v15  ;;  %26860 = vmatmul.mubr.msk.f32.vlgmr.msra.gmra.mrb[84].mxu1 %vm795_vm2, %v6323_v63  ;;  %v6329_v37 = vmul.f32 %v28251_v27, %v30308_v21  ;;  %v5951_v21 = vsub.f32 %v30166_v30, %v30464_v22  ;;  %v5950_v22 = vsub.f32 %v30192_v6, %v30482_v10 }
 0x4db   : > { %26865 = vmatmul.mubr.msk.f32.vlgmr.msra.gmra.mrb[84].mxu0 %vm795_vm2, %v6325_v58  ;;  %26868 = vmatpush3.msra.mxu1 %v35449_v50 }
 0x4dc   : > { %v6159_v48 = vpop.xlane.xlu1 %6158  ;;  %v6150_v12 = vpop.xlane.xlu0 %6149  ;;  %26873 = vmatpush3.msra.mxu0 %v35450_v7  ;;  %26874 = vmatprep.mubr.msk.f32.mxu0 %vm28836_vm1, %v35375_v15  ;;  %v6052_v63 = vmul.f32 1.442695, %v5951_v21 }
 0x4dd   : > { %26882 = vmatprep.subr.mxu0 %v35375_v15  ;;  %26869 = vmatprep.mubr.msk.f32.mxu1 %vm28836_vm1, %v35375_v15  ;;  %28252 = vrcp.f32 %v6159_v48 }
 0x4de   : > { %26877 = vmatprep.subr.mxu1 %v35375_v15  ;;  %28254 = vrcp.f32 %v6150_v12 }
 0x4df   : > { %26875 = vmatmul.mubr.msk.f32.vlgmr.msra.gmra.mrb[86].mxu0 %vm795_vm2, %v6329_v37  ;;  %8174 = vrot.lane.b32.xlu1 %v35451_v36, %s28837_s22  ;;  %v35453_v36 = vld [vmem:[#allocation82_spill] sm:$0xff] }
 0x4e0   : > { %v6165_v40 = vpop.xlane.xlu1 %6164  ;;  %v30642_v28 = vpop.xlane.xlu0 %5906  ;;  %26883 = vmatpush3.msra.mxu0 %v35452_v14  ;;  %26884 = vmatprep.mubr.msk.f32.mxu0 %vm28836_vm1, %v35375_v15 }
 0x4e1   : > { %28256 = vrcp.f32 %v6165_v40  ;;  %26892 = vmatprep.subr.mxu0 %v35375_v15 }
 0x4e2   : > { %28258 = vpow2.f32 %v6052_v63 }
 0x4e4   : > { %v30650_v57 = vpop.xlane.xlu0 %5912 }
 0x4e7   : > { %v28253_v27 = vpop.eup %28252 }
 0x4e8   : > { %v6156_v58 = vpop.xlane.xlu0 %6155  ;;  %v28255_v50 = vpop.eup %28254  ;;  %v6333_v48 = vmul.f32 %v28253_v27, %v30384_v52 }
 0x4e9   : > { %28260 = vrcp.f32 %v6156_v58  ;;  %v6327_v7 = vmul.f32 %v28255_v50, %v30378_v17  ;;  %v6168_v58 = vpop.xlane.xlu1 %6167 }
 0x4ea   : > { %26885 = vmatmul.mubr.msk.f32.vlgmr.msra.gmra.mrb[88].mxu0 %vm795_vm2, %v6333_v48 }
 0x4eb   : > { %v28257_v12 = vpop.eup %28256  ;;  %26870 = vmatmul.mubr.msk.f32.vlgmr.msra.gmra.mrb[86].mxu1 %vm795_vm2, %v6327_v7  ;;  %26893 = vmatpush3.msra.mxu0 %v29809_v23  ;;  %v6050_v23 = vmul.f32 1.442695, %v5950_v22 }
 0x4ec   : > { %v6162_v37 = vpop.xlane.xlu0 %6161  ;;  %v6337_v30 = vmul.f32 %v28257_v12, %v30395_v53  ;;  %26878 = vmatpush3.msra.mxu1 %v35453_v36  ;;  %26894 = vmatprep.mubr.msk.f32.mxu0 %vm28836_vm1, %v35375_v15  ;;  %v30670_v6 = vpop.eup %28258  ;;  %v35455_v12 = vld [vmem:[#allocation50_spill] sm:$0xff] }
 0x4ed   : > { %28262 = vrcp.f32 %v6162_v37  ;;  %26879 = vmatprep.mubr.msk.f32.mxu1 %vm28836_vm1, %v35375_v15  ;;  %26887 = vmatprep.subr.mxu1 %v35375_v15  ;;  %v6217_v53 = vsel %vm795_vm2, %v30670_v6, 0.0  ;;  %v6174_v50 = vpop.xlane.xlu1 %6173  ;;  %v5953_v37 = vsub.f32 %v30174_v55, %v30469_v2  ;;  %v35456_v55 = vld [vmem:[#allocation86_spill] sm:$0xff] }
 0x4ee   : > { %26895 = vmatmul.mubr.msk.f32.vlgmr.msra.gmra.mrb[90].mxu0 %vm795_vm2, %v6337_v30  ;;  %26902 = vmatprep.subr.mxu0 %v35375_v15  ;;  %28264 = vpow2.f32 %v6050_v23  ;;  %v5952_v2 = vsub.f32 %v35456_v55, %v30486_v8 }
 0x4ef   : > { %26904 = vmatprep.mubr.msk.f32.mxu0 %vm28836_vm1, %v35375_v15  ;;  %28266 = vrcp.f32 %v6168_v58  ;;  %v6056_v23 = vmul.f32 1.442695, %v5953_v37 }
 0x4f0   : > { %v6171_v14 = vpop.xlane.xlu0 %6170 }
 0x4f1   : > { %v30702_v30 = vpop.xlane.xlu1 %6179  ;;  %28268 = vrcp.f32 %v6171_v14  ;;  %v6054_v14 = vmul.f32 1.442695, %v5952_v2 }
 0x4f2   : > { %28270 = vpow2.f32 %v6056_v23  ;;  %v35458_v23 = vld [vmem:[#allocation57_spill] sm:$0xff] }
 0x4f3   : > { %v28261_v17 = vpop.eup %28260  ;;  %28272 = vpow2.f32 %v6054_v14 }
 0x4f4   : > { %v6331_v52 = vmul.f32 %v28261_v17, %v30408_v44  ;;  %v6177_v21 = vpop.xlane.xlu0 %6176  ;;  %28274 = vrcp.f32 %v6174_v50  ;;  %v35460_v50 = vld [vmem:[#allocation26_spill] sm:$0xff] }
 0x4f5   : > { %28276 = vrcp.f32 %v6177_v21 }
 0x4f6   : > { %26880 = vmatmul.mubr.msk.f32.vlgmr.msra.gmra.mrb[88].mxu1 %vm795_vm2, %v6331_v52 }
 0x4f7   : > { %v28263_v10 = vpop.eup %28262  ;;  %6218 = vadd.xlane.f32.xlu0 %v6217_v53  ;;  %26888 = vmatpush3.msra.mxu1 %v30151_v0 }
 0x4f8   : > { %26889 = vmatprep.mubr.msk.f32.mxu1 %vm28836_vm1, %v35375_v15  ;;  %v6335_v40 = vmul.f32 %v28263_v10, %v30420_v1  ;;  %26897 = vmatprep.subr.mxu1 %v35375_v15  ;;  %v30684_v44 = vpop.eup %28264  ;;  %v30688_v0 = vpop.xlane.xlu0 %6182  ;;  %v35454_v1 = vld [vmem:[#allocation51_spill] sm:$0xff] }
 0x4f9   : > { %v6214_v63 = vsel %vm795_vm2, %v30684_v44, 0.0  ;;  %v28267_v36 = vpop.eup %28266 }
 0x4fa   : > { %26890 = vmatmul.mubr.msk.f32.vlgmr.msra.gmra.mrb[90].mxu1 %vm795_vm2, %v6335_v40  ;;  %v30706_v17 = vpop.xlane.xlu1 %6185  ;;  %v6339_v53 = vmul.f32 %v28267_v36, %v30405_v4 }
 0x4fb   : > { %26899 = vmatprep.mubr.msk.f32.mxu1 %vm28836_vm1, %v35375_v15  ;;  %v28269_v4 = vpop.eup %28268 }
 0x4fc   : > { %v30690_v27 = vpop.xlane.xlu0 %6188  ;;  %v30721_v58 = vpop.eup %28270 }
 0x4fd   : > { %v6223_v37 = vsel %vm795_vm2, %v30721_v58, 0.0  ;;  %v30730_v8 = vpop.eup %28272 }
 0x4fe   : > { %v6220_v36 = vsel %vm795_vm2, %v30730_v8, 0.0  ;;  %v28275_v2 = vpop.eup %28274 }
 0x503   : > { %6215 = vadd.xlane.f32.xlu1 %v6214_v63 }
 0x504   : > { %v30694_v48 = vpop.xlane.xlu0 %6194 }
 0x506   : > { %v30709_v10 = vpop.xlane.xlu1 %6191 }
 0x50d   : > { %8250 = vrot.lane.b32.xlu0 %v35454_v1, %s28837_s22 }
 0x514   : > { %8326 = vrot.lane.b32.xlu1 %v35455_v12, %s28837_s22  ;;  %v6341_v12 = vmul.f32 %v28269_v4, %v30430_v20  ;;  %v35457_v20 = vld [vmem:[#allocation62_spill] sm:$0xff] }
 0x516   : > { %v30698_v7 = vpop.xlane.xlu0 %6200 }
 0x51a   : > { %v30704_v22 = vpop.xlane.xlu0 %6206 }
 0x51e   : > { %v7947_v52 = vpop.permute.xlu0 %7946 }
 0x51f   : > { %26898 = vmatpush3.msra.mxu1 %v7947_v52  ;;  %v35459_v52 = vld [vmem:[#allocation85_spill] sm:$0xff] }
 0x520   : > { %26900 = vmatmul.mubr.msk.f32.vlgmr.msra.gmra.mrb[92].mxu1 %vm795_vm2, %v6339_v53  ;;  %26907 = vmatprep.subr.mxu1 %v35375_v15  ;;  %v5955_v53 = vsub.f32 %v35459_v52, %v30480_v41  ;;  %v5954_v41 = vsub.f32 %v35460_v50, %v30494_v24  ;;  %v35463_v50 = vld [vmem:[#allocation66_spill] sm:$0xff] }
 0x521   : > { %26909 = vmatprep.mubr.msk.f32.mxu1 %vm28836_vm1, %v35375_v15 }
 0x522   : > { %v30717_v40 = vpop.xlane.xlu1 %6197  ;;  %v6060_v14 = vmul.f32 1.442695, %v5955_v53 }
 0x524   : > { %28278 = vpow2.f32 %v6060_v14 }
 0x526   : > { %v30719_v63 = vpop.xlane.xlu1 %6203 }
 0x52a   : > { %v8023_v1 = vpop.permute.xlu1 %8022 }
 0x52b   : > { %26903 = vmatpush3.msra.mxu0 %v8023_v1  ;;  %v6343_v1 = vmul.f32 %v28275_v2, %v30414_v49 }
 0x52c   : > { %6224 = vadd.xlane.f32.xlu0 %v6223_v37  ;;  %26905 = vmatmul.mubr.msk.f32.vlgmr.msra.gmra.mrb[92].mxu0 %vm795_vm2, %v6341_v12  ;;  %v6058_v12 = vmul.f32 1.442695, %v5954_v41 }
 0x52d   : > { %26912 = vmatprep.subr.mxu0 %v35375_v15  ;;  %26914 = vmatprep.mubr.msk.f32.mxu0 %vm28836_vm1, %v35375_v15 }
 0x52e   : > { %28280 = vpow2.f32 %v6058_v12  ;;  %v35464_v12 = vld [vmem:[#allocation21_spill] sm:$0xff] }
 0x52f   : > { %28282 = vrcp.f32 %v30702_v30 }
 0x530   : > { %28284 = vrcp.f32 %v30688_v0 }
 0x538   : > { %6221 = vadd.xlane.f32.xlu1 %v6220_v36  ;;  %v28277_v36 = vpop.eup %28276 }
 0x539   : > { %v30751_v21 = vpop.eup %28278 }
 0x53a   : > { %v30760_v24 = vpop.eup %28280 }
 0x53b   : > { %v6226_v52 = vsel %vm795_vm2, %v30760_v24, 0.0 }
 0x542   : > { %8402 = vrot.lane.b32.xlu0 %v35457_v20, %s28837_s22  ;;  %v6345_v20 = vmul.f32 %v28277_v36, %v30434_v43  ;;  %v5957_v36 = vsub.f32 %v35464_v12, %v30492_v47  ;;  %v35467_v47 = vld [vmem:[#allocation83_spill] sm:$0xff] }
 0x549   : > { %8478 = vrot.lane.b32.xlu1 %v35458_v23, %s28837_s22  ;;  %v6229_v23 = vsel %vm795_vm2, %v30751_v21, 0.0 }
 0x54f   : > { %v30740_v55 = vpop.xlane.xlu0 %6212 }
 0x553   : > { %v8099_v4 = vpop.permute.xlu0 %8098 }
 0x554   : > { %26908 = vmatpush3.msra.mxu1 %v8099_v4  ;;  %v35461_v4 = vld [vmem:[#allocation67_spill] sm:$0xff] }
 0x555   : > { %26910 = vmatmul.mubr.msk.f32.vlgmr.msra.gmra.mrb[94].mxu1 %vm795_vm2, %v6343_v1  ;;  %26917 = vmatprep.subr.mxu1 %v35375_v15 }
 0x556   : > { %26919 = vmatprep.mubr.msk.f32.mxu1 %vm28836_vm1, %v35375_v15 }
 0x55b   : > { %v30749_v37 = vpop.xlane.xlu1 %6209 }
 0x55f   : > { %v8175_v49 = vpop.permute.xlu1 %8174 }
 0x560   : > { %26913 = vmatpush3.msra.mxu0 %v8175_v49 }
 0x561   : > { %6230 = vadd.xlane.f32.xlu0 %v6229_v23  ;;  %26915 = vmatmul.mubr.msk.f32.vlgmr.msra.gmra.mrb[94].mxu0 %vm795_vm2, %v6345_v20  ;;  %v6064_v23 = vmul.f32 1.442695, %v5957_v36 }
 0x562   : > { %26922 = vmatprep.subr.mxu0 %v35375_v15  ;;  %26924 = vmatprep.mubr.msk.f32.mxu0 %vm28836_vm1, %v35375_v15 }
 0x563   : > { %28286 = vpow2.f32 %v6064_v23 }
 0x56d   : > { %6227 = vadd.xlane.f32.xlu1 %v6226_v52 }
 0x56f   : > { %v30764_v53 = vpop.f32.mrb[72].mxu1 }
 0x570   : > { %v26801_v43 = vpop.f32.mrb[73].mxu1 }
 0x571   : > { %v28283_v43 = vpop.eup %28282 }
 0x572   : > { %v28285_v36 = vpop.eup %28284 }
 0x575   : > { %v30766_v2 = vpop.f32.mrb[72].mxu0 }
 0x576   : > { %v26806_v14 = vpop.f32.mrb[73].mxu0 }
 0x577   : > { %8554 = vrot.lane.b32.xlu0 %v35461_v4, %s28837_s22  ;;  %v6347_v14 = vmul.f32 %v28283_v43, %v30423_v38  ;;  %v30795_v38 = vpop.eup %28286 }
 0x57d   : > { %v30771_v1 = vpop.f32.mrb[74].mxu1 }
 0x57e   : > { %35462 = vst [vmem:[#allocation35_spill] sm:$0xff] %v30771_v1  ;;  %8630 = vrot.lane.b32.xlu1 %v35463_v50, %s28837_s22  ;;  %v26811_v41 = vpop.f32.mrb[75].mxu1 }
 0x57f   : > { %v5956_v41 = vsub.f32 %v35467_v47, %v30500_v46 }
 0x581   : > { %v30777_v49 = vpop.f32.mrb[74].mxu0  ;;  %v6062_v12 = vmul.f32 1.442695, %v5956_v41 }
 0x582   : > { %35465 = vst [vmem:[#allocation28_spill] sm:$0xff] %v30777_v49  ;;  %v26816_v20 = vpop.f32.mrb[75].mxu0 }
 0x583   : > { %28288 = vpow2.f32 %v6062_v12 }
 0x584   : > { %v30779_v52 = vpop.xlane.xlu0 %6218  ;;  %28290 = vrcp.f32 %v30706_v17 }
 0x585   : > { %28292 = vrcp.f32 %v30690_v27  ;;  %v35482_v27 = vld [vmem:[#allocation87_spill] sm:$0xff] }
 0x588   : > { %v8251_v30 = vpop.permute.xlu0 %8250 }
 0x589   : > { %v30783_v4 = vpop.f32.mrb[76].mxu1  ;;  %26918 = vmatpush3.msra.mxu1 %v8251_v30  ;;  %v6349_v30 = vmul.f32 %v28285_v36, %v30438_v11 }
 0x58a   : > { %35466 = vst [vmem:[#allocation34_spill] sm:$0xff] %v30783_v4  ;;  %v26821_v50 = vpop.f32.mrb[77].mxu1  ;;  %26920 = vmatmul.mubr.msk.f32.vlgmr.msra.gmra.mrb[96].mxu1 %vm795_vm2, %v6347_v14  ;;  %26927 = vmatprep.subr.mxu1 %v35375_v15  ;;  %v6235_v14 = vsel %vm795_vm2, %v30795_v38, 0.0  ;;  %v35475_v4 = vld [vmem:[#allocation78_spill] sm:$0xff] }
 0x58b   : > { %26929 = vmatprep.mubr.msk.f32.mxu1 %vm28836_vm1, %v35375_v15 }
 0x58d   : > { %v30806_v47 = vpop.eup %28288 }
 0x58e   : > { %v6232_v11 = vsel %vm795_vm2, %v30806_v47, 0.0 }
 0x590   : > { %v30791_v0 = vpop.xlane.xlu1 %6215 }
 0x591   : > { %v30793_v20 = vpop.f32.mrb[76].mxu0 }
 0x592   : > { %35468 = vst [vmem:[#allocation40_spill] sm:$0xff] %v30793_v20  ;;  %v26826_v23 = vpop.f32.mrb[77].mxu0 }
 0x594   : > { %v8327_v43 = vpop.permute.xlu1 %8326 }
 0x595   : > { %26923 = vmatpush3.msra.mxu0 %v8327_v43 }
 0x596   : > { %6236 = vadd.xlane.f32.xlu0 %v6235_v14  ;;  %26925 = vmatmul.mubr.msk.f32.vlgmr.msra.gmra.mrb[96].mxu0 %vm795_vm2, %v6349_v30 }
 0x597   : > { %26932 = vmatprep.subr.mxu0 %v35375_v15  ;;  %26934 = vmatprep.mubr.msk.f32.mxu0 %vm28836_vm1, %v35375_v15 }
 0x599   : > { %v30804_v46 = vpop.f32.mrb[78].mxu1 }
 0x59a   : > { %35469 = vst [vmem:[#allocation33_spill] sm:$0xff] %v30804_v46  ;;  %v26831_v50 = vpop.f32.mrb[79].mxu1 }
 0x5a1   : > { %v30808_v41 = vpop.f32.mrb[78].mxu0 }
 0x5a2   : > { %35470 = vst [vmem:[#allocation48_spill] sm:$0xff] %v30808_v41  ;;  %v26836_v12 = vpop.f32.mrb[79].mxu0  ;;  %6233 = vadd.xlane.f32.xlu1 %v6232_v11 }
 0x5a5   : > { %v30812_v36 = vpop.f32.mrb[80].mxu1  ;;  %v30814_v23 = vpop.f32.mrb[80].mxu0 }
 0x5a6   : > { %35471 = vst [vmem:[#allocation42_spill] sm:$0xff] %v30812_v36  ;;  %35472 = vst [vmem:[#allocation56_spill] sm:$0xff] %v30814_v23  ;;  %v26841_v43 = vpop.f32.mrb[81].mxu1  ;;  %v26846_v30 = vpop.f32.mrb[81].mxu0 }
 0x5a7   : > { %v35479_v30 = vld [vmem:[#allocation73_spill] sm:$0xff] }
 0x5a9   : > { %v30816_v14 = vpop.f32.mrb[82].mxu1  ;;  %v30818_v20 = vpop.f32.mrb[82].mxu0 }
 0x5aa   : > { %35473 = vst [vmem:[#allocation49_spill] sm:$0xff] %v30816_v14  ;;  %35474 = vst [vmem:[#allocation64_spill] sm:$0xff] %v30818_v20  ;;  %v26851_v50 = vpop.f32.mrb[83].mxu1  ;;  %v26856_v46 = vpop.f32.mrb[83].mxu0 }
 0x5ab   : > { %v35480_v50 = vld [vmem:[#allocation84_spill] sm:$0xff] }
 0x5ac   : > { %8706 = vrot.lane.b32.xlu0 %v35475_v4, %s28837_s22  ;;  %v5959_v46 = vsub.f32 %v35480_v50, %v30506_v54  ;;  %v28291_v4 = vpop.eup %28290 }
 0x5ad   : > { %v30822_v41 = vpop.f32.mrb[84].mxu1 }
 0x5ae   : > { %35476 = vst [vmem:[#allocation58_spill] sm:$0xff] %v30822_v41  ;;  %v30824_v49 = vpop.f32.mrb[84].mxu0  ;;  %v26861_v11 = vpop.f32.mrb[85].mxu1  ;;  %v6068_v20 = vmul.f32 1.442695, %v5959_v46 }
 0x5af   : > { %35477 = vst [vmem:[#allocation72_spill] sm:$0xff] %v30824_v49  ;;  %v26866_v12 = vpop.f32.mrb[85].mxu0 }
 0x5b0   : > { %28294 = vpow2.f32 %v6068_v20  ;;  %v6351_v12 = vmul.f32 %v28291_v4, %v30446_v42  ;;  %v5958_v20 = vsub.f32 %v35482_v27, %v30512_v62  ;;  %v28293_v4 = vpop.eup %28292 }
 0x5b2   : > { %v30827_v23 = vpop.f32.mrb[86].mxu0  ;;  %v6066_v50 = vmul.f32 1.442695, %v5958_v20 }
 0x5b3   : > { %35478 = vst [vmem:[#allocation65_spill] sm:$0xff] %v30827_v23  ;;  %v26876_v43 = vpop.f32.mrb[87].mxu0  ;;  %8782 = vrot.lane.b32.xlu1 %v35479_v30, %s28837_s22 }
 0x5b4   : > { %28296 = vpow2.f32 %v6066_v50  ;;  %v35483_v50 = vld [vmem:[#allocation23_spill] sm:$0xff] }
 0x5b5   : > { %28298 = vrcp.f32 %v30709_v10 }
 0x5b6   : > { %28300 = vrcp.f32 %v30694_v48 }
 0x5b9   : > { %v30833_v14 = vpop.xlane.xlu0 %6224 }
 0x5bd   : > { %v8403_v11 = vpop.permute.xlu0 %8402  ;;  %v30837_v17 = vpop.f32.mrb[88].mxu0 }
 0x5be   : > { %26928 = vmatpush3.msra.mxu1 %v8403_v11  ;;  %v30839_v43 = vpop.f32.mrb[86].mxu1  ;;  %v26886_v23 = vpop.f32.mrb[89].mxu0 }
 0x5bf   : > { %35481 = vst [vmem:[#allocation46_spill] sm:$0xff] %v30839_v43  ;;  %26930 = vmatmul.mubr.msk.f32.vlgmr.msra.gmra.mrb[98].mxu1 %vm795_vm2, %v6351_v12  ;;  %26937 = vmatprep.subr.mxu1 %v35375_v15  ;;  %v26871_v54 = vpop.f32.mrb[87].mxu1  ;;  %v30851_v11 = vpop.eup %28294  ;;  %v6353_v12 = vmul.f32 %v28293_v4, %v30442_v32  ;;  %v35485_v4 = vld [vmem:[#allocation88_spill] sm:$0xff] }
 0x5c0   : > { %26939 = vmatprep.mubr.msk.f32.mxu1 %vm28836_vm1, %v35375_v15  ;;  %v6241_v43 = vsel %vm795_vm2, %v30851_v11, 0.0 }
 0x5c1   : > { %v30847_v30 = vpop.f32.mrb[90].mxu0 }
 0x5c2   : > { %v26896_v42 = vpop.f32.mrb[91].mxu0 }
 0x5c3   : > { %v30864_v42 = vpop.eup %28296 }
 0x5c4   : > { %v6238_v32 = vsel %vm795_vm2, %v30864_v42, 0.0 }
 0x5c5   : > { %v30849_v46 = vpop.xlane.xlu1 %6221 }
 0x5c9   : > { %v8479_v23 = vpop.permute.xlu1 %8478  ;;  %v30854_v54 = vpop.f32.mrb[88].mxu1 }
 0x5ca   : > { %26933 = vmatpush3.msra.mxu0 %v8479_v23  ;;  %v26881_v62 = vpop.f32.mrb[89].mxu1  ;;  %v5961_v23 = vsub.f32 %v35485_v4, %v30518_v61  ;;  %v35486_v61 = vld [vmem:[#allocation89_spill] sm:$0xff] }
 0x5cb   : > { %6242 = vadd.xlane.f32.xlu0 %v6241_v43  ;;  %26935 = vmatmul.mubr.msk.f32.vlgmr.msra.gmra.mrb[98].mxu0 %vm795_vm2, %v6353_v12  ;;  %v35484_v43 = vld [vmem:[#allocation22_spill] sm:$0xff] }
 0x5cc   : > { %26942 = vmatprep.subr.mxu0 %v35375_v15  ;;  %26944 = vmatprep.mubr.msk.f32.mxu0 %vm28836_vm1, %v35375_v15  ;;  %v6072_v12 = vmul.f32 1.442695, %v5961_v23 }
 0x5cd   : > { %v30862_v27 = vpop.f32.mrb[90].mxu1 }
 0x5ce   : > { %v26891_v20 = vpop.f32.mrb[91].mxu1  ;;  %28302 = vpow2.f32 %v6072_v12 }
 0x5cf   : > { %v28299_v20 = vpop.eup %28298 }
 0x5d0   : > { %v28301_v23 = vpop.eup %28300 }
 0x5d7   : > { %6239 = vadd.xlane.f32.xlu1 %v6238_v32 }
 0x5d8   : > { %v30889_v12 = vpop.eup %28302 }
 0x5e1   : > { %8858 = vrot.lane.b32.xlu0 %v35483_v50, %s28837_s22  ;;  %v6355_v50 = vmul.f32 %v28299_v20, %v30456_v39 }
 0x5e8   : > { %8934 = vrot.lane.b32.xlu1 %v35484_v43, %s28837_s22  ;;  %v5960_v43 = vsub.f32 %v35486_v61, %v30526_v29  ;;  %v35487_v61 = vld [vmem:[#allocation30_spill] sm:$0xff] }
 0x5ea   : > { %v6070_v4 = vmul.f32 1.442695, %v5960_v43  ;;  %v35488_v43 = vld [vmem:[#allocation27_spill] sm:$0xff] }
 0x5ec   : > { %28304 = vpow2.f32 %v6070_v4  ;;  %v35489_v4 = vld [vmem:[#allocation90_spill] sm:$0xff] }
 0x5ed   : > { %28306 = vrcp.f32 %v30717_v40 }
 0x5ee   : > { %v30875_v62 = vpop.xlane.xlu0 %6230  ;;  %28308 = vrcp.f32 %v30698_v7 }
 0x5f2   : > { %v8555_v49 = vpop.permute.xlu0 %8554 }
 0x5f3   : > { %v30878_v32 = vpop.f32.mrb[92].mxu1  ;;  %26938 = vmatpush3.msra.mxu1 %v8555_v49  ;;  %v6357_v49 = vmul.f32 %v28301_v23, %v30452_v19  ;;  %v5963_v23 = vsub.f32 %v35489_v4, %v30535_v9  ;;  %v35490_v9 = vld [vmem:[#allocation91_spill] sm:$0xff] }
 0x5f4   : > { %v26901_v10 = vpop.f32.mrb[93].mxu1  ;;  %26940 = vmatmul.mubr.msk.f32.vlgmr.msra.gmra.mrb[100].mxu1 %vm795_vm2, %v6355_v50  ;;  %26947 = vmatprep.subr.mxu1 %v35375_v15  ;;  %v6247_v50 = vsel %vm795_vm2, %v30889_v12, 0.0 }
 0x5f5   : > { %26949 = vmatprep.mubr.msk.f32.mxu1 %vm28836_vm1, %v35375_v15 }
 0x5f6   : > { %v30900_v29 = vpop.eup %28304 }
 0x5f7   : > { %v6244_v19 = vsel %vm795_vm2, %v30900_v29, 0.0 }
 0x5fa   : > { %v30887_v48 = vpop.xlane.xlu1 %6227 }
 0x5fe   : > { %v8631_v39 = vpop.permute.xlu1 %8630 }
 0x5ff   : > { %v30892_v20 = vpop.f32.mrb[92].mxu0  ;;  %26943 = vmatpush3.msra.mxu0 %v8631_v39  ;;  %v6076_v39 = vmul.f32 1.442695, %v5963_v23 }
 0x600   : > { %6248 = vadd.xlane.f32.xlu0 %v6247_v50  ;;  %v26906_v10 = vpop.f32.mrb[93].mxu0  ;;  %26945 = vmatmul.mubr.msk.f32.vlgmr.msra.gmra.mrb[100].mxu0 %vm795_vm2, %v6357_v49  ;;  %v28307_v50 = vpop.eup %28306 }
 0x601   : > { %26952 = vmatprep.subr.mxu0 %v35375_v15  ;;  %26954 = vmatprep.mubr.msk.f32.mxu0 %vm28836_vm1, %v35375_v15  ;;  %28310 = vpow2.f32 %v6076_v39  ;;  %v28309_v23 = vpop.eup %28308 }
 0x60b   : > { %v30925_v39 = vpop.eup %28310 }
 0x60c   : > { %6245 = vadd.xlane.f32.xlu1 %v6244_v19 }
 0x616   : > { %9010 = vrot.lane.b32.xlu0 %v35487_v61, %s28837_s22  ;;  %v6359_v61 = vmul.f32 %v28307_v50, %v30484_v31  ;;  %v6361_v50 = vmul.f32 %v28309_v23, %v30467_v25 }
 0x61d   : > { %9086 = vrot.lane.b32.xlu1 %v35488_v43, %s28837_s22  ;;  %v5962_v43 = vsub.f32 %v35490_v9, %v30540_v33  ;;  %v35491_v9 = vld [vmem:[#allocation37_spill] sm:$0xff] }
 0x61f   : > { %v6074_v4 = vmul.f32 1.442695, %v5962_v43  ;;  %v35492_v43 = vld [vmem:[#allocation36_spill] sm:$0xff] }
 0x621   : > { %28312 = vpow2.f32 %v6074_v4  ;;  %v35493_v4 = vld [vmem:[#allocation92_spill] sm:$0xff] }
 0x622   : > { %28314 = vrcp.f32 %v30719_v63  ;;  %v5965_v23 = vsub.f32 %v35493_v4, %v30545_v35  ;;  %v35495_v35 = vld [vmem:[#allocation93_spill] sm:$0xff] }
 0x623   : > { %v30911_v49 = vpop.xlane.xlu0 %6236  ;;  %28316 = vrcp.f32 %v30704_v22 }
 0x627   : > { %v8707_v10 = vpop.permute.xlu0 %8706 }
 0x628   : > { %v30914_v19 = vpop.f32.mrb[94].mxu1  ;;  %26948 = vmatpush3.msra.mxu1 %v8707_v10 }
 0x629   : > { %v26911_v40 = vpop.f32.mrb[95].mxu1  ;;  %26950 = vmatmul.mubr.msk.f32.vlgmr.msra.gmra.mrb[102].mxu1 %vm795_vm2, %v6359_v61  ;;  %26957 = vmatprep.subr.mxu1 %v35375_v15  ;;  %v6253_v61 = vsel %vm795_vm2, %v30925_v39, 0.0 }
 0x62a   : > { %26959 = vmatprep.mubr.msk.f32.mxu1 %vm28836_vm1, %v35375_v15 }
 0x62b   : > { %v30936_v33 = vpop.eup %28312 }
 0x62c   : > { %v6250_v25 = vsel %vm795_vm2, %v30936_v33, 0.0 }
 0x62f   : > { %v30923_v7 = vpop.xlane.xlu1 %6233 }
 0x633   : > { %v8783_v31 = vpop.permute.xlu1 %8782 }
 0x634   : > { %v30928_v10 = vpop.f32.mrb[94].mxu0  ;;  %26953 = vmatpush3.msra.mxu0 %v8783_v31  ;;  %v6080_v31 = vmul.f32 1.442695, %v5965_v23 }
 0x635   : > { %6254 = vadd.xlane.f32.xlu0 %v6253_v61  ;;  %v26916_v40 = vpop.f32.mrb[95].mxu0  ;;  %26955 = vmatmul.mubr.msk.f32.vlgmr.msra.gmra.mrb[102].mxu0 %vm795_vm2, %v6361_v50  ;;  %v28315_v61 = vpop.eup %28314 }
 0x636   : > { %26962 = vmatprep.subr.mxu0 %v35375_v15  ;;  %26964 = vmatprep.mubr.msk.f32.mxu0 %vm28836_vm1, %v35375_v15  ;;  %28318 = vpow2.f32 %v6080_v31  ;;  %v28317_v4 = vpop.eup %28316 }
 0x640   : > { %v30961_v23 = vpop.eup %28318 }
 0x641   : > { %6251 = vadd.xlane.f32.xlu1 %v6250_v25  ;;  %v35494_v25 = vld [vmem:[#allocation107_spill] sm:$0xff] }
 0x642   : > { %v6363_v41 = vmul.f32 %v28315_v61, %v35494_v25  ;;  %v35496_v61 = vld [vmem:[#allocation106_spill] sm:$0xff] }
 0x64b   : > { %9162 = vrot.lane.b32.xlu0 %v35491_v9, %s28837_s22  ;;  %v5964_v9 = vsub.f32 %v35495_v35, %v30552_v51 }
 0x652   : > { %9238 = vrot.lane.b32.xlu1 %v35492_v43, %s28837_s22  ;;  %v6078_v43 = vmul.f32 1.442695, %v5964_v9  ;;  %v35497_v9 = vld [vmem:[#allocation45_spill] sm:$0xff] }
 0x654   : > { %28320 = vpow2.f32 %v6078_v43  ;;  %v35498_v43 = vld [vmem:[#allocation43_spill] sm:$0xff] }
 0x655   : > { %28322 = vrcp.f32 %v30749_v37 }
 0x656   : > { %28324 = vrcp.f32 %v30740_v55 }
 0x658   : > { %v30947_v50 = vpop.xlane.xlu0 %6242 }
 0x65c   : > { %v8859_v40 = vpop.permute.xlu0 %8858 }
 0x65d   : > { %v30951_v36 = vpop.f32.mrb[96].mxu1  ;;  %26958 = vmatpush3.msra.mxu1 %v8859_v40  ;;  %v6365_v40 = vmul.f32 %v28317_v4, %v35496_v61  ;;  %v35499_v4 = vld [vmem:[#allocation94_spill] sm:$0xff] }
 0x65e   : > { %v26921_v63 = vpop.f32.mrb[97].mxu1  ;;  %26960 = vmatmul.mubr.msk.f32.vlgmr.msra.gmra.mrb[104].mxu1 %vm795_vm2, %v6363_v41  ;;  %26967 = vmatprep.subr.mxu1 %v35375_v15  ;;  %v6259_v41 = vsel %vm795_vm2, %v30961_v23, 0.0  ;;  %v30972_v51 = vpop.eup %28320 }
 0x65f   : > { %26969 = vmatprep.mubr.msk.f32.mxu1 %vm28836_vm1, %v35375_v15  ;;  %v6256_v35 = vsel %vm795_vm2, %v30972_v51, 0.0 }
 0x664   : > { %v30959_v22 = vpop.xlane.xlu1 %6239 }
 0x668   : > { %v8935_v31 = vpop.permute.xlu1 %8934 }
 0x669   : > { %v30964_v25 = vpop.f32.mrb[96].mxu0  ;;  %26963 = vmatpush3.msra.mxu0 %v8935_v31  ;;  %v5967_v31 = vsub.f32 %v35499_v4, %v30559_v18  ;;  %v35500_v18 = vld [vmem:[#allocation95_spill] sm:$0xff] }
 0x66a   : > { %6260 = vadd.xlane.f32.xlu0 %v6259_v41  ;;  %v26926_v63 = vpop.f32.mrb[97].mxu0  ;;  %26965 = vmatmul.mubr.msk.f32.vlgmr.msra.gmra.mrb[104].mxu0 %vm795_vm2, %v6365_v40  ;;  %v28323_v41 = vpop.eup %28322 }
 0x66b   : > { %26972 = vmatprep.subr.mxu0 %v35375_v15  ;;  %26974 = vmatprep.mubr.msk.f32.mxu0 %vm28836_vm1, %v35375_v15  ;;  %v6084_v61 = vmul.f32 1.442695, %v5967_v31  ;;  %v28325_v4 = vpop.eup %28324 }
 0x66d   : > { %28326 = vpow2.f32 %v6084_v61  ;;  %v6369_v61 = vmul.f32 %v28325_v4, %v30555_v26 }
 0x676   : > { %6257 = vadd.xlane.f32.xlu1 %v6256_v35  ;;  %v6367_v35 = vmul.f32 %v28323_v41, %v30576_v16 }
 0x677   : > { %v30997_v31 = vpop.eup %28326 }
 0x680   : > { %9314 = vrot.lane.b32.xlu0 %v35497_v9, %s28837_s22  ;;  %v5966_v9 = vsub.f32 %v35500_v18, %v30566_v59  ;;  %v35502_v18 = vld [vmem:[#allocation52_spill] sm:$0xff] }
 0x687   : > { %9390 = vrot.lane.b32.xlu1 %v35498_v43, %s28837_s22  ;;  %v6082_v43 = vmul.f32 1.442695, %v5966_v9  ;;  %v35503_v9 = vld [vmem:[#allocation96_spill] sm:$0xff] }
 0x689   : > { %28328 = vpow2.f32 %v6082_v43  ;;  %v5969_v43 = vsub.f32 %v35503_v9, %v30571_v5  ;;  %v35504_v5 = vld [vmem:[#allocation97_spill] sm:$0xff] }
 0x68a   : > { %28330 = vrcp.f32 %v30791_v0 }
 0x68b   : > { %v6088_v4 = vmul.f32 1.442695, %v5969_v43  ;;  %28332 = vrcp.f32 %v30779_v52 }
 0x68d   : > { %v30983_v40 = vpop.xlane.xlu0 %6248  ;;  %28334 = vpow2.f32 %v6088_v4 }
 0x691   : > { %v9011_v63 = vpop.permute.xlu0 %9010 }
 0x692   : > { %v30987_v1 = vpop.f32.mrb[98].mxu1  ;;  %26968 = vmatpush3.msra.mxu1 %v9011_v63  ;;  %v6265_v63 = vsel %vm795_vm2, %v30997_v31, 0.0 }
 0x693   : > { %v26931_v37 = vpop.f32.mrb[99].mxu1  ;;  %26970 = vmatmul.mubr.msk.f32.vlgmr.msra.gmra.mrb[106].mxu1 %vm795_vm2, %v6367_v35  ;;  %26977 = vmatprep.subr.mxu1 %v35375_v15  ;;  %v31008_v59 = vpop.eup %28328 }
 0x694   : > { %26979 = vmatprep.mubr.msk.f32.mxu1 %vm28836_vm1, %v35375_v15  ;;  %v6262_v26 = vsel %vm795_vm2, %v31008_v59, 0.0  ;;  %v35501_v37 = vld [vmem:[#allocation53_spill] sm:$0xff] }
 0x699   : > { %v30995_v55 = vpop.xlane.xlu1 %6245 }
 0x69d   : > { %v9087_v16 = vpop.permute.xlu1 %9086 }
 0x69e   : > { %v31000_v41 = vpop.f32.mrb[98].mxu0  ;;  %26973 = vmatpush3.msra.mxu0 %v9087_v16 }
 0x69f   : > { %6266 = vadd.xlane.f32.xlu0 %v6265_v63  ;;  %v26936_v35 = vpop.f32.mrb[99].mxu0  ;;  %26975 = vmatmul.mubr.msk.f32.vlgmr.msra.gmra.mrb[106].mxu0 %vm795_vm2, %v6369_v61  ;;  %v28331_v61 = vpop.eup %28330 }
 0x6a0   : > { %26982 = vmatprep.subr.mxu0 %v35375_v15  ;;  %26984 = vmatprep.mubr.msk.f32.mxu0 %vm28836_vm1, %v35375_v15  ;;  %v6371_v35 = vmul.f32 %v28331_v61, %v30684_v44  ;;  %v28333_v9 = vpop.eup %28332 }
 0x6a1   : > { %v31033_v43 = vpop.eup %28334  ;;  %v6373_v4 = vmul.f32 %v28333_v9, %v30670_v6 }
 0x6ab   : > { %6263 = vadd.xlane.f32.xlu1 %v6262_v26 }
 0x6b5   : > { %9466 = vrot.lane.b32.xlu0 %v35501_v37, %s28837_s22  ;;  %v5968_v37 = vsub.f32 %v35504_v5, %v30578_v34  ;;  %v35506_v5 = vld [vmem:[#allocation59_spill] sm:$0xff] }
 0x6bc   : > { %9542 = vrot.lane.b32.xlu1 %v35502_v18, %s28837_s22  ;;  %v6086_v18 = vmul.f32 1.442695, %v5968_v37  ;;  %v35507_v37 = vld [vmem:[#allocation98_spill] sm:$0xff] }
 0x6be   : > { %28336 = vpow2.f32 %v6086_v18  ;;  %v5971_v18 = vsub.f32 %v35507_v37, %v30587_v3  ;;  %v35508_v3 = vld [vmem:[#allocation100_spill] sm:$0xff] }
 0x6bf   : > { %28338 = vrcp.f32 %v30849_v46 }
 0x6c0   : > { %v6092_v9 = vmul.f32 1.442695, %v5971_v18  ;;  %28340 = vrcp.f32 %v30833_v14 }
 0x6c2   : > { %v31019_v16 = vpop.xlane.xlu0 %6254  ;;  %28342 = vpow2.f32 %v6092_v9 }
 0x6c6   : > { %v9163_v63 = vpop.permute.xlu0 %9162 }
 0x6c7   : > { %v31023_v26 = vpop.f32.mrb[100].mxu1  ;;  %26978 = vmatpush3.msra.mxu1 %v9163_v63  ;;  %v6271_v63 = vsel %vm795_vm2, %v31033_v43, 0.0 }
 0x6c8   : > { %v26941_v0 = vpop.f32.mrb[101].mxu1  ;;  %26980 = vmatmul.mubr.msk.f32.vlgmr.msra.gmra.mrb[108].mxu1 %vm795_vm2, %v6371_v35  ;;  %26987 = vmatprep.subr.mxu1 %v35375_v15  ;;  %v31044_v34 = vpop.eup %28336 }
 0x6c9   : > { %26989 = vmatprep.mubr.msk.f32.mxu1 %vm28836_vm1, %v35375_v15  ;;  %v6268_v6 = vsel %vm795_vm2, %v31044_v34, 0.0  ;;  %v35505_v0 = vld [vmem:[#allocation61_spill] sm:$0xff] }
 0x6ce   : > { %v31031_v52 = vpop.xlane.xlu1 %6251 }
 0x6d2   : > { %v9239_v44 = vpop.permute.xlu1 %9238 }
 0x6d3   : > { %v31036_v61 = vpop.f32.mrb[100].mxu0  ;;  %26983 = vmatpush3.msra.mxu0 %v9239_v44 }
 0x6d4   : > { %6272 = vadd.xlane.f32.xlu0 %v6271_v63  ;;  %v26946_v35 = vpop.f32.mrb[101].mxu0  ;;  %26985 = vmatmul.mubr.msk.f32.vlgmr.msra.gmra.mrb[108].mxu0 %vm795_vm2, %v6373_v4  ;;  %v28339_v4 = vpop.eup %28338 }
 0x6d5   : > { %26992 = vmatprep.subr.mxu0 %v35375_v15  ;;  %26994 = vmatprep.mubr.msk.f32.mxu0 %vm28836_vm1, %v35375_v15  ;;  %v6375_v35 = vmul.f32 %v28339_v4, %v30730_v8  ;;  %v28341_v37 = vpop.eup %28340 }
 0x6d6   : > { %v31069_v18 = vpop.eup %28342  ;;  %v6377_v9 = vmul.f32 %v28341_v37, %v30721_v58 }
 0x6e0   : > { %6269 = vadd.xlane.f32.xlu1 %v6268_v6 }
 0x6ea   : > { %9618 = vrot.lane.b32.xlu0 %v35505_v0, %s28837_s22  ;;  %v5970_v0 = vsub.f32 %v35508_v3, %v30600_v13  ;;  %v35511_v3 = vld [vmem:[#allocation68_spill] sm:$0xff] }
 0x6f1   : > { %9694 = vrot.lane.b32.xlu1 %v35506_v5, %s28837_s22  ;;  %v6090_v5 = vmul.f32 1.442695, %v5970_v0  ;;  %v35512_v0 = vld [vmem:[#allocation102_spill] sm:$0xff] }
 0x6f3   : > { %28344 = vpow2.f32 %v6090_v5  ;;  %v5973_v5 = vsub.f32 %v35512_v0, %v30616_v45  ;;  %v35513_v45 = vld [vmem:[#allocation32_spill] sm:$0xff] }
 0x6f4   : > { %28346 = vrcp.f32 %v30887_v48 }
 0x6f5   : > { %v6096_v37 = vmul.f32 1.442695, %v5973_v5  ;;  %28348 = vrcp.f32 %v30875_v62 }
 0x6f7   : > { %v31055_v44 = vpop.xlane.xlu0 %6260  ;;  %28350 = vpow2.f32 %v6096_v37 }
 0x6fb   : > { %v9315_v63 = vpop.permute.xlu0 %9314 }
 0x6fc   : > { %v31059_v6 = vpop.f32.mrb[102].mxu1  ;;  %26988 = vmatpush3.msra.mxu1 %v9315_v63  ;;  %v6277_v63 = vsel %vm795_vm2, %v31069_v18, 0.0 }
 0x6fd   : > { %v26951_v46 = vpop.f32.mrb[103].mxu1  ;;  %26990 = vmatmul.mubr.msk.f32.vlgmr.msra.gmra.mrb[110].mxu1 %vm795_vm2, %v6375_v35  ;;  %26997 = vmatprep.subr.mxu1 %v35375_v15  ;;  %v31080_v13 = vpop.eup %28344 }
 0x6fe   : > { %26999 = vmatprep.mubr.msk.f32.mxu1 %vm28836_vm1, %v35375_v15  ;;  %v6274_v58 = vsel %vm795_vm2, %v31080_v13, 0.0  ;;  %v35510_v46 = vld [vmem:[#allocation69_spill] sm:$0xff] }
 0x703   : > { %v31067_v14 = vpop.xlane.xlu1 %6257 }
 0x707   : > { %v9391_v8 = vpop.permute.xlu1 %9390 }
 0x708   : > { %v31072_v4 = vpop.f32.mrb[102].mxu0  ;;  %26993 = vmatpush3.msra.mxu0 %v9391_v8 }
 0x709   : > { %35509 = vst [vmem:[#allocation80_spill] sm:$0xff] %v31072_v4  ;;  %6278 = vadd.xlane.f32.xlu0 %v6277_v63  ;;  %v26956_v35 = vpop.f32.mrb[103].mxu0  ;;  %26995 = vmatmul.mubr.msk.f32.vlgmr.msra.gmra.mrb[110].mxu0 %vm795_vm2, %v6377_v9  ;;  %v28347_v9 = vpop.eup %28346 }
 0x70a   : > { %27002 = vmatprep.subr.mxu0 %v35375_v15  ;;  %27004 = vmatprep.mubr.msk.f32.mxu0 %vm28836_vm1, %v35375_v15  ;;  %v6379_v35 = vmul.f32 %v28347_v9, %v30760_v24  ;;  %v28349_v5 = vpop.eup %28348 }
 0x70b   : > { %v31105_v37 = vpop.eup %28350  ;;  %v6381_v9 = vmul.f32 %v28349_v5, %v30751_v21 }
 0x715   : > { %6275 = vadd.xlane.f32.xlu1 %v6274_v58 }
 0x71f   : > { %9770 = vrot.lane.b32.xlu0 %v35510_v46, %s28837_s22  ;;  %v35514_v46 = vld [vmem:[#allocation99_spill] sm:$0xff] }
 0x726   : > { %9846 = vrot.lane.b32.xlu1 %v35511_v3, %s28837_s22  ;;  %v5972_v3 = vsub.f32 %v35514_v46, %v35513_v45  ;;  %v35515_v46 = vld [vmem:[#allocation77_spill] sm:$0xff] }
 0x728   : > { %v6094_v0 = vmul.f32 1.442695, %v5972_v3  ;;  %v35516_v3 = vld [vmem:[#allocation75_spill] sm:$0xff] }
 0x72a   : > { %28352 = vpow2.f32 %v6094_v0  ;;  %v35517_v0 = vld [vmem:[#allocation104_spill] sm:$0xff] }
 0x72b   : > { %28354 = vrcp.f32 %v30923_v7  ;;  %v5975_v5 = vsub.f32 %v35517_v0, %v30642_v28  ;;  %v35518_v28 = vld [vmem:[#allocation101_spill] sm:$0xff] }
 0x72c   : > { %v31091_v8 = vpop.xlane.xlu0 %6266  ;;  %28356 = vrcp.f32 %v30911_v49 }
 0x730   : > { %v9467_v63 = vpop.permute.xlu0 %9466 }
 0x731   : > { %v31095_v58 = vpop.f32.mrb[104].mxu1  ;;  %26998 = vmatpush3.msra.mxu1 %v9467_v63 }
 0x732   : > { %v26961_v48 = vpop.f32.mrb[105].mxu1  ;;  %27000 = vmatmul.mubr.msk.f32.vlgmr.msra.gmra.mrb[112].mxu1 %vm795_vm2, %v6379_v35  ;;  %27007 = vmatprep.subr.mxu1 %v35375_v15  ;;  %v6283_v35 = vsel %vm795_vm2, %v31105_v37, 0.0 }
 0x733   : > { %27009 = vmatprep.mubr.msk.f32.mxu1 %vm28836_vm1, %v35375_v15 }
 0x734   : > { %v31116_v45 = vpop.eup %28352 }
 0x735   : > { %v6280_v21 = vsel %vm795_vm2, %v31116_v45, 0.0 }
 0x738   : > { %v31103_v62 = vpop.xlane.xlu1 %6263 }
 0x73c   : > { %v9543_v24 = vpop.permute.xlu1 %9542 }
 0x73d   : > { %v31108_v63 = vpop.f32.mrb[104].mxu0  ;;  %27003 = vmatpush3.msra.mxu0 %v9543_v24  ;;  %v6100_v24 = vmul.f32 1.442695, %v5975_v5 }
 0x73e   : > { %6284 = vadd.xlane.f32.xlu0 %v6283_v35  ;;  %v26966_v48 = vpop.f32.mrb[105].mxu0  ;;  %27005 = vmatmul.mubr.msk.f32.vlgmr.msra.gmra.mrb[112].mxu0 %vm795_vm2, %v6381_v9  ;;  %v28355_v35 = vpop.eup %28354 }
 0x73f   : > { %27012 = vmatprep.subr.mxu0 %v35375_v15  ;;  %27014 = vmatprep.mubr.msk.f32.mxu0 %vm28836_vm1, %v35375_v15  ;;  %28358 = vpow2.f32 %v6100_v24  ;;  %v28357_v0 = vpop.eup %28356 }
 0x740   : > { %v6385_v24 = vmul.f32 %v28357_v0, %v30795_v38 }
 0x749   : > { %v31141_v5 = vpop.eup %28358 }
 0x74a   : > { %6281 = vadd.xlane.f32.xlu1 %v6280_v21  ;;  %v6383_v21 = vmul.f32 %v28355_v35, %v30806_v47 }
 0x754   : > { %9922 = vrot.lane.b32.xlu0 %v35515_v46, %s28837_s22  ;;  %v5974_v46 = vsub.f32 %v35518_v28, %v30598_v60  ;;  %v35520_v28 = vld [vmem:[#allocation24_spill] sm:$0xff] }
 0x75b   : > { %9998 = vrot.lane.b32.xlu1 %v35516_v3, %s28837_s22  ;;  %v6098_v3 = vmul.f32 1.442695, %v5974_v46  ;;  %v35521_v46 = vld [vmem:[#allocation105_spill] sm:$0xff] }
 0x75d   : > { %28360 = vpow2.f32 %v6098_v3  ;;  %v5977_v3 = vsub.f32 %v35521_v46, %v30650_v57  ;;  %v35522_v57 = vld [vmem:[#allocation103_spill] sm:$0xff] }
 0x75e   : > { %28362 = vrcp.f32 %v30959_v22 }
 0x75f   : > { %v6104_v0 = vmul.f32 1.442695, %v5977_v3  ;;  %28364 = vrcp.f32 %v30947_v50 }
 0x761   : > { %v31127_v9 = vpop.xlane.xlu0 %6272  ;;  %28366 = vpow2.f32 %v6104_v0 }
 0x765   : > { %v9619_v48 = vpop.permute.xlu0 %9618 }
 0x766   : > { %v31131_v4 = vpop.f32.mrb[106].mxu1  ;;  %27008 = vmatpush3.msra.mxu1 %v9619_v48  ;;  %v6289_v48 = vsel %vm795_vm2, %v31141_v5, 0.0 }
 0x767   : > { %v26971_v7 = vpop.f32.mrb[107].mxu1  ;;  %27010 = vmatmul.mubr.msk.f32.vlgmr.msra.gmra.mrb[114].mxu1 %vm795_vm2, %v6383_v21  ;;  %27017 = vmatprep.subr.mxu1 %v35375_v15  ;;  %v31152_v60 = vpop.eup %28360 }
 0x768   : > { %27019 = vmatprep.mubr.msk.f32.mxu1 %vm28836_vm1, %v35375_v15  ;;  %v6286_v38 = vsel %vm795_vm2, %v31152_v60, 0.0  ;;  %v35519_v7 = vld [vmem:[#allocation25_spill] sm:$0xff] }
 0x76d   : > { %v31139_v49 = vpop.xlane.xlu1 %6269 }
 0x771   : > { %v9695_v47 = vpop.permute.xlu1 %9694 }
 0x772   : > { %v31144_v35 = vpop.f32.mrb[106].mxu0  ;;  %27013 = vmatpush3.msra.mxu0 %v9695_v47 }
 0x773   : > { %6290 = vadd.xlane.f32.xlu0 %v6289_v48  ;;  %v26976_v21 = vpop.f32.mrb[107].mxu0  ;;  %27015 = vmatmul.mubr.msk.f32.vlgmr.msra.gmra.mrb[114].mxu0 %vm795_vm2, %v6385_v24  ;;  %v28363_v24 = vpop.eup %28362 }
 0x774   : > { %27022 = vmatprep.subr.mxu0 %v35375_v15  ;;  %27024 = vmatprep.mubr.msk.f32.mxu0 %vm28836_vm1, %v35375_v15  ;;  %v6387_v21 = vmul.f32 %v28363_v24, %v30864_v42  ;;  %v28365_v46 = vpop.eup %28364 }
 0x775   : > { %v31177_v3 = vpop.eup %28366  ;;  %v6389_v0 = vmul.f32 %v28365_v46, %v30851_v11  ;;  %v35527_v46 = vld [vmem:[#allocation39_spill] sm:$0xff] }
 0x77f   : > { %6287 = vadd.xlane.f32.xlu1 %v6286_v38 }
 0x789   : > { %10074 = vrot.lane.b32.xlu0 %v35519_v7, %s28837_s22  ;;  %v5976_v7 = vsub.f32 %v35522_v57, %v30614_v56  ;;  %v35524_v57 = vld [vmem:[#allocation38_spill] sm:$0xff] }
 0x790   : > { %10150 = vrot.lane.b32.xlu1 %v35520_v28, %s28837_s22  ;;  %v6102_v28 = vmul.f32 1.442695, %v5976_v7  ;;  %v35525_v7 = vld [vmem:[#allocation29_spill] sm:$0xff] }
 0x792   : > { %28368 = vpow2.f32 %v6102_v28  ;;  %v35526_v28 = vld [vmem:[#allocation44_spill] sm:$0xff] }
 0x793   : > { %28370 = vrcp.f32 %v30995_v55  ;;  %v35529_v55 = vld [vmem:[#allocation47_spill] sm:$0xff] }
 0x794   : > { %28372 = vrcp.f32 %v30983_v40  ;;  %v35533_v40 = vld [vmem:[#allocation63_spill] sm:$0xff] }
 0x795   : > { %28374 = vrcp.f32 %v31031_v52 }
 0x796   : > { %v31163_v47 = vpop.xlane.xlu0 %6278  ;;  %28376 = vrcp.f32 %v31019_v16 }
 0x797   : > { %28378 = vrcp.f32 %v31067_v14 }
 0x798   : > { %28380 = vrcp.f32 %v31055_v44 }
 0x799   : > { %28382 = vrcp.f32 %v31091_v8 }
 0x79a   : > { %v9771_v48 = vpop.permute.xlu0 %9770  ;;  %28384 = vrcp.f32 %v31103_v62 }
 0x79b   : > { %v31167_v38 = vpop.f32.mrb[108].mxu1  ;;  %27018 = vmatpush3.msra.mxu1 %v9771_v48  ;;  %v6295_v48 = vsel %vm795_vm2, %v31177_v3, 0.0  ;;  %28386 = vrcp.f32 %v31127_v9 }
 0x79c   : > { %v26981_v22 = vpop.f32.mrb[109].mxu1  ;;  %27020 = vmatmul.mubr.msk.f32.vlgmr.msra.gmra.mrb[116].mxu1 %vm795_vm2, %v6387_v21  ;;  %27027 = vmatprep.subr.mxu1 %v35375_v15  ;;  %v31188_v56 = vpop.eup %28368  ;;  %28388 = vrcp.f32 %v31139_v49 }
 0x79d   : > { %27029 = vmatprep.mubr.msk.f32.mxu1 %vm28836_vm1, %v35375_v15  ;;  %v6292_v11 = vsel %vm795_vm2, %v31188_v56, 0.0  ;;  %v35523_v22 = vld [vmem:[#allocation31_spill] sm:$0xff]  ;;  %28390 = vrcp.f32 %v31163_v47 }
 0x7a2   : > { %v31175_v50 = vpop.xlane.xlu1 %6275 }
 0x7a3   : > { %28392 = vrcp.f32 %v31175_v50 }
 0x7a6   : > { %v9847_v42 = vpop.permute.xlu1 %9846 }
 0x7a7   : > { %v31180_v24 = vpop.f32.mrb[108].mxu0  ;;  %27023 = vmatpush3.msra.mxu0 %v9847_v42  ;;  %v35528_v42 = vld [vmem:[#allocation54_spill] sm:$0xff] }
 0x7a8   : > { %6296 = vadd.xlane.f32.xlu0 %v6295_v48  ;;  %v26986_v21 = vpop.f32.mrb[109].mxu0  ;;  %27025 = vmatmul.mubr.msk.f32.vlgmr.msra.gmra.mrb[116].mxu0 %vm795_vm2, %v6389_v0  ;;  %v28371_v48 = vpop.eup %28370 }
 0x7a9   : > { %27032 = vmatprep.subr.mxu0 %v35375_v15  ;;  %27034 = vmatprep.mubr.msk.f32.mxu0 %vm28836_vm1, %v35375_v15  ;;  %v35530_v21 = vld [vmem:[#allocation60_spill] sm:$0xff] }
 0x7b4   : > { %6293 = vadd.xlane.f32.xlu1 %v6292_v11 }
 0x7be   : > { %10226 = vrot.lane.b32.xlu0 %v35523_v22, %s28837_s22  ;;  %v6391_v22 = vmul.f32 %v28371_v48, %v30900_v29  ;;  %v35534_v29 = vld [vmem:[#allocation76_spill] sm:$0xff]  ;;  %v28373_v48 = vpop.eup %28372 }
 0x7c2   : > { %10454 = vrot.lane.b32.xlu0 %v35524_v57, %s28837_s22 }
 0x7c5   : > { %10302 = vrot.lane.b32.xlu1 %v35525_v7, %s28837_s22  ;;  %v35531_v7 = vld [vmem:[#allocation55_spill] sm:$0xff] }
 0x7c6   : > { %10606 = vrot.lane.b32.xlu0 %v35526_v28, %s28837_s22 }
 0x7c9   : > { %10378 = vrot.lane.b32.xlu1 %v35527_v46, %s28837_s22  ;;  %v35532_v46 = vld [vmem:[#allocation70_spill] sm:$0xff] }
 0x7ca   : > { %10758 = vrot.lane.b32.xlu0 %v35528_v42, %s28837_s22 }
 0x7cb   : > { %v31205_v0 = vpop.xlane.xlu0 %6284 }
 0x7cc   : > { %28394 = vrcp.f32 %v31205_v0 }
 0x7cd   : > { %10530 = vrot.lane.b32.xlu1 %v35529_v55, %s28837_s22  ;;  %v35535_v55 = vld [vmem:[#allocation71_spill] sm:$0xff] }
 0x7ce   : > { %10910 = vrot.lane.b32.xlu0 %v35530_v21, %s28837_s22 }
 0x7cf   : > { %v9923_v11 = vpop.permute.xlu0 %9922 }
 0x7d0   : > { %v31213_v57 = vpop.f32.mrb[110].mxu1  ;;  %27028 = vmatpush3.msra.mxu1 %v9923_v11  ;;  %v6393_v11 = vmul.f32 %v28373_v48, %v30889_v12  ;;  %v28375_v12 = vpop.eup %28374 }
 0x7d1   : > { %10682 = vrot.lane.b32.xlu1 %v35531_v7, %s28837_s22  ;;  %v26991_v28 = vpop.f32.mrb[111].mxu1  ;;  %27030 = vmatmul.mubr.msk.f32.vlgmr.msra.gmra.mrb[118].mxu1 %vm795_vm2, %v6391_v22  ;;  %v35536_v7 = vld [vmem:[#allocation79_spill] sm:$0xff]  ;;  %v28377_v52 = vpop.eup %28376 }
 0x7d2   : > { %11062 = vrot.lane.b32.xlu0 %v35532_v46, %s28837_s22  ;;  %27037 = vmatprep.subr.mxu1 %v35375_v15  ;;  %v6397_v48 = vmul.f32 %v28377_v52, %v30925_v39 }
 0x7d3   : > { %27039 = vmatprep.mubr.msk.f32.mxu1 %vm28836_vm1, %v35375_v15 }
 0x7d5   : > { %10834 = vrot.lane.b32.xlu1 %v35533_v40, %s28837_s22 }
 0x7d6   : > { %11214 = vrot.lane.b32.xlu0 %v35534_v29, %s28837_s22 }
 0x7d7   : > { %v31227_v42 = vpop.xlane.xlu1 %6281 }
 0x7d8   : > { %28396 = vrcp.f32 %v31227_v42 }
 0x7d9   : > { %10986 = vrot.lane.b32.xlu1 %v35535_v55, %s28837_s22 }
 0x7da   : > { %11308 = vrot.lane.b32.xlu0 %v30837_v17, %s28842_s27 }
 0x7db   : > { %v9999_v21 = vpop.permute.xlu1 %9998 }
 0x7dc   : > { %v31234_v22 = vpop.f32.mrb[110].mxu0  ;;  %27033 = vmatpush3.msra.mxu0 %v9999_v21  ;;  %v28379_v21 = vpop.eup %28378 }
 0x7dd   : > { %11138 = vrot.lane.b32.xlu1 %v35536_v7, %s28837_s22  ;;  %v26996_v28 = vpop.f32.mrb[111].mxu0  ;;  %27035 = vmatmul.mubr.msk.f32.vlgmr.msra.gmra.mrb[118].mxu0 %vm795_vm2, %v6393_v11  ;;  %v6399_v39 = vmul.f32 %v28379_v21, %v30972_v51  ;;  %v28381_v44 = vpop.eup %28380 }
 0x7de   : > { %11372 = vrot.lane.b32.xlu0 %v31108_v63, %s28843_s28  ;;  %27042 = vmatprep.subr.mxu0 %v35375_v15  ;;  %v6395_v63 = vmul.f32 %v28375_v12, %v30936_v33  ;;  %v28383_v12 = vpop.eup %28382 }
 0x7df   : > { %27044 = vmatprep.mubr.msk.f32.mxu0 %vm28836_vm1, %v35375_v15  ;;  %v28385_v62 = vpop.eup %28384  ;;  %v6405_v0 = vmul.f32 %v28383_v12, %v30997_v31 }
 0x7e0   : > { %v28387_v49 = vpop.eup %28386  ;;  %v6403_v50 = vmul.f32 %v28385_v62, %v31008_v59 }
 0x7e1   : > { %11306 = vrot.lane.b32.xlu1 %v30854_v54, %s28842_s27  ;;  %v28389_v52 = vpop.eup %28388  ;;  %v6409_v59 = vmul.f32 %v28387_v49, %v31033_v43 }
 0x7e2   : > { %v28391_v42 = vpop.eup %28390  ;;  %v6407_v31 = vmul.f32 %v28389_v52, %v31044_v34  ;;  %v461_v52 = vld [vmem:[#allocation2 + $0x30] sm:$0xff] }
 0x7e3   : > { %v6413_v34 = vmul.f32 %v28391_v42, %v31069_v18  ;;  %v462_v42 = vld [vmem:[#allocation2 + $0x38] sm:$0xff] }
 0x7e5   : > { %11370 = vrot.lane.b32.xlu1 %v31095_v58, %s28843_s28 }
 0x800   : > { %v31249_v17 = vpop.xlane.xlu0 %6290 }
 0x801   : > { %28398 = vrcp.f32 %v31249_v17  ;;  %v28393_v17 = vpop.eup %28392 }
 0x802   : > { %v6411_v43 = vmul.f32 %v28393_v17, %v31080_v13 }
 0x804   : > { %v10075_v46 = vpop.permute.xlu0 %10074 }
 0x805   : > { %v31253_v40 = vpop.f32.mrb[112].mxu1  ;;  %27038 = vmatpush3.msra.mxu1 %v10075_v46 }
 0x806   : > { %v27001_v29 = vpop.f32.mrb[113].mxu1  ;;  %27040 = vmatmul.mubr.msk.f32.vlgmr.msra.gmra.mrb[120].mxu1 %vm795_vm2, %v6395_v63  ;;  %27047 = vmatprep.subr.mxu1 %v35375_v15  ;;  %v6401_v63 = vmul.f32 %v28381_v44, %v30961_v23 }
 0x807   : > { %27049 = vmatprep.mubr.msk.f32.mxu1 %vm28836_vm1, %v35375_v15 }
 0x80c   : > { %v6288_v54 = vpop.xlane.xlu1 %6287 }
 0x80d   : > { %28400 = vrcp.f32 %v6288_v54 }
 0x810   : > { %v10151_v58 = vpop.permute.xlu1 %10150 }
 0x811   : > { %v31260_v16 = vpop.f32.mrb[112].mxu0  ;;  %27043 = vmatpush3.msra.mxu0 %v10151_v58 }
 0x812   : > { %v27006_v33 = vpop.f32.mrb[113].mxu0  ;;  %27045 = vmatmul.mubr.msk.f32.vlgmr.msra.gmra.mrb[120].mxu0 %vm795_vm2, %v6397_v48  ;;  %27052 = vmatprep.subr.mxu0 %v35375_v15  ;;  %v28395_v48 = vpop.eup %28394 }
 0x813   : > { %27054 = vmatprep.mubr.msk.f32.mxu0 %vm28836_vm1, %v35375_v15  ;;  %v6417_v13 = vmul.f32 %v28395_v48, %v31105_v37 }
 0x835   : > { %v6297_v55 = vpop.xlane.xlu0 %6296 }
 0x836   : > { %28402 = vrcp.f32 %v6297_v55  ;;  %v28397_v55 = vpop.eup %28396 }
 0x837   : > { %v28399_v21 = vpop.eup %28398  ;;  %v6415_v18 = vmul.f32 %v28397_v55, %v31116_v45 }
 0x838   : > { %v6421_v45 = vmul.f32 %v28399_v21, %v31141_v5 }
 0x839   : > { %v10227_v11 = vpop.permute.xlu0 %10226 }
 0x83a   : > { %v31269_v7 = vpop.f32.mrb[114].mxu1  ;;  %27048 = vmatpush3.msra.mxu1 %v10227_v11 }
 0x83b   : > { %v27011_v28 = vpop.f32.mrb[115].mxu1  ;;  %27050 = vmatmul.mubr.msk.f32.vlgmr.msra.gmra.mrb[122].mxu1 %vm795_vm2, %v6399_v39  ;;  %27057 = vmatprep.subr.mxu1 %v35375_v15 }
 0x83c   : > { %27059 = vmatprep.mubr.msk.f32.mxu1 %vm28836_vm1, %v35375_v15  ;;  %v28401_v28 = vpop.eup %28400 }
 0x83d   : > { %v10455_v14 = vpop.permute.xlu0 %10454  ;;  %v6419_v37 = vmul.f32 %v28401_v28, %v31152_v60 }
 0x841   : > { %v6294_v51 = vpop.xlane.xlu1 %6293  ;;  %v10607_v8 = vpop.permute.xlu0 %10606 }
 0x842   : > { %28404 = vrcp.f32 %v6294_v51 }
 0x845   : > { %v10303_v46 = vpop.permute.xlu1 %10302  ;;  %v10759_v47 = vpop.permute.xlu0 %10758 }
 0x846   : > { %v31282_v29 = vpop.f32.mrb[114].mxu0  ;;  %27053 = vmatpush3.msra.mxu0 %v10303_v46 }
 0x847   : > { %v27016_v9 = vpop.f32.mrb[115].mxu0  ;;  %27055 = vmatmul.mubr.msk.f32.vlgmr.msra.gmra.mrb[122].mxu0 %vm795_vm2, %v6401_v63  ;;  %27062 = vmatprep.subr.mxu0 %v35375_v15 }
 0x848   : > { %27063 = vmatpush3.msra.mxu0 %v10455_v14  ;;  %27064 = vmatprep.mubr.msk.f32.mxu0 %vm28836_vm1, %v35375_v15  ;;  %v28403_v14 = vpop.eup %28402 }
 0x849   : > { %v10379_v23 = vpop.permute.xlu1 %10378  ;;  %27072 = vmatprep.subr.mxu0 %v35375_v15  ;;  %v10911_v54 = vpop.permute.xlu0 %10910  ;;  %v6425_v60 = vmul.f32 %v28403_v14, %v31177_v3 }
 0x84a   : > { %27058 = vmatpush3.msra.mxu1 %v10379_v23 }
 0x84b   : > { %27060 = vmatmul.mubr.msk.f32.vlgmr.msra.gmra.mrb[124].mxu1 %vm795_vm2, %v6403_v50  ;;  %27065 = vmatmul.mubr.msk.f32.vlgmr.msra.gmra.mrb[124].mxu0 %vm795_vm2, %v6405_v0  ;;  %v460_v0 = vld [vmem:[#allocation2 + $0x28] sm:$0xff] }
 0x84c   : > { %27073 = vmatpush3.msra.mxu0 %v10607_v8  ;;  %27067 = vmatprep.subr.mxu1 %v35375_v15  ;;  %v28405_v44 = vpop.eup %28404 }
 0x84d   : > { %v10531_v58 = vpop.permute.xlu1 %10530  ;;  %27069 = vmatprep.mubr.msk.f32.mxu1 %vm28836_vm1, %v35375_v15  ;;  %27074 = vmatprep.mubr.msk.f32.mxu0 %vm28836_vm1, %v35375_v15  ;;  %v11063_v11 = vpop.permute.xlu0 %11062  ;;  %v6423_v5 = vmul.f32 %v28405_v44, %v31188_v56  ;;  %v459_v56 = vld [vmem:[#allocation2 + $0x20] sm:$0xff] }
 0x84e   : > { %27068 = vmatpush3.msra.mxu1 %v10531_v58  ;;  %27082 = vmatprep.subr.mxu0 %v35375_v15  ;;  %v28016_v3 = vpack.c.bf16 %v460_v0, %v459_v56  ;;  %v28020_v58 = vpack.c.bf16 %v462_v42, %v461_v52  ;;  %v35540_v42 = vld [vmem:[#allocation34_spill] sm:$0xff] }
 0x84f   : > { %27070 = vmatmul.mubr.msk.f32.vlgmr.msra.gmra.mrb[126].mxu1 %vm795_vm2, %v6407_v31  ;;  %27075 = vmatmul.mubr.msk.f32.vlgmr.msra.gmra.mrb[126].mxu0 %vm795_vm2, %v6409_v59 }
 0x850   : > { %27083 = vmatpush3.msra.mxu0 %v10759_v47  ;;  %27077 = vmatprep.subr.mxu1 %v35375_v15 }
 0x851   : > { %v10683_v33 = vpop.permute.xlu1 %10682  ;;  %27079 = vmatprep.mubr.msk.f32.mxu1 %vm28836_vm1, %v35375_v15  ;;  %27084 = vmatprep.mubr.msk.f32.mxu0 %vm28836_vm1, %v35375_v15  ;;  %v11215_v8 = vpop.permute.xlu0 %11214 }
 0x852   : > { %27078 = vmatpush3.msra.mxu1 %v10683_v33  ;;  %27092 = vmatprep.subr.mxu0 %v35375_v15 }
 0x853   : > { %27080 = vmatmul.mubr.msk.f32.vlgmr.msra.gmra.mrb[128].mxu1 %vm795_vm2, %v6411_v43  ;;  %27085 = vmatmul.mubr.msk.f32.vlgmr.msra.gmra.mrb[128].mxu0 %vm795_vm2, %v6413_v34 }
 0x854   : > { %27093 = vmatpush3.msra.mxu0 %v10911_v54  ;;  %27087 = vmatprep.subr.mxu1 %v35375_v15 }
 0x855   : > { %v10835_v39 = vpop.permute.xlu1 %10834  ;;  %27089 = vmatprep.mubr.msk.f32.mxu1 %vm28836_vm1, %v35375_v15  ;;  %27094 = vmatprep.mubr.msk.f32.mxu0 %vm28836_vm1, %v35375_v15 }
 0x856   : > { %27088 = vmatpush3.msra.mxu1 %v10835_v39  ;;  %27102 = vmatprep.subr.mxu0 %v35375_v15 }
 0x857   : > { %27090 = vmatmul.mubr.msk.f32.vlgmr.msra.gmra.mrb[130].mxu1 %vm795_vm2, %v6415_v18  ;;  %27095 = vmatmul.mubr.msk.f32.vlgmr.msra.gmra.mrb[130].mxu0 %vm795_vm2, %v6417_v13 }
 0x858   : > { %27103 = vmatpush3.msra.mxu0 %v11063_v11  ;;  %27097 = vmatprep.subr.mxu1 %v35375_v15 }
 0x859   : > { %v10987_v51 = vpop.permute.xlu1 %10986  ;;  %27099 = vmatprep.mubr.msk.f32.mxu1 %vm28836_vm1, %v35375_v15  ;;  %27104 = vmatprep.mubr.msk.f32.mxu0 %vm28836_vm1, %v35375_v15 }
 0x85a   : > { %27098 = vmatpush3.msra.mxu1 %v10987_v51  ;;  %27112 = vmatprep.subr.mxu0 %v35375_v15 }
 0x85b   : > { %27100 = vmatmul.mubr.msk.f32.vlgmr.msra.gmra.mrb[132].mxu1 %vm795_vm2, %v6419_v37  ;;  %27105 = vmatmul.mubr.msk.f32.vlgmr.msra.gmra.mrb[132].mxu0 %vm795_vm2, %v6421_v45 }
 0x85c   : > { %27113 = vmatpush3.msra.mxu0 %v11215_v8  ;;  %27107 = vmatprep.subr.mxu1 %v35375_v15 }
 0x85d   : > { %v11139_v12 = vpop.permute.xlu1 %11138  ;;  %27109 = vmatprep.mubr.msk.f32.mxu1 %vm28836_vm1, %v35375_v15  ;;  %27114 = vmatprep.mubr.msk.f32.mxu0 %vm28836_vm1, %v35375_v15 }
 0x85e   : > { %27108 = vmatpush3.msra.mxu1 %v11139_v12  ;;  %28017 = vmatprep.subr.bf16.mxu0 %v28016_v3 }
 0x85f   : > { %27110 = vmatmul.mubr.msk.f32.vlgmr.msra.gmra.mrb[134].mxu1 %vm795_vm2, %v6423_v5  ;;  %27115 = vmatmul.mubr.msk.f32.vlgmr.msra.gmra.mrb[134].mxu0 %vm795_vm2, %v6425_v60  ;;  %v35538_v5 = vld [vmem:[#allocation35_spill] sm:$0xff] }
 0x860   : > { %28096 = vmatprep.subr.bf16.mxu1 %v28016_v3  ;;  %28019 = vmatpush3.bf16.msra.mxu0 %v28016_v3 }
 0x861   : > { %28098 = vmatpush3.bf16.msra.mxu1 %v28016_v3  ;;  %28021 = vmatprep.subr.bf16.mxu0 %v28020_v58 }
 0x862   : > { %28097 = vmatprep.subr.bf16.mxu1 %v28020_v58 }
 0x864   : > { %28023 = vmatpush3.bf16.msra.mxu0 %v28020_v58 }
 0x865   : > { %28099 = vmatpush3.bf16.msra.mxu1 %v28020_v58 }
 0x86f   : > { %v31345_v46 = vpop.f32.mrb[116].mxu1 }
 0x870   : > { %v27021_v63 = vpop.f32.mrb[117].mxu1 }
 0x87b   : > { %v31347_v62 = vpop.f32.mrb[116].mxu0 }
 0x87c   : > { %v27026_v9 = vpop.f32.mrb[117].mxu0 }
 0x8a4   : > { %v31349_v49 = vpop.f32.mrb[118].mxu1 }
 0x8a5   : > { %v27031_v47 = vpop.f32.mrb[119].mxu1 }
 0x8b0   : > { %v31351_v23 = vpop.f32.mrb[118].mxu0 }
 0x8b1   : > { %v27036_v50 = vpop.f32.mrb[119].mxu0 }
 0x8b2   : > { %v35539_v50 = vld [vmem:[#allocation28_spill] sm:$0xff] }
 0x8d9   : > { %v10146_v31 = vpop.f32.mrb[120].mxu1 }
 0x8da   : > { %11434 = vrot.lane.b32.xlu1 %v10146_v31, %s28844_s29  ;;  %v27041_v59 = vpop.f32.mrb[121].mxu1 }
 0x8de   : > { %11310 = vrot.lane.b32.xlu1 %v30862_v27, %s28842_s27 }
 0x8e2   : > { %11374 = vrot.lane.b32.xlu1 %v31131_v4, %s28843_s28 }
 0x8e5   : > { %v10222_v17 = vpop.f32.mrb[120].mxu0 }
 0x8e6   : > { %11436 = vrot.lane.b32.xlu0 %v10222_v17, %s28844_s29  ;;  %v27046_v54 = vpop.f32.mrb[121].mxu0 }
 0x8ea   : > { %11312 = vrot.lane.b32.xlu0 %v30847_v30, %s28842_s27 }
 0x8ee   : > { %11376 = vrot.lane.b32.xlu0 %v31144_v35, %s28843_s28 }
 0x90e   : > { %v10298_v48 = vpop.f32.mrb[122].mxu1 }
 0x90f   : > { %11438 = vrot.lane.b32.xlu1 %v10298_v48, %s28844_s29  ;;  %v27051_v33 = vpop.f32.mrb[123].mxu1 }
 0x913   : > { %11314 = vrot.lane.b32.xlu1 %v30878_v32, %s28842_s27 }
 0x917   : > { %11378 = vrot.lane.b32.xlu1 %v31167_v38, %s28843_s28 }
 0x91a   : > { %v10374_v27 = vpop.f32.mrb[122].mxu0 }
 0x91b   : > { %11440 = vrot.lane.b32.xlu0 %v10374_v27, %s28844_s29  ;;  %v27056_v4 = vpop.f32.mrb[123].mxu0  ;;  %v35541_v27 = vld [vmem:[#allocation40_spill] sm:$0xff] }
 0x91e   : > { %v10450_v43 = vpop.f32.mrb[124].mxu1  ;;  %v10526_v34 = vpop.f32.mrb[124].mxu0 }
 0x91f   : > { %11316 = vrot.lane.b32.xlu0 %v30892_v20, %s28842_s27  ;;  %11442 = vrot.lane.b32.xlu1 %v10450_v43, %s28844_s29  ;;  %v27061_v30 = vpop.f32.mrb[125].mxu1  ;;  %v27066_v35 = vpop.f32.mrb[125].mxu0 }
 0x922   : > { %v10602_v55 = vpop.f32.mrb[126].mxu1  ;;  %v10678_v21 = vpop.f32.mrb[126].mxu0 }
 0x923   : > { %11380 = vrot.lane.b32.xlu0 %v31180_v24, %s28843_s28  ;;  %11318 = vrot.lane.b32.xlu1 %v30914_v19, %s28842_s27  ;;  %v27071_v32 = vpop.f32.mrb[127].mxu1  ;;  %v27076_v38 = vpop.f32.mrb[127].mxu0 }
 0x926   : > { %v10754_v11 = vpop.f32.mrb[128].mxu1  ;;  %v10830_v39 = vpop.f32.mrb[128].mxu0 }
 0x927   : > { %11382 = vrot.lane.b32.xlu1 %v31213_v57, %s28843_s28  ;;  %v27081_v20 = vpop.f32.mrb[129].mxu1  ;;  %11444 = vrot.lane.b32.xlu0 %v10526_v34, %s28844_s29  ;;  %v27086_v18 = vpop.f32.mrb[129].mxu0 }
 0x92a   : > { %v10906_v13 = vpop.f32.mrb[130].mxu1  ;;  %v10982_v28 = vpop.f32.mrb[130].mxu0 }
 0x92b   : > { %11446 = vrot.lane.b32.xlu1 %v10602_v55, %s28844_s29  ;;  %v27091_v14 = vpop.f32.mrb[131].mxu1  ;;  %11320 = vrot.lane.b32.xlu0 %v30928_v10, %s28842_s27  ;;  %v27096_v19 = vpop.f32.mrb[131].mxu0  ;;  %v35542_v55 = vld [vmem:[#allocation33_spill] sm:$0xff] }
 0x92e   : > { %v11058_v24 = vpop.f32.mrb[132].mxu1  ;;  %v11134_v51 = vpop.f32.mrb[132].mxu0 }
 0x92f   : > { %11322 = vrot.lane.b32.xlu1 %v30951_v36, %s28842_s27  ;;  %v27101_v37 = vpop.f32.mrb[133].mxu1  ;;  %11384 = vrot.lane.b32.xlu0 %v31234_v22, %s28843_s28  ;;  %v27106_v57 = vpop.f32.mrb[133].mxu0 }
 0x930   : > { %v11307_v36 = vpop.permute.xlu1 %11306  ;;  %v35544_v37 = vld [vmem:[#allocation42_spill] sm:$0xff] }
 0x932   : > { %v11210_v45 = vpop.f32.mrb[134].mxu1  ;;  %v11286_v44 = vpop.f32.mrb[134].mxu0 }
 0x933   : > { %11386 = vrot.lane.b32.xlu1 %v31253_v40, %s28843_s28  ;;  %v27111_v8 = vpop.f32.mrb[135].mxu1  ;;  %11448 = vrot.lane.b32.xlu0 %v10678_v21, %s28844_s29  ;;  %v27116_v10 = vpop.f32.mrb[135].mxu0 }
 0x937   : > { %11450 = vrot.lane.b32.xlu1 %v10754_v11, %s28844_s29  ;;  %11324 = vrot.lane.b32.xlu0 %v30964_v25, %s28842_s27  ;;  %v11482_v25 = vsel %vm795_vm2, %v30764_v53, %v11307_v36 }
 0x93b   : > { %11326 = vrot.lane.b32.xlu1 %v30987_v1, %s28842_s27  ;;  %11388 = vrot.lane.b32.xlu0 %v31260_v16, %s28843_s28  ;;  %v11371_v1 = vpop.permute.xlu1 %11370 }
 0x93c   : > { %v11499_v22 = vsel %vm11498_vm4, %v11482_v25, %v11371_v1  ;;  %v35545_v25 = vld [vmem:[#allocation56_spill] sm:$0xff] }
 0x93f   : > { %11390 = vrot.lane.b32.xlu1 %v31269_v7, %s28843_s28  ;;  %11452 = vrot.lane.b32.xlu0 %v10830_v39, %s28844_s29 }
 0x943   : > { %11454 = vrot.lane.b32.xlu1 %v10906_v13, %s28844_s29  ;;  %11328 = vrot.lane.b32.xlu0 %v31000_v41, %s28842_s27  ;;  %v35543_v13 = vld [vmem:[#allocation48_spill] sm:$0xff] }
 0x947   : > { %11330 = vrot.lane.b32.xlu1 %v31023_v26, %s28842_s27  ;;  %11392 = vrot.lane.b32.xlu0 %v31282_v29, %s28843_s28  ;;  %v11309_v26 = vpop.permute.xlu0 %11308 }
 0x948   : > { %v11483_v16 = vsel %vm795_vm2, %v30766_v2, %v11309_v26 }
 0x94b   : > { %11394 = vrot.lane.b32.xlu1 %v31345_v46, %s28843_s28  ;;  %11456 = vrot.lane.b32.xlu0 %v10982_v28, %s28844_s29  ;;  %v11373_v53 = vpop.permute.xlu0 %11372 }
 0x94c   : > { %v11435_v41 = vpop.permute.xlu1 %11434  ;;  %v11500_v7 = vsel %vm11498_vm4, %v11483_v16, %v11373_v53  ;;  %v35546_v16 = vld [vmem:[#allocation49_spill] sm:$0xff] }
 0x94d   : > { %v11516_v40 = vsel %vm11515_vm3, %v11499_v22, %v11435_v41 }
 0x94e   : > { %27125 = vmatprep.mubr.msk.f32.mxu0 %vm487_vm0, %v11516_v40 }
 0x94f   : > { %11458 = vrot.lane.b32.xlu1 %v11058_v24, %s28844_s29  ;;  %11332 = vrot.lane.b32.xlu0 %v31036_v61, %s28842_s27 }
 0x950   : > { %v11311_v2 = vpop.permute.xlu1 %11310 }
 0x951   : > { %v11484_v60 = vsel %vm795_vm2, %v35538_v5, %v11311_v2 }
 0x953   : > { %11334 = vrot.lane.b32.xlu1 %v31059_v6, %s28842_s27  ;;  %11396 = vrot.lane.b32.xlu0 %v31347_v62, %s28843_s28  ;;  %v35537_v6 = vld [vmem:[#allocation80_spill] sm:$0xff] }
 0x954   : > { %v11375_v12 = vpop.permute.xlu1 %11374 }
 0x955   : > { %v11501_v46 = vsel %vm11498_vm4, %v11484_v60, %v11375_v12  ;;  %v35547_v60 = vld [vmem:[#allocation64_spill] sm:$0xff] }
 0x957   : > { %11398 = vrot.lane.b32.xlu1 %v31349_v49, %s28843_s28  ;;  %11460 = vrot.lane.b32.xlu0 %v11134_v51, %s28844_s29 }
 0x958   : > { %v11437_v29 = vpop.permute.xlu0 %11436 }
 0x959   : > { %v11517_v61 = vsel %vm11515_vm3, %v11500_v7, %v11437_v29 }
 0x95a   : > { %27126 = vmatmul.mubr.msk.f32.vlgmr.msra.gmra.mrb[136].mxu0 %vm487_vm0, %v11517_v61 }
 0x95b   : > { %11462 = vrot.lane.b32.xlu1 %v11210_v45, %s28844_s29  ;;  %11336 = vrot.lane.b32.xlu0 %v35537_v6, %s28842_s27 }
 0x95c   : > { %v11313_v9 = vpop.permute.xlu0 %11312 }
 0x95f   : > { %11400 = vrot.lane.b32.xlu0 %v31351_v23, %s28843_s28  ;;  %v11485_v23 = vsel %vm795_vm2, %v35539_v50, %v11313_v9 }
 0x960   : > { %v11377_v47 = vpop.permute.xlu0 %11376 }
 0x961   : > { %v11502_v56 = vsel %vm11498_vm4, %v11485_v23, %v11377_v47  ;;  %v35548_v47 = vld [vmem:[#allocation58_spill] sm:$0xff] }
 0x963   : > { %11464 = vrot.lane.b32.xlu0 %v11286_v44, %s28844_s29 }
 0x981   : > { %v11439_v63 = vpop.permute.xlu1 %11438 }
 0x982   : > { %v11518_v62 = vsel %vm11515_vm3, %v11501_v46, %v11439_v63 }
 0x983   : > { %27128 = vmatprep.mubr.msk.f32.mxu0 %vm487_vm0, %v11518_v62 }
 0x985   : > { %v11315_v49 = vpop.permute.xlu1 %11314 }
 0x986   : > { %v11486_v58 = vsel %vm795_vm2, %v35540_v42, %v11315_v49 }
 0x989   : > { %v11379_v0 = vpop.permute.xlu1 %11378 }
 0x98a   : > { %v11503_v31 = vsel %vm11498_vm4, %v11486_v58, %v11379_v0  ;;  %v35549_v58 = vld [vmem:[#allocation72_spill] sm:$0xff] }
 0x98d   : > { %v11441_v3 = vpop.permute.xlu0 %11440 }
 0x98e   : > { %v11519_v52 = vsel %vm11515_vm3, %v11502_v56, %v11441_v3 }
 0x98f   : > { %27129 = vmatmul.mubr.msk.f32.gmra.mrb[138].mxu0 %vm487_vm0, %v11519_v52 }
 0x991   : > { %v11443_v59 = vpop.permute.xlu1 %11442  ;;  %v11317_v17 = vpop.permute.xlu0 %11316 }
 0x992   : > { %v11520_v54 = vsel %vm11515_vm3, %v11503_v31, %v11443_v59  ;;  %v11487_v4 = vsel %vm795_vm2, %v35541_v27, %v11317_v17 }
 0x993   : > { %27131 = vmatprep.mubr.msk.f32.mxu0 %vm487_vm0, %v11520_v54 }
 0x995   : > { %v11319_v48 = vpop.permute.xlu1 %11318  ;;  %v11381_v33 = vpop.permute.xlu0 %11380 }
 0x996   : > { %v11504_v43 = vsel %vm11498_vm4, %v11487_v4, %v11381_v33  ;;  %v11488_v21 = vsel %vm795_vm2, %v35542_v55, %v11319_v48  ;;  %v35550_v33 = vld [vmem:[#allocation46_spill] sm:$0xff]  ;;  %v35551_v55 = vld [vmem:[#allocation65_spill] sm:$0xff] }
 0x999   : > { %v11383_v34 = vpop.permute.xlu1 %11382  ;;  %v11445_v30 = vpop.permute.xlu0 %11444 }
 0x99a   : > { %v11521_v35 = vsel %vm11515_vm3, %v11504_v43, %v11445_v30  ;;  %v11505_v32 = vsel %vm11498_vm4, %v11488_v21, %v11383_v34 }
 0x99b   : > { %27132 = vmatmul.mubr.msk.f32.gmra.mrb[140].mxu0 %vm487_vm0, %v11521_v35 }
 0x99d   : > { %v11447_v38 = vpop.permute.xlu1 %11446  ;;  %v11321_v11 = vpop.permute.xlu0 %11320 }
 0x99e   : > { %v11522_v39 = vsel %vm11515_vm3, %v11505_v32, %v11447_v38  ;;  %v11489_v28 = vsel %vm795_vm2, %v35543_v13, %v11321_v11 }
 0x99f   : > { %27134 = vmatprep.mubr.msk.f32.mxu1 %vm487_vm0, %v11522_v39  ;;  %v31508_v39 = vld [vmem:[%s35139_s2 + $0x1] ss:$0 sm:$0xff] }
 0x9a1   : > { %v11323_v20 = vpop.permute.xlu1 %11322  ;;  %v11385_v18 = vpop.permute.xlu0 %11384 }
 0x9a2   : > { %v11506_v14 = vsel %vm11498_vm4, %v11489_v28, %v11385_v18  ;;  %v11490_v57 = vsel %vm795_vm2, %v35544_v37, %v11323_v20 }
 0x9a5   : > { %v11387_v19 = vpop.permute.xlu1 %11386  ;;  %v11449_v24 = vpop.permute.xlu0 %11448 }
 0x9a6   : > { %v11523_v51 = vsel %vm11515_vm3, %v11506_v14, %v11449_v24  ;;  %v11507_v45 = vsel %vm11498_vm4, %v11490_v57, %v11387_v19  ;;  %v35552_v14 = vld [vmem:[#allocation6_spill] sm:$0xff]  ;;  %v35553_v24 = vld [vmem:[#allocation5_spill] sm:$0xff] }
 0x9a7   : > { %27135 = vmatmul.mubr.msk.f32.vlgmr.msra.gmra.mrb[136].mxu1 %vm487_vm0, %v11523_v51 }
 0x9a9   : > { %v11451_v44 = vpop.permute.xlu1 %11450  ;;  %v11325_v8 = vpop.permute.xlu0 %11324 }
 0x9aa   : > { %v11524_v10 = vsel %vm11515_vm3, %v11507_v45, %v11451_v44  ;;  %v11491_v22 = vsel %vm795_vm2, %v35545_v25, %v11325_v8  ;;  %v35555_v25 = vld [vmem:[#allocation8_spill] sm:$0xff] }
 0x9ab   : > { %27137 = vmatprep.mubr.msk.f32.mxu1 %vm487_vm0, %v11524_v10 }
 0x9ad   : > { %v11327_v36 = vpop.permute.xlu1 %11326  ;;  %v11389_v1 = vpop.permute.xlu0 %11388 }
 0x9ae   : > { %v11508_v41 = vsel %vm11498_vm4, %v11491_v22, %v11389_v1  ;;  %v11492_v7 = vsel %vm795_vm2, %v35546_v16, %v11327_v36  ;;  %v35554_v36 = vld [vmem:[#allocation9_spill] sm:$0xff] }
 0x9b1   : > { %v11391_v40 = vpop.permute.xlu1 %11390  ;;  %v11453_v26 = vpop.permute.xlu0 %11452 }
 0x9b2   : > { %v11525_v53 = vsel %vm11515_vm3, %v11508_v41, %v11453_v26  ;;  %v11509_v29 = vsel %vm11498_vm4, %v11492_v7, %v11391_v40 }
 0x9b3   : > { %27138 = vmatmul.mubr.msk.f32.gmra.mrb[138].mxu1 %vm487_vm0, %v11525_v53 }
 0x9b5   : > { %v11455_v61 = vpop.permute.xlu1 %11454  ;;  %v11329_v6 = vpop.permute.xlu0 %11328 }
 0x9b6   : > { %v11526_v2 = vsel %vm11515_vm3, %v11509_v29, %v11455_v61  ;;  %v11493_v46 = vsel %vm795_vm2, %v35547_v60, %v11329_v6  ;;  %v35556_v29 = vld [vmem:[#allocation10_spill] sm:$0xff]  ;;  %v35557_v6 = vld [vmem:[#allocation7_spill] sm:$0xff] }
 0x9b7   : > { %27140 = vmatprep.mubr.msk.f32.mxu1 %vm487_vm0, %v11526_v2 }
 0x9b9   : > { %v11331_v12 = vpop.permute.xlu1 %11330  ;;  %v11393_v5 = vpop.permute.xlu0 %11392 }
 0x9ba   : > { %v11510_v63 = vsel %vm11498_vm4, %v11493_v46, %v11393_v5  ;;  %v11494_v50 = vsel %vm795_vm2, %v35548_v47, %v11331_v12  ;;  %v35559_v47 = vld [vmem:[#allocation11_spill] sm:$0xff] }
 0x9bd   : > { %v11395_v62 = vpop.permute.xlu1 %11394  ;;  %v11457_v9 = vpop.permute.xlu0 %11456 }
 0x9be   : > { %v11527_v49 = vsel %vm11515_vm3, %v11510_v63, %v11457_v9  ;;  %v11511_v23 = vsel %vm11498_vm4, %v11494_v50, %v11395_v62  ;;  %v35558_v9 = vld [vmem:[#allocation12_spill] sm:$0xff] }
 0x9bf   : > { %27141 = vmatmul.mubr.msk.f32.gmra.mrb[140].mxu1 %vm487_vm0, %v11527_v49 }
 0x9c1   : > { %v11459_v56 = vpop.permute.xlu1 %11458  ;;  %v11333_v0 = vpop.permute.xlu0 %11332 }
 0x9c2   : > { %v11528_v3 = vsel %vm11515_vm3, %v11511_v23, %v11459_v56  ;;  %v11495_v31 = vsel %vm795_vm2, %v35549_v58, %v11333_v0  ;;  %v35560_v58 = vld [vmem:[#allocation14_spill] sm:$0xff] }
 0x9c3   : > { %27143 = vmatprep.mubr.msk.f32.mxu1 %vm487_vm0, %v11528_v3 }
 0x9c5   : > { %v11335_v52 = vpop.permute.xlu1 %11334  ;;  %v11397_v42 = vpop.permute.xlu0 %11396 }
 0x9c6   : > { %v11512_v59 = vsel %vm11498_vm4, %v11495_v31, %v11397_v42  ;;  %v11496_v27 = vsel %vm795_vm2, %v35550_v33, %v11335_v52 }
 0x9c9   : > { %v11399_v17 = vpop.permute.xlu1 %11398  ;;  %v11461_v54 = vpop.permute.xlu0 %11460 }
 0x9ca   : > { %v11529_v48 = vsel %vm11515_vm3, %v11512_v59, %v11461_v54  ;;  %v11513_v4 = vsel %vm11498_vm4, %v11496_v27, %v11399_v17  ;;  %v35561_v59 = vld [vmem:[#allocation13_spill] sm:$0xff] }
 0x9cb   : > { %27144 = vmatmul.mubr.msk.f32.gmra.mrb[142].mxu1 %vm487_vm0, %v11529_v48 }
 0x9cd   : > { %v11463_v43 = vpop.permute.xlu1 %11462  ;;  %v11337_v34 = vpop.permute.xlu0 %11336 }
 0x9ce   : > { %v11530_v30 = vsel %vm11515_vm3, %v11513_v4, %v11463_v43  ;;  %v11497_v21 = vsel %vm795_vm2, %v35551_v55, %v11337_v34  ;;  %v35562_v34 = vld [vmem:[#allocation16_spill] sm:$0xff] }
 0x9cf   : > { %27146 = vmatprep.mubr.msk.f32.mxu1 %vm487_vm0, %v11530_v30 }
 0x9d1   : > { %v11401_v35 = vpop.permute.xlu0 %11400 }
 0x9d2   : > { %v11514_v32 = vsel %vm11498_vm4, %v11497_v21, %v11401_v35  ;;  %v35563_v35 = vld [vmem:[#allocation15_spill] sm:$0xff] }
 0x9d5   : > { %v11465_v38 = vpop.permute.xlu0 %11464 }
 0x9d6   : > { %v11531_v11 = vsel %vm11515_vm3, %v11514_v32, %v11465_v38 }
 0x9d7   : > { %27147 = vmatmul.mubr.msk.f32.gmra.mrb[144].mxu1 %vm487_vm0, %v11531_v11 }
 0xa2d   : > { %v27127_v20 = vpop.f32.mrb[136].mxu0 }
 0xa2e   : > { %v11656_v18 = vadd.f32 %v27127_v20, %v31508_v39  ;;  %v11650_v13 = vpop.f32.mrb[137].mxu0 }
 0xa2f   : > { %v11651_v28 = vadd.f32 %v31508_v39, %v11650_v13  ;;  %v35564_v13 = vld [vmem:[#allocation18_spill] sm:$0xff] }
 0xa30   : > { %v31513_v19 = vadd.f32 %v11656_v18, %v35552_v14  ;;  %v35565_v14 = vld [vmem:[#allocation17_spill] sm:$0xff] }
 0xa31   : > { %v31516_v51 = vadd.f32 %v11651_v28, %v35553_v24 }
 0xa32   : > { %v11748_v37 = vsel %vm487_vm0, %v31513_v19, 0.0 }
 0xa33   : > { %11749 = vadd.xlane.f32.xlu0 %v11748_v37  ;;  %v11745_v57 = vsel %vm487_vm0, %v31516_v51, 0.0 }
 0xa34   : > { %11746 = vadd.xlane.f32.xlu1 %v11745_v57 }
 0xa62   : > { %v27130_v45 = vpop.f32.mrb[138].mxu0 }
 0xa63   : > { %v11666_v44 = vadd.f32 %v27130_v45, %v31508_v39  ;;  %v11660_v8 = vpop.f32.mrb[139].mxu0 }
 0xa64   : > { %v11661_v10 = vadd.f32 %v31508_v39, %v11660_v8 }
 0xa65   : > { %v31525_v1 = vadd.f32 %v11666_v44, %v35554_v36  ;;  %v35566_v36 = vld [vmem:[#allocation20_spill] sm:$0xff] }
 0xa66   : > { %v31528_v22 = vadd.f32 %v11661_v10, %v35555_v25 }
 0xa67   : > { %v11754_v41 = vsel %vm487_vm0, %v31525_v1, 0.0 }
 0xa68   : > { %11755 = vadd.xlane.f32.xlu1 %v11754_v41  ;;  %v11751_v40 = vsel %vm487_vm0, %v31528_v22, 0.0  ;;  %v35567_v41 = vld [vmem:[#allocation19_spill] sm:$0xff] }
 0xa69   : > { %11752 = vadd.xlane.f32.xlu0 %v11751_v40 }
 0xa6e   : > { %v27133_v26 = vpop.f32.mrb[140].mxu0 }
 0xa6f   : > { %v11676_v53 = vadd.f32 %v27133_v26, %v31508_v39  ;;  %v11670_v16 = vpop.f32.mrb[141].mxu0 }
 0xa70   : > { %v11671_v7 = vadd.f32 %v31508_v39, %v11670_v16 }
 0xa71   : > { %v31537_v61 = vadd.f32 %v11676_v53, %v35556_v29 }
 0xa72   : > { %v31540_v2 = vadd.f32 %v11671_v7, %v35557_v6 }
 0xa73   : > { %v11760_v12 = vsel %vm487_vm0, %v31537_v61, 0.0 }
 0xa74   : > { %11761 = vadd.xlane.f32.xlu1 %v11760_v12  ;;  %v11757_v5 = vsel %vm487_vm0, %v31540_v2, 0.0 }
 0xa75   : > { %11758 = vadd.xlane.f32.xlu0 %v11757_v5 }
 0xa7a   : > { %v27136_v60 = vpop.f32.mrb[136].mxu1 }
 0xa7b   : > { %v11686_v46 = vadd.f32 %v27136_v60, %v31508_v39  ;;  %v11680_v63 = vpop.f32.mrb[137].mxu1 }
 0xa7c   : > { %v11681_v62 = vadd.f32 %v31508_v39, %v11680_v63 }
 0xa7d   : > { %v31549_v49 = vadd.f32 %v11686_v46, %v35558_v9  ;;  %v464_v9 = vld [vmem:[#allocation2 + $0x48] sm:$0xff] }
 0xa7e   : > { %v31552_v50 = vadd.f32 %v11681_v62, %v35559_v47  ;;  %v463_v62 = vld [vmem:[#allocation2 + $0x40] sm:$0xff] }
 0xa7f   : > { %v11766_v23 = vsel %vm487_vm0, %v31549_v49, 0.0  ;;  %v28024_v47 = vpack.c.bf16 %v464_v9, %v463_v62 }
 0xa80   : > { %11767 = vadd.xlane.f32.xlu1 %v11766_v23  ;;  %v11763_v56 = vsel %vm487_vm0, %v31552_v50, 0.0  ;;  %v466_v23 = vld [vmem:[#allocation2 + $0x58] sm:$0xff] }
 0xa81   : > { %11764 = vadd.xlane.f32.xlu0 %v11763_v56  ;;  %28025 = vmatprep.subr.bf16.mxu0 %v28024_v47 }
 0xa82   : > { %28027 = vmatpush3.bf16.msra.mxu0 %v28024_v47 }
 0xa86   : > { %v27139_v0 = vpop.f32.mrb[138].mxu1 }
 0xa87   : > { %v11696_v3 = vadd.f32 %v27139_v0, %v31508_v39  ;;  %v11690_v52 = vpop.f32.mrb[139].mxu1 }
 0xa88   : > { %v11691_v42 = vadd.f32 %v31508_v39, %v11690_v52 }
 0xa89   : > { %v31561_v31 = vadd.f32 %v11696_v3, %v35560_v58 }
 0xa8a   : > { %v31564_v17 = vadd.f32 %v11691_v42, %v35561_v59 }
 0xa8b   : > { %v11772_v54 = vsel %vm487_vm0, %v31561_v31, 0.0 }
 0xa8c   : > { %11773 = vadd.xlane.f32.xlu1 %v11772_v54  ;;  %v11769_v48 = vsel %vm487_vm0, %v31564_v17, 0.0 }
 0xa8d   : > { %11770 = vadd.xlane.f32.xlu0 %v11769_v48 }
 0xa92   : > { %v27142_v33 = vpop.f32.mrb[140].mxu1 }
 0xa93   : > { %v11706_v27 = vadd.f32 %v27142_v33, %v31508_v39  ;;  %v11700_v4 = vpop.f32.mrb[141].mxu1 }
 0xa94   : > { %v11701_v43 = vadd.f32 %v31508_v39, %v11700_v4 }
 0xa95   : > { %v31573_v30 = vadd.f32 %v11706_v27, %v35562_v34 }
 0xa96   : > { %v31576_v55 = vadd.f32 %v11701_v43, %v35563_v35 }
 0xa97   : > { %v11778_v21 = vsel %vm487_vm0, %v31573_v30, 0.0 }
 0xa98   : > { %11779 = vadd.xlane.f32.xlu1 %v11778_v21  ;;  %v11775_v32 = vsel %vm487_vm0, %v31576_v55, 0.0 }
 0xa99   : > { %11776 = vadd.xlane.f32.xlu0 %v11775_v32 }
 0xa9e   : > { %v27145_v38 = vpop.f32.mrb[142].mxu1 }
 0xa9f   : > { %v11716_v11 = vadd.f32 %v27145_v38, %v31508_v39  ;;  %v11710_v20 = vpop.f32.mrb[143].mxu1 }
 0xaa0   : > { %v11711_v18 = vadd.f32 %v31508_v39, %v11710_v20 }
 0xaa1   : > { %v31585_v28 = vadd.f32 %v11716_v11, %v35564_v13 }
 0xaa2   : > { %v31588_v24 = vadd.f32 %v11711_v18, %v35565_v14 }
 0xaa3   : > { %v11784_v37 = vsel %vm487_vm0, %v31585_v28, 0.0 }
 0xaa4   : > { %11785 = vadd.xlane.f32.xlu1 %v11784_v37  ;;  %v11781_v57 = vsel %vm487_vm0, %v31588_v24, 0.0 }
 0xaa5   : > { %11782 = vadd.xlane.f32.xlu0 %v11781_v57 }
 0xaaa   : > { %v27148_v45 = vpop.f32.mrb[144].mxu1 }
 0xaab   : > { %v11726_v44 = vadd.f32 %v27148_v45, %v31508_v39  ;;  %v11720_v8 = vpop.f32.mrb[145].mxu1 }
 0xaac   : > { %v11721_v10 = vadd.f32 %v31508_v39, %v11720_v8 }
 0xaad   : > { %v31597_v25 = vadd.f32 %v11726_v44, %v35566_v36 }
 0xaae   : > { %v31600_v40 = vadd.f32 %v11721_v10, %v35567_v41 }
 0xaaf   : > { %v11790_v26 = vsel %vm487_vm0, %v31597_v25, 0.0 }
 0xab0   : > { %11791 = vadd.xlane.f32.xlu1 %v11790_v26  ;;  %v11787_v53 = vsel %vm487_vm0, %v31600_v40, 0.0 }
 0xab1   : > { %11788 = vadd.xlane.f32.xlu0 %v11787_v53 }
 0xac0   : > { %v11750_v16 = vpop.xlane.xlu0 %11749 }
 0xac1   : > { %v11795_v7 = vmul.f32 0.03125, %v11750_v16  ;;  %v11747_v29 = vpop.xlane.xlu1 %11746 }
 0xac2   : > { %v11794_v6 = vmul.f32 0.03125, %v11747_v29 }
 0xac3   : > { %v31607_v39 = vsub.f32 %v31513_v19, %v11795_v7  ;;  %v465_v19 = vld [vmem:[#allocation2 + $0x50] sm:$0xff] }
 0xac4   : > { %v31610_v12 = vsub.f32 %v31516_v51, %v11794_v6  ;;  %v28028_v51 = vpack.c.bf16 %v466_v23, %v465_v19 }
 0xac5   : > { %v11827_v5 = vmul.f32 %v31607_v39, %v31607_v39 }
 0xac6   : > { %v11826_v60 = vmul.f32 %v31610_v12, %v31610_v12  ;;  %28029 = vmatprep.subr.bf16.mxu0 %v28028_v51 }
 0xac7   : > { %v11845_v46 = vsel %vm487_vm0, %v11827_v5, 0.0  ;;  %28031 = vmatpush3.bf16.msra.mxu0 %v28028_v51 }
 0xac8   : > { %11846 = vadd.xlane.f32.xlu1 %v11845_v46  ;;  %v11842_v63 = vsel %vm487_vm0, %v11826_v60, 0.0 }
 0xac9   : > { %11843 = vadd.xlane.f32.xlu0 %v11842_v63 }
 0xaf5   : > { %v11756_v56 = vpop.xlane.xlu1 %11755 }
 0xaf6   : > { %v11797_v0 = vmul.f32 0.03125, %v11756_v56  ;;  %v11753_v3 = vpop.xlane.xlu0 %11752 }
 0xaf7   : > { %v11796_v52 = vmul.f32 0.03125, %v11753_v3 }
 0xaf8   : > { %v31619_v42 = vsub.f32 %v31525_v1, %v11797_v0 }
 0xaf9   : > { %v31622_v58 = vsub.f32 %v31528_v22, %v11796_v52 }
 0xafa   : > { %v11829_v59 = vmul.f32 %v31619_v42, %v31619_v42 }
 0xafb   : > { %v11828_v54 = vmul.f32 %v31622_v58, %v31622_v58 }
 0xafc   : > { %v11851_v48 = vsel %vm487_vm0, %v11829_v59, 0.0 }
 0xafd   : > { %11852 = vadd.xlane.f32.xlu1 %v11851_v48  ;;  %v11848_v33 = vsel %vm487_vm0, %v11828_v54, 0.0 }
 0xafe   : > { %11849 = vadd.xlane.f32.xlu0 %v11848_v33 }
 0xb01   : > { %v11762_v27 = vpop.xlane.xlu1 %11761 }
 0xb02   : > { %v11799_v4 = vmul.f32 0.03125, %v11762_v27  ;;  %v11759_v43 = vpop.xlane.xlu0 %11758 }
 0xb03   : > { %v11798_v1 = vmul.f32 0.03125, %v11759_v43 }
 0xb04   : > { %v31631_v34 = vsub.f32 %v31537_v61, %v11799_v4 }
 0xb05   : > { %v31634_v22 = vsub.f32 %v31540_v2, %v11798_v1 }
 0xb06   : > { %v11831_v35 = vmul.f32 %v31631_v34, %v31631_v34 }
 0xb07   : > { %v11830_v21 = vmul.f32 %v31634_v22, %v31634_v22 }
 0xb08   : > { %v11857_v32 = vsel %vm487_vm0, %v11831_v35, 0.0 }
 0xb09   : > { %11858 = vadd.xlane.f32.xlu1 %v11857_v32  ;;  %v11854_v38 = vsel %vm487_vm0, %v11830_v21, 0.0 }
 0xb0a   : > { %11855 = vadd.xlane.f32.xlu0 %v11854_v38 }
 0xb0d   : > { %v11768_v11 = vpop.xlane.xlu1 %11767 }
 0xb0e   : > { %v11801_v20 = vmul.f32 0.03125, %v11768_v11  ;;  %v11765_v18 = vpop.xlane.xlu0 %11764  ;;  %v31705_v11 = vld [vmem:[%s35139_s2 + $0x2] ss:$0 sm:$0xff] }
 0xb0f   : > { %v11800_v61 = vmul.f32 0.03125, %v11765_v18 }
 0xb10   : > { %v31643_v13 = vsub.f32 %v31549_v49, %v11801_v20 }
 0xb11   : > { %v31646_v2 = vsub.f32 %v31552_v50, %v11800_v61 }
 0xb12   : > { %v11833_v14 = vmul.f32 %v31643_v13, %v31643_v13 }
 0xb13   : > { %v11832_v37 = vmul.f32 %v31646_v2, %v31646_v2 }
 0xb14   : > { %v11863_v57 = vsel %vm487_vm0, %v11833_v14, 0.0 }
 0xb15   : > { %11864 = vadd.xlane.f32.xlu1 %v11863_v57  ;;  %v11860_v45 = vsel %vm487_vm0, %v11832_v37, 0.0  ;;  %v31713_v37 = vld [vmem:[%s35139_s2 + $0x3] ss:$0 sm:$0xff] }
 0xb16   : > { %11861 = vadd.xlane.f32.xlu0 %v11860_v45 }
 0xb19   : > { %v11774_v44 = vpop.xlane.xlu1 %11773 }
 0xb1a   : > { %v11803_v8 = vmul.f32 0.03125, %v11774_v44  ;;  %v11771_v10 = vpop.xlane.xlu0 %11770  ;;  %v467_v44 = vld [vmem:[#allocation2 + $0x60] sm:$0xff] }
 0xb1b   : > { %v11802_v49 = vmul.f32 0.03125, %v11771_v10  ;;  %v469_v10 = vld [vmem:[#allocation2 + $0x70] sm:$0xff] }
 0xb1c   : > { %v31655_v36 = vsub.f32 %v31561_v31, %v11803_v8  ;;  %v468_v8 = vld [vmem:[#allocation2 + $0x68] sm:$0xff] }
 0xb1d   : > { %v31658_v50 = vsub.f32 %v31564_v17, %v11802_v49 }
 0xb1e   : > { %v11835_v41 = vmul.f32 %v31655_v36, %v31655_v36 }
 0xb1f   : > { %v11834_v26 = vmul.f32 %v31658_v50, %v31658_v50 }
 0xb20   : > { %v11869_v53 = vsel %vm487_vm0, %v11835_v41, 0.0 }
 0xb21   : > { %11870 = vadd.xlane.f32.xlu1 %v11869_v53  ;;  %v11866_v16 = vsel %vm487_vm0, %v11834_v26, 0.0  ;;  %v471_v26 = vld [vmem:[#allocation2 + $0x80] sm:$0xff]  ;;  %v472_v53 = vld [vmem:[#allocation2 + $0x88] sm:$0xff] }
 0xb22   : > { %11867 = vadd.xlane.f32.xlu0 %v11866_v16  ;;  %v28040_v16 = vpack.c.bf16 %v472_v53, %v471_v26 }
 0xb25   : > { %v11780_v7 = vpop.xlane.xlu1 %11779 }
 0xb26   : > { %v11805_v29 = vmul.f32 0.03125, %v11780_v7  ;;  %v11777_v6 = vpop.xlane.xlu0 %11776 }
 0xb27   : > { %v11804_v31 = vmul.f32 0.03125, %v11777_v6 }
 0xb28   : > { %v31667_v5 = vsub.f32 %v31573_v30, %v11805_v29 }
 0xb29   : > { %v31670_v17 = vsub.f32 %v31576_v55, %v11804_v31 }
 0xb2a   : > { %v11837_v60 = vmul.f32 %v31667_v5, %v31667_v5 }
 0xb2b   : > { %v11836_v46 = vmul.f32 %v31670_v17, %v31670_v17 }
 0xb2c   : > { %v11875_v63 = vsel %vm487_vm0, %v11837_v60, 0.0 }
 0xb2d   : > { %11876 = vadd.xlane.f32.xlu1 %v11875_v63  ;;  %v11872_v62 = vsel %vm487_vm0, %v11836_v46, 0.0 }
 0xb2e   : > { %11873 = vadd.xlane.f32.xlu0 %v11872_v62 }
 0xb31   : > { %v11786_v9 = vpop.xlane.xlu1 %11785 }
 0xb32   : > { %v11807_v47 = vmul.f32 0.03125, %v11786_v9  ;;  %v11783_v19 = vpop.xlane.xlu0 %11782 }
 0xb33   : > { %v11806_v30 = vmul.f32 0.03125, %v11783_v19 }
 0xb34   : > { %v31679_v23 = vsub.f32 %v31585_v28, %v11807_v47 }
 0xb35   : > { %v31682_v55 = vsub.f32 %v31588_v24, %v11806_v30 }
 0xb36   : > { %v11839_v51 = vmul.f32 %v31679_v23, %v31679_v23 }
 0xb37   : > { %v11838_v56 = vmul.f32 %v31682_v55, %v31682_v55 }
 0xb38   : > { %v11881_v0 = vsel %vm487_vm0, %v11839_v51, 0.0 }
 0xb39   : > { %11882 = vadd.xlane.f32.xlu1 %v11881_v0  ;;  %v11878_v3 = vsel %vm487_vm0, %v11838_v56, 0.0 }
 0xb3a   : > { %11879 = vadd.xlane.f32.xlu0 %v11878_v3 }
 0xb3d   : > { %v11792_v52 = vpop.xlane.xlu1 %11791 }
 0xb3e   : > { %v11809_v59 = vmul.f32 0.03125, %v11792_v52  ;;  %v11789_v54 = vpop.xlane.xlu0 %11788 }
 0xb3f   : > { %v11808_v28 = vmul.f32 0.03125, %v11789_v54 }
 0xb40   : > { %v31691_v48 = vsub.f32 %v31597_v25, %v11809_v59 }
 0xb41   : > { %v31694_v24 = vsub.f32 %v31600_v40, %v11808_v28 }
 0xb42   : > { %v11841_v33 = vmul.f32 %v31691_v48, %v31691_v48 }
 0xb43   : > { %v11840_v27 = vmul.f32 %v31694_v24, %v31694_v24 }
 0xb44   : > { %v11887_v4 = vsel %vm487_vm0, %v11841_v33, 0.0 }
 0xb45   : > { %11888 = vadd.xlane.f32.xlu1 %v11887_v4  ;;  %v11884_v43 = vsel %vm487_vm0, %v11840_v27, 0.0 }
 0xb46   : > { %11885 = vadd.xlane.f32.xlu0 %v11884_v43 }
 0xb55   : > { %v11847_v1 = vpop.xlane.xlu1 %11846 }
 0xb56   : > { %v11891_v35 = vmul.f32 0.03125, %v11847_v1  ;;  %v11844_v21 = vpop.xlane.xlu0 %11843 }
 0xb57   : > { %v11890_v25 = vmul.f32 0.03125, %v11844_v21 }
 0xb58   : > { %v11907_v32 = vadd.f32 1e-05, %v11891_v35 }
 0xb59   : > { %v11906_v38 = vadd.f32 1e-05, %v11890_v25 }
 0xb5a   : > { %28406 = vrsqrt.f32 %v11907_v32 }
 0xb5b   : > { %28408 = vrsqrt.f32 %v11906_v38 }
 0xb64   : > { %v28407_v40 = vpop.eup %28406 }
 0xb65   : > { %v28409_v20 = vpop.eup %28408  ;;  %v11939_v18 = vmul.f32 %v28407_v40, %v31607_v39  ;;  %v28032_v39 = vpack.c.bf16 %v468_v8, %v467_v44 }
 0xb66   : > { %v11938_v61 = vmul.f32 %v28409_v20, %v31610_v12  ;;  %v470_v12 = vld [vmem:[#allocation2 + $0x78] sm:$0xff] }
 0xb67   : > { %v11959_v14 = vmul.f32 %v31705_v11, %v11939_v18  ;;  %v28036_v41 = vpack.c.bf16 %v470_v12, %v469_v10  ;;  %28033 = vmatprep.subr.bf16.mxu1 %v28032_v39 }
 0xb68   : > { %v11958_v57 = vmul.f32 %v31705_v11, %v11938_v61  ;;  %28035 = vmatpush3.bf16.msra.mxu1 %v28032_v39 }
 0xb69   : > { %v31720_v49 = vadd.f32 %v31713_v37, %v11959_v14  ;;  %28037 = vmatprep.subr.bf16.mxu1 %v28036_v41 }
 0xb6a   : > { %v31717_v45 = vadd.f32 %v31713_v37, %v11958_v57 }
 0xb6c   : > { %27157 = vmatprep.mubr.msk.f32.mxu0 %vm487_vm0, %v31717_v45  ;;  %28039 = vmatpush3.bf16.msra.mxu1 %v28036_v41 }
 0xb6d   : > { %27158 = vmatmul.mubr.msk.f32.vlgmr.msra.gmra.mrb[142].mxu0 %vm487_vm0, %v31720_v49  ;;  %28041 = vmatprep.subr.bf16.mxu1 %v28040_v16 }
 0xb70   : > { %28043 = vmatpush3.bf16.msra.mxu1 %v28040_v16 }
 0xb8a   : > { %v11853_v7 = vpop.xlane.xlu1 %11852 }
 0xb8b   : > { %v11893_v29 = vmul.f32 0.03125, %v11853_v7  ;;  %v11850_v6 = vpop.xlane.xlu0 %11849 }
 0xb8c   : > { %v11892_v31 = vmul.f32 0.03125, %v11850_v6 }
 0xb8d   : > { %v11909_v60 = vadd.f32 1e-05, %v11893_v29 }
 0xb8e   : > { %v11908_v46 = vadd.f32 1e-05, %v11892_v31 }
 0xb8f   : > { %28410 = vrsqrt.f32 %v11909_v60 }
 0xb90   : > { %28412 = vrsqrt.f32 %v11908_v46 }
 0xb96   : > { %v11859_v63 = vpop.xlane.xlu1 %11858 }
 0xb97   : > { %v11895_v62 = vmul.f32 0.03125, %v11859_v63  ;;  %v11856_v9 = vpop.xlane.xlu0 %11855 }
 0xb98   : > { %v11894_v47 = vmul.f32 0.03125, %v11856_v9 }
 0xb99   : > { %v28411_v19 = vpop.eup %28410  ;;  %v11911_v30 = vadd.f32 1e-05, %v11895_v62 }
 0xb9a   : > { %v28413_v51 = vpop.eup %28412  ;;  %v11910_v56 = vadd.f32 1e-05, %v11894_v47  ;;  %v11941_v0 = vmul.f32 %v28411_v19, %v31619_v42  ;;  %v473_v19 = vld [vmem:[#allocation2 + $0x90] sm:$0xff] }
 0xb9b   : > { %28414 = vrsqrt.f32 %v11911_v30  ;;  %v11940_v3 = vmul.f32 %v28413_v51, %v31622_v58  ;;  %v474_v30 = vld [vmem:[#allocation2 + $0x98] sm:$0xff] }
 0xb9c   : > { %28416 = vrsqrt.f32 %v11910_v56  ;;  %v11961_v52 = vmul.f32 %v31705_v11, %v11941_v0  ;;  %v28044_v56 = vpack.c.bf16 %v474_v30, %v473_v19 }
 0xb9d   : > { %v11960_v59 = vmul.f32 %v31705_v11, %v11940_v3 }
 0xb9e   : > { %v31734_v28 = vadd.f32 %v31713_v37, %v11961_v52  ;;  %28045 = vmatprep.subr.bf16.mxu1 %v28044_v56 }
 0xb9f   : > { %v31731_v54 = vadd.f32 %v31713_v37, %v11960_v59  ;;  %28047 = vmatpush3.bf16.msra.mxu1 %v28044_v56 }
 0xba0   : > { %27253 = vmatprep.subr.mxu1 %v35375_v15 }
 0xba1   : > { %27160 = vmatprep.mubr.msk.f32.mxu0 %vm487_vm0, %v31731_v54 }
 0xba2   : > { %v11865_v33 = vpop.xlane.xlu1 %11864  ;;  %27161 = vmatmul.mubr.msk.f32.gmra.mrb[144].mxu0 %vm487_vm0, %v31734_v28 }
 0xba3   : > { %v11897_v42 = vmul.f32 0.03125, %v11865_v33  ;;  %v11862_v58 = vpop.xlane.xlu0 %11861 }
 0xba4   : > { %v11896_v27 = vmul.f32 0.03125, %v11862_v58 }
 0xba5   : > { %v28415_v4 = vpop.eup %28414  ;;  %v11913_v43 = vadd.f32 1e-05, %v11897_v42 }
 0xba6   : > { %v28417_v1 = vpop.eup %28416  ;;  %v11912_v35 = vadd.f32 1e-05, %v11896_v27  ;;  %v11943_v21 = vmul.f32 %v28415_v4, %v31631_v34 }
 0xba7   : > { %28418 = vrsqrt.f32 %v11913_v43  ;;  %v11942_v25 = vmul.f32 %v28417_v1, %v31634_v22 }
 0xba8   : > { %28420 = vrsqrt.f32 %v11912_v35  ;;  %v11963_v32 = vmul.f32 %v31705_v11, %v11943_v21 }
 0xba9   : > { %v11962_v38 = vmul.f32 %v31705_v11, %v11942_v25 }
 0xbaa   : > { %v31748_v20 = vadd.f32 %v31713_v37, %v11963_v32 }
 0xbab   : > { %v31745_v40 = vadd.f32 %v31713_v37, %v11962_v38 }
 0xbad   : > { %27163 = vmatprep.mubr.msk.f32.mxu0 %vm487_vm0, %v31745_v40 }
 0xbae   : > { %v11871_v18 = vpop.xlane.xlu1 %11870  ;;  %27164 = vmatmul.mubr.msk.f32.gmra.mrb[146].mxu0 %vm487_vm0, %v31748_v20 }
 0xbaf   : > { %v11899_v34 = vmul.f32 0.03125, %v11871_v18  ;;  %v11868_v22 = vpop.xlane.xlu0 %11867 }
 0xbb0   : > { %v11898_v61 = vmul.f32 0.03125, %v11868_v22 }
 0xbb1   : > { %v28419_v14 = vpop.eup %28418  ;;  %v11915_v57 = vadd.f32 1e-05, %v11899_v34 }
 0xbb2   : > { %v28421_v44 = vpop.eup %28420  ;;  %v11914_v8 = vadd.f32 1e-05, %v11898_v61  ;;  %v11945_v10 = vmul.f32 %v28419_v14, %v31643_v13 }
 0xbb3   : > { %28422 = vrsqrt.f32 %v11915_v57  ;;  %v11944_v39 = vmul.f32 %v28421_v44, %v31646_v2 }
 0xbb4   : > { %28424 = vrsqrt.f32 %v11914_v8  ;;  %v11965_v12 = vmul.f32 %v31705_v11, %v11945_v10 }
 0xbb5   : > { %v11964_v41 = vmul.f32 %v31705_v11, %v11944_v39 }
 0xbb6   : > { %v31762_v53 = vadd.f32 %v31713_v37, %v11965_v12 }
 0xbb7   : > { %v31759_v26 = vadd.f32 %v31713_v37, %v11964_v41 }
 0xbb9   : > { %27166 = vmatprep.mubr.msk.f32.mxu0 %vm487_vm0, %v31759_v26 }
 0xbba   : > { %v11877_v16 = vpop.xlane.xlu1 %11876  ;;  %27167 = vmatmul.mubr.msk.f32.gmra.mrb[148].mxu0 %vm487_vm0, %v31762_v53 }
 0xbbb   : > { %v11901_v13 = vmul.f32 0.03125, %v11877_v16  ;;  %v11874_v2 = vpop.xlane.xlu0 %11873 }
 0xbbc   : > { %v11900_v7 = vmul.f32 0.03125, %v11874_v2 }
 0xbbd   : > { %v28423_v29 = vpop.eup %28422  ;;  %v11917_v6 = vadd.f32 1e-05, %v11901_v13 }
 0xbbe   : > { %v28425_v31 = vpop.eup %28424  ;;  %v11916_v60 = vadd.f32 1e-05, %v11900_v7  ;;  %v11947_v46 = vmul.f32 %v28423_v29, %v31655_v36 }
 0xbbf   : > { %28426 = vrsqrt.f32 %v11917_v6  ;;  %v11946_v63 = vmul.f32 %v28425_v31, %v31658_v50 }
 0xbc0   : > { %28428 = vrsqrt.f32 %v11916_v60  ;;  %v11967_v62 = vmul.f32 %v31705_v11, %v11947_v46 }
 0xbc1   : > { %v11966_v9 = vmul.f32 %v31705_v11, %v11946_v63 }
 0xbc2   : > { %v31776_v51 = vadd.f32 %v31713_v37, %v11967_v62 }
 0xbc3   : > { %v31773_v47 = vadd.f32 %v31713_v37, %v11966_v9 }
 0xbc5   : > { %27169 = vmatprep.mubr.msk.f32.mxu0 %vm487_vm0, %v31773_v47 }
 0xbc6   : > { %v11883_v36 = vpop.xlane.xlu1 %11882  ;;  %27170 = vmatmul.mubr.msk.f32.gmra.mrb[150].mxu0 %vm487_vm0, %v31776_v51 }
 0xbc7   : > { %v11903_v50 = vmul.f32 0.03125, %v11883_v36  ;;  %v11880_v0 = vpop.xlane.xlu0 %11879 }
 0xbc8   : > { %v11902_v3 = vmul.f32 0.03125, %v11880_v0 }
 0xbc9   : > { %v28427_v52 = vpop.eup %28426  ;;  %v11919_v59 = vadd.f32 1e-05, %v11903_v50 }
 0xbca   : > { %v28429_v33 = vpop.eup %28428  ;;  %v11918_v42 = vadd.f32 1e-05, %v11902_v3  ;;  %v11949_v58 = vmul.f32 %v28427_v52, %v31667_v5 }
 0xbcb   : > { %28430 = vrsqrt.f32 %v11919_v59  ;;  %v11948_v27 = vmul.f32 %v28429_v33, %v31670_v17 }
 0xbcc   : > { %28432 = vrsqrt.f32 %v11918_v42  ;;  %v11969_v4 = vmul.f32 %v31705_v11, %v11949_v58 }
 0xbcd   : > { %v11968_v43 = vmul.f32 %v31705_v11, %v11948_v27 }
 0xbce   : > { %v31791_v35 = vadd.f32 %v31713_v37, %v11969_v4 }
 0xbcf   : > { %v31788_v1 = vadd.f32 %v31713_v37, %v11968_v43 }
 0xbd1   : > { %27172 = vmatprep.mubr.msk.f32.mxu0 %vm487_vm0, %v31788_v1 }
 0xbd2   : > { %v11889_v21 = vpop.xlane.xlu1 %11888  ;;  %27173 = vmatmul.mubr.msk.f32.gmra.mrb[152].mxu0 %vm487_vm0, %v31791_v35 }
 0xbd3   : > { %v11905_v5 = vmul.f32 0.03125, %v11889_v21  ;;  %v11886_v17 = vpop.xlane.xlu0 %11885 }
 0xbd4   : > { %v11904_v25 = vmul.f32 0.03125, %v11886_v17 }
 0xbd5   : > { %v28431_v32 = vpop.eup %28430  ;;  %v11921_v38 = vadd.f32 1e-05, %v11905_v5 }
 0xbd6   : > { %v28433_v18 = vpop.eup %28432  ;;  %v11920_v34 = vadd.f32 1e-05, %v11904_v25  ;;  %v11951_v22 = vmul.f32 %v28431_v32, %v31679_v23 }
 0xbd7   : > { %28434 = vrsqrt.f32 %v11921_v38  ;;  %v11950_v61 = vmul.f32 %v28433_v18, %v31682_v55 }
 0xbd8   : > { %28436 = vrsqrt.f32 %v11920_v34  ;;  %v11971_v14 = vmul.f32 %v31705_v11, %v11951_v22 }
 0xbd9   : > { %v11970_v57 = vmul.f32 %v31705_v11, %v11950_v61 }
 0xbda   : > { %v31805_v8 = vadd.f32 %v31713_v37, %v11971_v14 }
 0xbdb   : > { %v31802_v44 = vadd.f32 %v31713_v37, %v11970_v57 }
 0xbdd   : > { %27175 = vmatprep.mubr.msk.f32.mxu0 %vm487_vm0, %v31802_v44 }
 0xbde   : > { %27176 = vmatmul.mubr.msk.f32.gmra.mrb[154].mxu0 %vm487_vm0, %v31805_v8 }
 0xbe1   : > { %v28435_v23 = vpop.eup %28434 }
 0xbe2   : > { %v28437_v10 = vpop.eup %28436  ;;  %v11953_v55 = vmul.f32 %v28435_v23, %v31691_v48  ;;  %v25446_v48 = vld [vmem:[%s35139_s2 + $0x4] ss:$0 sm:$0xff] }
 0xbe3   : > { %v11952_v39 = vmul.f32 %v28437_v10, %v31694_v24 }
 0xbe4   : > { %v11973_v12 = vmul.f32 %v31705_v11, %v11953_v55 }
 0xbe5   : > { %v11972_v41 = vmul.f32 %v31705_v11, %v11952_v39 }
 0xbe6   : > { %v31819_v13 = vadd.f32 %v31713_v37, %v11973_v12 }
 0xbe7   : > { %v31816_v16 = vadd.f32 %v31713_v37, %v11972_v41 }
 0xbe9   : > { %27178 = vmatprep.mubr.msk.f32.mxu0 %vm487_vm0, %v31816_v16 }
 0xbea   : > { %27179 = vmatmul.mubr.msk.f32.gmra.mrb[156].mxu0 %vm487_vm0, %v31819_v13 }
 0xc40   : > { %v27159_v24 = vpop.f32.mrb[142].mxu0 }
 0xc41   : > { %v12118_v2 = vadd.f32 %v27159_v24, %v25446_v48  ;;  %v12112_v7 = vpop.f32.mrb[143].mxu0 }
 0xc42   : > { %v12113_v11 = vadd.f32 %v25446_v48, %v12112_v7  ;;  %v31849_v7 = vld [vmem:[%s35139_s2 + $0x5] ss:$0 sm:$0xff] }
 0xc43   : > { %v12192_v6 = vmax.f32 %v12118_v2, 0.0 }
 0xc44   : > { %v12191_v29 = vmax.f32 %v12113_v11, 0.0 }
 0xc46   : > { %27197 = vmatprep.mubr.msk.f32.mxu1 %vm12211_vm5, %v12191_v29 }
 0xc47   : > { %27198 = vmatmul.mubr.msk.f32.vlgmr.msra.gmra.mrb[146].mxu1 %vm12211_vm5, %v12192_v6 }
 0xc75   : > { %v27162_v37 = vpop.f32.mrb[144].mxu0 }
 0xc76   : > { %v12128_v31 = vadd.f32 %v27162_v37, %v25446_v48  ;;  %v12122_v60 = vpop.f32.mrb[145].mxu0 }
 0xc77   : > { %v12123_v46 = vadd.f32 %v25446_v48, %v12122_v60 }
 0xc78   : > { %v12194_v62 = vmax.f32 %v12128_v31, 0.0 }
 0xc79   : > { %v12193_v63 = vmax.f32 %v12123_v46, 0.0 }
 0xc7b   : > { %27200 = vmatprep.mubr.msk.f32.mxu1 %vm12211_vm5, %v12193_v63 }
 0xc7c   : > { %27201 = vmatmul.mubr.msk.f32.gmra.mrb[148].mxu1 %vm12211_vm5, %v12194_v62 }
 0xc81   : > { %v27165_v9 = vpop.f32.mrb[146].mxu0 }
 0xc82   : > { %v12138_v19 = vadd.f32 %v27165_v9, %v25446_v48  ;;  %v12132_v30 = vpop.f32.mrb[147].mxu0 }
 0xc83   : > { %v12133_v56 = vadd.f32 %v25446_v48, %v12132_v30 }
 0xc84   : > { %v12196_v50 = vmax.f32 %v12138_v19, 0.0 }
 0xc85   : > { %v12195_v36 = vmax.f32 %v12133_v56, 0.0 }
 0xc87   : > { %27203 = vmatprep.mubr.msk.f32.mxu1 %vm12211_vm5, %v12195_v36 }
 0xc88   : > { %27204 = vmatmul.mubr.msk.f32.gmra.mrb[150].mxu1 %vm12211_vm5, %v12196_v50 }
 0xc8d   : > { %v27168_v0 = vpop.f32.mrb[148].mxu0 }
 0xc8e   : > { %v12148_v3 = vadd.f32 %v27168_v0, %v25446_v48  ;;  %v12142_v52 = vpop.f32.mrb[149].mxu0 }
 0xc8f   : > { %v12143_v59 = vadd.f32 %v25446_v48, %v12142_v52 }
 0xc90   : > { %v12198_v42 = vmax.f32 %v12148_v3, 0.0 }
 0xc91   : > { %v12197_v33 = vmax.f32 %v12143_v59, 0.0 }
 0xc93   : > { %27206 = vmatprep.mubr.msk.f32.mxu1 %vm12211_vm5, %v12197_v33 }
 0xc94   : > { %27207 = vmatmul.mubr.msk.f32.gmra.mrb[152].mxu1 %vm12211_vm5, %v12198_v42 }
 0xc99   : > { %v27171_v58 = vpop.f32.mrb[150].mxu0 }
 0xc9a   : > { %v12158_v27 = vadd.f32 %v27171_v58, %v25446_v48  ;;  %v12152_v4 = vpop.f32.mrb[151].mxu0 }
 0xc9b   : > { %v12153_v43 = vadd.f32 %v25446_v48, %v12152_v4 }
 0xc9c   : > { %v12200_v5 = vmax.f32 %v12158_v27, 0.0 }
 0xc9d   : > { %v12199_v21 = vmax.f32 %v12153_v43, 0.0 }
 0xc9f   : > { %27209 = vmatprep.mubr.msk.f32.mxu1 %vm12211_vm5, %v12199_v21 }
 0xca0   : > { %27210 = vmatmul.mubr.msk.f32.gmra.mrb[154].mxu1 %vm12211_vm5, %v12200_v5 }
 0xca5   : > { %v27174_v17 = vpop.f32.mrb[152].mxu0 }
 0xca6   : > { %v12168_v25 = vadd.f32 %v27174_v17, %v25446_v48  ;;  %v12162_v32 = vpop.f32.mrb[153].mxu0 }
 0xca7   : > { %v12163_v38 = vadd.f32 %v25446_v48, %v12162_v32 }
 0xca8   : > { %v12202_v34 = vmax.f32 %v12168_v25, 0.0 }
 0xca9   : > { %v12201_v18 = vmax.f32 %v12163_v38, 0.0 }
 0xcab   : > { %27212 = vmatprep.mubr.msk.f32.mxu1 %vm12211_vm5, %v12201_v18 }
 0xcac   : > { %27213 = vmatmul.mubr.msk.f32.gmra.mrb[156].mxu1 %vm12211_vm5, %v12202_v34 }
 0xcb1   : > { %v27177_v22 = vpop.f32.mrb[154].mxu0 }
 0xcb2   : > { %v12178_v61 = vadd.f32 %v27177_v22, %v25446_v48  ;;  %v12172_v14 = vpop.f32.mrb[155].mxu0 }
 0xcb3   : > { %v12173_v57 = vadd.f32 %v25446_v48, %v12172_v14 }
 0xcb4   : > { %v12204_v10 = vmax.f32 %v12178_v61, 0.0 }
 0xcb5   : > { %v12203_v23 = vmax.f32 %v12173_v57, 0.0 }
 0xcb7   : > { %27215 = vmatprep.mubr.msk.f32.mxu1 %vm12211_vm5, %v12203_v23 }
 0xcb8   : > { %27216 = vmatmul.mubr.msk.f32.gmra.mrb[158].mxu1 %vm12211_vm5, %v12204_v10 }
 0xcbd   : > { %v27180_v55 = vpop.f32.mrb[156].mxu0 }
 0xcbe   : > { %v12188_v39 = vadd.f32 %v27180_v55, %v25446_v48  ;;  %v12182_v12 = vpop.f32.mrb[157].mxu0 }
 0xcbf   : > { %v12183_v41 = vadd.f32 %v25446_v48, %v12182_v12 }
 0xcc0   : > { %v12206_v2 = vmax.f32 %v12188_v39, 0.0 }
 0xcc1   : > { %v12205_v24 = vmax.f32 %v12183_v41, 0.0 }
 0xcc3   : > { %27218 = vmatprep.mubr.msk.f32.mxu1 %vm12211_vm5, %v12205_v24 }
 0xcc4   : > { %27219 = vmatmul.mubr.msk.f32.gmra.mrb[160].mxu1 %vm12211_vm5, %v12206_v2 }
 0xcc5   : > { %27255 = vmatprep.mubr.msk.f32.mxu1 %vm28836_vm1, %v35375_v15 }
 0xd1a   : > { %v27199_v11 = vpop.f32.mrb[146].mxu1 }
 0xd1b   : > { %v12332_v29 = vadd.f32 %v27199_v11, %v31849_v7  ;;  %v12326_v6 = vpop.f32.mrb[147].mxu1 }
 0xd1c   : > { %v12327_v48 = vadd.f32 %v31849_v7, %v12326_v6 }
 0xd1d   : > { %v31854_v37 = vadd.f32 %v12332_v29, %v31720_v49 }
 0xd1e   : > { %v31857_v31 = vadd.f32 %v12327_v48, %v31717_v45 }
 0xd1f   : > { %v12424_v60 = vsel %vm487_vm0, %v31854_v37, 0.0 }
 0xd20   : > { %12425 = vadd.xlane.f32.xlu1 %v12424_v60  ;;  %v12421_v46 = vsel %vm487_vm0, %v31857_v31, 0.0 }
 0xd21   : > { %12422 = vadd.xlane.f32.xlu0 %v12421_v46 }
 0xd4f   : > { %v27202_v63 = vpop.f32.mrb[148].mxu1 }
 0xd50   : > { %v12342_v62 = vadd.f32 %v27202_v63, %v31849_v7  ;;  %v12336_v9 = vpop.f32.mrb[149].mxu1 }
 0xd51   : > { %v12337_v19 = vadd.f32 %v31849_v7, %v12336_v9 }
 0xd52   : > { %v31866_v49 = vadd.f32 %v12342_v62, %v31734_v28 }
 0xd53   : > { %v31869_v45 = vadd.f32 %v12337_v19, %v31731_v54 }
 0xd54   : > { %v12430_v30 = vsel %vm487_vm0, %v31866_v49, 0.0 }
 0xd55   : > { %12431 = vadd.xlane.f32.xlu1 %v12430_v30  ;;  %v12427_v56 = vsel %vm487_vm0, %v31869_v45, 0.0 }
 0xd56   : > { %12428 = vadd.xlane.f32.xlu0 %v12427_v56  ;;  %v12670_v56 = vld [vmem:[#allocation2 + $0xa0] sm:$0xff] }
 0xd5b   : > { %v27205_v36 = vpop.f32.mrb[150].mxu1 }
 0xd5c   : > { %v12352_v50 = vadd.f32 %v27205_v36, %v31849_v7  ;;  %v12346_v0 = vpop.f32.mrb[151].mxu1  ;;  %v12671_v36 = vld [vmem:[#allocation2 + $0xa8] sm:$0xff] }
 0xd5d   : > { %v12347_v3 = vadd.f32 %v31849_v7, %v12346_v0  ;;  %v12673_v0 = vld [vmem:[#allocation2 + $0xb8] sm:$0xff] }
 0xd5e   : > { %v31878_v28 = vadd.f32 %v12352_v50, %v31748_v20  ;;  %v28048_v50 = vpack.c.bf16 %v12671_v36, %v12670_v56 }
 0xd5f   : > { %v31881_v54 = vadd.f32 %v12347_v3, %v31745_v40 }
 0xd60   : > { %v12436_v52 = vsel %vm487_vm0, %v31878_v28, 0.0  ;;  %28049 = vmatprep.subr.bf16.mxu0 %v28048_v50 }
 0xd61   : > { %12437 = vadd.xlane.f32.xlu1 %v12436_v52  ;;  %v12433_v59 = vsel %vm487_vm0, %v31881_v54, 0.0  ;;  %28051 = vmatpush3.bf16.msra.mxu0 %v28048_v50 }
 0xd62   : > { %12434 = vadd.xlane.f32.xlu0 %v12433_v59 }
 0xd67   : > { %v27208_v33 = vpop.f32.mrb[152].mxu1 }
 0xd68   : > { %v12362_v42 = vadd.f32 %v27208_v33, %v31849_v7  ;;  %v12356_v58 = vpop.f32.mrb[153].mxu1 }
 0xd69   : > { %v12357_v27 = vadd.f32 %v31849_v7, %v12356_v58 }
 0xd6a   : > { %v31890_v20 = vadd.f32 %v12362_v42, %v31762_v53 }
 0xd6b   : > { %v31893_v40 = vadd.f32 %v12357_v27, %v31759_v26 }
 0xd6c   : > { %v12442_v4 = vsel %vm487_vm0, %v31890_v20, 0.0 }
 0xd6d   : > { %12443 = vadd.xlane.f32.xlu1 %v12442_v4  ;;  %v12439_v43 = vsel %vm487_vm0, %v31893_v40, 0.0 }
 0xd6e   : > { %12440 = vadd.xlane.f32.xlu0 %v12439_v43 }
 0xd73   : > { %v27211_v21 = vpop.f32.mrb[154].mxu1 }
 0xd74   : > { %v12372_v5 = vadd.f32 %v27211_v21, %v31849_v7  ;;  %v12366_v17 = vpop.f32.mrb[155].mxu1 }
 0xd75   : > { %v12367_v25 = vadd.f32 %v31849_v7, %v12366_v17 }
 0xd76   : > { %v31902_v53 = vadd.f32 %v12372_v5, %v31776_v51 }
 0xd77   : > { %v31905_v26 = vadd.f32 %v12367_v25, %v31773_v47 }
 0xd78   : > { %v12448_v32 = vsel %vm487_vm0, %v31902_v53, 0.0 }
 0xd79   : > { %12449 = vadd.xlane.f32.xlu1 %v12448_v32  ;;  %v12445_v38 = vsel %vm487_vm0, %v31905_v26, 0.0 }
 0xd7a   : > { %12446 = vadd.xlane.f32.xlu0 %v12445_v38 }
 0xd7f   : > { %v27214_v18 = vpop.f32.mrb[156].mxu1 }
 0xd80   : > { %v12382_v34 = vadd.f32 %v27214_v18, %v31849_v7  ;;  %v12376_v22 = vpop.f32.mrb[157].mxu1 }
 0xd81   : > { %v12377_v61 = vadd.f32 %v31849_v7, %v12376_v22 }
 0xd82   : > { %v31914_v51 = vadd.f32 %v12382_v34, %v31791_v35 }
 0xd83   : > { %v31917_v47 = vadd.f32 %v12377_v61, %v31788_v1 }
 0xd84   : > { %v12454_v14 = vsel %vm487_vm0, %v31914_v51, 0.0 }
 0xd85   : > { %12455 = vadd.xlane.f32.xlu1 %v12454_v14  ;;  %v12451_v57 = vsel %vm487_vm0, %v31917_v47, 0.0 }
 0xd86   : > { %12452 = vadd.xlane.f32.xlu0 %v12451_v57 }
 0xd8b   : > { %v27217_v23 = vpop.f32.mrb[158].mxu1 }
 0xd8c   : > { %v12392_v10 = vadd.f32 %v27217_v23, %v31849_v7  ;;  %v12386_v55 = vpop.f32.mrb[159].mxu1 }
 0xd8d   : > { %v12387_v39 = vadd.f32 %v31849_v7, %v12386_v55 }
 0xd8e   : > { %v31926_v35 = vadd.f32 %v12392_v10, %v31805_v8 }
 0xd8f   : > { %v31929_v1 = vadd.f32 %v12387_v39, %v31802_v44 }
 0xd90   : > { %v12460_v12 = vsel %vm487_vm0, %v31926_v35, 0.0 }
 0xd91   : > { %12461 = vadd.xlane.f32.xlu1 %v12460_v12  ;;  %v12457_v41 = vsel %vm487_vm0, %v31929_v1, 0.0 }
 0xd92   : > { %12458 = vadd.xlane.f32.xlu0 %v12457_v41 }
 0xd97   : > { %v27220_v24 = vpop.f32.mrb[160].mxu1 }
 0xd98   : > { %v12402_v2 = vadd.f32 %v27220_v24, %v31849_v7  ;;  %v12396_v11 = vpop.f32.mrb[161].mxu1 }
 0xd99   : > { %v12397_v29 = vadd.f32 %v31849_v7, %v12396_v11 }
 0xd9a   : > { %v31938_v8 = vadd.f32 %v12402_v2, %v31819_v13 }
 0xd9b   : > { %v31941_v44 = vadd.f32 %v12397_v29, %v31816_v16 }
 0xd9c   : > { %v12466_v6 = vsel %vm487_vm0, %v31938_v8, 0.0 }
 0xd9d   : > { %12467 = vadd.xlane.f32.xlu1 %v12466_v6  ;;  %v12463_v48 = vsel %vm487_vm0, %v31941_v44, 0.0 }
 0xd9e   : > { %12464 = vadd.xlane.f32.xlu0 %v12463_v48 }
 0xdad   : > { %v12426_v60 = vpop.xlane.xlu1 %12425 }
 0xdae   : > { %v12470_v46 = vmul.f32 0.03125, %v12426_v60  ;;  %v12423_v63 = vpop.xlane.xlu0 %12422 }
 0xdaf   : > { %v12469_v62 = vmul.f32 0.03125, %v12423_v63 }
 0xdb0   : > { %v31948_v7 = vsub.f32 %v31854_v37, %v12470_v46  ;;  %v12672_v37 = vld [vmem:[#allocation2 + $0xb0] sm:$0xff] }
 0xdb1   : > { %v31951_v13 = vsub.f32 %v31857_v31, %v12469_v62  ;;  %v28052_v31 = vpack.c.bf16 %v12673_v0, %v12672_v37 }
 0xdb2   : > { %v12502_v16 = vmul.f32 %v31948_v7, %v31948_v7 }
 0xdb3   : > { %v12501_v9 = vmul.f32 %v31951_v13, %v31951_v13  ;;  %28053 = vmatprep.subr.bf16.mxu0 %v28052_v31 }
 0xdb4   : > { %v12520_v19 = vsel %vm487_vm0, %v12502_v16, 0.0  ;;  %28055 = vmatpush3.bf16.msra.mxu0 %v28052_v31 }
 0xdb5   : > { %12521 = vadd.xlane.f32.xlu1 %v12520_v19  ;;  %v12517_v30 = vsel %vm487_vm0, %v12501_v9, 0.0  ;;  %27258 = vmatprep.subr.mxu0 %v35375_v15 }
 0xdb6   : > { %12518 = vadd.xlane.f32.xlu0 %v12517_v30 }
 0xde2   : > { %v12432_v3 = vpop.xlane.xlu1 %12431 }
 0xde3   : > { %v12472_v52 = vmul.f32 0.03125, %v12432_v3  ;;  %v12429_v59 = vpop.xlane.xlu0 %12428 }
 0xde4   : > { %v12471_v33 = vmul.f32 0.03125, %v12429_v59 }
 0xde5   : > { %v31961_v42 = vsub.f32 %v31866_v49, %v12472_v52 }
 0xde6   : > { %v31964_v58 = vsub.f32 %v31869_v45, %v12471_v33 }
 0xde7   : > { %v12504_v27 = vmul.f32 %v31961_v42, %v31961_v42 }
 0xde8   : > { %v12503_v4 = vmul.f32 %v31964_v58, %v31964_v58 }
 0xde9   : > { %v12526_v43 = vsel %vm487_vm0, %v12504_v27, 0.0 }
 0xdea   : > { %12527 = vadd.xlane.f32.xlu1 %v12526_v43  ;;  %v12523_v21 = vsel %vm487_vm0, %v12503_v4, 0.0 }
 0xdeb   : > { %12524 = vadd.xlane.f32.xlu0 %v12523_v21 }
 0xdee   : > { %v12438_v5 = vpop.xlane.xlu1 %12437 }
 0xdef   : > { %v12474_v17 = vmul.f32 0.03125, %v12438_v5  ;;  %v12435_v25 = vpop.xlane.xlu0 %12434 }
 0xdf0   : > { %v12473_v49 = vmul.f32 0.03125, %v12435_v25 }
 0xdf1   : > { %v31973_v32 = vsub.f32 %v31878_v28, %v12474_v17 }
 0xdf2   : > { %v31976_v45 = vsub.f32 %v31881_v54, %v12473_v49 }
 0xdf3   : > { %v12506_v38 = vmul.f32 %v31973_v32, %v31973_v32 }
 0xdf4   : > { %v12505_v18 = vmul.f32 %v31976_v45, %v31976_v45 }
 0xdf5   : > { %v12532_v34 = vsel %vm487_vm0, %v12506_v38, 0.0 }
 0xdf6   : > { %12533 = vadd.xlane.f32.xlu1 %v12532_v34  ;;  %v12529_v22 = vsel %vm487_vm0, %v12505_v18, 0.0 }
 0xdf7   : > { %12530 = vadd.xlane.f32.xlu0 %v12529_v22 }
 0xdfa   : > { %v12444_v61 = vpop.xlane.xlu1 %12443 }
 0xdfb   : > { %v12476_v14 = vmul.f32 0.03125, %v12444_v61  ;;  %v12441_v57 = vpop.xlane.xlu0 %12440  ;;  %v32047_v61 = vld [vmem:[%s35139_s2 + $0x6] ss:$0 sm:$0xff] }
 0xdfc   : > { %v12475_v28 = vmul.f32 0.03125, %v12441_v57 }
 0xdfd   : > { %v31985_v23 = vsub.f32 %v31890_v20, %v12476_v14 }
 0xdfe   : > { %v31988_v54 = vsub.f32 %v31893_v40, %v12475_v28 }
 0xdff   : > { %v12508_v10 = vmul.f32 %v31985_v23, %v31985_v23 }
 0xe00   : > { %v12507_v55 = vmul.f32 %v31988_v54, %v31988_v54 }
 0xe01   : > { %v12538_v39 = vsel %vm487_vm0, %v12508_v10, 0.0 }
 0xe02   : > { %12539 = vadd.xlane.f32.xlu1 %v12538_v39  ;;  %v12535_v12 = vsel %vm487_vm0, %v12507_v55, 0.0  ;;  %v32055_v55 = vld [vmem:[%s35139_s2 + $0x7] ss:$0 sm:$0xff] }
 0xe03   : > { %12536 = vadd.xlane.f32.xlu0 %v12535_v12 }
 0xe06   : > { %v12450_v41 = vpop.xlane.xlu1 %12449 }
 0xe07   : > { %v12478_v24 = vmul.f32 0.03125, %v12450_v41  ;;  %v12447_v2 = vpop.xlane.xlu0 %12446 }
 0xe08   : > { %v12477_v20 = vmul.f32 0.03125, %v12447_v2 }
 0xe09   : > { %v31997_v11 = vsub.f32 %v31902_v53, %v12478_v24 }
 0xe0a   : > { %v32000_v40 = vsub.f32 %v31905_v26, %v12477_v20 }
 0xe0b   : > { %v12510_v29 = vmul.f32 %v31997_v11, %v31997_v11 }
 0xe0c   : > { %v12509_v6 = vmul.f32 %v32000_v40, %v32000_v40 }
 0xe0d   : > { %v12544_v48 = vsel %vm487_vm0, %v12510_v29, 0.0 }
 0xe0e   : > { %12545 = vadd.xlane.f32.xlu1 %v12544_v48  ;;  %v12541_v60 = vsel %vm487_vm0, %v12509_v6, 0.0 }
 0xe0f   : > { %12542 = vadd.xlane.f32.xlu0 %v12541_v60 }
 0xe12   : > { %v12456_v46 = vpop.xlane.xlu1 %12455 }
 0xe13   : > { %v12480_v63 = vmul.f32 0.03125, %v12456_v46  ;;  %v12453_v62 = vpop.xlane.xlu0 %12452 }
 0xe14   : > { %v12479_v53 = vmul.f32 0.03125, %v12453_v62 }
 0xe15   : > { %v32009_v16 = vsub.f32 %v31914_v51, %v12480_v63 }
 0xe16   : > { %v32012_v26 = vsub.f32 %v31917_v47, %v12479_v53 }
 0xe17   : > { %v12512_v9 = vmul.f32 %v32009_v16, %v32009_v16 }
 0xe18   : > { %v12511_v19 = vmul.f32 %v32012_v26, %v32012_v26 }
 0xe19   : > { %v12550_v30 = vsel %vm487_vm0, %v12512_v9, 0.0 }
 0xe1a   : > { %12551 = vadd.xlane.f32.xlu1 %v12550_v30  ;;  %v12547_v56 = vsel %vm487_vm0, %v12511_v19, 0.0 }
 0xe1b   : > { %12548 = vadd.xlane.f32.xlu0 %v12547_v56 }
 0xe1e   : > { %v12462_v36 = vpop.xlane.xlu1 %12461 }
 0xe1f   : > { %v12482_v50 = vmul.f32 0.03125, %v12462_v36  ;;  %v12459_v37 = vpop.xlane.xlu0 %12458 }
 0xe20   : > { %v12481_v51 = vmul.f32 0.03125, %v12459_v37 }
 0xe21   : > { %v32021_v0 = vsub.f32 %v31926_v35, %v12482_v50 }
 0xe22   : > { %v32024_v47 = vsub.f32 %v31929_v1, %v12481_v51 }
 0xe23   : > { %v12514_v31 = vmul.f32 %v32021_v0, %v32021_v0 }
 0xe24   : > { %v12513_v3 = vmul.f32 %v32024_v47, %v32024_v47 }
 0xe25   : > { %v12556_v52 = vsel %vm487_vm0, %v12514_v31, 0.0 }
 0xe26   : > { %12557 = vadd.xlane.f32.xlu1 %v12556_v52  ;;  %v12553_v59 = vsel %vm487_vm0, %v12513_v3, 0.0 }
 0xe27   : > { %12554 = vadd.xlane.f32.xlu0 %v12553_v59 }
 0xe2a   : > { %v12468_v33 = vpop.xlane.xlu1 %12467 }
 0xe2b   : > { %v12484_v27 = vmul.f32 0.03125, %v12468_v33  ;;  %v12465_v4 = vpop.xlane.xlu0 %12464 }
 0xe2c   : > { %v12483_v35 = vmul.f32 0.03125, %v12465_v4 }
 0xe2d   : > { %v32033_v43 = vsub.f32 %v31938_v8, %v12484_v27 }
 0xe2e   : > { %v32036_v1 = vsub.f32 %v31941_v44, %v12483_v35 }
 0xe2f   : > { %v12516_v21 = vmul.f32 %v32033_v43, %v32033_v43 }
 0xe30   : > { %v12515_v5 = vmul.f32 %v32036_v1, %v32036_v1 }
 0xe31   : > { %v12562_v17 = vsel %vm487_vm0, %v12516_v21, 0.0 }
 0xe32   : > { %12563 = vadd.xlane.f32.xlu1 %v12562_v17  ;;  %v12559_v25 = vsel %vm487_vm0, %v12515_v5, 0.0 }
 0xe33   : > { %12560 = vadd.xlane.f32.xlu0 %v12559_v25 }
 0xe42   : > { %v12522_v49 = vpop.xlane.xlu1 %12521 }
 0xe43   : > { %v12566_v38 = vmul.f32 0.03125, %v12522_v49  ;;  %v12519_v18 = vpop.xlane.xlu0 %12518 }
 0xe44   : > { %v12565_v8 = vmul.f32 0.03125, %v12519_v18 }
 0xe45   : > { %v12582_v34 = vadd.f32 1e-05, %v12566_v38 }
 0xe46   : > { %v12581_v22 = vadd.f32 1e-05, %v12565_v8 }
 0xe47   : > { %28438 = vrsqrt.f32 %v12582_v34 }
 0xe48   : > { %28440 = vrsqrt.f32 %v12581_v22 }
 0xe51   : > { %v28439_v44 = vpop.eup %28438 }
 0xe52   : > { %v28441_v14 = vpop.eup %28440  ;;  %v12614_v57 = vmul.f32 %v28439_v44, %v31948_v7 }
 0xe53   : > { %v12613_v28 = vmul.f32 %v28441_v14, %v31951_v13 }
 0xe54   : > { %v12634_v10 = vmul.f32 %v32047_v61, %v12614_v57 }
 0xe55   : > { %v12633_v39 = vmul.f32 %v32047_v61, %v12613_v28 }
 0xe56   : > { %v32062_v41 = vadd.f32 %v32055_v55, %v12634_v10 }
 0xe57   : > { %v32059_v12 = vadd.f32 %v32055_v55, %v12633_v39 }
 0xe58   : > { %35569 = vst [vmem:[#allocation41_spill] sm:$0xff] %v32062_v41 }
 0xe59   : > { %35568 = vst [vmem:[#allocation74_spill] sm:$0xff] %v32059_v12  ;;  %27229 = vmatprep.mubr.msk.f32.mxu0 %vm487_vm0, %v32059_v12 }
 0xe5a   : > { %27230 = vmatmul.mubr.msk.f32.vlgmr.msra.gmra.mrb[158].mxu0 %vm487_vm0, %v32062_v41 }
 0xe77   : > { %v12528_v7 = vpop.xlane.xlu1 %12527 }
 0xe78   : > { %v12568_v13 = vmul.f32 0.03125, %v12528_v7  ;;  %v12525_v24 = vpop.xlane.xlu0 %12524 }
 0xe79   : > { %v12567_v2 = vmul.f32 0.03125, %v12525_v24 }
 0xe7a   : > { %v12584_v20 = vadd.f32 1e-05, %v12568_v13 }
 0xe7b   : > { %v12583_v29 = vadd.f32 1e-05, %v12567_v2 }
 0xe7c   : > { %28442 = vrsqrt.f32 %v12584_v20 }
 0xe7d   : > { %28444 = vrsqrt.f32 %v12583_v29 }
 0xe83   : > { %v12534_v6 = vpop.xlane.xlu1 %12533 }
 0xe84   : > { %v12570_v48 = vmul.f32 0.03125, %v12534_v6  ;;  %v12531_v60 = vpop.xlane.xlu0 %12530 }
 0xe85   : > { %v12569_v46 = vmul.f32 0.03125, %v12531_v60 }
 0xe86   : > { %v28443_v63 = vpop.eup %28442  ;;  %v12586_v62 = vadd.f32 1e-05, %v12570_v48 }
 0xe87   : > { %v28445_v53 = vpop.eup %28444  ;;  %v12585_v9 = vadd.f32 1e-05, %v12569_v46  ;;  %v12616_v19 = vmul.f32 %v28443_v63, %v31961_v42 }
 0xe88   : > { %28446 = vrsqrt.f32 %v12586_v62  ;;  %v12615_v30 = vmul.f32 %v28445_v53, %v31964_v58 }
 0xe89   : > { %28448 = vrsqrt.f32 %v12585_v9  ;;  %v12636_v56 = vmul.f32 %v32047_v61, %v12616_v19 }
 0xe8a   : > { %v12635_v36 = vmul.f32 %v32047_v61, %v12615_v30 }
 0xe8b   : > { %v32076_v37 = vadd.f32 %v32055_v55, %v12636_v56 }
 0xe8c   : > { %v32073_v50 = vadd.f32 %v32055_v55, %v12635_v36 }
 0xe8d   : > { %35571 = vst [vmem:[#allocation82_spill] sm:$0xff] %v32076_v37 }
 0xe8e   : > { %35570 = vst [vmem:[#allocation81_spill] sm:$0xff] %v32073_v50  ;;  %27232 = vmatprep.mubr.msk.f32.mxu0 %vm487_vm0, %v32073_v50 }
 0xe8f   : > { %v12540_v51 = vpop.xlane.xlu1 %12539  ;;  %27233 = vmatmul.mubr.msk.f32.gmra.mrb[160].mxu0 %vm487_vm0, %v32076_v37 }
 0xe90   : > { %v12572_v42 = vmul.f32 0.03125, %v12540_v51  ;;  %v12537_v58 = vpop.xlane.xlu0 %12536 }
 0xe91   : > { %v12571_v31 = vmul.f32 0.03125, %v12537_v58 }
 0xe92   : > { %v28447_v3 = vpop.eup %28446  ;;  %v12588_v52 = vadd.f32 1e-05, %v12572_v42 }
 0xe93   : > { %v28449_v59 = vpop.eup %28448  ;;  %v12587_v33 = vadd.f32 1e-05, %v12571_v31  ;;  %v12618_v27 = vmul.f32 %v28447_v3, %v31973_v32 }
 0xe94   : > { %28450 = vrsqrt.f32 %v12588_v52  ;;  %v12617_v4 = vmul.f32 %v28449_v59, %v31976_v45 }
 0xe95   : > { %28452 = vrsqrt.f32 %v12587_v33  ;;  %v12638_v35 = vmul.f32 %v32047_v61, %v12618_v27 }
 0xe96   : > { %v12637_v21 = vmul.f32 %v32047_v61, %v12617_v4 }
 0xe97   : > { %v32090_v17 = vadd.f32 %v32055_v55, %v12638_v35 }
 0xe98   : > { %v32087_v5 = vadd.f32 %v32055_v55, %v12637_v21 }
 0xe99   : > { %35573 = vst [vmem:[#allocation50_spill] sm:$0xff] %v32090_v17 }
 0xe9a   : > { %35572 = vst [vmem:[#allocation51_spill] sm:$0xff] %v32087_v5  ;;  %27235 = vmatprep.mubr.msk.f32.mxu0 %vm487_vm0, %v32087_v5 }
 0xe9b   : > { %v12546_v25 = vpop.xlane.xlu1 %12545  ;;  %27236 = vmatmul.mubr.msk.f32.gmra.mrb[162].mxu0 %vm487_vm0, %v32090_v17 }
 0xe9c   : > { %v12574_v32 = vmul.f32 0.03125, %v12546_v25  ;;  %v12543_v45 = vpop.xlane.xlu0 %12542 }
 0xe9d   : > { %v12573_v49 = vmul.f32 0.03125, %v12543_v45 }
 0xe9e   : > { %v28451_v38 = vpop.eup %28450  ;;  %v12590_v18 = vadd.f32 1e-05, %v12574_v32 }
 0xe9f   : > { %v28453_v8 = vpop.eup %28452  ;;  %v12589_v34 = vadd.f32 1e-05, %v12573_v49  ;;  %v12620_v22 = vmul.f32 %v28451_v38, %v31985_v23 }
 0xea0   : > { %28454 = vrsqrt.f32 %v12590_v18  ;;  %v12619_v44 = vmul.f32 %v28453_v8, %v31988_v54 }
 0xea1   : > { %28456 = vrsqrt.f32 %v12589_v34  ;;  %v12640_v14 = vmul.f32 %v32047_v61, %v12620_v22 }
 0xea2   : > { %v12639_v57 = vmul.f32 %v32047_v61, %v12619_v44 }
 0xea3   : > { %v32104_v10 = vadd.f32 %v32055_v55, %v12640_v14 }
 0xea4   : > { %v32101_v28 = vadd.f32 %v32055_v55, %v12639_v57 }
 0xea5   : > { %35575 = vst [vmem:[#allocation62_spill] sm:$0xff] %v32104_v10 }
 0xea6   : > { %35574 = vst [vmem:[#allocation86_spill] sm:$0xff] %v32101_v28  ;;  %27238 = vmatprep.mubr.msk.f32.mxu0 %vm487_vm0, %v32101_v28 }
 0xea7   : > { %v12552_v39 = vpop.xlane.xlu1 %12551  ;;  %27239 = vmatmul.mubr.msk.f32.gmra.mrb[164].mxu0 %vm487_vm0, %v32104_v10 }
 0xea8   : > { %v12576_v23 = vmul.f32 0.03125, %v12552_v39  ;;  %v12549_v54 = vpop.xlane.xlu0 %12548 }
 0xea9   : > { %v12575_v7 = vmul.f32 0.03125, %v12549_v54 }
 0xeaa   : > { %v28455_v13 = vpop.eup %28454  ;;  %v12592_v24 = vadd.f32 1e-05, %v12576_v23 }
 0xeab   : > { %v28457_v2 = vpop.eup %28456  ;;  %v12591_v20 = vadd.f32 1e-05, %v12575_v7  ;;  %v12622_v29 = vmul.f32 %v28455_v13, %v31997_v11 }
 0xeac   : > { %28458 = vrsqrt.f32 %v12592_v24  ;;  %v12621_v6 = vmul.f32 %v28457_v2, %v32000_v40 }
 0xead   : > { %28460 = vrsqrt.f32 %v12591_v20  ;;  %v12642_v48 = vmul.f32 %v32047_v61, %v12622_v29 }
 0xeae   : > { %v12641_v60 = vmul.f32 %v32047_v61, %v12621_v6 }
 0xeaf   : > { %v32118_v63 = vadd.f32 %v32055_v55, %v12642_v48 }
 0xeb0   : > { %v32115_v46 = vadd.f32 %v32055_v55, %v12641_v60 }
 0xeb1   : > { %35577 = vst [vmem:[#allocation85_spill] sm:$0xff] %v32118_v63 }
 0xeb2   : > { %35576 = vst [vmem:[#allocation57_spill] sm:$0xff] %v32115_v46  ;;  %27241 = vmatprep.mubr.msk.f32.mxu0 %vm487_vm0, %v32115_v46 }
 0xeb3   : > { %v12558_v62 = vpop.xlane.xlu1 %12557  ;;  %27242 = vmatmul.mubr.msk.f32.gmra.mrb[166].mxu0 %vm487_vm0, %v32118_v63 }
 0xeb4   : > { %v12578_v11 = vmul.f32 0.03125, %v12558_v62  ;;  %v12555_v40 = vpop.xlane.xlu0 %12554 }
 0xeb5   : > { %v12577_v53 = vmul.f32 0.03125, %v12555_v40 }
 0xeb6   : > { %v28459_v9 = vpop.eup %28458  ;;  %v12594_v19 = vadd.f32 1e-05, %v12578_v11 }
 0xeb7   : > { %v28461_v30 = vpop.eup %28460  ;;  %v12593_v56 = vadd.f32 1e-05, %v12577_v53  ;;  %v12624_v36 = vmul.f32 %v28459_v9, %v32009_v16 }
 0xeb8   : > { %28462 = vrsqrt.f32 %v12594_v19  ;;  %v12623_v51 = vmul.f32 %v28461_v30, %v32012_v26 }
 0xeb9   : > { %28464 = vrsqrt.f32 %v12593_v56  ;;  %v12644_v42 = vmul.f32 %v32047_v61, %v12624_v36 }
 0xeba   : > { %v12643_v58 = vmul.f32 %v32047_v61, %v12623_v51 }
 0xebb   : > { %v32132_v3 = vadd.f32 %v32055_v55, %v12644_v42 }
 0xebc   : > { %v32129_v31 = vadd.f32 %v32055_v55, %v12643_v58 }
 0xebd   : > { %35579 = vst [vmem:[#allocation67_spill] sm:$0xff] %v32132_v3 }
 0xebe   : > { %35578 = vst [vmem:[#allocation26_spill] sm:$0xff] %v32129_v31  ;;  %27244 = vmatprep.mubr.msk.f32.mxu0 %vm487_vm0, %v32129_v31 }
 0xebf   : > { %v12564_v52 = vpop.xlane.xlu1 %12563  ;;  %27245 = vmatmul.mubr.msk.f32.gmra.mrb[168].mxu0 %vm487_vm0, %v32132_v3 }
 0xec0   : > { %v12580_v16 = vmul.f32 0.03125, %v12564_v52  ;;  %v12561_v26 = vpop.xlane.xlu0 %12560 }
 0xec1   : > { %v12579_v59 = vmul.f32 0.03125, %v12561_v26 }
 0xec2   : > { %v28463_v33 = vpop.eup %28462  ;;  %v12596_v27 = vadd.f32 1e-05, %v12580_v16 }
 0xec3   : > { %v28465_v4 = vpop.eup %28464  ;;  %v12595_v35 = vadd.f32 1e-05, %v12579_v59  ;;  %v12626_v21 = vmul.f32 %v28463_v33, %v32021_v0 }
 0xec4   : > { %28466 = vrsqrt.f32 %v12596_v27  ;;  %v12625_v25 = vmul.f32 %v28465_v4, %v32024_v47 }
 0xec5   : > { %28468 = vrsqrt.f32 %v12595_v35  ;;  %v12646_v32 = vmul.f32 %v32047_v61, %v12626_v21 }
 0xec6   : > { %v12645_v45 = vmul.f32 %v32047_v61, %v12625_v25 }
 0xec7   : > { %v32146_v38 = vadd.f32 %v32055_v55, %v12646_v32 }
 0xec8   : > { %v32143_v49 = vadd.f32 %v32055_v55, %v12645_v45 }
 0xec9   : > { %35581 = vst [vmem:[#allocation21_spill] sm:$0xff] %v32146_v38 }
 0xeca   : > { %35580 = vst [vmem:[#allocation66_spill] sm:$0xff] %v32143_v49  ;;  %27247 = vmatprep.mubr.msk.f32.mxu0 %vm487_vm0, %v32143_v49 }
 0xecb   : > { %27248 = vmatmul.mubr.msk.f32.gmra.mrb[170].mxu0 %vm487_vm0, %v32146_v38 }
 0xece   : > { %v28467_v0 = vpop.eup %28466 }
 0xecf   : > { %v28469_v18 = vpop.eup %28468  ;;  %v12628_v47 = vmul.f32 %v28467_v0, %v32033_v43  ;;  %v32171_v43 = vld [vmem:[%s35139_s2 + $0x8] ss:$0 sm:$0xff] }
 0xed0   : > { %v12627_v8 = vmul.f32 %v28469_v18, %v32036_v1 }
 0xed1   : > { %v12648_v34 = vmul.f32 %v32047_v61, %v12628_v47 }
 0xed2   : > { %v12647_v22 = vmul.f32 %v32047_v61, %v12627_v8 }
 0xed3   : > { %v32160_v14 = vadd.f32 %v32055_v55, %v12648_v34 }
 0xed4   : > { %v32157_v44 = vadd.f32 %v32055_v55, %v12647_v22 }
 0xed5   : > { %35583 = vst [vmem:[#allocation78_spill] sm:$0xff] %v32160_v14 }
 0xed6   : > { %35582 = vst [vmem:[#allocation83_spill] sm:$0xff] %v32157_v44  ;;  %27250 = vmatprep.mubr.msk.f32.mxu0 %vm487_vm0, %v32157_v44 }
 0xed7   : > { %27251 = vmatmul.mubr.msk.f32.gmra.mrb[172].mxu0 %vm487_vm0, %v32160_v14 }
 0xed8   : > { %27260 = vmatprep.mubr.msk.f32.mxu0 %vm28836_vm1, %v35375_v15 }
 0xf2d   : > { %v27231_v1 = vpop.f32.mrb[158].mxu0 }
 0xf2e   : > { %v32174_v61 = vadd.f32 %v27231_v1, %v32171_v43  ;;  %v12817_v55 = vpop.f32.mrb[159].mxu0 }
 0xf2f   : > { %v32185_v57 = vadd.f32 %v32171_v43, %v12817_v55 }
 0xf30   : > { %13084 = vrot.lane.b32.xlu0 %v32174_v61, %s28839_s24  ;;  %12914 = vrot.lane.b32.xlu1 %v32174_v61, %s28838_s23 }
 0xf34   : > { %12946 = vrot.lane.b32.xlu0 %v32174_v61, %s28840_s25  ;;  %18716 = vrot.lane.b32.xlu1 %v32174_v61, %s28837_s22 }
 0xf38   : > { %12978 = vrot.lane.b32.xlu0 %v32174_v61, %s28841_s26  ;;  %13008 = vrot.lane.b32.xlu1 %v32185_v57, %s28839_s24 }
 0xf3c   : > { %12944 = vrot.lane.b32.xlu1 %v32185_v57, %s28840_s25  ;;  %12912 = vrot.lane.b32.xlu0 %v32185_v57, %s28838_s23 }
 0xf40   : > { %12976 = vrot.lane.b32.xlu1 %v32185_v57, %s28841_s26  ;;  %18640 = vrot.lane.b32.xlu0 %v32185_v57, %s28837_s22 }
 0xf62   : > { %v27234_v39 = vpop.f32.mrb[160].mxu0 }
 0xf63   : > { %v32200_v23 = vadd.f32 %v27234_v39, %v32171_v43  ;;  %v12827_v54 = vpop.f32.mrb[161].mxu0 }
 0xf64   : > { %v32207_v7 = vadd.f32 %v32171_v43, %v12827_v54 }
 0xf65   : > { %18868 = vrot.lane.b32.xlu1 %v32200_v23, %s28837_s22  ;;  %12918 = vrot.lane.b32.xlu0 %v32200_v23, %s28838_s23 }
 0xf69   : > { %13236 = vrot.lane.b32.xlu0 %v32200_v23, %s28839_s24  ;;  %12916 = vrot.lane.b32.xlu1 %v32207_v7, %s28838_s23 }
 0xf6d   : > { %12950 = vrot.lane.b32.xlu0 %v32200_v23, %s28840_s25  ;;  %13160 = vrot.lane.b32.xlu1 %v32207_v7, %s28839_s24 }
 0xf6e   : > { %v27237_v13 = vpop.f32.mrb[162].mxu0 }
 0xf6f   : > { %v12837_v24 = vpop.f32.mrb[163].mxu0  ;;  %v32226_v2 = vadd.f32 %v27237_v13, %v32171_v43 }
 0xf70   : > { %v32233_v29 = vadd.f32 %v32171_v43, %v12837_v24 }
 0xf71   : > { %12982 = vrot.lane.b32.xlu0 %v32200_v23, %s28841_s26  ;;  %12948 = vrot.lane.b32.xlu1 %v32207_v7, %s28840_s25 }
 0xf75   : > { %18792 = vrot.lane.b32.xlu0 %v32207_v7, %s28837_s22  ;;  %12980 = vrot.lane.b32.xlu1 %v32207_v7, %s28841_s26 }
 0xf79   : > { %19020 = vrot.lane.b32.xlu1 %v32226_v2, %s28837_s22  ;;  %12922 = vrot.lane.b32.xlu0 %v32226_v2, %s28838_s23 }
 0xf7a   : > { %v27240_v20 = vpop.f32.mrb[164].mxu0 }
 0xf7b   : > { %v12847_v6 = vpop.f32.mrb[165].mxu0  ;;  %v32252_v62 = vadd.f32 %v27240_v20, %v32171_v43 }
 0xf7c   : > { %v32259_v11 = vadd.f32 %v32171_v43, %v12847_v6 }
 0xf7d   : > { %13388 = vrot.lane.b32.xlu0 %v32226_v2, %s28839_s24  ;;  %12920 = vrot.lane.b32.xlu1 %v32233_v29, %s28838_s23 }
 0xf81   : > { %12954 = vrot.lane.b32.xlu0 %v32226_v2, %s28840_s25  ;;  %13312 = vrot.lane.b32.xlu1 %v32233_v29, %s28839_s24 }
 0xf85   : > { %12986 = vrot.lane.b32.xlu0 %v32226_v2, %s28841_s26  ;;  %12952 = vrot.lane.b32.xlu1 %v32233_v29, %s28840_s25 }
 0xf86   : > { %v27243_v48 = vpop.f32.mrb[166].mxu0 }
 0xf87   : > { %v12857_v60 = vpop.f32.mrb[167].mxu0  ;;  %v32278_v19 = vadd.f32 %v27243_v48, %v32171_v43 }
 0xf88   : > { %v32287_v51 = vadd.f32 %v32171_v43, %v12857_v60 }
 0xf89   : > { %18944 = vrot.lane.b32.xlu0 %v32233_v29, %s28837_s22  ;;  %12984 = vrot.lane.b32.xlu1 %v32233_v29, %s28841_s26 }
 0xf8d   : > { %19172 = vrot.lane.b32.xlu1 %v32252_v62, %s28837_s22  ;;  %12926 = vrot.lane.b32.xlu0 %v32252_v62, %s28838_s23 }
 0xf91   : > { %13540 = vrot.lane.b32.xlu0 %v32252_v62, %s28839_s24  ;;  %12924 = vrot.lane.b32.xlu1 %v32259_v11, %s28838_s23 }
 0xf92   : > { %v27246_v40 = vpop.f32.mrb[168].mxu0 }
 0xf93   : > { %v12867_v53 = vpop.f32.mrb[169].mxu0  ;;  %v32320_v26 = vadd.f32 %v27246_v40, %v32171_v43 }
 0xf94   : > { %v32327_v59 = vadd.f32 %v32171_v43, %v12867_v53 }
 0xf95   : > { %12958 = vrot.lane.b32.xlu0 %v32252_v62, %s28840_s25  ;;  %13464 = vrot.lane.b32.xlu1 %v32259_v11, %s28839_s24 }
 0xf99   : > { %12990 = vrot.lane.b32.xlu0 %v32252_v62, %s28841_s26  ;;  %12956 = vrot.lane.b32.xlu1 %v32259_v11, %s28840_s25 }
 0xf9d   : > { %19096 = vrot.lane.b32.xlu0 %v32259_v11, %s28837_s22  ;;  %12988 = vrot.lane.b32.xlu1 %v32259_v11, %s28841_s26 }
 0xf9e   : > { %v27249_v9 = vpop.f32.mrb[170].mxu0 }
 0xf9f   : > { %v12877_v30 = vpop.f32.mrb[171].mxu0  ;;  %v32348_v27 = vadd.f32 %v27249_v9, %v32171_v43 }
 0xfa0   : > { %v32357_v35 = vadd.f32 %v32171_v43, %v12877_v30 }
 0xfa1   : > { %19324 = vrot.lane.b32.xlu1 %v32278_v19, %s28837_s22  ;;  %12930 = vrot.lane.b32.xlu0 %v32278_v19, %s28838_s23 }
 0xfa2   : > { %v32284_v56 = vpop.permute.xlu1 %12914  ;;  %v13085_v36 = vpop.permute.xlu0 %13084 }
 0xfa3   : > { %27259 = vmatpush3.xpose.msk.msra.mxu0 %vm795_vm2, %v13085_v36 }
 0xfa4   : > { %27268 = vmatprep.subr.mxu0 %v35375_v15 }
 0xfa5   : > { %13692 = vrot.lane.b32.xlu0 %v32278_v19, %s28839_s24  ;;  %12928 = vrot.lane.b32.xlu1 %v32287_v51, %s28838_s23 }
 0xfa6   : > { %v32295_v42 = vpop.permute.xlu1 %18716  ;;  %27261 = vmatmul.mubr.msk.f32.vlgmr.msra.gmra.mrb[174].mxu0 %vm795_vm2, %v32174_v61  ;;  %v32337_v33 = vpop.permute.xlu0 %12946 }
 0xfa7   : > { %35584 = vst [vmem:[#allocation73_spill] sm:$0xff] %v32295_v42  ;;  %27270 = vmatprep.mubr.msk.f32.mxu0 %vm28836_vm1, %v35375_v15 }
 0xfa9   : > { %12962 = vrot.lane.b32.xlu0 %v32278_v19, %s28840_s25  ;;  %13616 = vrot.lane.b32.xlu1 %v32287_v51, %s28839_s24 }
 0xfaa   : > { %v13009_v58 = vpop.permute.xlu1 %13008  ;;  %v27252_v52 = vpop.f32.mrb[172].mxu0 }
 0xfab   : > { %v12887_v16 = vpop.f32.mrb[173].mxu0  ;;  %27254 = vmatpush3.xpose.msk.msra.mxu1 %vm795_vm2, %v13009_v58  ;;  %v32350_v4 = vpop.permute.xlu0 %12978  ;;  %v32388_v47 = vadd.f32 %v27252_v52, %v32171_v43 }
 0xfac   : > { %27263 = vmatprep.subr.mxu1 %v35375_v15  ;;  %35585 = vst [vmem:[#allocation84_spill] sm:$0xff] %v32350_v4  ;;  %v32399_v22 = vadd.f32 %v32171_v43, %v12887_v16 }
 0xfad   : > { %12994 = vrot.lane.b32.xlu0 %v32278_v19, %s28841_s26  ;;  %12960 = vrot.lane.b32.xlu1 %v32287_v51, %s28840_s25 }
 0xfae   : > { %27256 = vmatmul.mubr.msk.f32.vlgmr.msra.gmra.mrb[162].mxu1 %vm795_vm2, %v32185_v57  ;;  %v32359_v21 = vpop.permute.xlu1 %12944 }
 0xfaf   : > { %27265 = vmatprep.mubr.msk.f32.mxu1 %vm28836_vm1, %v35375_v15  ;;  %v32361_v25 = vpop.permute.xlu0 %12912 }
 0xfb1   : > { %19248 = vrot.lane.b32.xlu0 %v32287_v51, %s28837_s22  ;;  %12992 = vrot.lane.b32.xlu1 %v32287_v51, %s28841_s26 }
 0xfb2   : > { %v32371_v32 = vpop.permute.xlu1 %12976 }
 0xfb3   : > { %35586 = vst [vmem:[#allocation87_spill] sm:$0xff] %v32371_v32  ;;  %v32373_v45 = vpop.permute.xlu0 %18640 }
 0xfb4   : > { %35587 = vst [vmem:[#allocation23_spill] sm:$0xff] %v32373_v45 }
 0xfb5   : > { %19476 = vrot.lane.b32.xlu1 %v32320_v26, %s28837_s22  ;;  %12934 = vrot.lane.b32.xlu0 %v32320_v26, %s28838_s23 }
 0xfb9   : > { %13844 = vrot.lane.b32.xlu0 %v32320_v26, %s28839_s24  ;;  %12932 = vrot.lane.b32.xlu1 %v32327_v59, %s28838_s23 }
 0xfbd   : > { %12966 = vrot.lane.b32.xlu0 %v32320_v26, %s28840_s25  ;;  %13768 = vrot.lane.b32.xlu1 %v32327_v59, %s28839_s24 }
 0xfc1   : > { %12998 = vrot.lane.b32.xlu0 %v32320_v26, %s28841_s26  ;;  %12964 = vrot.lane.b32.xlu1 %v32327_v59, %s28840_s25 }
 0xfc5   : > { %19400 = vrot.lane.b32.xlu0 %v32327_v59, %s28837_s22  ;;  %12996 = vrot.lane.b32.xlu1 %v32327_v59, %s28841_s26 }
 0xfc9   : > { %19628 = vrot.lane.b32.xlu1 %v32348_v27, %s28837_s22  ;;  %12938 = vrot.lane.b32.xlu0 %v32348_v27, %s28838_s23 }
 0xfcd   : > { %13996 = vrot.lane.b32.xlu0 %v32348_v27, %s28839_s24  ;;  %12936 = vrot.lane.b32.xlu1 %v32357_v35, %s28838_s23 }
 0xfd1   : > { %12970 = vrot.lane.b32.xlu0 %v32348_v27, %s28840_s25  ;;  %13920 = vrot.lane.b32.xlu1 %v32357_v35, %s28839_s24 }
 0xfd5   : > { %13002 = vrot.lane.b32.xlu0 %v32348_v27, %s28841_s26  ;;  %12968 = vrot.lane.b32.xlu1 %v32357_v35, %s28840_s25 }
 0xfd7   : > { %v32379_v0 = vpop.permute.xlu1 %18868  ;;  %v32381_v18 = vpop.permute.xlu0 %12918 }
 0xfd8   : > { %35588 = vst [vmem:[#allocation22_spill] sm:$0xff] %v32379_v0 }
 0xfd9   : > { %19552 = vrot.lane.b32.xlu0 %v32357_v35, %s28837_s22  ;;  %13000 = vrot.lane.b32.xlu1 %v32357_v35, %s28841_s26 }
 0xfdb   : > { %v32390_v8 = vpop.permute.xlu1 %12916  ;;  %v13237_v34 = vpop.permute.xlu0 %13236 }
 0xfdc   : > { %27269 = vmatpush3.xpose.msk.msra.mxu0 %vm795_vm2, %v13237_v34 }
 0xfdd   : > { %19780 = vrot.lane.b32.xlu1 %v32388_v47, %s28837_s22  ;;  %12942 = vrot.lane.b32.xlu0 %v32388_v47, %s28838_s23 }
 0xfde   : > { %27278 = vmatprep.subr.mxu0 %v35375_v15 }
 0xfdf   : > { %v13161_v1 = vpop.permute.xlu1 %13160  ;;  %27271 = vmatmul.mubr.msk.f32.vlgmr.msra.gmra.mrb[176].mxu0 %vm795_vm2, %v32200_v23  ;;  %v32403_v61 = vpop.permute.xlu0 %12950 }
 0xfe0   : > { %27264 = vmatpush3.xpose.msk.msra.mxu1 %vm795_vm2, %v13161_v1  ;;  %27280 = vmatprep.mubr.msk.f32.mxu0 %vm28836_vm1, %v35375_v15 }
 0xfe1   : > { %14148 = vrot.lane.b32.xlu0 %v32388_v47, %s28839_s24  ;;  %12940 = vrot.lane.b32.xlu1 %v32399_v22, %s28838_s23 }
 0xfe2   : > { %27273 = vmatprep.subr.mxu1 %v35375_v15 }
 0xfe3   : > { %27266 = vmatmul.mubr.msk.f32.vlgmr.msra.gmra.mrb[164].mxu1 %vm795_vm2, %v32207_v7  ;;  %v32415_v43 = vpop.permute.xlu1 %12948  ;;  %v32417_v55 = vpop.permute.xlu0 %12982 }
 0xfe4   : > { %35589 = vst [vmem:[#allocation88_spill] sm:$0xff] %v32417_v55  ;;  %27275 = vmatprep.mubr.msk.f32.mxu1 %vm28836_vm1, %v35375_v15 }
 0xfe5   : > { %12974 = vrot.lane.b32.xlu0 %v32388_v47, %s28840_s25  ;;  %14072 = vrot.lane.b32.xlu1 %v32399_v22, %s28839_s24 }
 0xfe7   : > { %v32425_v57 = vpop.permute.xlu1 %12980  ;;  %v32427_v39 = vpop.permute.xlu0 %18792 }
 0xfe8   : > { %35590 = vst [vmem:[#allocation89_spill] sm:$0xff] %v32425_v57  ;;  %35591 = vst [vmem:[#allocation30_spill] sm:$0xff] %v32427_v39 }
 0xfe9   : > { %13006 = vrot.lane.b32.xlu0 %v32388_v47, %s28841_s26  ;;  %12972 = vrot.lane.b32.xlu1 %v32399_v22, %s28840_s25 }
 0xfeb   : > { %v32433_v23 = vpop.permute.xlu1 %19020  ;;  %v32435_v54 = vpop.permute.xlu0 %12922 }
 0xfec   : > { %35592 = vst [vmem:[#allocation27_spill] sm:$0xff] %v32433_v23 }
 0xfed   : > { %19704 = vrot.lane.b32.xlu0 %v32399_v22, %s28837_s22  ;;  %13004 = vrot.lane.b32.xlu1 %v32399_v22, %s28841_s26  ;;  %s214_s26 = scalar_lea.vmem %s35141_s4, %s25214_s21 }
 0xfef   : > { %v32441_v7 = vpop.permute.xlu1 %12920  ;;  %v13389_v13 = vpop.permute.xlu0 %13388 }
 0xff0   : > { %27279 = vmatpush3.xpose.msk.msra.mxu0 %vm795_vm2, %v13389_v13 }
 0xff1   : > { %14300 = vrot.lane.b32.xlu0 %v32284_v56, %s28839_s24  ;;  %19932 = vrot.lane.b32.xlu1 %v32284_v56, %s28837_s22 }
 0xff2   : > { %27288 = vmatprep.subr.mxu0 %v35375_v15 }
 0xff3   : > { %v13313_v24 = vpop.permute.xlu1 %13312  ;;  %27281 = vmatmul.mubr.msk.f32.vlgmr.msra.gmra.mrb[178].mxu0 %vm795_vm2, %v32226_v2  ;;  %v32451_v20 = vpop.permute.xlu0 %12954 }
 0xff4   : > { %27274 = vmatpush3.xpose.msk.msra.mxu1 %vm795_vm2, %v13313_v24  ;;  %27290 = vmatprep.mubr.msk.f32.mxu0 %vm28836_vm1, %v35375_v15 }
 0xff5   : > { %21148 = vrot.lane.b32.xlu1 %v32337_v33, %s28837_s22  ;;  %15516 = vrot.lane.b32.xlu0 %v32337_v33, %s28839_s24 }
 0xff6   : > { %27283 = vmatprep.subr.mxu1 %v35375_v15 }
 0xff7   : > { %27276 = vmatmul.mubr.msk.f32.vlgmr.msra.gmra.mrb[166].mxu1 %vm795_vm2, %v32233_v29  ;;  %v32463_v6 = vpop.permute.xlu1 %12952  ;;  %v32465_v2 = vpop.permute.xlu0 %12986 }
 0xff8   : > { %35593 = vst [vmem:[#allocation90_spill] sm:$0xff] %v32465_v2  ;;  %27285 = vmatprep.mubr.msk.f32.mxu1 %vm28836_vm1, %v35375_v15 }
 0xff9   : > { %16732 = vrot.lane.b32.xlu0 %v32350_v4, %s28839_s24  ;;  %14224 = vrot.lane.b32.xlu1 %v32361_v25, %s28839_s24 }
 0xffb   : > { %v32473_v48 = vpop.permute.xlu1 %12984  ;;  %v32475_v60 = vpop.permute.xlu0 %18944 }
 0xffc   : > { %35594 = vst [vmem:[#allocation91_spill] sm:$0xff] %v32473_v48  ;;  %35595 = vst [vmem:[#allocation37_spill] sm:$0xff] %v32475_v60 }
 0xffd   : > { %19856 = vrot.lane.b32.xlu0 %v32361_v25, %s28837_s22  ;;  %15440 = vrot.lane.b32.xlu1 %v32359_v21, %s28839_s24 }
 0xfff   : > { %v32481_v29 = vpop.permute.xlu1 %19172  ;;  %v32483_v40 = vpop.permute.xlu0 %12926 }
0x1000   : > { %35596 = vst [vmem:[#allocation36_spill] sm:$0xff] %v32481_v29 }
0x1001   : > { %21072 = vrot.lane.b32.xlu0 %v32359_v21, %s28837_s22  ;;  %16656 = vrot.lane.b32.xlu1 %v32371_v32, %s28839_s24 }
0x1003   : > { %v32489_v53 = vpop.permute.xlu1 %12924  ;;  %v13541_v9 = vpop.permute.xlu0 %13540 }
0x1004   : > { %27289 = vmatpush3.xpose.msk.msra.mxu0 %vm795_vm2, %v13541_v9 }
0x1005   : > { %20084 = vrot.lane.b32.xlu1 %v32381_v18, %s28837_s22  ;;  %14452 = vrot.lane.b32.xlu0 %v32381_v18, %s28839_s24 }
0x1006   : > { %27298 = vmatprep.subr.mxu0 %v35375_v15 }
0x1007   : > { %v13465_v30 = vpop.permute.xlu1 %13464  ;;  %27291 = vmatmul.mubr.msk.f32.vlgmr.msra.gmra.mrb[180].mxu0 %vm795_vm2, %v32252_v62  ;;  %v32499_v36 = vpop.permute.xlu0 %12958 }
0x1008   : > { %27284 = vmatpush3.xpose.msk.msra.mxu1 %vm795_vm2, %v13465_v30  ;;  %27300 = vmatprep.mubr.msk.f32.mxu0 %vm28836_vm1, %v35375_v15 }
0x1009   : > { %21300 = vrot.lane.b32.xlu1 %v32403_v61, %s28837_s22  ;;  %15668 = vrot.lane.b32.xlu0 %v32403_v61, %s28839_s24 }
0x100a   : > { %27293 = vmatprep.subr.mxu1 %v35375_v15 }
0x100b   : > { %27286 = vmatmul.mubr.msk.f32.vlgmr.msra.gmra.mrb[168].mxu1 %vm795_vm2, %v32259_v11  ;;  %v32511_v58 = vpop.permute.xlu1 %12956  ;;  %v32513_v62 = vpop.permute.xlu0 %12990 }
0x100c   : > { %35597 = vst [vmem:[#allocation92_spill] sm:$0xff] %v32513_v62  ;;  %27295 = vmatprep.mubr.msk.f32.mxu1 %vm28836_vm1, %v35375_v15 }
0x100d   : > { %14376 = vrot.lane.b32.xlu1 %v32390_v8, %s28839_s24  ;;  %16884 = vrot.lane.b32.xlu0 %v32417_v55, %s28839_s24 }
0x100f   : > { %v32521_v52 = vpop.permute.xlu1 %12988  ;;  %v32523_v16 = vpop.permute.xlu0 %19096 }
0x1010   : > { %35598 = vst [vmem:[#allocation107_spill] sm:$0xff] %v32521_v52  ;;  %35599 = vst [vmem:[#allocation93_spill] sm:$0xff] %v32523_v16 }
0x1011   : > { %15592 = vrot.lane.b32.xlu1 %v32415_v43, %s28839_s24  ;;  %20008 = vrot.lane.b32.xlu0 %v32390_v8, %s28837_s22 }
0x1013   : > { %v32529_v11 = vpop.permute.xlu1 %19324  ;;  %v32531_v34 = vpop.permute.xlu0 %12930 }
0x1014   : > { %35600 = vst [vmem:[#allocation106_spill] sm:$0xff] %v32529_v11 }
0x1015   : > { %16808 = vrot.lane.b32.xlu1 %v32425_v57, %s28839_s24  ;;  %21224 = vrot.lane.b32.xlu0 %v32415_v43, %s28837_s22 }
0x1017   : > { %v32537_v1 = vpop.permute.xlu1 %12928  ;;  %v13693_v13 = vpop.permute.xlu0 %13692 }
0x1018   : > { %27299 = vmatpush3.xpose.msk.msra.mxu0 %vm795_vm2, %v13693_v13 }
0x1019   : > { %20236 = vrot.lane.b32.xlu1 %v32435_v54, %s28837_s22  ;;  %14604 = vrot.lane.b32.xlu0 %v32435_v54, %s28839_s24 }
0x101a   : > { %27308 = vmatprep.subr.mxu0 %v35375_v15 }
0x101b   : > { %v13617_v24 = vpop.permute.xlu1 %13616  ;;  %27301 = vmatmul.mubr.msk.f32.vlgmr.msra.gmra.mrb[182].mxu0 %vm795_vm2, %v32278_v19  ;;  %v32547_v9 = vpop.permute.xlu0 %12962 }
0x101c   : > { %27294 = vmatpush3.xpose.msk.msra.mxu1 %vm795_vm2, %v13617_v24  ;;  %27310 = vmatprep.mubr.msk.f32.mxu0 %vm28836_vm1, %v35375_v15 }
0x101d   : > { %21452 = vrot.lane.b32.xlu1 %v32451_v20, %s28837_s22  ;;  %15820 = vrot.lane.b32.xlu0 %v32451_v20, %s28839_s24 }
0x101e   : > { %27303 = vmatprep.subr.mxu1 %v35375_v15 }
0x101f   : > { %27296 = vmatmul.mubr.msk.f32.vlgmr.msra.gmra.mrb[170].mxu1 %vm795_vm2, %v32287_v51  ;;  %v32559_v30 = vpop.permute.xlu1 %12960  ;;  %v32561_v19 = vpop.permute.xlu0 %12994 }
0x1020   : > { %35601 = vst [vmem:[#allocation45_spill] sm:$0xff] %v32561_v19  ;;  %27305 = vmatprep.mubr.msk.f32.mxu1 %vm28836_vm1, %v35375_v15 }
0x1021   : > { %14528 = vrot.lane.b32.xlu1 %v32441_v7, %s28839_s24  ;;  %17036 = vrot.lane.b32.xlu0 %v32465_v2, %s28839_s24 }
0x1023   : > { %v32569_v13 = vpop.permute.xlu1 %12992  ;;  %v32571_v24 = vpop.permute.xlu0 %19248 }
0x1024   : > { %35602 = vst [vmem:[#allocation43_spill] sm:$0xff] %v32569_v13  ;;  %35603 = vst [vmem:[#allocation94_spill] sm:$0xff] %v32571_v24 }
0x1025   : > { %15744 = vrot.lane.b32.xlu1 %v32463_v6, %s28839_s24  ;;  %20160 = vrot.lane.b32.xlu0 %v32441_v7, %s28837_s22 }
0x1027   : > { %v32577_v51 = vpop.permute.xlu1 %19476  ;;  %v32579_v44 = vpop.permute.xlu0 %12934 }
0x1028   : > { %35604 = vst [vmem:[#allocation95_spill] sm:$0xff] %v32577_v51 }
0x1029   : > { %16960 = vrot.lane.b32.xlu1 %v32473_v48, %s28839_s24  ;;  %21376 = vrot.lane.b32.xlu0 %v32463_v6, %s28837_s22 }
0x102b   : > { %v32585_v14 = vpop.permute.xlu1 %12932  ;;  %v13845_v49 = vpop.permute.xlu0 %13844 }
0x102c   : > { %27309 = vmatpush3.xpose.msk.msra.mxu0 %vm795_vm2, %v13845_v49 }
0x102d   : > { %20388 = vrot.lane.b32.xlu1 %v32483_v40, %s28837_s22  ;;  %14756 = vrot.lane.b32.xlu0 %v32483_v40, %s28839_s24 }
0x102e   : > { %27318 = vmatprep.subr.mxu0 %v35375_v15 }
0x102f   : > { %v13769_v38 = vpop.permute.xlu1 %13768  ;;  %27311 = vmatmul.mubr.msk.f32.vlgmr.msra.gmra.mrb[184].mxu0 %vm795_vm2, %v32320_v26  ;;  %v32595_v31 = vpop.permute.xlu0 %12966 }
0x1030   : > { %27304 = vmatpush3.xpose.msk.msra.mxu1 %vm795_vm2, %v13769_v38  ;;  %27320 = vmatprep.mubr.msk.f32.mxu0 %vm28836_vm1, %v35375_v15 }
0x1031   : > { %21604 = vrot.lane.b32.xlu1 %v32499_v36, %s28837_s22  ;;  %15972 = vrot.lane.b32.xlu0 %v32499_v36, %s28839_s24 }
0x1032   : > { %27313 = vmatprep.subr.mxu1 %v35375_v15 }
0x1033   : > { %27306 = vmatmul.mubr.msk.f32.vlgmr.msra.gmra.mrb[172].mxu1 %vm795_vm2, %v32327_v59  ;;  %v32607_v49 = vpop.permute.xlu1 %12964  ;;  %v32609_v26 = vpop.permute.xlu0 %12998 }
0x1034   : > { %35605 = vst [vmem:[#allocation53_spill] sm:$0xff] %v32609_v26  ;;  %27315 = vmatprep.mubr.msk.f32.mxu1 %vm28836_vm1, %v35375_v15 }
0x1035   : > { %14680 = vrot.lane.b32.xlu1 %v32489_v53, %s28839_s24  ;;  %17188 = vrot.lane.b32.xlu0 %v32513_v62, %s28839_s24 }
0x1037   : > { %v32617_v38 = vpop.permute.xlu1 %12996  ;;  %v32619_v3 = vpop.permute.xlu0 %19400 }
0x1038   : > { %35606 = vst [vmem:[#allocation52_spill] sm:$0xff] %v32617_v38  ;;  %35607 = vst [vmem:[#allocation96_spill] sm:$0xff] %v32619_v3 }
0x1039   : > { %15896 = vrot.lane.b32.xlu1 %v32511_v58, %s28839_s24  ;;  %20312 = vrot.lane.b32.xlu0 %v32489_v53, %s28837_s22 }
0x103b   : > { %v32625_v59 = vpop.permute.xlu1 %19628  ;;  %v32627_v46 = vpop.permute.xlu0 %12938 }
0x103c   : > { %35608 = vst [vmem:[#allocation97_spill] sm:$0xff] %v32625_v59 }
0x103d   : > { %17112 = vrot.lane.b32.xlu1 %v32521_v52, %s28839_s24  ;;  %21528 = vrot.lane.b32.xlu0 %v32511_v58, %s28837_s22 }
0x103f   : > { %v32633_v63 = vpop.permute.xlu1 %12936  ;;  %v13997_v28 = vpop.permute.xlu0 %13996 }
0x1040   : > { %27319 = vmatpush3.xpose.msk.msra.mxu0 %vm795_vm2, %v13997_v28 }
0x1041   : > { %20540 = vrot.lane.b32.xlu1 %v32531_v34, %s28837_s22  ;;  %14908 = vrot.lane.b32.xlu0 %v32531_v34, %s28839_s24 }
0x1042   : > { %27328 = vmatprep.subr.mxu0 %v35375_v15 }
0x1043   : > { %v13921_v10 = vpop.permute.xlu1 %13920  ;;  %27321 = vmatmul.mubr.msk.f32.vlgmr.msra.gmra.mrb[186].mxu0 %vm795_vm2, %v32348_v27  ;;  %v32643_v5 = vpop.permute.xlu0 %12970 }
0x1044   : > { %35609 = vst [vmem:[#allocation61_spill] sm:$0xff] %v32643_v5  ;;  %27314 = vmatpush3.xpose.msk.msra.mxu1 %vm795_vm2, %v13921_v10  ;;  %27330 = vmatprep.mubr.msk.f32.mxu0 %vm28836_vm1, %v35375_v15 }
0x1045   : > { %21756 = vrot.lane.b32.xlu1 %v32547_v9, %s28837_s22  ;;  %16124 = vrot.lane.b32.xlu0 %v32547_v9, %s28839_s24 }
0x1046   : > { %27323 = vmatprep.subr.mxu1 %v35375_v15 }
0x1047   : > { %27316 = vmatmul.mubr.msk.f32.vlgmr.msra.gmra.mrb[174].mxu1 %vm795_vm2, %v32357_v35  ;;  %v32655_v28 = vpop.permute.xlu1 %12968  ;;  %v32657_v27 = vpop.permute.xlu0 %13002 }
0x1048   : > { %35610 = vst [vmem:[#allocation59_spill] sm:$0xff] %v32655_v28  ;;  %35611 = vst [vmem:[#allocation98_spill] sm:$0xff] %v32657_v27  ;;  %27325 = vmatprep.mubr.msk.f32.mxu1 %vm28836_vm1, %v35375_v15 }
0x1049   : > { %14832 = vrot.lane.b32.xlu1 %v32537_v1, %s28839_s24  ;;  %17340 = vrot.lane.b32.xlu0 %v32561_v19, %s28839_s24 }
0x104b   : > { %v32665_v10 = vpop.permute.xlu1 %13000  ;;  %v32667_v17 = vpop.permute.xlu0 %19552 }
0x104c   : > { %35612 = vst [vmem:[#allocation100_spill] sm:$0xff] %v32665_v10  ;;  %35613 = vst [vmem:[#allocation69_spill] sm:$0xff] %v32667_v17 }
0x104d   : > { %16048 = vrot.lane.b32.xlu1 %v32559_v30, %s28839_s24  ;;  %20464 = vrot.lane.b32.xlu0 %v32537_v1, %s28837_s22 }
0x104f   : > { %v32673_v35 = vpop.permute.xlu1 %19780  ;;  %v32675_v50 = vpop.permute.xlu0 %12942 }
0x1050   : > { %35614 = vst [vmem:[#allocation68_spill] sm:$0xff] %v32673_v35 }
0x1051   : > { %17264 = vrot.lane.b32.xlu1 %v32569_v13, %s28839_s24  ;;  %21680 = vrot.lane.b32.xlu0 %v32559_v30, %s28837_s22 }
0x1053   : > { %v32681_v37 = vpop.permute.xlu1 %12940  ;;  %v14149_v12 = vpop.permute.xlu0 %14148 }
0x1054   : > { %27329 = vmatpush3.xpose.msk.msra.mxu0 %vm795_vm2, %v14149_v12 }
0x1055   : > { %20692 = vrot.lane.b32.xlu1 %v32579_v44, %s28837_s22  ;;  %15060 = vrot.lane.b32.xlu0 %v32579_v44, %s28839_s24 }
0x1056   : > { %27338 = vmatprep.subr.mxu0 %v35375_v15 }
0x1057   : > { %v14073_v41 = vpop.permute.xlu1 %14072  ;;  %27331 = vmatmul.mubr.msk.f32.vlgmr.msra.gmra.mrb[188].mxu0 %vm795_vm2, %v32388_v47  ;;  %v32691_v35 = vpop.permute.xlu0 %12974 }
0x1058   : > { %35615 = vst [vmem:[#allocation102_spill] sm:$0xff] %v32691_v35  ;;  %27324 = vmatpush3.xpose.msk.msra.mxu1 %vm795_vm2, %v14073_v41  ;;  %27340 = vmatprep.mubr.msk.f32.mxu0 %vm28836_vm1, %v35375_v15 }
0x1059   : > { %21908 = vrot.lane.b32.xlu1 %v32595_v31, %s28837_s22  ;;  %16276 = vrot.lane.b32.xlu0 %v32595_v31, %s28839_s24 }
0x105a   : > { %27333 = vmatprep.subr.mxu1 %v35375_v15 }
0x105b   : > { %27326 = vmatmul.mubr.msk.f32.vlgmr.msra.gmra.mrb[176].mxu1 %vm795_vm2, %v32399_v22  ;;  %v32703_v12 = vpop.permute.xlu1 %12972  ;;  %v32705_v47 = vpop.permute.xlu0 %13006 }
0x105c   : > { %35616 = vst [vmem:[#allocation32_spill] sm:$0xff] %v32703_v12  ;;  %35617 = vst [vmem:[#allocation99_spill] sm:$0xff] %v32705_v47  ;;  %27335 = vmatprep.mubr.msk.f32.mxu1 %vm28836_vm1, %v35375_v15 }
0x105d   : > { %14984 = vrot.lane.b32.xlu1 %v32585_v14, %s28839_s24  ;;  %17492 = vrot.lane.b32.xlu0 %v32609_v26, %s28839_s24 }
0x105f   : > { %v32713_v41 = vpop.permute.xlu1 %13004  ;;  %v32715_v17 = vpop.permute.xlu0 %19704 }
0x1060   : > { %35618 = vst [vmem:[#allocation77_spill] sm:$0xff] %v32713_v41  ;;  %35619 = vst [vmem:[#allocation75_spill] sm:$0xff] %v32715_v17 }
0x1061   : > { %16200 = vrot.lane.b32.xlu1 %v32607_v49, %s28839_s24  ;;  %20616 = vrot.lane.b32.xlu0 %v32585_v14, %s28837_s22 }
0x1063   : > { %v32721_v22 = vpop.permute.xlu1 %19932  ;;  %v14301_v59 = vpop.permute.xlu0 %14300 }
0x1064   : > { %35620 = vst [vmem:[#allocation104_spill] sm:$0xff] %v32721_v22  ;;  %27339 = vmatpush3.xpose.msk.msra.mxu0 %vm795_vm2, %v14301_v59 }
0x1065   : > { %17416 = vrot.lane.b32.xlu1 %v32617_v38, %s28839_s24  ;;  %21832 = vrot.lane.b32.xlu0 %v32607_v49, %s28837_s22 }
0x1066   : > { %27348 = vmatprep.subr.mxu0 %v35375_v15 }
0x1067   : > { %v32729_v17 = vpop.permute.xlu1 %21148  ;;  %27341 = vmatmul.mubr.msk.f32.vlgmr.msra.gmra.mrb[190].mxu0 %vm795_vm2, %v32284_v56  ;;  %v32733_v3 = vpop.permute.xlu0 %15516 }
0x1068   : > { %35621 = vst [vmem:[#allocation101_spill] sm:$0xff] %v32729_v17  ;;  %27350 = vmatprep.mubr.msk.f32.mxu0 %vm28836_vm1, %v35375_v15 }
0x1069   : > { %20844 = vrot.lane.b32.xlu1 %v32627_v46, %s28837_s22  ;;  %15212 = vrot.lane.b32.xlu0 %v32627_v46, %s28839_s24 }
0x106b   : > { %v14225_v59 = vpop.permute.xlu1 %14224  ;;  %v32741_v22 = vpop.permute.xlu0 %16732 }
0x106c   : > { %27334 = vmatpush3.xpose.msk.msra.mxu1 %vm795_vm2, %v14225_v59 }
0x106d   : > { %15136 = vrot.lane.b32.xlu1 %v32633_v63, %s28839_s24  ;;  %16428 = vrot.lane.b32.xlu0 %v32643_v5, %s28839_s24 }
0x106e   : > { %27343 = vmatprep.subr.mxu1 %v35375_v15 }
0x106f   : > { %27336 = vmatmul.mubr.msk.f32.vlgmr.msra.gmra.mrb[178].mxu1 %vm795_vm2, %v32361_v25  ;;  %v32751_v56 = vpop.permute.xlu1 %15440  ;;  %v32753_v17 = vpop.permute.xlu0 %19856 }
0x1070   : > { %35622 = vst [vmem:[#allocation25_spill] sm:$0xff] %v32753_v17  ;;  %27345 = vmatprep.mubr.msk.f32.mxu1 %vm28836_vm1, %v35375_v15 }
0x1071   : > { %16352 = vrot.lane.b32.xlu1 %v32655_v28, %s28839_s24  ;;  %17644 = vrot.lane.b32.xlu0 %v32657_v27, %s28839_s24 }
0x1073   : > { %v32761_v59 = vpop.permute.xlu1 %16656  ;;  %v32763_v51 = vpop.permute.xlu0 %21072 }
0x1074   : > { %35623 = vst [vmem:[#allocation24_spill] sm:$0xff] %v32763_v51 }
0x1075   : > { %17568 = vrot.lane.b32.xlu1 %v32665_v10, %s28839_s24  ;;  %20768 = vrot.lane.b32.xlu0 %v32633_v63, %s28837_s22 }
0x1077   : > { %v32769_v25 = vpop.permute.xlu1 %20084  ;;  %v14453_v17 = vpop.permute.xlu0 %14452 }
0x1078   : > { %35624 = vst [vmem:[#allocation105_spill] sm:$0xff] %v32769_v25  ;;  %27349 = vmatpush3.xpose.msk.msra.mxu0 %vm795_vm2, %v14453_v17 }
0x1079   : > { %v13156_v24 = vpop.f32.mrb[174].mxu0  ;;  %20996 = vrot.lane.b32.xlu1 %v32675_v50, %s28837_s22  ;;  %15364 = vrot.lane.b32.xlu0 %v32675_v50, %s28839_s24 }
0x107a   : > { %v27262_v11 = vpop.f32.mrb[175].mxu0  ;;  %27358 = vmatprep.subr.mxu0 %v35375_v15 }
0x107b   : > { %v32777_v51 = vpop.permute.xlu1 %21300  ;;  %27351 = vmatmul.mubr.msk.f32.vlgmr.msra.gmra.mrb[192].mxu0 %vm795_vm2, %v32381_v18  ;;  %v32781_v16 = vpop.permute.xlu0 %15668 }
0x107c   : > { %35625 = vst [vmem:[#allocation103_spill] sm:$0xff] %v32777_v51  ;;  %27360 = vmatprep.mubr.msk.f32.mxu0 %vm28836_vm1, %v35375_v15 }
0x107d   : > { %15288 = vrot.lane.b32.xlu1 %v32681_v37, %s28839_s24  ;;  %16580 = vrot.lane.b32.xlu0 %v32691_v35, %s28839_s24 }
0x107f   : > { %v14377_v17 = vpop.permute.xlu1 %14376  ;;  %v32789_v11 = vpop.permute.xlu0 %16884 }
0x1080   : > { %27344 = vmatpush3.xpose.msk.msra.mxu1 %vm795_vm2, %v14377_v17 }
0x1081   : > { %v13080_v51 = vpop.f32.mrb[162].mxu1  ;;  %16504 = vrot.lane.b32.xlu1 %v32703_v12, %s28839_s24  ;;  %17796 = vrot.lane.b32.xlu0 %v32705_v47, %s28839_s24 }
0x1082   : > { %v27257_v18 = vpop.f32.mrb[163].mxu1  ;;  %27353 = vmatprep.subr.mxu1 %v35375_v15 }
0x1083   : > { %27346 = vmatmul.mubr.msk.f32.vlgmr.msra.gmra.mrb[180].mxu1 %vm795_vm2, %v32390_v8  ;;  %v32799_v25 = vpop.permute.xlu1 %15592  ;;  %v32801_v29 = vpop.permute.xlu0 %20008 }
0x1084   : > { %35626 = vst [vmem:[#allocation31_spill] sm:$0xff] %v32801_v29  ;;  %27355 = vmatprep.mubr.msk.f32.mxu1 %vm28836_vm1, %v35375_v15 }
0x1085   : > { %17720 = vrot.lane.b32.xlu1 %v32713_v41, %s28839_s24  ;;  %20920 = vrot.lane.b32.xlu0 %v32681_v37, %s28837_s22 }
0x1087   : > { %v32809_v17 = vpop.permute.xlu1 %16808  ;;  %v32811_v18 = vpop.permute.xlu0 %21224 }
0x1088   : > { %35627 = vst [vmem:[#allocation38_spill] sm:$0xff] %v32811_v18 }
0x108b   : > { %v32813_v60 = vpop.permute.xlu1 %20236  ;;  %v14605_v8 = vpop.permute.xlu0 %14604 }
0x108c   : > { %35628 = vst [vmem:[#allocation29_spill] sm:$0xff] %v32813_v60  ;;  %27359 = vmatpush3.xpose.msk.msra.mxu0 %vm795_vm2, %v14605_v8  ;;  %v32841_v60 = vmul.f32 0.35355338, %v13156_v24 }
0x108d   : > { %27368 = vmatprep.subr.mxu0 %v35375_v15 }
0x108e   : > { %35632 = vst [vmem:[#allocation47_spill] sm:$0xff] %v32841_v60  ;;  %v17939_v41 = vsel %vm795_vm2, %v32841_v60, -inf }
0x108f   : > { %v32817_v29 = vpop.permute.xlu1 %21452  ;;  %27361 = vmatmul.mubr.msk.f32.vlgmr.msra.gmra.mrb[194].mxu0 %vm795_vm2, %v32435_v54  ;;  %v32821_v23 = vpop.permute.xlu0 %15820 }
0x1090   : > { %35629 = vst [vmem:[#allocation44_spill] sm:$0xff] %v32817_v29  ;;  %27370 = vmatprep.mubr.msk.f32.mxu0 %vm28836_vm1, %v35375_v15 }
0x1093   : > { %v14529_v39 = vpop.permute.xlu1 %14528  ;;  %v32825_v0 = vpop.permute.xlu0 %17036 }
0x1094   : > { %27354 = vmatpush3.xpose.msk.msra.mxu1 %vm795_vm2, %v14529_v39 }
0x1095   : > { %27363 = vmatprep.subr.mxu1 %v35375_v15 }
0x1097   : > { %27356 = vmatmul.mubr.msk.f32.vlgmr.msra.gmra.mrb[182].mxu1 %vm795_vm2, %v32441_v7  ;;  %v32831_v8 = vpop.permute.xlu1 %15744  ;;  %v32833_v29 = vpop.permute.xlu0 %20160 }
0x1098   : > { %35630 = vst [vmem:[#allocation39_spill] sm:$0xff] %v32833_v29  ;;  %27365 = vmatprep.mubr.msk.f32.mxu1 %vm28836_vm1, %v35375_v15 }
0x109b   : > { %v32837_v54 = vpop.permute.xlu1 %16960  ;;  %v32839_v18 = vpop.permute.xlu0 %21376 }
0x109c   : > { %35631 = vst [vmem:[#allocation54_spill] sm:$0xff] %v32839_v18  ;;  %v32855_v18 = vmul.f32 0.35355338, %v13080_v51 }
0x109e   : > { %35635 = vst [vmem:[#allocation70_spill] sm:$0xff] %v32855_v18 }
0x109f   : > { %v32843_v45 = vpop.permute.xlu1 %20388  ;;  %v14757_v39 = vpop.permute.xlu0 %14756 }
0x10a0   : > { %35633 = vst [vmem:[#allocation60_spill] sm:$0xff] %v32843_v45  ;;  %27369 = vmatpush3.xpose.msk.msra.mxu0 %vm795_vm2, %v14757_v39 }
0x10a1   : > { %27378 = vmatprep.subr.mxu0 %v35375_v15 }
0x10a3   : > { %v32847_v7 = vpop.permute.xlu1 %21604  ;;  %27371 = vmatmul.mubr.msk.f32.vlgmr.msra.gmra.mrb[196].mxu0 %vm795_vm2, %v32483_v40  ;;  %v32851_v29 = vpop.permute.xlu0 %15972 }
0x10a4   : > { %35634 = vst [vmem:[#allocation55_spill] sm:$0xff] %v32847_v7  ;;  %17940 = vmax.xlane.f32.xlu0 %v17939_v41  ;;  %27380 = vmatprep.mubr.msk.f32.mxu0 %vm28836_vm1, %v35375_v15  ;;  %v17936_v7 = vsel %vm795_vm2, %v32855_v18, -inf }
0x10a7   : > { %v14681_v24 = vpop.permute.xlu1 %14680  ;;  %v32859_v39 = vpop.permute.xlu0 %17188 }
0x10a8   : > { %27364 = vmatpush3.xpose.msk.msra.mxu1 %vm795_vm2, %v14681_v24 }
0x10a9   : > { %17937 = vmax.xlane.f32.xlu1 %v17936_v7  ;;  %27373 = vmatprep.subr.mxu1 %v35375_v15 }
0x10ab   : > { %27366 = vmatmul.mubr.msk.f32.vlgmr.msra.gmra.mrb[184].mxu1 %vm795_vm2, %v32489_v53  ;;  %v32867_v40 = vpop.permute.xlu1 %15896  ;;  %v32869_v51 = vpop.permute.xlu0 %20312 }
0x10ac   : > { %35636 = vst [vmem:[#allocation63_spill] sm:$0xff] %v32869_v51  ;;  %27375 = vmatprep.mubr.msk.f32.mxu1 %vm28836_vm1, %v35375_v15 }
0x10af   : > { %v32873_v41 = vpop.permute.xlu1 %17112  ;;  %v32875_v45 = vpop.permute.xlu0 %21528 }
0x10b0   : > { %35637 = vst [vmem:[#allocation76_spill] sm:$0xff] %v32875_v45 }
0x10b2   : > { %v13308_v24 = vpop.f32.mrb[176].mxu0 }
0x10b3   : > { %v32877_v60 = vmul.f32 0.35355338, %v13308_v24  ;;  %v27272_v7 = vpop.f32.mrb[177].mxu0  ;;  %v32879_v18 = vpop.permute.xlu1 %20540 }
0x10b4   : > { %35639 = vst [vmem:[#allocation79_spill] sm:$0xff] %v32879_v18  ;;  %v14909_v42 = vpop.permute.xlu0 %14908 }
0x10b5   : > { %35638 = vst [vmem:[#allocation71_spill] sm:$0xff] %v32877_v60  ;;  %27379 = vmatpush3.xpose.msk.msra.mxu0 %vm795_vm2, %v14909_v42  ;;  %v17945_v53 = vsel %vm795_vm2, %v32877_v60, -inf }
0x10b6   : > { %v13232_v51 = vpop.f32.mrb[164].mxu1  ;;  %17946 = vmax.xlane.f32.xlu1 %v17945_v53  ;;  %27388 = vmatprep.subr.mxu0 %v35375_v15 }
0x10b7   : > { %v32885_v47 = vmul.f32 0.35355338, %v13232_v51  ;;  %v27267_v10 = vpop.f32.mrb[165].mxu1  ;;  %v32887_v45 = vpop.permute.xlu1 %21756 }
0x10b8   : > { %35641 = vst [vmem:[#allocation35_spill] sm:$0xff] %v32887_v45  ;;  %27381 = vmatmul.mubr.msk.f32.vlgmr.msra.gmra.mrb[198].mxu0 %vm795_vm2, %v32531_v34  ;;  %v32891_v24 = vpop.permute.xlu0 %16124 }
0x10b9   : > { %35640 = vst [vmem:[#allocation80_spill] sm:$0xff] %v32885_v47  ;;  %v17942_v42 = vsel %vm795_vm2, %v32885_v47, -inf  ;;  %27390 = vmatprep.mubr.msk.f32.mxu0 %vm28836_vm1, %v35375_v15 }
0x10ba   : > { %17943 = vmax.xlane.f32.xlu0 %v17942_v42 }
0x10bb   : > { %v14833_v7 = vpop.permute.xlu1 %14832 }
0x10bc   : > { %v32897_v53 = vpop.permute.xlu0 %17340  ;;  %27374 = vmatpush3.xpose.msk.msra.mxu1 %vm795_vm2, %v14833_v7 }
0x10bd   : > { %27383 = vmatprep.subr.mxu1 %v35375_v15 }
0x10bf   : > { %27376 = vmatmul.mubr.msk.f32.vlgmr.msra.gmra.mrb[186].mxu1 %vm795_vm2, %v32537_v1  ;;  %v32903_v34 = vpop.permute.xlu1 %16048 }
0x10c0   : > { %v32905_v10 = vpop.permute.xlu0 %20464  ;;  %27385 = vmatprep.mubr.msk.f32.mxu1 %vm28836_vm1, %v35375_v15 }
0x10c1   : > { %35642 = vst [vmem:[#allocation28_spill] sm:$0xff] %v32905_v10 }
0x10c3   : > { %v32909_v51 = vpop.permute.xlu1 %17264 }
0x10c4   : > { %v32911_v42 = vpop.permute.xlu0 %21680 }
0x10c5   : > { %35643 = vst [vmem:[#allocation34_spill] sm:$0xff] %v32911_v42 }
0x10c6   : > { %v13460_v45 = vpop.f32.mrb[178].mxu0 }
0x10c7   : > { %v32913_v18 = vmul.f32 0.35355338, %v13460_v45  ;;  %v27282_v7 = vpop.f32.mrb[179].mxu0  ;;  %v32915_v47 = vpop.permute.xlu1 %20692 }
0x10c8   : > { %35645 = vst [vmem:[#allocation33_spill] sm:$0xff] %v32915_v47  ;;  %v15061_v60 = vpop.permute.xlu0 %15060 }
0x10c9   : > { %35644 = vst [vmem:[#allocation40_spill] sm:$0xff] %v32913_v18  ;;  %27389 = vmatpush3.xpose.msk.msra.mxu0 %vm795_vm2, %v15061_v60  ;;  %v17951_v1 = vsel %vm795_vm2, %v32913_v18, -inf }
0x10ca   : > { %v13384_v10 = vpop.f32.mrb[166].mxu1  ;;  %17952 = vmax.xlane.f32.xlu1 %v17951_v1  ;;  %27398 = vmatprep.subr.mxu0 %v35375_v15 }
0x10cb   : > { %v32921_v27 = vmul.f32 0.35355338, %v13384_v10  ;;  %v27277_v38 = vpop.f32.mrb[167].mxu1  ;;  %v32923_v42 = vpop.permute.xlu1 %21908 }
0x10cc   : > { %35647 = vst [vmem:[#allocation42_spill] sm:$0xff] %v32923_v42  ;;  %27391 = vmatmul.mubr.msk.f32.vlgmr.msra.gmra.mrb[200].mxu0 %vm795_vm2, %v32579_v44  ;;  %v32927_v45 = vpop.permute.xlu0 %16276 }
0x10cd   : > { %35646 = vst [vmem:[#allocation48_spill] sm:$0xff] %v32921_v27  ;;  %v17948_v60 = vsel %vm795_vm2, %v32921_v27, -inf  ;;  %27400 = vmatprep.mubr.msk.f32.mxu0 %vm28836_vm1, %v35375_v15 }
0x10ce   : > { %17949 = vmax.xlane.f32.xlu0 %v17948_v60 }
0x10cf   : > { %v14985_v7 = vpop.permute.xlu1 %14984 }
0x10d0   : > { %v32933_v1 = vpop.permute.xlu0 %17492  ;;  %27384 = vmatpush3.xpose.msk.msra.mxu1 %vm795_vm2, %v14985_v7 }
0x10d1   : > { %27393 = vmatprep.subr.mxu1 %v35375_v15 }
0x10d3   : > { %27386 = vmatmul.mubr.msk.f32.vlgmr.msra.gmra.mrb[188].mxu1 %vm795_vm2, %v32585_v14  ;;  %v32939_v44 = vpop.permute.xlu1 %16200 }
0x10d4   : > { %v32941_v38 = vpop.permute.xlu0 %20616  ;;  %27395 = vmatprep.mubr.msk.f32.mxu1 %vm28836_vm1, %v35375_v15 }
0x10d5   : > { %35648 = vst [vmem:[#allocation56_spill] sm:$0xff] %v32941_v38 }
0x10d7   : > { %v32945_v10 = vpop.permute.xlu1 %17416 }
0x10d8   : > { %35649 = vst [vmem:[#allocation49_spill] sm:$0xff] %v32945_v10  ;;  %v32947_v60 = vpop.permute.xlu0 %21832 }
0x10d9   : > { %35650 = vst [vmem:[#allocation64_spill] sm:$0xff] %v32947_v60 }
0x10da   : > { %v13612_v42 = vpop.f32.mrb[180].mxu0 }
0x10db   : > { %v32949_v47 = vmul.f32 0.35355338, %v13612_v42  ;;  %v27292_v7 = vpop.f32.mrb[181].mxu0  ;;  %v32951_v27 = vpop.permute.xlu1 %20844 }
0x10dc   : > { %35651 = vst [vmem:[#allocation58_spill] sm:$0xff] %v32951_v27  ;;  %v15213_v18 = vpop.permute.xlu0 %15212 }
0x10dd   : > { %27399 = vmatpush3.xpose.msk.msra.mxu0 %vm795_vm2, %v15213_v18  ;;  %v17957_v14 = vsel %vm795_vm2, %v32949_v47, -inf }
0x10de   : > { %v13536_v38 = vpop.f32.mrb[168].mxu1  ;;  %17958 = vmax.xlane.f32.xlu1 %v17957_v14  ;;  %27408 = vmatprep.subr.mxu0 %v35375_v15 }
0x10df   : > { %v32957_v26 = vmul.f32 0.35355338, %v13536_v38  ;;  %v27287_v10 = vpop.f32.mrb[169].mxu1  ;;  %v15137_v60 = vpop.permute.xlu1 %15136 }
0x10e0   : > { %27401 = vmatmul.mubr.msk.f32.vlgmr.msra.gmra.mrb[202].mxu0 %vm795_vm2, %v32627_v46  ;;  %v32961_v42 = vpop.permute.xlu0 %16428  ;;  %27394 = vmatpush3.xpose.msk.msra.mxu1 %vm795_vm2, %v15137_v60 }
0x10e1   : > { %35652 = vst [vmem:[#allocation72_spill] sm:$0xff] %v32957_v26  ;;  %v17954_v18 = vsel %vm795_vm2, %v32957_v26, -inf  ;;  %27410 = vmatprep.mubr.msk.f32.mxu0 %vm28836_vm1, %v35375_v15  ;;  %27403 = vmatprep.subr.mxu1 %v35375_v15 }
0x10e2   : > { %17955 = vmax.xlane.f32.xlu0 %v17954_v18 }
0x10e3   : > { %27396 = vmatmul.mubr.msk.f32.vlgmr.msra.gmra.mrb[190].mxu1 %vm795_vm2, %v32633_v63  ;;  %v32971_v38 = vpop.permute.xlu1 %16352 }
0x10e4   : > { %v32973_v10 = vpop.permute.xlu0 %17644  ;;  %27405 = vmatprep.mubr.msk.f32.mxu1 %vm28836_vm1, %v35375_v15 }
0x10e7   : > { %v32977_v46 = vpop.permute.xlu1 %17568 }
0x10e8   : > { %v32979_v60 = vpop.permute.xlu0 %20768 }
0x10e9   : > { %35653 = vst [vmem:[#allocation46_spill] sm:$0xff] %v32979_v60 }
0x10eb   : > { %v32981_v7 = vpop.permute.xlu1 %20996 }
0x10ec   : > { %35654 = vst [vmem:[#allocation65_spill] sm:$0xff] %v32981_v7  ;;  %v15365_v14 = vpop.permute.xlu0 %15364 }
0x10ed   : > { %27409 = vmatpush3.xpose.msk.msra.mxu0 %vm795_vm2, %v15365_v14 }
0x10ee   : > { %v13764_v18 = vpop.f32.mrb[182].mxu0  ;;  %27418 = vmatprep.subr.mxu0 %v35375_v15 }
0x10ef   : > { %v32985_v63 = vmul.f32 0.35355338, %v13764_v18  ;;  %v27302_v27 = vpop.f32.mrb[183].mxu0  ;;  %v15289_v26 = vpop.permute.xlu1 %15288 }
0x10f0   : > { %27411 = vmatmul.mubr.msk.f32.vlgmr.msra.gmra.mrb[204].mxu0 %vm795_vm2, %v32675_v50  ;;  %27404 = vmatpush3.xpose.msk.msra.mxu1 %vm795_vm2, %v15289_v26  ;;  %v35655_v26 = vld [vmem:[#allocation53_spill] sm:$0xff] }
0x10f1   : > { %27419 = vmatpush3.xpose.msk.msra.mxu0 %vm795_vm2, %v32733_v3  ;;  %v17963_v7 = vsel %vm795_vm2, %v32985_v63, -inf  ;;  %27420 = vmatprep.mubr.msk.f32.mxu0 %vm28836_vm1, %v35375_v15 }
0x10f2   : > { %v13688_v14 = vpop.f32.mrb[170].mxu1  ;;  %17964 = vmax.xlane.f32.xlu1 %v17963_v7  ;;  %27413 = vmatprep.subr.mxu1 %v35375_v15 }
0x10f3   : > { %v32997_v27 = vmul.f32 0.35355338, %v13688_v14  ;;  %v27297_v18 = vpop.f32.mrb[171].mxu1  ;;  %27406 = vmatmul.mubr.msk.f32.vlgmr.msra.gmra.mrb[192].mxu1 %vm795_vm2, %v32681_v37  ;;  %27428 = vmatprep.subr.mxu0 %v35375_v15 }
0x10f4   : > { %27421 = vmatmul.mubr.msk.f32.vlgmr.msra.gmra.mrb[206].mxu0 %vm795_vm2, %v32337_v33  ;;  %27414 = vmatpush3.xpose.msk.msra.mxu1 %vm795_vm2, %v32751_v56  ;;  %v35656_v56 = vld [vmem:[#allocation49_spill] sm:$0xff] }
0x10f5   : > { %27429 = vmatpush3.xpose.msk.msra.mxu0 %vm795_vm2, %v32781_v16  ;;  %27415 = vmatprep.mubr.msk.f32.mxu1 %vm28836_vm1, %v35375_v15  ;;  %v17960_v50 = vsel %vm795_vm2, %v32997_v27, -inf }
0x10f6   : > { %17961 = vmax.xlane.f32.xlu0 %v17960_v50  ;;  %27430 = vmatprep.mubr.msk.f32.mxu0 %vm28836_vm1, %v35375_v15 }
0x10f7   : > { %27416 = vmatmul.mubr.msk.f32.vlgmr.msra.gmra.mrb[194].mxu1 %vm795_vm2, %v32359_v21  ;;  %27423 = vmatprep.subr.mxu1 %v35375_v15 }
0x10f8   : > { %27431 = vmatmul.mubr.msk.f32.vlgmr.msra.gmra.mrb[208].mxu0 %vm795_vm2, %v32403_v61  ;;  %27438 = vmatprep.subr.mxu0 %v35375_v15 }
0x10f9   : > { %27424 = vmatpush3.xpose.msk.msra.mxu1 %vm795_vm2, %v32799_v25  ;;  %27439 = vmatpush3.xpose.msk.msra.mxu0 %vm795_vm2, %v32821_v23 }
0x10fa   : > { %27425 = vmatprep.mubr.msk.f32.mxu1 %vm28836_vm1, %v35375_v15  ;;  %27440 = vmatprep.mubr.msk.f32.mxu0 %vm28836_vm1, %v35375_v15 }
0x10fb   : > { %27433 = vmatprep.subr.mxu1 %v35375_v15  ;;  %27448 = vmatprep.subr.mxu0 %v35375_v15 }
0x10fc   : > { %27426 = vmatmul.mubr.msk.f32.vlgmr.msra.gmra.mrb[196].mxu1 %vm795_vm2, %v32415_v43  ;;  %27441 = vmatmul.mubr.msk.f32.vlgmr.msra.gmra.mrb[210].mxu0 %vm795_vm2, %v32451_v20 }
0x10fd   : > { %27434 = vmatpush3.xpose.msk.msra.mxu1 %vm795_vm2, %v32831_v8  ;;  %27449 = vmatpush3.xpose.msk.msra.mxu0 %vm795_vm2, %v32851_v29  ;;  %v35657_v8 = vld [vmem:[#allocation52_spill] sm:$0xff] }
0x10fe   : > { %27435 = vmatprep.mubr.msk.f32.mxu1 %vm28836_vm1, %v35375_v15  ;;  %27450 = vmatprep.mubr.msk.f32.mxu0 %vm28836_vm1, %v35375_v15 }
0x10ff   : > { %27443 = vmatprep.subr.mxu1 %v35375_v15  ;;  %27458 = vmatprep.subr.mxu0 %v35375_v15 }
0x1100   : > { %27436 = vmatmul.mubr.msk.f32.vlgmr.msra.gmra.mrb[198].mxu1 %vm795_vm2, %v32463_v6  ;;  %27451 = vmatmul.mubr.msk.f32.vlgmr.msra.gmra.mrb[212].mxu0 %vm795_vm2, %v32499_v36  ;;  %v16505_v6 = vpop.permute.xlu1 %16504 }
0x1101   : > { %27444 = vmatpush3.xpose.msk.msra.mxu1 %vm795_vm2, %v32867_v40  ;;  %27459 = vmatpush3.xpose.msk.msra.mxu0 %vm795_vm2, %v32891_v24 }
0x1102   : > { %v13916_v37 = vpop.f32.mrb[184].mxu0  ;;  %27445 = vmatprep.mubr.msk.f32.mxu1 %vm28836_vm1, %v35375_v15  ;;  %27460 = vmatprep.mubr.msk.f32.mxu0 %vm28836_vm1, %v35375_v15 }
0x1103   : > { %v33056_v3 = vmul.f32 0.35355338, %v13916_v37  ;;  %v27312_v33 = vpop.f32.mrb[185].mxu0  ;;  %27453 = vmatprep.subr.mxu1 %v35375_v15  ;;  %27468 = vmatprep.subr.mxu0 %v35375_v15 }
0x1104   : > { %27446 = vmatmul.mubr.msk.f32.vlgmr.msra.gmra.mrb[200].mxu1 %vm795_vm2, %v32511_v58  ;;  %27461 = vmatmul.mubr.msk.f32.vlgmr.msra.gmra.mrb[214].mxu0 %vm795_vm2, %v32547_v9  ;;  %v17721_v24 = vpop.permute.xlu1 %17720 }
0x1105   : > { %27454 = vmatpush3.xpose.msk.msra.mxu1 %vm795_vm2, %v32903_v34  ;;  %27469 = vmatpush3.xpose.msk.msra.mxu0 %vm795_vm2, %v32927_v45  ;;  %v17969_v21 = vsel %vm795_vm2, %v33056_v3, -inf  ;;  %v35660_v34 = vld [vmem:[#allocation99_spill] sm:$0xff]  ;;  %v35661_v45 = vld [vmem:[#allocation73_spill] sm:$0xff] }
0x1106   : > { %v13840_v61 = vpop.f32.mrb[172].mxu1  ;;  %17970 = vmax.xlane.f32.xlu1 %v17969_v21  ;;  %27455 = vmatprep.mubr.msk.f32.mxu1 %vm28836_vm1, %v35375_v15 }
0x1107   : > { %v33072_v43 = vmul.f32 0.35355338, %v13840_v61  ;;  %27470 = vmatprep.mubr.msk.f32.mxu0 %vm28836_vm1, %v35375_v15  ;;  %v27307_v23 = vpop.f32.mrb[173].mxu1  ;;  %27463 = vmatprep.subr.mxu1 %v35375_v15 }
0x1108   : > { %27456 = vmatmul.mubr.msk.f32.vlgmr.msra.gmra.mrb[202].mxu1 %vm795_vm2, %v32559_v30  ;;  %27471 = vmatmul.mubr.msk.f32.vlgmr.msra.gmra.mrb[216].mxu0 %vm795_vm2, %v32595_v31  ;;  %v16581_v31 = vpop.permute.xlu0 %16580 }
0x1109   : > { %27478 = vmatprep.subr.mxu0 %v35375_v15  ;;  %27464 = vmatpush3.xpose.msk.msra.mxu1 %vm795_vm2, %v32939_v44  ;;  %v17966_v20 = vsel %vm795_vm2, %v33072_v43, -inf  ;;  %v35663_v44 = vld [vmem:[#allocation23_spill] sm:$0xff] }
0x110a   : > { %27479 = vmatpush3.xpose.msk.msra.mxu0 %vm795_vm2, %v32961_v42  ;;  %27465 = vmatprep.mubr.msk.f32.mxu1 %vm28836_vm1, %v35375_v15 }
0x110b   : > { %17967 = vmax.xlane.f32.xlu0 %v17966_v20  ;;  %27480 = vmatprep.mubr.msk.f32.mxu0 %vm28836_vm1, %v35375_v15 }
0x110c   : > { %27466 = vmatmul.mubr.msk.f32.vlgmr.msra.gmra.mrb[204].mxu1 %vm795_vm2, %v32607_v49  ;;  %27473 = vmatprep.subr.mxu1 %v35375_v15 }
0x110d   : > { %27481 = vmatmul.mubr.msk.f32.vlgmr.msra.gmra.mrb[218].mxu0 %vm795_vm2, %v32643_v5  ;;  %27488 = vmatprep.subr.mxu0 %v35375_v15 }
0x110e   : > { %27474 = vmatpush3.xpose.msk.msra.mxu1 %vm795_vm2, %v32971_v38  ;;  %27489 = vmatpush3.xpose.msk.msra.mxu0 %vm795_vm2, %v16581_v31 }
0x110f   : > { %27475 = vmatprep.mubr.msk.f32.mxu1 %vm28836_vm1, %v35375_v15  ;;  %27490 = vmatprep.mubr.msk.f32.mxu0 %vm28836_vm1, %v35375_v15 }
0x1110   : > { %27483 = vmatprep.subr.mxu1 %v35375_v15  ;;  %27498 = vmatprep.subr.mxu0 %v35375_v15 }
0x1111   : > { %27476 = vmatmul.mubr.msk.f32.vlgmr.msra.gmra.mrb[206].mxu1 %vm795_vm2, %v32655_v28  ;;  %27491 = vmatmul.mubr.msk.f32.vlgmr.msra.gmra.mrb[220].mxu0 %vm795_vm2, %v32691_v35 }
0x1112   : > { %27484 = vmatpush3.xpose.msk.msra.mxu1 %vm795_vm2, %v16505_v6  ;;  %27499 = vmatpush3.xpose.msk.msra.mxu0 %vm795_vm2, %v32741_v22 }
0x1113   : > { %27485 = vmatprep.mubr.msk.f32.mxu1 %vm28836_vm1, %v35375_v15  ;;  %27500 = vmatprep.mubr.msk.f32.mxu0 %vm28836_vm1, %v35375_v15 }
0x1114   : > { %27493 = vmatprep.subr.mxu1 %v35375_v15  ;;  %27508 = vmatprep.subr.mxu0 %v35375_v15 }
0x1115   : > { %27486 = vmatmul.mubr.msk.f32.vlgmr.msra.gmra.mrb[208].mxu1 %vm795_vm2, %v32703_v12  ;;  %27501 = vmatmul.mubr.msk.f32.vlgmr.msra.gmra.mrb[222].mxu0 %vm795_vm2, %v32350_v4 }
0x1116   : > { %27494 = vmatpush3.xpose.msk.msra.mxu1 %vm795_vm2, %v32761_v59  ;;  %27509 = vmatpush3.xpose.msk.msra.mxu0 %vm795_vm2, %v32789_v11  ;;  %v14068_v29 = vpop.f32.mrb[186].mxu0 }
0x1117   : > { %v33128_v36 = vmul.f32 0.35355338, %v14068_v29  ;;  %27495 = vmatprep.mubr.msk.f32.mxu1 %vm28836_vm1, %v35375_v15  ;;  %27510 = vmatprep.mubr.msk.f32.mxu0 %vm28836_vm1, %v35375_v15  ;;  %v27322_v58 = vpop.f32.mrb[187].mxu0 }
0x1118   : > { %27503 = vmatprep.subr.mxu1 %v35375_v15  ;;  %27518 = vmatprep.subr.mxu0 %v35375_v15 }
0x1119   : > { %27496 = vmatmul.mubr.msk.f32.vlgmr.msra.gmra.mrb[210].mxu1 %vm795_vm2, %v32371_v32  ;;  %27511 = vmatmul.mubr.msk.f32.vlgmr.msra.gmra.mrb[224].mxu0 %vm795_vm2, %v32417_v55  ;;  %v17975_v16 = vsel %vm795_vm2, %v33128_v36, -inf }
0x111a   : > { %27504 = vmatpush3.xpose.msk.msra.mxu1 %vm795_vm2, %v32809_v17  ;;  %27519 = vmatpush3.xpose.msk.msra.mxu0 %vm795_vm2, %v32825_v0  ;;  %v13992_v9 = vpop.f32.mrb[174].mxu1  ;;  %v17797_v17 = vpop.permute.xlu0 %17796 }
0x111b   : > { %v33146_v30 = vmul.f32 0.35355338, %v13992_v9  ;;  %17976 = vmax.xlane.f32.xlu1 %v17975_v16  ;;  %27505 = vmatprep.mubr.msk.f32.mxu1 %vm28836_vm1, %v35375_v15  ;;  %v27317_v49 = vpop.f32.mrb[175].mxu1 }
0x111c   : > { %27520 = vmatprep.mubr.msk.f32.mxu0 %vm28836_vm1, %v35375_v15  ;;  %27513 = vmatprep.subr.mxu1 %v35375_v15 }
0x111d   : > { %27506 = vmatmul.mubr.msk.f32.vlgmr.msra.gmra.mrb[212].mxu1 %vm795_vm2, %v32425_v57  ;;  %27521 = vmatmul.mubr.msk.f32.vlgmr.msra.gmra.mrb[226].mxu0 %vm795_vm2, %v32465_v2  ;;  %v17972_v0 = vsel %vm795_vm2, %v33146_v30, -inf }
0x111e   : > { %27528 = vmatprep.subr.mxu0 %v35375_v15  ;;  %27514 = vmatpush3.xpose.msk.msra.mxu1 %vm795_vm2, %v32837_v54  ;;  %v35658_v54 = vld [vmem:[#allocation98_spill] sm:$0xff] }
0x111f   : > { %27529 = vmatpush3.xpose.msk.msra.mxu0 %vm795_vm2, %v32859_v39  ;;  %27515 = vmatprep.mubr.msk.f32.mxu1 %vm28836_vm1, %v35375_v15 }
0x1120   : > { %17973 = vmax.xlane.f32.xlu0 %v17972_v0  ;;  %27530 = vmatprep.mubr.msk.f32.mxu0 %vm28836_vm1, %v35375_v15 }
0x1121   : > { %27516 = vmatmul.mubr.msk.f32.vlgmr.msra.gmra.mrb[214].mxu1 %vm795_vm2, %v32473_v48  ;;  %27523 = vmatprep.subr.mxu1 %v35375_v15 }
0x1122   : > { %27531 = vmatmul.mubr.msk.f32.vlgmr.msra.gmra.mrb[228].mxu0 %vm795_vm2, %v32513_v62  ;;  %27538 = vmatprep.subr.mxu0 %v35375_v15 }
0x1123   : > { %27524 = vmatpush3.xpose.msk.msra.mxu1 %vm795_vm2, %v32873_v41  ;;  %27539 = vmatpush3.xpose.msk.msra.mxu0 %vm795_vm2, %v32897_v53  ;;  %v35659_v53 = vld [vmem:[#allocation100_spill] sm:$0xff] }
0x1124   : > { %27525 = vmatprep.mubr.msk.f32.mxu1 %vm28836_vm1, %v35375_v15  ;;  %27540 = vmatprep.mubr.msk.f32.mxu0 %vm28836_vm1, %v35375_v15 }
0x1125   : > { %27533 = vmatprep.subr.mxu1 %v35375_v15  ;;  %27548 = vmatprep.subr.mxu0 %v35375_v15 }
0x1126   : > { %27526 = vmatmul.mubr.msk.f32.vlgmr.msra.gmra.mrb[216].mxu1 %vm795_vm2, %v32521_v52  ;;  %27541 = vmatmul.mubr.msk.f32.vlgmr.msra.gmra.mrb[230].mxu0 %vm795_vm2, %v32561_v19 }
0x1127   : > { %27534 = vmatpush3.xpose.msk.msra.mxu1 %vm795_vm2, %v32909_v51  ;;  %27549 = vmatpush3.xpose.msk.msra.mxu0 %vm795_vm2, %v32933_v1  ;;  %v35662_v1 = vld [vmem:[#allocation77_spill] sm:$0xff] }
0x1128   : > { %27535 = vmatprep.mubr.msk.f32.mxu1 %vm28836_vm1, %v35375_v15  ;;  %27550 = vmatprep.mubr.msk.f32.mxu0 %vm28836_vm1, %v35375_v15 }
0x1129   : > { %27543 = vmatprep.subr.mxu1 %v35375_v15  ;;  %27558 = vmatprep.subr.mxu0 %v35375_v15 }
0x112a   : > { %27536 = vmatmul.mubr.msk.f32.vlgmr.msra.gmra.mrb[218].mxu1 %vm795_vm2, %v32569_v13  ;;  %27551 = vmatmul.mubr.msk.f32.vlgmr.msra.gmra.mrb[232].mxu0 %vm795_vm2, %v35655_v26  ;;  %v14220_v22 = vpop.f32.mrb[188].mxu0 }
0x112b   : > { %27544 = vmatpush3.xpose.msk.msra.mxu1 %vm795_vm2, %v35656_v56  ;;  %27559 = vmatpush3.xpose.msk.msra.mxu0 %vm795_vm2, %v32973_v10  ;;  %v33206_v59 = vmul.f32 0.35355338, %v14220_v22  ;;  %v27332_v25 = vpop.f32.mrb[189].mxu0 }
0x112c   : > { %27545 = vmatprep.mubr.msk.f32.mxu1 %vm28836_vm1, %v35375_v15  ;;  %27560 = vmatprep.mubr.msk.f32.mxu0 %vm28836_vm1, %v35375_v15 }
0x112d   : > { %27553 = vmatprep.subr.mxu1 %v35375_v15  ;;  %27568 = vmatprep.subr.mxu0 %v35375_v15  ;;  %v17981_v11 = vsel %vm795_vm2, %v33206_v59, -inf }
0x112e   : > { %27546 = vmatmul.mubr.msk.f32.vlgmr.msra.gmra.mrb[220].mxu1 %vm795_vm2, %v35657_v8  ;;  %27561 = vmatmul.mubr.msk.f32.vlgmr.msra.gmra.mrb[234].mxu0 %vm795_vm2, %v35658_v54  ;;  %v14144_v39 = vpop.f32.mrb[176].mxu1 }
0x112f   : > { %27554 = vmatpush3.xpose.msk.msra.mxu1 %vm795_vm2, %v32977_v46  ;;  %27569 = vmatpush3.xpose.msk.msra.mxu0 %vm795_vm2, %v17797_v17  ;;  %v33223_v40 = vmul.f32 0.35355338, %v14144_v39  ;;  %v27327_v41 = vpop.f32.mrb[177].mxu1 }
0x1130   : > { %27555 = vmatprep.mubr.msk.f32.mxu1 %vm28836_vm1, %v35375_v15  ;;  %17982 = vmax.xlane.f32.xlu1 %v17981_v11 }
0x1131   : > { %27570 = vmatprep.mubr.msk.f32.mxu0 %vm28836_vm1, %v35375_v15  ;;  %27563 = vmatprep.subr.mxu1 %v35375_v15  ;;  %v17978_v51 = vsel %vm795_vm2, %v33223_v40, -inf }
0x1132   : > { %27556 = vmatmul.mubr.msk.f32.vlgmr.msra.gmra.mrb[222].mxu1 %vm795_vm2, %v35659_v53  ;;  %27571 = vmatmul.mubr.msk.f32.vlgmr.msra.gmra.mrb[236].mxu0 %vm795_vm2, %v35660_v34 }
0x1133   : > { %27578 = vmatprep.subr.mxu0 %v35375_v15  ;;  %27564 = vmatpush3.xpose.msk.msra.mxu1 %vm795_vm2, %v17721_v24 }
0x1134   : > { %27579 = vmatpush3.msra.mxu0 %v35661_v45  ;;  %27565 = vmatprep.mubr.msk.f32.mxu1 %vm28836_vm1, %v35375_v15 }
0x1135   : > { %17979 = vmax.xlane.f32.xlu0 %v17978_v51  ;;  %27573 = vmatprep.subr.mxu1 %v35375_v15 }
0x1136   : > { %27566 = vmatmul.mubr.msk.f32.vlgmr.msra.gmra.mrb[224].mxu1 %vm795_vm2, %v35662_v1  ;;  %27580 = vmatprep.mubr.msk.f32.mxu0 %vm28836_vm1, %v35375_v15 }
0x1137   : > { %27574 = vmatpush3.msra.mxu1 %v35663_v44  ;;  %27588 = vmatprep.subr.mxu0 %v35375_v15 }
0x1138   : > { %27575 = vmatprep.mubr.msk.f32.mxu1 %vm28836_vm1, %v35375_v15  ;;  %27583 = vmatprep.subr.mxu1 %v35375_v15 }
0x113a   : > { %v14372_v42 = vpop.f32.mrb[190].mxu0 }
0x113b   : > { %v33251_v38 = vmul.f32 0.35355338, %v14372_v42  ;;  %v27342_v10 = vpop.f32.mrb[191].mxu0 }
0x113d   : > { %v17987_v46 = vsel %vm795_vm2, %v33251_v38, -inf }
0x113e   : > { %17988 = vmax.xlane.f32.xlu1 %v17987_v46 }
0x1142   : > { %v14296_v7 = vpop.f32.mrb[178].mxu1 }
0x1143   : > { %v33255_v14 = vmul.f32 0.35355338, %v14296_v7  ;;  %v27337_v18 = vpop.f32.mrb[179].mxu1 }
0x1145   : > { %v17984_v50 = vsel %vm795_vm2, %v33255_v14, -inf }
0x1146   : > { %17985 = vmax.xlane.f32.xlu0 %v17984_v50 }
0x114e   : > { %v14524_v37 = vpop.f32.mrb[192].mxu0 }
0x114f   : > { %v33259_v33 = vmul.f32 0.35355338, %v14524_v37  ;;  %v27352_v21 = vpop.f32.mrb[193].mxu0 }
0x1151   : > { %v17993_v61 = vsel %vm795_vm2, %v33259_v33, -inf }
0x1152   : > { %17994 = vmax.xlane.f32.xlu1 %v17993_v61 }
0x1156   : > { %v14448_v23 = vpop.f32.mrb[180].mxu1 }
0x1157   : > { %v33263_v20 = vmul.f32 0.35355338, %v14448_v23  ;;  %v27347_v31 = vpop.f32.mrb[181].mxu1 }
0x1159   : > { %v17990_v6 = vsel %vm795_vm2, %v33263_v20, -inf }
0x115a   : > { %17991 = vmax.xlane.f32.xlu0 %v17990_v6 }
0x1162   : > { %v14676_v29 = vpop.f32.mrb[194].mxu0 }
0x1163   : > { %v33267_v58 = vmul.f32 0.35355338, %v14676_v29  ;;  %v27362_v16 = vpop.f32.mrb[195].mxu0 }
0x1165   : > { %v17999_v9 = vsel %vm795_vm2, %v33267_v58, -inf }
0x1166   : > { %18000 = vmax.xlane.f32.xlu1 %v17999_v9 }
0x116a   : > { %v14600_v49 = vpop.f32.mrb[182].mxu1 }
0x116b   : > { %v33271_v0 = vmul.f32 0.35355338, %v14600_v49  ;;  %v27357_v22 = vpop.f32.mrb[183].mxu1 }
0x116d   : > { %v17996_v56 = vsel %vm795_vm2, %v33271_v0, -inf }
0x116e   : > { %17997 = vmax.xlane.f32.xlu0 %v17996_v56 }
0x1176   : > { %v14828_v25 = vpop.f32.mrb[196].mxu0 }
0x1177   : > { %v33275_v11 = vmul.f32 0.35355338, %v14828_v25  ;;  %v27372_v17 = vpop.f32.mrb[197].mxu0 }
0x1179   : > { %v18005_v39 = vsel %vm795_vm2, %v33275_v11, -inf }
0x117a   : > { %18006 = vmax.xlane.f32.xlu1 %v18005_v39 }
0x117e   : > { %v14752_v41 = vpop.f32.mrb[184].mxu1 }
0x117f   : > { %v33279_v24 = vmul.f32 0.35355338, %v14752_v41  ;;  %v27367_v51 = vpop.f32.mrb[185].mxu1 }
0x1181   : > { %v18002_v45 = vsel %vm795_vm2, %v33279_v24, -inf }
0x1182   : > { %18003 = vmax.xlane.f32.xlu0 %v18002_v45  ;;  %v33307_v45 = vpop.permute.xlu0 %20920 }
0x1183   : > { %35664 = vst [vmem:[#allocation6_spill] sm:$0xff] %v33307_v45 }
0x118b   : > { %v14980_v44 = vpop.f32.mrb[198].mxu0 }
0x118c   : > { %v33283_v42 = vmul.f32 0.35355338, %v14980_v44  ;;  %v27382_v10 = vpop.f32.mrb[199].mxu0  ;;  %v17941_v44 = vpop.xlane.xlu0 %17940 }
0x118d   : > { %v35665_v10 = vld [vmem:[#allocation47_spill] sm:$0xff] }
0x118e   : > { %v18011_v46 = vsel %vm795_vm2, %v33283_v42, -inf }
0x118f   : > { %18012 = vmax.xlane.f32.xlu1 %v18011_v46  ;;  %v18129_v46 = vsub.f32 %v35665_v10, %v17941_v44 }
0x1192   : > { %v14904_v7 = vpop.f32.mrb[186].mxu1 }
0x1193   : > { %v33287_v18 = vmul.f32 0.35355338, %v14904_v7  ;;  %v27377_v50 = vpop.f32.mrb[187].mxu1 }
0x1195   : > { %v18008_v37 = vsel %vm795_vm2, %v33287_v18, -inf }
0x1196   : > { %18009 = vmax.xlane.f32.xlu0 %v18008_v37 }
0x119f   : > { %v15132_v21 = vpop.f32.mrb[200].mxu0 }
0x11a0   : > { %v33291_v61 = vmul.f32 0.35355338, %v15132_v21  ;;  %v27392_v23 = vpop.f32.mrb[201].mxu0  ;;  %v18194_v21 = vmul.f32 1.442695, %v18129_v46 }
0x11a1   : > { %v17938_v23 = vpop.xlane.xlu1 %17937 }
0x11a2   : > { %v18017_v31 = vsel %vm795_vm2, %v33291_v61, -inf  ;;  %28470 = vpow2.f32 %v18194_v21 }
0x11a3   : > { %18018 = vmax.xlane.f32.xlu1 %v18017_v31 }
0x11a5   : > { %v17947_v44 = vpop.xlane.xlu1 %17946 }
0x11a6   : > { %v15056_v6 = vpop.f32.mrb[188].mxu1 }
0x11a7   : > { %v33295_v29 = vmul.f32 0.35355338, %v15056_v6  ;;  %v27387_v16 = vpop.f32.mrb[189].mxu1 }
0x11a9   : > { %v18014_v9 = vsel %vm795_vm2, %v33295_v29, -inf }
0x11aa   : > { %18015 = vmax.xlane.f32.xlu0 %v18014_v9 }
0x11b3   : > { %v15284_v49 = vpop.f32.mrb[202].mxu0 }
0x11b4   : > { %v33299_v22 = vmul.f32 0.35355338, %v15284_v49  ;;  %v27402_v56 = vpop.f32.mrb[203].mxu0 }
0x11b6   : > { %v15208_v25 = vpop.f32.mrb[190].mxu1  ;;  %v18023_v17 = vsel %vm795_vm2, %v33299_v22, -inf }
0x11b7   : > { %v33303_v39 = vmul.f32 0.35355338, %v15208_v25  ;;  %18024 = vmax.xlane.f32.xlu1 %v18023_v17  ;;  %v27397_v41 = vpop.f32.mrb[191].mxu1  ;;  %v35666_v17 = vld [vmem:[#allocation70_spill] sm:$0xff] }
0x11b8   : > { %v18128_v41 = vsub.f32 %v35666_v17, %v17938_v23 }
0x11b9   : > { %v18020_v51 = vsel %vm795_vm2, %v33303_v39, -inf }
0x11ba   : > { %18021 = vmax.xlane.f32.xlu0 %v18020_v51  ;;  %v18192_v21 = vmul.f32 1.442695, %v18128_v41 }
0x11bc   : > { %28472 = vpow2.f32 %v18192_v21  ;;  %v35668_v21 = vld [vmem:[#allocation80_spill] sm:$0xff] }
0x11c3   : > { %v15436_v7 = vpop.f32.mrb[204].mxu0 }
0x11c4   : > { %v33310_v50 = vmul.f32 0.35355338, %v15436_v7  ;;  %v27412_v37 = vpop.f32.mrb[205].mxu0 }
0x11c6   : > { %v15360_v31 = vpop.f32.mrb[192].mxu1  ;;  %v18029_v6 = vsel %vm795_vm2, %v33310_v50, -inf }
0x11c7   : > { %v33314_v16 = vmul.f32 0.35355338, %v15360_v31  ;;  %18030 = vmax.xlane.f32.xlu1 %v18029_v6  ;;  %v15588_v9 = vpop.f32.mrb[206].mxu0  ;;  %v27407_v49 = vpop.f32.mrb[193].mxu1 }
0x11c8   : > { %v33316_v56 = vmul.f32 0.35355338, %v15588_v9  ;;  %v27422_v25 = vpop.f32.mrb[207].mxu0  ;;  %v35667_v49 = vld [vmem:[#allocation71_spill] sm:$0xff] }
0x11c9   : > { %v18026_v51 = vsel %vm795_vm2, %v33314_v16, -inf  ;;  %v18131_v23 = vsub.f32 %v35667_v49, %v17947_v44 }
0x11ca   : > { %v15512_v10 = vpop.f32.mrb[194].mxu1  ;;  %18027 = vmax.xlane.f32.xlu0 %v18026_v51  ;;  %v18035_v46 = vsel %vm795_vm2, %v33316_v56, -inf }
0x11cb   : > { %v33323_v7 = vmul.f32 0.35355338, %v15512_v10  ;;  %18036 = vmax.xlane.f32.xlu1 %v18035_v46  ;;  %v15740_v37 = vpop.f32.mrb[208].mxu0  ;;  %v27417_v31 = vpop.f32.mrb[195].mxu1  ;;  %v18198_v41 = vmul.f32 1.442695, %v18131_v23 }
0x11cc   : > { %v33325_v6 = vmul.f32 0.35355338, %v15740_v37  ;;  %v27432_v9 = vpop.f32.mrb[209].mxu0 }
0x11cd   : > { %v18032_v25 = vsel %vm795_vm2, %v33323_v7, -inf  ;;  %v17944_v9 = vpop.xlane.xlu0 %17943  ;;  %28474 = vpow2.f32 %v18198_v41 }
0x11ce   : > { %18033 = vmax.xlane.f32.xlu0 %v18032_v25  ;;  %v18041_v17 = vsel %vm795_vm2, %v33325_v6, -inf  ;;  %v33340_v25 = vpop.eup %28470  ;;  %v18130_v23 = vsub.f32 %v35668_v21, %v17944_v9 }
0x11cf   : > { %v15664_v51 = vpop.f32.mrb[196].mxu1  ;;  %18042 = vmax.xlane.f32.xlu1 %v18041_v17  ;;  %v15892_v10 = vpop.f32.mrb[210].mxu0  ;;  %v18323_v26 = vsel %vm795_vm2, %v33340_v25, 0.0 }
0x11d0   : > { %v33332_v34 = vmul.f32 0.35355338, %v15664_v51  ;;  %v33334_v46 = vmul.f32 0.35355338, %v15892_v10  ;;  %v27427_v37 = vpop.f32.mrb[197].mxu1  ;;  %v27442_v31 = vpop.f32.mrb[211].mxu0 }
0x11d1   : > { %v17953_v31 = vpop.xlane.xlu1 %17952  ;;  %v33358_v19 = vpop.eup %28472 }
0x11d2   : > { %v18038_v44 = vsel %vm795_vm2, %v33332_v34, -inf  ;;  %v18047_v49 = vsel %vm795_vm2, %v33334_v46, -inf }
0x11d3   : > { %v15816_v1 = vpop.f32.mrb[198].mxu1  ;;  %18039 = vmax.xlane.f32.xlu0 %v18038_v44  ;;  %18048 = vmax.xlane.f32.xlu1 %v18047_v49  ;;  %v16044_v17 = vpop.f32.mrb[212].mxu0  ;;  %v18196_v49 = vmul.f32 1.442695, %v18130_v23 }
0x11d4   : > { %v33342_v51 = vmul.f32 0.35355338, %v15816_v1  ;;  %v27437_v10 = vpop.f32.mrb[199].mxu1  ;;  %v27452_v37 = vpop.f32.mrb[213].mxu0  ;;  %v33345_v54 = vmul.f32 0.35355338, %v16044_v17 }
0x11d5   : > { %v35669_v10 = vld [vmem:[#allocation40_spill] sm:$0xff]  ;;  %28476 = vpow2.f32 %v18196_v49 }
0x11d6   : > { %v18044_v53 = vsel %vm795_vm2, %v33342_v51, -inf  ;;  %v18133_v41 = vsub.f32 %v35669_v10, %v17953_v31  ;;  %v18053_v21 = vsel %vm795_vm2, %v33345_v54, -inf  ;;  %v17950_v10 = vpop.xlane.xlu0 %17949 }
0x11d7   : > { %v15968_v8 = vpop.f32.mrb[200].mxu1  ;;  %18045 = vmax.xlane.f32.xlu0 %v18044_v53  ;;  %v16196_v44 = vpop.f32.mrb[214].mxu0  ;;  %18324 = vadd.xlane.f32.xlu1 %v18323_v26 }
0x11d8   : > { %v33351_v1 = vmul.f32 0.35355338, %v15968_v8  ;;  %v27447_v37 = vpop.f32.mrb[201].mxu1  ;;  %v27462_v9 = vpop.f32.mrb[215].mxu0  ;;  %v18202_v31 = vmul.f32 1.442695, %v18133_v41 }
0x11d9   : > { %v18320_v9 = vsel %vm795_vm2, %v33358_v19, 0.0  ;;  %v33368_v62 = vpop.eup %28474  ;;  %v33373_v48 = vmul.f32 0.35355338, %v16196_v44 }
0x11da   : > { %v18050_v17 = vsel %vm795_vm2, %v33351_v1, -inf  ;;  %28478 = vpow2.f32 %v18202_v31  ;;  %v17956_v2 = vpop.xlane.xlu0 %17955 }
0x11db   : > { %v16120_v13 = vpop.f32.mrb[202].mxu1  ;;  %18051 = vmax.xlane.f32.xlu0 %v18050_v17  ;;  %v33360_v53 = vpop.f32.mrb[216].mxu0  ;;  %18054 = vmax.xlane.f32.xlu1 %v18053_v21  ;;  %v18059_v32 = vsel %vm795_vm2, %v33373_v48, -inf }
0x11dc   : > { %v33362_v26 = vmul.f32 0.35355338, %v16120_v13  ;;  %v27457_v8 = vpop.f32.mrb[203].mxu1  ;;  %v27472_v23 = vpop.f32.mrb[217].mxu0  ;;  %v33405_v60 = vmul.f32 0.35355338, %v33360_v53 }
0x11dd   : > { %v35670_v8 = vld [vmem:[#allocation48_spill] sm:$0xff]  ;;  %v17959_v23 = vpop.xlane.xlu1 %17958 }
0x11de   : > { %v18056_v37 = vsel %vm795_vm2, %v33362_v26, -inf  ;;  %v18132_v49 = vsub.f32 %v35670_v8, %v17950_v10  ;;  %v18135_v10 = vsub.f32 %v32949_v47, %v17959_v23  ;;  %v35672_v47 = vld [vmem:[#allocation72_spill] sm:$0xff] }
0x11df   : > { %v16272_v52 = vpop.f32.mrb[204].mxu1  ;;  %18057 = vmax.xlane.f32.xlu0 %v18056_v37  ;;  %18321 = vadd.xlane.f32.xlu1 %v18320_v9  ;;  %v18329_v37 = vsel %vm795_vm2, %v33368_v62, 0.0  ;;  %v33388_v4 = vpop.eup %28476  ;;  %v18134_v23 = vsub.f32 %v35672_v47, %v17956_v2 }
0x11e0   : > { %v33370_v17 = vmul.f32 0.35355338, %v16272_v52  ;;  %v16500_v13 = vpop.f32.mrb[218].mxu0  ;;  %v27467_v21 = vpop.f32.mrb[205].mxu1  ;;  %v18200_v31 = vmul.f32 1.442695, %v18132_v49 }
0x11e1   : > { %v27482_v41 = vpop.f32.mrb[219].mxu0  ;;  %v33375_v57 = vmul.f32 0.35355338, %v16500_v13  ;;  %35671 = vst [vmem:[#allocation5_spill] sm:$0xff] %v33388_v4  ;;  %v18206_v49 = vmul.f32 1.442695, %v18135_v10 }
0x11e2   : > { %v18062_v55 = vsel %vm795_vm2, %v33370_v17, -inf  ;;  %v17962_v41 = vpop.xlane.xlu0 %17961  ;;  %28480 = vpow2.f32 %v18200_v31  ;;  %v18204_v2 = vmul.f32 1.442695, %v18134_v23 }
0x11e3   : > { %18063 = vmax.xlane.f32.xlu0 %v18062_v55  ;;  %18330 = vadd.xlane.f32.xlu1 %v18329_v37  ;;  %v18071_v13 = vsel %vm795_vm2, %v33375_v57, -inf  ;;  %28482 = vpow2.f32 %v18206_v49 }
0x11e4   : > { %v16424_v52 = vpop.f32.mrb[206].mxu1  ;;  %v16652_v9 = vpop.f32.mrb[220].mxu0  ;;  %28484 = vpow2.f32 %v18204_v2 }
0x11e5   : > { %v27477_v21 = vpop.f32.mrb[207].mxu1  ;;  %v27492_v8 = vpop.f32.mrb[221].mxu0  ;;  %v33382_v44 = vmul.f32 0.35355338, %v16424_v52  ;;  %v33393_v35 = vmul.f32 0.35355338, %v16652_v9 }
0x11e6   : > { %v17965_v52 = vpop.xlane.xlu1 %17964  ;;  %v33391_v12 = vpop.xlane.xlu0 %17967 }
0x11e7   : > { %18072 = vmax.xlane.f32.xlu0 %v18071_v13  ;;  %18060 = vmax.xlane.f32.xlu1 %v18059_v32  ;;  %35673 = vst [vmem:[#allocation9_spill] sm:$0xff] %v33393_v35  ;;  %v18068_v45 = vsel %vm795_vm2, %v33382_v44, -inf  ;;  %v18326_v13 = vsel %vm795_vm2, %v33388_v4, 0.0  ;;  %v33399_v32 = vpop.eup %28478  ;;  %v18137_v47 = vsub.f32 %v32985_v63, %v17965_v52  ;;  %v18077_v5 = vsel %vm795_vm2, %v33393_v35, -inf }
0x11e8   : > { %v16576_v55 = vpop.f32.mrb[208].mxu1  ;;  %v16804_v37 = vpop.f32.mrb[222].mxu0  ;;  %35674 = vst [vmem:[#allocation8_spill] sm:$0xff] %v33399_v32  ;;  %v18136_v52 = vsub.f32 %v32997_v27, %v17962_v41 }
0x11e9   : > { %v27487_v21 = vpop.f32.mrb[209].mxu1  ;;  %v27502_v8 = vpop.f32.mrb[223].mxu0  ;;  %v33407_v28 = vmul.f32 0.35355338, %v16576_v55  ;;  %v18210_v23 = vmul.f32 1.442695, %v18137_v47 }
0x11ea   : > { %v33402_v9 = vpop.xlane.xlu0 %17973  ;;  %v33414_v55 = vmul.f32 0.35355338, %v16804_v37  ;;  %v18208_v27 = vmul.f32 1.442695, %v18136_v52 }
0x11eb   : > { %18069 = vmax.xlane.f32.xlu0 %v18068_v45  ;;  %18327 = vadd.xlane.f32.xlu1 %v18326_v13  ;;  %v18335_v45 = vsel %vm795_vm2, %v33399_v32, 0.0  ;;  %v17971_v13 = vpop.xlane.xlu1 %17970  ;;  %v18074_v4 = vsel %vm795_vm2, %v33407_v28, -inf  ;;  %v18065_v32 = vsel %vm795_vm2, %v33405_v60, -inf  ;;  %28486 = vpow2.f32 %v18210_v23 }
0x11ec   : > { %v16728_v31 = vpop.f32.mrb[210].mxu1  ;;  %v16956_v10 = vpop.f32.mrb[224].mxu0  ;;  %28488 = vpow2.f32 %v18208_v27 }
0x11ed   : > { %v27497_v21 = vpop.f32.mrb[211].mxu1  ;;  %v27512_v8 = vpop.f32.mrb[225].mxu0 }
0x11ee   : > { %v17980_v8 = vpop.xlane.xlu0 %17979  ;;  %v33420_v35 = vpop.eup %28480 }
0x11ef   : > { %18078 = vmax.xlane.f32.xlu0 %v18077_v5  ;;  %18336 = vadd.xlane.f32.xlu1 %v18335_v45  ;;  %35675 = vst [vmem:[#allocation10_spill] sm:$0xff] %v33420_v35  ;;  %v18139_v5 = vsub.f32 %v33056_v3, %v17971_v13  ;;  %v18142_v41 = vsub.f32 %v33223_v40, %v17980_v8  ;;  %v33428_v45 = vmul.f32 0.35355338, %v16728_v31  ;;  %v17977_v13 = vpop.xlane.xlu1 %17976  ;;  %v33442_v8 = vmul.f32 0.35355338, %v16956_v10 }
0x11f0   : > { %v16880_v49 = vpop.f32.mrb[212].mxu1  ;;  %v17108_v63 = vpop.f32.mrb[226].mxu0  ;;  %v18138_v40 = vsub.f32 %v33072_v43, %v33391_v12  ;;  %v18141_v43 = vsub.f32 %v33128_v36, %v17977_v13  ;;  %v18140_v13 = vsub.f32 %v33146_v30, %v33402_v9 }
0x11f1   : > { %v27507_v21 = vpop.f32.mrb[213].mxu1  ;;  %v27522_v53 = vpop.f32.mrb[227].mxu0  ;;  %v18214_v3 = vmul.f32 1.442695, %v18139_v5  ;;  %v18220_v23 = vmul.f32 1.442695, %v18142_v41 }
0x11f2   : > { %v18083_v53 = vsel %vm795_vm2, %v33414_v55, -inf  ;;  %v18212_v12 = vmul.f32 1.442695, %v18138_v40  ;;  %v33455_v41 = vmul.f32 0.35355338, %v16880_v49 }
0x11f3   : > { %18075 = vmax.xlane.f32.xlu0 %v18074_v4  ;;  %18066 = vmax.xlane.f32.xlu1 %v18065_v32  ;;  %v18332_v4 = vsel %vm795_vm2, %v33420_v35, 0.0  ;;  %v33434_v32 = vpop.eup %28482  ;;  %v18080_v35 = vsel %vm795_vm2, %v33428_v45, -inf  ;;  %28490 = vpow2.f32 %v18214_v3  ;;  %v17983_v36 = vpop.xlane.xlu1 %17982  ;;  %v18218_v3 = vmul.f32 1.442695, %v18141_v43 }
0x11f4   : > { %v33423_v2 = vpop.f32.mrb[214].mxu1  ;;  %35676 = vst [vmem:[#allocation7_spill] sm:$0xff] %v33434_v32  ;;  %v18341_v5 = vsel %vm795_vm2, %v33434_v32, 0.0  ;;  %28492 = vpow2.f32 %v18220_v23  ;;  %35678 = vst [vmem:[#allocation11_spill] sm:$0xff] %v33455_v41  ;;  %v33467_v23 = vmul.f32 0.35355338, %v17108_v63  ;;  %v18143_v30 = vsub.f32 %v33206_v59, %v17983_v36 }
0x11f5   : > { %v33426_v37 = vpop.f32.mrb[228].mxu0  ;;  %v27517_v47 = vpop.f32.mrb[215].mxu1  ;;  %28494 = vpow2.f32 %v18212_v12  ;;  %v18216_v12 = vmul.f32 1.442695, %v18140_v13  ;;  %v33487_v36 = vmul.f32 0.35355338, %v33423_v2 }
0x11f6   : > { %v27532_v21 = vpop.f32.mrb[229].mxu0  ;;  %28496 = vpow2.f32 %v18218_v3  ;;  %v18095_v32 = vsel %vm795_vm2, %v33467_v23, -inf }
0x11f7   : > { %18084 = vmax.xlane.f32.xlu0 %v18083_v53  ;;  %18333 = vadd.xlane.f32.xlu1 %v18332_v4  ;;  %v33448_v53 = vpop.eup %28484  ;;  %28498 = vpow2.f32 %v18216_v12  ;;  %v18092_v2 = vsel %vm795_vm2, %v33487_v36, -inf }
0x11f8   : > { %35677 = vst [vmem:[#allocation12_spill] sm:$0xff] %v33448_v53 }
0x11f9   : > { %v33438_v31 = vpop.f32.mrb[216].mxu1  ;;  %v33440_v52 = vpop.f32.mrb[230].mxu0 }
0x11fa   : > { %v27527_v47 = vpop.f32.mrb[217].mxu1  ;;  %v27542_v21 = vpop.f32.mrb[231].mxu0 }
0x11fb   : > { %18081 = vmax.xlane.f32.xlu0 %v18080_v35  ;;  %18342 = vadd.xlane.f32.xlu1 %v18341_v5  ;;  %v18089_v21 = vsel %vm795_vm2, %v33442_v8, -inf  ;;  %v18338_v35 = vsel %vm795_vm2, %v33448_v53, 0.0  ;;  %v33461_v5 = vpop.eup %28486  ;;  %v18086_v53 = vsel %vm795_vm2, %v33455_v41, -inf }
0x11fc   : > { %35679 = vst [vmem:[#allocation14_spill] sm:$0xff] %v33461_v5 }
0x11fd   : > { %v33451_v27 = vpop.f32.mrb[218].mxu1  ;;  %v33453_v10 = vpop.f32.mrb[232].mxu0 }
0x11fe   : > { %v27537_v4 = vpop.f32.mrb[219].mxu1  ;;  %v27552_v47 = vpop.f32.mrb[233].mxu0 }
0x11ff   : > { %18090 = vmax.xlane.f32.xlu0 %v18089_v21  ;;  %18339 = vadd.xlane.f32.xlu1 %v18338_v35  ;;  %v18347_v21 = vsel %vm795_vm2, %v33461_v5, 0.0  ;;  %v33473_v35 = vpop.eup %28488 }
0x1200   : > { %v33478_v63 = vpop.eup %28490  ;;  %v18344_v5 = vsel %vm795_vm2, %v33473_v35, 0.0 }
0x1201   : > { %v17488_v49 = vpop.f32.mrb[220].mxu1  ;;  %v33465_v40 = vpop.f32.mrb[234].mxu0  ;;  %35680 = vst [vmem:[#allocation13_spill] sm:$0xff] %v33478_v63  ;;  %v18353_v13 = vsel %vm795_vm2, %v33478_v63, 0.0 }
0x1202   : > { %v27547_v4 = vpop.f32.mrb[221].mxu1  ;;  %v27562_v47 = vpop.f32.mrb[235].mxu0  ;;  %v33528_v63 = vmul.f32 0.35355338, %v17488_v49 }
0x1203   : > { %18087 = vmax.xlane.f32.xlu0 %v18086_v53  ;;  %18348 = vadd.xlane.f32.xlu1 %v18347_v21  ;;  %v33484_v41 = vpop.eup %28492  ;;  %v18222_v53 = vmul.f32 1.442695, %v18143_v30  ;;  %v17989_v30 = vpop.xlane.xlu1 %17988 }
0x1204   : > { %35681 = vst [vmem:[#allocation16_spill] sm:$0xff] %v33484_v41  ;;  %v18362_v21 = vsel %vm795_vm2, %v33484_v41, 0.0 }
0x1205   : > { %v17640_v9 = vpop.f32.mrb[222].mxu1  ;;  %v33476_v43 = vpop.f32.mrb[236].mxu0  ;;  %28500 = vpow2.f32 %v18222_v53 }
0x1206   : > { %v27557_v4 = vpop.f32.mrb[223].mxu1  ;;  %v27572_v47 = vpop.f32.mrb[237].mxu0  ;;  %v33539_v49 = vmul.f32 0.35355338, %v17640_v9  ;;  %v33548_v9 = vmul.f32 0.35355338, %v33465_v40 }
0x1207   : > { %18096 = vmax.xlane.f32.xlu0 %v18095_v32  ;;  %18345 = vadd.xlane.f32.xlu1 %v18344_v5  ;;  %v33493_v4 = vpop.eup %28494  ;;  %v33496_v32 = vmul.f32 0.35355338, %v33426_v37  ;;  %v17986_v47 = vpop.xlane.xlu0 %17985 }
0x1208   : > { %35682 = vst [vmem:[#allocation15_spill] sm:$0xff] %v33493_v4  ;;  %v18350_v5 = vsel %vm795_vm2, %v33493_v4, 0.0  ;;  %v33502_v12 = vpop.eup %28496  ;;  %v17995_v41 = vpop.xlane.xlu1 %17994 }
0x1209   : > { %v17792_v59 = vpop.f32.mrb[224].mxu1  ;;  %35683 = vst [vmem:[#allocation18_spill] sm:$0xff] %v33502_v12  ;;  %v18359_v53 = vsel %vm795_vm2, %v33502_v12, 0.0  ;;  %v18101_v37 = vsel %vm795_vm2, %v33496_v32, -inf }
0x120a   : > { %v27567_v3 = vpop.f32.mrb[225].mxu1 }
0x120b   : > { %18354 = vadd.xlane.f32.xlu1 %v18353_v13  ;;  %18363 = vadd.xlane.f32.xlu0 %v18362_v21  ;;  %v33505_v3 = vmul.f32 0.35355338, %v33438_v31  ;;  %v33511_v13 = vpop.eup %28498  ;;  %v18145_v21 = vsub.f32 %v33251_v38, %v17989_v30  ;;  %v18147_v38 = vsub.f32 %v33259_v33, %v17995_v41  ;;  %v33526_v30 = vmul.f32 0.35355338, %v33451_v27 }
0x120c   : > { %35685 = vst [vmem:[#allocation20_spill] sm:$0xff] %v33511_v13  ;;  %v18356_v31 = vsel %vm795_vm2, %v33511_v13, 0.0  ;;  %v18001_v33 = vpop.xlane.xlu1 %18000  ;;  %v33537_v41 = vmul.f32 0.35355338, %v33453_v10 }
0x120d   : > { %35684 = vst [vmem:[#allocation17_spill] sm:$0xff] %v33505_v3  ;;  %v18098_v12 = vsel %vm795_vm2, %v33505_v3, -inf }
0x120f   : > { %18351 = vadd.xlane.f32.xlu1 %v18350_v5  ;;  %18093 = vmax.xlane.f32.xlu0 %v18092_v2  ;;  %v17992_v5 = vpop.xlane.xlu0 %17991  ;;  %v33515_v2 = vmul.f32 0.35355338, %v33440_v52  ;;  %v33521_v4 = vpop.eup %28500 }
0x1210   : > { %v18365_v13 = vsel %vm795_vm2, %v33521_v4, 0.0 }
0x1211   : > { %v18107_v3 = vsel %vm795_vm2, %v33515_v2, -inf }
0x1213   : > { %18360 = vadd.xlane.f32.xlu1 %v18359_v53  ;;  %18102 = vmax.xlane.f32.xlu0 %v18101_v37  ;;  %v18144_v53 = vsub.f32 %v33255_v14, %v17986_v47  ;;  %v18226_v37 = vmul.f32 1.442695, %v18145_v21  ;;  %v17998_v52 = vpop.xlane.xlu0 %17997  ;;  %v18146_v14 = vsub.f32 %v33263_v20, %v17992_v5  ;;  %v18230_v47 = vmul.f32 1.442695, %v18147_v38  ;;  %v18007_v5 = vpop.xlane.xlu1 %18006 }
0x1214   : > { %v18148_v27 = vsub.f32 %v33271_v0, %v17998_v52  ;;  %v18113_v38 = vsel %vm795_vm2, %v33537_v41, -inf }
0x1215   : > { %28502 = vpow2.f32 %v18226_v37  ;;  %v18228_v20 = vmul.f32 1.442695, %v18146_v14  ;;  %v18116_v37 = vsel %vm795_vm2, %v33539_v49, -inf }
0x1216   : > { %v18232_v0 = vmul.f32 1.442695, %v18148_v27 }
0x1217   : > { %18357 = vadd.xlane.f32.xlu1 %v18356_v31  ;;  %18099 = vmax.xlane.f32.xlu0 %v18098_v12  ;;  %v18224_v12 = vmul.f32 1.442695, %v18144_v53  ;;  %v18004_v21 = vpop.xlane.xlu0 %18003  ;;  %v18110_v31 = vsel %vm795_vm2, %v33528_v63, -inf  ;;  %v33550_v53 = vmul.f32 0.35355338, %v17792_v59 }
0x1218   : > { %v18150_v10 = vsub.f32 %v33279_v24, %v18004_v21  ;;  %v33559_v59 = vmul.f32 0.35355338, %v33476_v43 }
0x1219   : > { %28504 = vpow2.f32 %v18224_v12  ;;  %35686 = vst [vmem:[#allocation19_spill] sm:$0xff] %v33550_v53  ;;  %v18151_v12 = vsub.f32 %v33275_v11, %v18007_v5 }
0x121a   : > { %28506 = vpow2.f32 %v18230_v47  ;;  %v18236_v24 = vmul.f32 1.442695, %v18150_v10  ;;  %35687 = vst [vmem:[#allocation49_spill] sm:$0xff] %v33559_v59  ;;  %v18122_v47 = vsel %vm795_vm2, %v33550_v53, -inf }
0x121b   : > { %18366 = vadd.xlane.f32.xlu1 %v18365_v13  ;;  %18108 = vmax.xlane.f32.xlu0 %v18107_v3  ;;  %v18104_v3 = vsel %vm795_vm2, %v33526_v30, -inf  ;;  %v18149_v13 = vsub.f32 %v33267_v58, %v18001_v33  ;;  %28508 = vpow2.f32 %v18228_v20  ;;  %v18119_v33 = vsel %vm795_vm2, %v33548_v9, -inf }
0x121c   : > { %28510 = vpow2.f32 %v18232_v0  ;;  %v18013_v14 = vpop.xlane.xlu1 %18012  ;;  %v18238_v11 = vmul.f32 1.442695, %v18151_v12 }
0x121d   : > { %v18234_v58 = vmul.f32 1.442695, %v18149_v13  ;;  %v18153_v21 = vsub.f32 %v33283_v42, %v18013_v14 }
0x121f   : > { %18111 = vmax.xlane.f32.xlu1 %v18110_v31  ;;  %18105 = vmax.xlane.f32.xlu0 %v18104_v3  ;;  %v33565_v27 = vpop.eup %28502  ;;  %28512 = vpow2.f32 %v18234_v58  ;;  %v18125_v3 = vsel %vm795_vm2, %v33559_v59, -inf  ;;  %v18242_v13 = vmul.f32 1.442695, %v18153_v21 }
0x1220   : > { %28514 = vpow2.f32 %v18236_v24  ;;  %v18371_v43 = vsel %vm795_vm2, %v33565_v27, 0.0 }
0x1221   : > { %28516 = vpow2.f32 %v18238_v11 }
0x1223   : > { %18117 = vmax.xlane.f32.xlu1 %v18116_v37  ;;  %18114 = vmax.xlane.f32.xlu0 %v18113_v38  ;;  %v18010_v52 = vpop.xlane.xlu0 %18009  ;;  %v33568_v31 = vpop.eup %28504 }
0x1224   : > { %v18152_v40 = vsub.f32 %v33287_v18, %v18010_v52  ;;  %v33574_v20 = vpop.eup %28506  ;;  %v18368_v5 = vsel %vm795_vm2, %v33568_v31, 0.0 }
0x1225   : > { %v33576_v0 = vpop.eup %28508  ;;  %v18377_v42 = vsel %vm795_vm2, %v33574_v20, 0.0 }
0x1226   : > { %v18240_v18 = vmul.f32 1.442695, %v18152_v40  ;;  %v33582_v10 = vpop.eup %28510  ;;  %v18374_v58 = vsel %vm795_vm2, %v33576_v0, 0.0 }
0x1227   : > { %18123 = vmax.xlane.f32.xlu1 %v18122_v47  ;;  %18120 = vmax.xlane.f32.xlu0 %v18119_v33  ;;  %v18380_v12 = vsel %vm795_vm2, %v33582_v10, 0.0 }
0x1228   : > { %28518 = vpow2.f32 %v18240_v18 }
0x1229   : > { %28520 = vpow2.f32 %v18242_v13  ;;  %v33585_v52 = vpop.eup %28512 }
0x122a   : > { %v33591_v24 = vpop.eup %28514  ;;  %v18383_v47 = vsel %vm795_vm2, %v33585_v52, 0.0 }
0x122b   : > { %18372 = vadd.xlane.f32.xlu1 %v18371_v43  ;;  %18126 = vmax.xlane.f32.xlu0 %v18125_v3  ;;  %v33593_v14 = vpop.eup %28516 }
0x122c   : > { %v18389_v43 = vsel %vm795_vm2, %v33593_v14, 0.0 }
0x122f   : > { %18378 = vadd.xlane.f32.xlu1 %v18377_v42  ;;  %18369 = vadd.xlane.f32.xlu0 %v18368_v5 }
0x1230   : > { %v18019_v37 = vpop.xlane.xlu1 %18018 }
0x1231   : > { %v18155_v38 = vsub.f32 %v33291_v61, %v18019_v37  ;;  %v18386_v61 = vsel %vm795_vm2, %v33591_v24, 0.0 }
0x1232   : > { %v33599_v33 = vpop.eup %28518 }
0x1233   : > { %v18246_v40 = vmul.f32 1.442695, %v18155_v38  ;;  %18375 = vadd.xlane.f32.xlu0 %v18374_v58  ;;  %18381 = vadd.xlane.f32.xlu1 %v18380_v12  ;;  %v18392_v3 = vsel %vm795_vm2, %v33599_v33, 0.0  ;;  %v33606_v13 = vpop.eup %28520 }
0x1234   : > { %v18395_v42 = vsel %vm795_vm2, %v33606_v13, 0.0 }
0x1235   : > { %28522 = vpow2.f32 %v18246_v40 }
0x1237   : > { %18384 = vadd.xlane.f32.xlu0 %v18383_v47  ;;  %18387 = vadd.xlane.f32.xlu1 %v18386_v61  ;;  %v18016_v11 = vpop.xlane.xlu0 %18015 }
0x1238   : > { %v18154_v21 = vsub.f32 %v33295_v29, %v18016_v11 }
0x123a   : > { %v18244_v18 = vmul.f32 1.442695, %v18154_v21 }
0x123b   : > { %18390 = vadd.xlane.f32.xlu0 %v18389_v43  ;;  %18393 = vadd.xlane.f32.xlu1 %v18392_v3 }
0x123c   : > { %28524 = vpow2.f32 %v18244_v18 }
0x123f   : > { %v33610_v5 = vpop.eup %28522  ;;  %18396 = vadd.xlane.f32.xlu0 %v18395_v42 }
0x1240   : > { %v18401_v29 = vsel %vm795_vm2, %v33610_v5, 0.0 }
0x1243   : > { %18402 = vadd.xlane.f32.xlu0 %v18401_v29 }
0x1244   : > { %v18025_v37 = vpop.xlane.xlu1 %18024 }
0x1245   : > { %v18157_v38 = vsub.f32 %v33299_v22, %v18025_v37 }
0x1246   : > { %v33615_v58 = vpop.eup %28524 }
0x1247   : > { %v18250_v12 = vmul.f32 1.442695, %v18157_v38  ;;  %v18022_v40 = vpop.xlane.xlu0 %18021  ;;  %v18398_v47 = vsel %vm795_vm2, %v33615_v58, 0.0 }
0x1248   : > { %v18156_v61 = vsub.f32 %v33303_v39, %v18022_v40  ;;  %18399 = vadd.xlane.f32.xlu1 %v18398_v47 }
0x1249   : > { %28526 = vpow2.f32 %v18250_v12 }
0x124a   : > { %v18248_v11 = vmul.f32 1.442695, %v18156_v61 }
0x124c   : > { %28528 = vpow2.f32 %v18248_v11 }
0x1253   : > { %v33620_v21 = vpop.eup %28526 }
0x1254   : > { %v18031_v18 = vpop.xlane.xlu1 %18030  ;;  %v18407_v43 = vsel %vm795_vm2, %v33620_v21, 0.0 }
0x1255   : > { %v18159_v22 = vsub.f32 %v33310_v50, %v18031_v18  ;;  %18408 = vadd.xlane.f32.xlu0 %v18407_v43 }
0x1256   : > { %v33625_v3 = vpop.eup %28528 }
0x1257   : > { %v18254_v42 = vmul.f32 1.442695, %v18159_v22  ;;  %v18028_v29 = vpop.xlane.xlu0 %18027  ;;  %v18404_v39 = vsel %vm795_vm2, %v33625_v3, 0.0 }
0x1258   : > { %v18037_v37 = vpop.xlane.xlu1 %18036  ;;  %v18158_v38 = vsub.f32 %v33314_v16, %v18028_v29  ;;  %18405 = vadd.xlane.f32.xlu1 %v18404_v39 }
0x1259   : > { %28530 = vpow2.f32 %v18254_v42  ;;  %v18161_v12 = vsub.f32 %v33316_v56, %v18037_v37 }
0x125a   : > { %v18252_v40 = vmul.f32 1.442695, %v18158_v38 }
0x125b   : > { %v18258_v47 = vmul.f32 1.442695, %v18161_v12  ;;  %v18034_v61 = vpop.xlane.xlu0 %18033 }
0x125c   : > { %28532 = vpow2.f32 %v18252_v40  ;;  %v18043_v50 = vpop.xlane.xlu1 %18042  ;;  %v18160_v11 = vsub.f32 %v33323_v7, %v18034_v61 }
0x125d   : > { %28534 = vpow2.f32 %v18258_v47  ;;  %v18163_v18 = vsub.f32 %v33325_v6, %v18043_v50 }
0x125e   : > { %v18256_v43 = vmul.f32 1.442695, %v18160_v11 }
0x125f   : > { %v18262_v22 = vmul.f32 1.442695, %v18163_v18 }
0x1260   : > { %28536 = vpow2.f32 %v18256_v43  ;;  %v18049_v53 = vpop.xlane.xlu1 %18048  ;;  %v18040_v59 = vpop.xlane.xlu0 %18039 }
0x1261   : > { %28538 = vpow2.f32 %v18262_v22  ;;  %v18165_v16 = vsub.f32 %v33334_v46, %v18049_v53  ;;  %v18162_v56 = vsub.f32 %v33332_v34, %v18040_v59 }
0x1263   : > { %v33635_v42 = vpop.eup %28530  ;;  %v18266_v29 = vmul.f32 1.442695, %v18165_v16  ;;  %v18260_v39 = vmul.f32 1.442695, %v18162_v56 }
0x1264   : > { %v18325_v37 = vpop.xlane.xlu1 %18324  ;;  %v18046_v38 = vpop.xlane.xlu0 %18045  ;;  %v18413_v7 = vsel %vm795_vm2, %v33635_v42, 0.0 }
0x1265   : > { %28540 = vpow2.f32 %v18266_v29  ;;  %v18164_v6 = vsub.f32 %v33342_v51, %v18046_v38  ;;  %18414 = vadd.xlane.f32.xlu0 %v18413_v7 }
0x1266   : > { %v33640_v12 = vpop.eup %28532  ;;  %28542 = vpow2.f32 %v18260_v39 }
0x1267   : > { %v33642_v40 = vpop.eup %28534  ;;  %28544 = vrcp.f32 %v18325_v37  ;;  %v18264_v34 = vmul.f32 1.442695, %v18164_v6  ;;  %v18410_v46 = vsel %vm795_vm2, %v33640_v12, 0.0 }
0x1268   : > { %v18055_v53 = vpop.xlane.xlu1 %18054  ;;  %v18052_v59 = vpop.xlane.xlu0 %18051  ;;  %v18419_v47 = vsel %vm795_vm2, %v33642_v40, 0.0  ;;  %18411 = vadd.xlane.f32.xlu1 %v18410_v46 }
0x1269   : > { %28546 = vpow2.f32 %v18264_v34  ;;  %v18167_v51 = vsub.f32 %v33345_v54, %v18055_v53  ;;  %v18166_v61 = vsub.f32 %v33351_v1, %v18052_v59  ;;  %18420 = vadd.xlane.f32.xlu0 %v18419_v47 }
0x126a   : > { %v33650_v50 = vpop.eup %28536 }
0x126b   : > { %v33652_v11 = vpop.eup %28538  ;;  %v18270_v18 = vmul.f32 1.442695, %v18167_v51  ;;  %v18268_v43 = vmul.f32 1.442695, %v18166_v61  ;;  %v18416_v22 = vsel %vm795_vm2, %v33650_v50, 0.0 }
0x126c   : > { %v18322_v16 = vpop.xlane.xlu1 %18321  ;;  %v18058_v56 = vpop.xlane.xlu0 %18057  ;;  %v18425_v29 = vsel %vm795_vm2, %v33652_v11, 0.0  ;;  %18417 = vadd.xlane.f32.xlu1 %v18416_v22 }
0x126d   : > { %28548 = vpow2.f32 %v18270_v18  ;;  %v18168_v54 = vsub.f32 %v33362_v26, %v18058_v56  ;;  %18426 = vadd.xlane.f32.xlu0 %v18425_v29 }
0x126e   : > { %28550 = vpow2.f32 %v18268_v43 }
0x126f   : > { %v33659_v1 = vpop.eup %28540  ;;  %28552 = vrcp.f32 %v18322_v16  ;;  %v18272_v39 = vmul.f32 1.442695, %v18168_v54 }
0x1270   : > { %v33661_v37 = vpop.eup %28542  ;;  %v18331_v38 = vpop.xlane.xlu1 %18330  ;;  %v18431_v6 = vsel %vm795_vm2, %v33659_v1, 0.0 }
0x1271   : > { %v18064_v7 = vpop.xlane.xlu0 %18063  ;;  %v28545_v34 = vpop.eup %28544  ;;  %28554 = vpow2.f32 %v18272_v39  ;;  %18432 = vadd.xlane.f32.xlu0 %v18431_v6  ;;  %v18422_v26 = vsel %vm795_vm2, %v33661_v37, 0.0 }
0x1272   : > { %v18170_v46 = vsub.f32 %v33370_v17, %v18064_v7  ;;  %28556 = vrcp.f32 %v18331_v38  ;;  %18423 = vadd.xlane.f32.xlu1 %v18422_v26  ;;  %v18515_v53 = vmul.f32 %v28545_v34, %v33340_v25  ;;  %v35688_v17 = vld [vmem:[#allocation22_spill] sm:$0xff] }
0x1273   : > { %v33669_v59 = vpop.eup %28546 }
0x1274   : > { %v18276_v47 = vmul.f32 1.442695, %v18170_v46  ;;  %27581 = vmatmul.mubr.msk.f32.vlgmr.msra.gmra.mrb[238].mxu0 %vm795_vm2, %v18515_v53  ;;  %v18061_v51 = vpop.xlane.xlu1 %18060  ;;  %v18428_v18 = vsel %vm795_vm2, %v33669_v59, 0.0 }
0x1275   : > { %v18073_v61 = vpop.xlane.xlu0 %18072  ;;  %27589 = vmatpush3.msra.mxu0 %v35688_v17  ;;  %v18169_v43 = vsub.f32 %v33373_v48, %v18061_v51  ;;  %27590 = vmatprep.mubr.msk.f32.mxu0 %vm28836_vm1, %v35375_v15  ;;  %v35689_v51 = vld [vmem:[#allocation30_spill] sm:$0xff] }
0x1276   : > { %28558 = vpow2.f32 %v18276_v47  ;;  %18429 = vadd.xlane.f32.xlu1 %v18428_v18  ;;  %27598 = vmatprep.subr.mxu0 %v35375_v15  ;;  %v18173_v26 = vsub.f32 %v33375_v57, %v18073_v61  ;;  %v35690_v61 = vld [vmem:[#allocation27_spill] sm:$0xff] }
0x1277   : > { %v33679_v25 = vpop.eup %28548  ;;  %v18274_v22 = vmul.f32 1.442695, %v18169_v43 }
0x1278   : > { %v33681_v16 = vpop.eup %28550  ;;  %v18328_v56 = vpop.xlane.xlu1 %18327  ;;  %v18437_v54 = vsel %vm795_vm2, %v33679_v25, 0.0 }
0x1279   : > { %v18070_v29 = vpop.xlane.xlu0 %18069  ;;  %v28553_v39 = vpop.eup %28552  ;;  %28560 = vpow2.f32 %v18274_v22  ;;  %18438 = vadd.xlane.f32.xlu0 %v18437_v54  ;;  %v18434_v38 = vsel %vm795_vm2, %v33681_v16, 0.0  ;;  %v35691_v54 = vld [vmem:[#allocation9_spill] sm:$0xff] }
0x127a   : > { %v18172_v48 = vsub.f32 %v33382_v44, %v18070_v29  ;;  %18435 = vadd.xlane.f32.xlu1 %v18434_v38  ;;  %v18513_v7 = vmul.f32 %v28553_v39, %v33358_v19  ;;  %28562 = vrcp.f32 %v18328_v56  ;;  %v18282_v19 = vmul.f32 1.442695, %v18173_v26 }
0x127b   : > { %v33689_v6 = vpop.eup %28554 }
0x127c   : > { %v18280_v34 = vmul.f32 1.442695, %v18172_v48  ;;  %v28557_v46 = vpop.eup %28556  ;;  %27576 = vmatmul.mubr.msk.f32.vlgmr.msra.gmra.mrb[226].mxu1 %vm795_vm2, %v18513_v7  ;;  %v18337_v53 = vpop.xlane.xlu1 %18336  ;;  %v18440_v44 = vsel %vm795_vm2, %v33689_v6, 0.0 }
0x127d   : > { %v18079_v47 = vpop.xlane.xlu0 %18078  ;;  %27584 = vmatpush3.msra.mxu1 %v35689_v51  ;;  %v18519_v18 = vmul.f32 %v28557_v46, %v33368_v62  ;;  %27585 = vmatprep.mubr.msk.f32.mxu1 %vm28836_vm1, %v35375_v15 }
0x127e   : > { %28564 = vpow2.f32 %v18280_v34  ;;  %18441 = vadd.xlane.f32.xlu1 %v18440_v44  ;;  %27593 = vmatprep.subr.mxu1 %v35375_v15  ;;  %v18175_v39 = vsub.f32 %v35691_v54, %v18079_v47  ;;  %v35695_v54 = vld [vmem:[#allocation36_spill] sm:$0xff] }
0x127f   : > { %28566 = vrcp.f32 %v18337_v53  ;;  %27591 = vmatmul.mubr.msk.f32.vlgmr.msra.gmra.mrb[240].mxu0 %vm795_vm2, %v18519_v18 }
0x1280   : > { %v33700_v57 = vpop.eup %28558  ;;  %27599 = vmatpush3.msra.mxu0 %v35690_v61  ;;  %v18067_v17 = vpop.xlane.xlu1 %18066  ;;  %27600 = vmatprep.mubr.msk.f32.mxu0 %vm28836_vm1, %v35375_v15  ;;  %28568 = vpow2.f32 %v18282_v19  ;;  %v18286_v44 = vmul.f32 1.442695, %v18175_v39 }
0x1281   : > { %v18076_v43 = vpop.xlane.xlu0 %18075  ;;  %v18446_v22 = vsel %vm795_vm2, %v33700_v57, 0.0  ;;  %v18171_v62 = vsub.f32 %v33405_v60, %v18067_v17  ;;  %27608 = vmatprep.subr.mxu0 %v35375_v15  ;;  %v35693_v17 = vld [vmem:[#allocation37_spill] sm:$0xff] }
0x1282   : > { %v18174_v56 = vsub.f32 %v33407_v28, %v18076_v43  ;;  %18447 = vadd.xlane.f32.xlu1 %v18446_v22  ;;  %v35692_v28 = vld [vmem:[#allocation5_spill] sm:$0xff]  ;;  %v35694_v22 = vld [vmem:[#allocation8_spill] sm:$0xff] }
0x1283   : > { %v33711_v29 = vpop.eup %28560  ;;  %v18278_v48 = vmul.f32 1.442695, %v18171_v62 }
0x1284   : > { %v18284_v38 = vmul.f32 1.442695, %v18174_v56  ;;  %v18334_v7 = vpop.xlane.xlu1 %18333  ;;  %v18443_v46 = vsel %vm795_vm2, %v33711_v29, 0.0  ;;  %v28563_v26 = vpop.eup %28562 }
0x1285   : > { %v18085_v34 = vpop.xlane.xlu0 %18084  ;;  %28570 = vpow2.f32 %v18278_v48  ;;  %18444 = vadd.xlane.f32.xlu0 %v18443_v46  ;;  %v18517_v60 = vmul.f32 %v28563_v26, %v35692_v28 }
0x1286   : > { %28572 = vpow2.f32 %v18284_v38  ;;  %v18177_v47 = vsub.f32 %v33414_v55, %v18085_v34 }
0x1287   : > { %28574 = vrcp.f32 %v18334_v7  ;;  %27586 = vmatmul.mubr.msk.f32.vlgmr.msra.gmra.mrb[228].mxu1 %vm795_vm2, %v18517_v60 }
0x1288   : > { %v33717_v53 = vpop.eup %28564  ;;  %v18343_v18 = vpop.xlane.xlu1 %18342  ;;  %27594 = vmatpush3.msra.mxu1 %v35693_v17  ;;  %27595 = vmatprep.mubr.msk.f32.mxu1 %vm28836_vm1, %v35375_v15  ;;  %v18290_v55 = vmul.f32 1.442695, %v18177_v47  ;;  %v35696_v47 = vld [vmem:[#allocation11_spill] sm:$0xff] }
0x1289   : > { %v28567_v51 = vpop.eup %28566  ;;  %v18082_v19 = vpop.xlane.xlu0 %18081  ;;  %v18452_v61 = vsel %vm795_vm2, %v33717_v53, 0.0  ;;  %28576 = vrcp.f32 %v18343_v18  ;;  %27603 = vmatprep.subr.mxu1 %v35375_v15  ;;  %v35697_v18 = vld [vmem:[#allocation10_spill] sm:$0xff] }
0x128a   : > { %v18176_v43 = vsub.f32 %v33428_v45, %v18082_v19  ;;  %18453 = vadd.xlane.f32.xlu1 %v18452_v61  ;;  %v18523_v62 = vmul.f32 %v28567_v51, %v35694_v22  ;;  %28578 = vpow2.f32 %v18286_v44  ;;  %v33735_v38 = vpop.eup %28568 }
0x128c   : > { %v18288_v56 = vmul.f32 1.442695, %v18176_v43  ;;  %27601 = vmatmul.mubr.msk.f32.vlgmr.msra.gmra.mrb[242].mxu0 %vm795_vm2, %v18523_v62  ;;  %v18340_v39 = vpop.xlane.xlu1 %18339  ;;  %v18455_v62 = vsel %vm795_vm2, %v33735_v38, 0.0 }
0x128d   : > { %27609 = vmatpush3.msra.mxu0 %v35695_v54  ;;  %v18091_v48 = vpop.xlane.xlu0 %18090  ;;  %27610 = vmatprep.mubr.msk.f32.mxu0 %vm28836_vm1, %v35375_v15 }
0x128e   : > { %28580 = vpow2.f32 %v18288_v56  ;;  %v18179_v45 = vsub.f32 %v33442_v8, %v18091_v48  ;;  %27618 = vmatprep.subr.mxu0 %v35375_v15  ;;  %v35698_v56 = vld [vmem:[#allocation93_spill] sm:$0xff] }
0x128f   : > { %28582 = vrcp.f32 %v18340_v39  ;;  %v33737_v7 = vpop.eup %28570  ;;  %v35699_v39 = vld [vmem:[#allocation7_spill] sm:$0xff] }
0x1290   : > { %28584 = vpow2.f32 %v18290_v55  ;;  %v18294_v34 = vmul.f32 1.442695, %v18179_v45  ;;  %v33739_v46 = vpop.eup %28572  ;;  %v18349_v26 = vpop.xlane.xlu1 %18348  ;;  %v18449_v60 = vsel %vm795_vm2, %v33737_v7, 0.0 }
0x1291   : > { %v18088_v28 = vpop.xlane.xlu0 %18087  ;;  %v28575_v44 = vpop.eup %28574  ;;  %18450 = vadd.xlane.f32.xlu0 %v18449_v60  ;;  %v18458_v8 = vsel %vm795_vm2, %v33739_v46, 0.0  ;;  %28586 = vrcp.f32 %v18349_v26 }
0x1292   : > { %v18178_v51 = vsub.f32 %v35696_v47, %v18088_v28  ;;  %18459 = vadd.xlane.f32.xlu1 %v18458_v8  ;;  %v18521_v19 = vmul.f32 %v28575_v44, %v35697_v18  ;;  %28588 = vpow2.f32 %v18294_v34  ;;  %v35700_v28 = vld [vmem:[#allocation106_spill] sm:$0xff]  ;;  %v35701_v8 = vld [vmem:[#allocation12_spill] sm:$0xff] }
0x1293   : > { %v28577_v17 = vpop.eup %28576 }
0x1294   : > { %v18292_v61 = vmul.f32 1.442695, %v18178_v51  ;;  %27596 = vmatmul.mubr.msk.f32.vlgmr.msra.gmra.mrb[230].mxu1 %vm795_vm2, %v18521_v19  ;;  %v18346_v43 = vpop.xlane.xlu1 %18345  ;;  %v33750_v55 = vpop.eup %28578  ;;  %v18527_v48 = vmul.f32 %v28577_v17, %v35699_v39 }
0x1295   : > { %v18097_v22 = vpop.xlane.xlu0 %18096  ;;  %27604 = vmatpush3.msra.mxu1 %v35698_v56  ;;  %18456 = vadd.xlane.f32.xlu0 %v18455_v62 }
0x1296   : > { %28590 = vpow2.f32 %v18292_v61  ;;  %v18181_v54 = vsub.f32 %v33467_v23, %v18097_v22  ;;  %27605 = vmatprep.mubr.msk.f32.mxu1 %vm28836_vm1, %v35375_v15  ;;  %27613 = vmatprep.subr.mxu1 %v35375_v15  ;;  %v18461_v23 = vsel %vm795_vm2, %v33750_v55, 0.0  ;;  %v35702_v61 = vld [vmem:[#allocation94_spill] sm:$0xff] }
0x1297   : > { %28592 = vrcp.f32 %v18346_v43  ;;  %27611 = vmatmul.mubr.msk.f32.vlgmr.msra.gmra.mrb[244].mxu0 %vm795_vm2, %v18527_v48 }
0x1298   : > { %v33758_v45 = vpop.eup %28580  ;;  %v18298_v34 = vmul.f32 1.442695, %v18181_v54  ;;  %27619 = vmatpush3.msra.mxu0 %v35700_v28  ;;  %v18355_v60 = vpop.xlane.xlu1 %18354  ;;  %27620 = vmatprep.mubr.msk.f32.mxu0 %vm28836_vm1, %v35375_v15  ;;  %v35703_v54 = vld [vmem:[#allocation14_spill] sm:$0xff]  ;;  %v35704_v28 = vld [vmem:[#allocation95_spill] sm:$0xff] }
0x1299   : > { %v28583_v26 = vpop.eup %28582  ;;  %v18364_v44 = vpop.xlane.xlu0 %18363  ;;  %v18464_v47 = vsel %vm795_vm2, %v33758_v45, 0.0  ;;  %18462 = vadd.xlane.f32.xlu0 %v18461_v23  ;;  %27628 = vmatprep.subr.mxu0 %v35375_v15 }
0x129a   : > { %v33768_v51 = vpop.eup %28584  ;;  %28594 = vpow2.f32 %v18298_v34  ;;  %18465 = vadd.xlane.f32.xlu1 %v18464_v47  ;;  %v18525_v18 = vmul.f32 %v28583_v26, %v35701_v8 }
0x129b   : > { %28596 = vrcp.f32 %v18355_v60  ;;  %v28587_v19 = vpop.eup %28586  ;;  %v18467_v22 = vsel %vm795_vm2, %v33768_v51, 0.0 }
0x129c   : > { %27606 = vmatmul.mubr.msk.f32.vlgmr.msra.gmra.mrb[232].mxu1 %vm795_vm2, %v18525_v18  ;;  %v18352_v17 = vpop.xlane.xlu1 %18351  ;;  %v33778_v62 = vpop.eup %28588  ;;  %v18531_v39 = vmul.f32 %v28587_v19, %v35703_v54 }
0x129d   : > { %27614 = vmatpush3.msra.mxu1 %v35702_v61  ;;  %v18094_v43 = vpop.xlane.xlu0 %18093  ;;  %27615 = vmatprep.mubr.msk.f32.mxu1 %vm28836_vm1, %v35375_v15  ;;  %28598 = vrcp.f32 %v18352_v17  ;;  %v18473_v47 = vsel %vm795_vm2, %v33778_v62, 0.0 }
0x129e   : > { %v18180_v56 = vsub.f32 %v33487_v36, %v18094_v43  ;;  %18468 = vadd.xlane.f32.xlu0 %v18467_v22  ;;  %27623 = vmatprep.subr.mxu1 %v35375_v15  ;;  %v35705_v43 = vld [vmem:[#allocation96_spill] sm:$0xff] }
0x129f   : > { %27621 = vmatmul.mubr.msk.f32.vlgmr.msra.gmra.mrb[246].mxu0 %vm795_vm2, %v18531_v39  ;;  %v35707_v39 = vld [vmem:[#allocation13_spill] sm:$0xff] }
0x12a0   : > { %v33783_v48 = vpop.eup %28590  ;;  %v18296_v34 = vmul.f32 1.442695, %v18180_v56  ;;  %27629 = vmatpush3.msra.mxu0 %v35704_v28  ;;  %v18361_v60 = vpop.xlane.xlu1 %18360  ;;  %27630 = vmatprep.mubr.msk.f32.mxu0 %vm28836_vm1, %v35375_v15 }
0x12a1   : > { %v28593_v26 = vpop.eup %28592  ;;  %v18103_v23 = vpop.xlane.xlu0 %18102  ;;  %v18470_v36 = vsel %vm795_vm2, %v33783_v48, 0.0  ;;  %27638 = vmatprep.subr.mxu0 %v35375_v15 }
0x12a2   : > { %28600 = vpow2.f32 %v18296_v34  ;;  %v18183_v8 = vsub.f32 %v33496_v32, %v18103_v23  ;;  %18474 = vadd.xlane.f32.xlu0 %v18473_v47  ;;  %18471 = vadd.xlane.f32.xlu1 %v18470_v36  ;;  %v18529_v18 = vmul.f32 %v28593_v26, %v33473_v35  ;;  %v35706_v35 = vld [vmem:[#allocation17_spill] sm:$0xff]  ;;  %v35709_v36 = vld [vmem:[#allocation15_spill] sm:$0xff] }
0x12a3   : > { %28602 = vrcp.f32 %v18361_v60  ;;  %v35708_v60 = vld [vmem:[#allocation97_spill] sm:$0xff] }
0x12a4   : > { %v33796_v19 = vpop.eup %28594  ;;  %v18302_v61 = vmul.f32 1.442695, %v18183_v8  ;;  %27616 = vmatmul.mubr.msk.f32.vlgmr.msra.gmra.mrb[234].mxu1 %vm795_vm2, %v18529_v18  ;;  %v18358_v22 = vpop.xlane.xlu1 %18357 }
0x12a5   : > { %v28597_v17 = vpop.eup %28596  ;;  %27624 = vmatpush3.msra.mxu1 %v35705_v43  ;;  %v18100_v56 = vpop.xlane.xlu0 %18099  ;;  %v18479_v32 = vsel %vm795_vm2, %v33796_v19, 0.0  ;;  %27625 = vmatprep.mubr.msk.f32.mxu1 %vm28836_vm1, %v35375_v15 }
0x12a6   : > { %28604 = vpow2.f32 %v18302_v61  ;;  %v18182_v54 = vsub.f32 %v35706_v35, %v18100_v56  ;;  %18480 = vadd.xlane.f32.xlu0 %v18479_v32  ;;  %v18535_v34 = vmul.f32 %v28597_v17, %v35707_v39  ;;  %27633 = vmatprep.subr.mxu1 %v35375_v15  ;;  %v35710_v17 = vld [vmem:[#allocation69_spill] sm:$0xff]  ;;  %v35711_v35 = vld [vmem:[#allocation18_spill] sm:$0xff] }
0x12a7   : > { %28606 = vrcp.f32 %v18358_v22  ;;  %v28599_v26 = vpop.eup %28598 }
0x12a8   : > { %v18300_v28 = vmul.f32 1.442695, %v18182_v54  ;;  %27631 = vmatmul.mubr.msk.f32.vlgmr.msra.gmra.mrb[248].mxu0 %vm795_vm2, %v18535_v34  ;;  %28608 = vrcp.f32 %v18364_v44  ;;  %v18367_v23 = vpop.xlane.xlu1 %18366  ;;  %v18533_v8 = vmul.f32 %v28599_v26, %v35709_v36 }
0x12a9   : > { %27639 = vmatpush3.msra.mxu0 %v35708_v60  ;;  %v18109_v47 = vpop.xlane.xlu0 %18108  ;;  %27640 = vmatprep.mubr.msk.f32.mxu0 %vm28836_vm1, %v35375_v15 }
0x12aa   : > { %28610 = vpow2.f32 %v18300_v28  ;;  %v18185_v18 = vsub.f32 %v33515_v2, %v18109_v47  ;;  %27648 = vmatprep.subr.mxu0 %v35375_v15  ;;  %27626 = vmatmul.mubr.msk.f32.vlgmr.msra.gmra.mrb[236].mxu1 %vm795_vm2, %v18533_v8  ;;  %v35712_v28 = vld [vmem:[#allocation68_spill] sm:$0xff] }
0x12ab   : > { %28612 = vrcp.f32 %v18367_v23  ;;  %27634 = vmatpush3.msra.mxu1 %v35710_v17  ;;  %27635 = vmatprep.mubr.msk.f32.mxu1 %vm28836_vm1, %v35375_v15  ;;  %v35714_v17 = vld [vmem:[#allocation75_spill] sm:$0xff] }
0x12ac   : > { %v33815_v61 = vpop.eup %28600  ;;  %v18306_v44 = vmul.f32 1.442695, %v18185_v18  ;;  %v33820_v22 = vpop.xlane.xlu1 %18111  ;;  %27643 = vmatprep.subr.mxu1 %v35375_v15 }
0x12ad   : > { %v28603_v43 = vpop.eup %28602  ;;  %v18106_v56 = vpop.xlane.xlu0 %18105  ;;  %v18476_v2 = vsel %vm795_vm2, %v33815_v61, 0.0 }
0x12ae   : > { %28614 = vpow2.f32 %v18306_v44  ;;  %v18184_v32 = vsub.f32 %v33526_v30, %v18106_v56  ;;  %18477 = vadd.xlane.f32.xlu1 %v18476_v2  ;;  %v18539_v54 = vmul.f32 %v28603_v43, %v35711_v35  ;;  %v35713_v30 = vld [vmem:[#allocation20_spill] sm:$0xff] }
0x12b0   : > { %v33827_v39 = vpop.eup %28604  ;;  %v18304_v34 = vmul.f32 1.442695, %v18184_v32  ;;  %27641 = vmatmul.mubr.msk.f32.vlgmr.msra.gmra.mrb[250].mxu0 %vm795_vm2, %v18539_v54  ;;  %v33831_v60 = vpop.xlane.xlu1 %18117  ;;  %v35715_v32 = vld [vmem:[#allocation16_spill] sm:$0xff] }
0x12b1   : > { %v28607_v26 = vpop.eup %28606  ;;  %27649 = vmatpush3.msra.mxu0 %v35712_v28  ;;  %v33833_v23 = vpop.xlane.xlu0 %18114  ;;  %v18485_v47 = vsel %vm795_vm2, %v33827_v39, 0.0  ;;  %27650 = vmatprep.mubr.msk.f32.mxu0 %vm28836_vm1, %v35375_v15  ;;  %v35718_v28 = vld [vmem:[#allocation104_spill] sm:$0xff] }
0x12b2   : > { %18486 = vadd.xlane.f32.xlu0 %v18485_v47  ;;  %v18537_v36 = vmul.f32 %v28607_v26, %v35713_v30  ;;  %27658 = vmatprep.subr.mxu0 %v35375_v15  ;;  %v28609_v8 = vpop.eup %28608  ;;  %28616 = vpow2.f32 %v18304_v34  ;;  %v35717_v26 = vld [vmem:[#allocation25_spill] sm:$0xff] }
0x12b3   : > { %v18541_v35 = vmul.f32 %v28609_v8, %v35715_v32 }
0x12b4   : > { %v33841_v18 = vpop.eup %28610  ;;  %27636 = vmatmul.mubr.msk.f32.vlgmr.msra.gmra.mrb[238].mxu1 %vm795_vm2, %v18537_v36  ;;  %v33845_v43 = vpop.xlane.xlu1 %18123 }
0x12b5   : > { %v28613_v44 = vpop.eup %28612  ;;  %27644 = vmatpush3.msra.mxu1 %v35714_v17  ;;  %v33847_v56 = vpop.xlane.xlu0 %18120  ;;  %27645 = vmatprep.mubr.msk.f32.mxu1 %vm28836_vm1, %v35375_v15  ;;  %v18482_v2 = vsel %vm795_vm2, %v33841_v18, 0.0 }
0x12b6   : > { %27653 = vmatprep.subr.mxu1 %v35375_v15  ;;  %18483 = vadd.xlane.f32.xlu1 %v18482_v2  ;;  %v18543_v54 = vmul.f32 %v28613_v44, %v33521_v4 }
0x12b8   : > { %v33856_v34 = vpop.eup %28614  ;;  %27646 = vmatmul.mubr.msk.f32.vlgmr.msra.gmra.mrb[240].mxu1 %vm795_vm2, %v18541_v35  ;;  %27651 = vmatmul.mubr.msk.f32.vlgmr.msra.gmra.mrb[252].mxu0 %vm795_vm2, %v18543_v54  ;;  %v18373_v47 = vpop.xlane.xlu1 %18372 }
0x12b9   : > { %35716 = vst [vmem:[#allocation73_spill] sm:$0xff] %v33856_v34  ;;  %27654 = vmatpush3.msra.mxu1 %v35717_v26  ;;  %27659 = vmatpush3.msra.mxu0 %v35718_v28  ;;  %v33862_v30 = vpop.xlane.xlu0 %18126  ;;  %v18491_v36 = vsel %vm795_vm2, %v33856_v34, 0.0  ;;  %28618 = vrcp.f32 %v18373_v47 }
0x12ba   : > { %18492 = vadd.xlane.f32.xlu0 %v18491_v36  ;;  %27660 = vmatprep.mubr.msk.f32.mxu0 %vm28836_vm1, %v35375_v15 }
0x12bb   : > { %27668 = vmatprep.subr.mxu0 %v35375_v15  ;;  %27655 = vmatprep.mubr.msk.f32.mxu1 %vm28836_vm1, %v35375_v15 }
0x12bc   : > { %27663 = vmatprep.subr.mxu1 %v35375_v15  ;;  %v33872_v4 = vpop.eup %28616  ;;  %v18379_v8 = vpop.xlane.xlu1 %18378 }
0x12bd   : > { %35719 = vst [vmem:[#allocation23_spill] sm:$0xff] %v33872_v4  ;;  %v18370_v44 = vpop.xlane.xlu0 %18369  ;;  %v18488_v17 = vsel %vm795_vm2, %v33872_v4, 0.0  ;;  %28620 = vrcp.f32 %v18379_v8  ;;  %v35720_v8 = vld [vmem:[#allocation105_spill] sm:$0xff] }
0x12be   : > { %18489 = vadd.xlane.f32.xlu1 %v18488_v17  ;;  %28622 = vrcp.f32 %v18370_v44 }
0x12c0   : > { %v18382_v2 = vpop.xlane.xlu1 %18381 }
0x12c1   : > { %v18376_v32 = vpop.xlane.xlu0 %18375 }
0x12c2   : > { %28624 = vrcp.f32 %v18376_v32  ;;  %v35722_v32 = vld [vmem:[#allocation29_spill] sm:$0xff] }
0x12c3   : > { %v28619_v26 = vpop.eup %28618  ;;  %28626 = vrcp.f32 %v18382_v2 }
0x12c4   : > { %v18388_v35 = vpop.xlane.xlu1 %18387  ;;  %v18547_v28 = vmul.f32 %v28619_v26, %v33565_v27 }
0x12c5   : > { %v18385_v54 = vpop.xlane.xlu0 %18384 }
0x12c6   : > { %28628 = vrcp.f32 %v18385_v54  ;;  %27661 = vmatmul.mubr.msk.f32.vlgmr.msra.gmra.mrb[254].mxu0 %vm795_vm2, %v18547_v28  ;;  %v35724_v54 = vld [vmem:[#allocation59_spill] sm:$0xff] }
0x12c7   : > { %v28621_v47 = vpop.eup %28620  ;;  %28630 = vrcp.f32 %v18388_v35  ;;  %27669 = vmatpush3.msra.mxu0 %v35720_v8  ;;  %27670 = vmatprep.mubr.msk.f32.mxu0 %vm28836_vm1, %v35375_v15  ;;  %v35725_v28 = vld [vmem:[#allocation39_spill] sm:$0xff] }
0x12c8   : > { %v28623_v34 = vpop.eup %28622  ;;  %v18551_v4 = vmul.f32 %v28621_v47, %v33574_v20  ;;  %v18394_v44 = vpop.xlane.xlu1 %18393  ;;  %27678 = vmatprep.subr.mxu0 %v35375_v15  ;;  %v35721_v20 = vld [vmem:[#allocation31_spill] sm:$0xff] }
0x12c9   : > { %v18391_v36 = vpop.xlane.xlu0 %18390  ;;  %v18545_v17 = vmul.f32 %v28623_v34, %v33568_v31  ;;  %v35723_v34 = vld [vmem:[#allocation61_spill] sm:$0xff] }
0x12ca   : > { %28632 = vrcp.f32 %v18391_v36  ;;  %27671 = vmatmul.mubr.msk.f32.vlgmr.msra.gmra.mrb[0].mxu0 %vm795_vm2, %v18551_v4 }
0x12cb   : > { %28634 = vrcp.f32 %v18394_v44  ;;  %27656 = vmatmul.mubr.msk.f32.vlgmr.msra.gmra.mrb[242].mxu1 %vm795_vm2, %v18545_v17  ;;  %27679 = vmatpush3.msra.mxu0 %v35722_v32  ;;  %v35726_v44 = vld [vmem:[#allocation60_spill] sm:$0xff]  ;;  %v35727_v17 = vld [vmem:[#allocation63_spill] sm:$0xff] }
0x12cc   : > { %v28625_v27 = vpop.eup %28624  ;;  %27664 = vmatpush3.msra.mxu1 %v35721_v20  ;;  %27665 = vmatprep.mubr.msk.f32.mxu1 %vm28836_vm1, %v35375_v15 }
0x12cd   : > { %v18397_v2 = vpop.xlane.xlu0 %18396  ;;  %v18549_v35 = vmul.f32 %v28625_v27, %v33576_v0  ;;  %27673 = vmatprep.subr.mxu1 %v35375_v15  ;;  %v28627_v31 = vpop.eup %28626  ;;  %27680 = vmatprep.mubr.msk.f32.mxu0 %vm28836_vm1, %v35375_v15 }
0x12ce   : > { %28636 = vrcp.f32 %v18397_v2  ;;  %27688 = vmatprep.subr.mxu0 %v35375_v15  ;;  %v18553_v47 = vmul.f32 %v28627_v31, %v33582_v10  ;;  %v35729_v31 = vld [vmem:[#allocation28_spill] sm:$0xff] }
0x12cf   : > { %22060 = vrot.lane.b32.xlu1 %v35723_v34, %s28837_s22  ;;  %27666 = vmatmul.mubr.msk.f32.vlgmr.msra.gmra.mrb[244].mxu1 %vm795_vm2, %v18549_v35  ;;  %v35728_v35 = vld [vmem:[#allocation79_spill] sm:$0xff] }
0x12d0   : > { %21984 = vrot.lane.b32.xlu0 %v35724_v54, %s28837_s22  ;;  %v28629_v4 = vpop.eup %28628  ;;  %27674 = vmatpush3.msra.mxu1 %v35725_v28  ;;  %v18186_v54 = vsub.f32 %v33528_v63, %v33820_v22 }
0x12d1   : > { %v18403_v26 = vpop.xlane.xlu0 %18402  ;;  %v18555_v0 = vmul.f32 %v28629_v4, %v33585_v52  ;;  %27675 = vmatprep.mubr.msk.f32.mxu1 %vm28836_vm1, %v35375_v15  ;;  %27683 = vmatprep.subr.mxu1 %v35375_v15  ;;  %v28631_v36 = vpop.eup %28630  ;;  %v35731_v4 = vld [vmem:[#allocation56_spill] sm:$0xff] }
0x12d2   : > { %28638 = vrcp.f32 %v18403_v26  ;;  %v18557_v10 = vmul.f32 %v28631_v36, %v33591_v24  ;;  %v18308_v63 = vmul.f32 1.442695, %v18186_v54  ;;  %v35736_v54 = vld [vmem:[#allocation101_spill] sm:$0xff] }
0x12d3   : > { %27681 = vmatmul.mubr.msk.f32.vlgmr.msra.gmra.mrb[2].mxu0 %vm795_vm2, %v18555_v0  ;;  %27676 = vmatmul.mubr.msk.f32.vlgmr.msra.gmra.mrb[246].mxu1 %vm795_vm2, %v18553_v47  ;;  %v35733_v0 = vld [vmem:[#allocation46_spill] sm:$0xff] }
0x12d4   : > { %v28633_v8 = vpop.eup %28632  ;;  %27689 = vmatpush3.msra.mxu0 %v35726_v44  ;;  %27684 = vmatpush3.msra.mxu1 %v35727_v17  ;;  %v35734_v17 = vld [vmem:[#allocation65_spill] sm:$0xff] }
0x12d5   : > { %v18559_v52 = vmul.f32 %v28633_v8, %v33593_v14  ;;  %27685 = vmatprep.mubr.msk.f32.mxu1 %vm28836_vm1, %v35375_v15  ;;  %v18400_v27 = vpop.xlane.xlu1 %18399  ;;  %v28635_v2 = vpop.eup %28634  ;;  %27690 = vmatprep.mubr.msk.f32.mxu0 %vm28836_vm1, %v35375_v15  ;;  %v18187_v14 = vsub.f32 %v33537_v41, %v33833_v23  ;;  %v35730_v23 = vld [vmem:[#allocation33_spill] sm:$0xff] }
0x12d6   : > { %27693 = vmatprep.subr.mxu1 %v35375_v15  ;;  %28640 = vrcp.f32 %v18400_v27  ;;  %27698 = vmatprep.subr.mxu0 %v35375_v15  ;;  %v18561_v24 = vmul.f32 %v28635_v2, %v33599_v33 }
0x12d7   : > { %27691 = vmatmul.mubr.msk.f32.vlgmr.msra.gmra.mrb[4].mxu0 %vm795_vm2, %v18559_v52  ;;  %27686 = vmatmul.mubr.msk.f32.vlgmr.msra.gmra.mrb[248].mxu1 %vm795_vm2, %v18557_v10  ;;  %v18310_v41 = vmul.f32 1.442695, %v18187_v14 }
0x12d8   : > { %v28637_v20 = vpop.eup %28636  ;;  %27699 = vmatpush3.msra.mxu0 %v35728_v35  ;;  %27694 = vmatpush3.msra.mxu1 %v35729_v31 }
0x12d9   : > { %v18563_v32 = vmul.f32 %v28637_v20, %v33606_v13  ;;  %27695 = vmatprep.mubr.msk.f32.mxu1 %vm28836_vm1, %v35375_v15  ;;  %27700 = vmatprep.mubr.msk.f32.mxu0 %vm28836_vm1, %v35375_v15  ;;  %28642 = vpow2.f32 %v18310_v41 }
0x12da   : > { %27703 = vmatprep.subr.mxu1 %v35375_v15  ;;  %27708 = vmatprep.subr.mxu0 %v35375_v15 }
0x12db   : > { %27701 = vmatmul.mubr.msk.f32.vlgmr.msra.gmra.mrb[6].mxu0 %vm795_vm2, %v18563_v32  ;;  %27696 = vmatmul.mubr.msk.f32.vlgmr.msra.gmra.mrb[250].mxu1 %vm795_vm2, %v18561_v24 }
0x12dc   : > { %v28639_v34 = vpop.eup %28638  ;;  %27709 = vmatpush3.msra.mxu0 %v35730_v23  ;;  %27704 = vmatpush3.msra.mxu1 %v35731_v4 }
0x12dd   : > { %v18567_v13 = vmul.f32 %v28639_v34, %v33610_v5  ;;  %27710 = vmatprep.mubr.msk.f32.mxu0 %vm28836_vm1, %v35375_v15  ;;  %27718 = vmatprep.subr.mxu0 %v35375_v15  ;;  %v35732_v5 = vld [vmem:[#allocation58_spill] sm:$0xff] }
0x12de   : > { %27705 = vmatprep.mubr.msk.f32.mxu1 %vm28836_vm1, %v35375_v15  ;;  %27713 = vmatprep.subr.mxu1 %v35375_v15 }
0x12df   : > { %27711 = vmatmul.mubr.msk.f32.vlgmr.msra.gmra.mrb[8].mxu0 %vm795_vm2, %v18567_v13 }
0x12e0   : > { %v28641_v33 = vpop.eup %28640  ;;  %27719 = vmatpush3.msra.mxu0 %v35732_v5  ;;  %27720 = vmatprep.mubr.msk.f32.mxu0 %vm28836_vm1, %v35375_v15  ;;  %v35737_v5 = vld [vmem:[#allocation102_spill] sm:$0xff] }
0x12e1   : > { %v18565_v22 = vmul.f32 %v28641_v33, %v33615_v58  ;;  %27728 = vmatprep.subr.mxu0 %v35375_v15 }
0x12e2   : > { %v18409_v26 = vpop.xlane.xlu0 %18408 }
0x12e3   : > { %28644 = vrcp.f32 %v18409_v26  ;;  %27706 = vmatmul.mubr.msk.f32.vlgmr.msra.gmra.mrb[252].mxu1 %vm795_vm2, %v18565_v22  ;;  %v33956_v47 = vpop.eup %28642  ;;  %v35739_v26 = vld [vmem:[#allocation24_spill] sm:$0xff] }
0x12e4   : > { %27714 = vmatpush3.msra.mxu1 %v35733_v0  ;;  %27715 = vmatprep.mubr.msk.f32.mxu1 %vm28836_vm1, %v35375_v15  ;;  %28646 = vpow2.f32 %v18308_v63  ;;  %v18497_v58 = vsel %vm795_vm2, %v33956_v47, 0.0  ;;  %v35738_v63 = vld [vmem:[#allocation32_spill] sm:$0xff]  ;;  %v35740_v0 = vld [vmem:[#allocation103_spill] sm:$0xff] }
0x12e5   : > { %v18406_v28 = vpop.xlane.xlu1 %18405  ;;  %27723 = vmatprep.subr.mxu1 %v35375_v15 }
0x12e6   : > { %28648 = vrcp.f32 %v18406_v28 }
0x12ed   : > { %v28645_v36 = vpop.eup %28644 }
0x12ee   : > { %v18571_v8 = vmul.f32 %v28645_v36, %v33620_v21  ;;  %v33961_v44 = vpop.eup %28646  ;;  %v35735_v21 = vld [vmem:[#allocation6_spill] sm:$0xff] }
0x12ef   : > { %18498 = vadd.xlane.f32.xlu0 %v18497_v58  ;;  %v18494_v2 = vsel %vm795_vm2, %v33961_v44, 0.0 }
0x12f0   : > { %v28649_v52 = vpop.eup %28648  ;;  %27721 = vmatmul.mubr.msk.f32.vlgmr.msra.gmra.mrb[10].mxu0 %vm795_vm2, %v18571_v8 }
0x12f1   : > { %27729 = vmatpush3.msra.mxu0 %v35734_v17  ;;  %v18569_v27 = vmul.f32 %v28649_v52, %v33625_v3  ;;  %27730 = vmatprep.mubr.msk.f32.mxu0 %vm28836_vm1, %v35375_v15  ;;  %v35742_v52 = vld [vmem:[#allocation44_spill] sm:$0xff] }
0x12f2   : > { %v18415_v10 = vpop.xlane.xlu0 %18414  ;;  %27738 = vmatprep.subr.mxu0 %v35375_v15 }
0x12f3   : > { %18495 = vadd.xlane.f32.xlu1 %v18494_v2  ;;  %28650 = vrcp.f32 %v18415_v10  ;;  %27716 = vmatmul.mubr.msk.f32.vlgmr.msra.gmra.mrb[254].mxu1 %vm795_vm2, %v18569_v27  ;;  %v18189_v2 = vsub.f32 %v33548_v9, %v33847_v56  ;;  %v35743_v10 = vld [vmem:[#allocation54_spill] sm:$0xff] }
0x12f4   : > { %27724 = vmatpush3.msra.mxu1 %v35735_v21  ;;  %27725 = vmatprep.mubr.msk.f32.mxu1 %vm28836_vm1, %v35375_v15 }
0x12f5   : > { %v18412_v20 = vpop.xlane.xlu1 %18411  ;;  %27733 = vmatprep.subr.mxu1 %v35375_v15  ;;  %v18314_v56 = vmul.f32 1.442695, %v18189_v2 }
0x12f6   : > { %28652 = vrcp.f32 %v18412_v20  ;;  %v18421_v3 = vpop.xlane.xlu0 %18420 }
0x12f7   : > { %28654 = vrcp.f32 %v18421_v3 }
0x12f9   : > { %v18418_v14 = vpop.xlane.xlu1 %18417 }
0x12fa   : > { %28656 = vrcp.f32 %v18418_v14  ;;  %v18427_v32 = vpop.xlane.xlu0 %18426 }
0x12fb   : > { %28658 = vrcp.f32 %v18427_v32  ;;  %v35745_v32 = vld [vmem:[#allocation76_spill] sm:$0xff] }
0x12fd   : > { %v28651_v35 = vpop.eup %28650 }
0x12fe   : > { %v18575_v31 = vmul.f32 %v28651_v35, %v33635_v42  ;;  %v18433_v24 = vpop.xlane.xlu0 %18432 }
0x12ff   : > { %v18424_v34 = vpop.xlane.xlu1 %18423  ;;  %28660 = vrcp.f32 %v18433_v24  ;;  %v35746_v24 = vld [vmem:[#allocation35_spill] sm:$0xff] }
0x1300   : > { %v28653_v41 = vpop.eup %28652  ;;  %28662 = vrcp.f32 %v18424_v34  ;;  %27731 = vmatmul.mubr.msk.f32.vlgmr.msra.gmra.mrb[12].mxu0 %vm795_vm2, %v18575_v31 }
0x1301   : > { %v28655_v13 = vpop.eup %28654  ;;  %v18573_v23 = vmul.f32 %v28653_v41, %v33640_v12  ;;  %27739 = vmatpush3.msra.mxu0 %v35736_v54  ;;  %27740 = vmatprep.mubr.msk.f32.mxu0 %vm28836_vm1, %v35375_v15  ;;  %v35748_v41 = vld [vmem:[#allocation64_spill] sm:$0xff] }
0x1302   : > { %v18579_v4 = vmul.f32 %v28655_v13, %v33642_v40  ;;  %27748 = vmatprep.subr.mxu0 %v35375_v15 }
0x1303   : > { %v18430_v42 = vpop.xlane.xlu1 %18429  ;;  %27726 = vmatmul.mubr.msk.f32.vlgmr.msra.gmra.mrb[0].mxu1 %vm795_vm2, %v18573_v23 }
0x1304   : > { %v28657_v33 = vpop.eup %28656  ;;  %28664 = vrcp.f32 %v18430_v42  ;;  %22212 = vrot.lane.b32.xlu1 %v35737_v5, %s28837_s22  ;;  %27734 = vmatpush3.msra.mxu1 %v35739_v26  ;;  %v35749_v42 = vld [vmem:[#allocation42_spill] sm:$0xff] }
0x1305   : > { %22136 = vrot.lane.b32.xlu0 %v35738_v63, %s28837_s22  ;;  %v28659_v12 = vpop.eup %28658  ;;  %v18577_v22 = vmul.f32 %v28657_v33, %v33650_v50  ;;  %27741 = vmatmul.mubr.msk.f32.vlgmr.msra.gmra.mrb[14].mxu0 %vm795_vm2, %v18579_v4 }
0x1306   : > { %v18583_v40 = vmul.f32 %v28659_v12, %v33652_v11  ;;  %27749 = vmatpush3.msra.mxu0 %v35740_v0  ;;  %v18439_v28 = vpop.xlane.xlu0 %18438  ;;  %27735 = vmatprep.mubr.msk.f32.mxu1 %vm28836_vm1, %v35375_v15  ;;  %v35741_v11 = vld [vmem:[#allocation38_spill] sm:$0xff] }
0x1307   : > { %v18436_v36 = vpop.xlane.xlu1 %18435  ;;  %28666 = vrcp.f32 %v18439_v28  ;;  %27743 = vmatprep.subr.mxu1 %v35375_v15  ;;  %27750 = vmatprep.mubr.msk.f32.mxu0 %vm28836_vm1, %v35375_v15 }
0x1308   : > { %28668 = vrcp.f32 %v18436_v36  ;;  %27758 = vmatprep.subr.mxu0 %v35375_v15  ;;  %27736 = vmatmul.mubr.msk.f32.vlgmr.msra.gmra.mrb[2].mxu1 %vm795_vm2, %v18577_v22  ;;  %v35750_v36 = vld [vmem:[#allocation84_spill] sm:$0xff] }
0x1309   : > { %v28661_v50 = vpop.eup %28660  ;;  %27744 = vmatpush3.msra.mxu1 %v35741_v11  ;;  %27751 = vmatmul.mubr.msk.f32.vlgmr.msra.gmra.mrb[16].mxu0 %vm795_vm2, %v18583_v40 }
0x130a   : > { %v28663_v58 = vpop.eup %28662  ;;  %v18587_v8 = vmul.f32 %v28661_v50, %v33659_v1  ;;  %27759 = vmatpush3.msra.mxu0 %v35742_v52  ;;  %27745 = vmatprep.mubr.msk.f32.mxu1 %vm28836_vm1, %v35375_v15  ;;  %v35751_v50 = vld [vmem:[#allocation87_spill] sm:$0xff] }
0x130b   : > { %v18581_v17 = vmul.f32 %v28663_v58, %v33661_v37  ;;  %v18442_v27 = vpop.xlane.xlu1 %18441  ;;  %27753 = vmatprep.subr.mxu1 %v35375_v15  ;;  %27760 = vmatprep.mubr.msk.f32.mxu0 %vm28836_vm1, %v35375_v15  ;;  %v35744_v37 = vld [vmem:[#allocation55_spill] sm:$0xff] }
0x130c   : > { %28670 = vrcp.f32 %v18442_v27  ;;  %27768 = vmatprep.subr.mxu0 %v35375_v15 }
0x130d   : > { %27746 = vmatmul.mubr.msk.f32.vlgmr.msra.gmra.mrb[4].mxu1 %vm795_vm2, %v18581_v17  ;;  %27761 = vmatmul.mubr.msk.f32.vlgmr.msra.gmra.mrb[18].mxu0 %vm795_vm2, %v18587_v8  ;;  %v35752_v8 = vld [vmem:[#allocation49_spill] sm:$0xff] }
0x130e   : > { %v28665_v1 = vpop.eup %28664  ;;  %27754 = vmatpush3.msra.mxu1 %v35743_v10  ;;  %27769 = vmatpush3.msra.mxu0 %v35744_v37  ;;  %v18191_v52 = vsub.f32 %v35752_v8, %v33862_v30  ;;  %v35753_v37 = vld [vmem:[#allocation19_spill] sm:$0xff] }
0x130f   : > { %v18585_v21 = vmul.f32 %v28665_v1, %v33669_v59  ;;  %v18448_v20 = vpop.xlane.xlu1 %18447  ;;  %27755 = vmatprep.mubr.msk.f32.mxu1 %vm28836_vm1, %v35375_v15  ;;  %27763 = vmatprep.subr.mxu1 %v35375_v15  ;;  %v18188_v59 = vsub.f32 %v33539_v49, %v33831_v60  ;;  %v35747_v60 = vld [vmem:[#allocation34_spill] sm:$0xff] }
0x1310   : > { %28672 = vrcp.f32 %v18448_v20  ;;  %27770 = vmatprep.mubr.msk.f32.mxu0 %vm28836_vm1, %v35375_v15  ;;  %27778 = vmatprep.subr.mxu0 %v35375_v15  ;;  %v18318_v2 = vmul.f32 1.442695, %v18191_v52 }
0x1311   : > { %v28667_v9 = vpop.eup %28666  ;;  %27756 = vmatmul.mubr.msk.f32.vlgmr.msra.gmra.mrb[6].mxu1 %vm795_vm2, %v18585_v21  ;;  %v18190_v21 = vsub.f32 %v35753_v37, %v33845_v43 }
0x1312   : > { %v28669_v3 = vpop.eup %28668  ;;  %v18591_v14 = vmul.f32 %v28667_v9, %v33679_v25  ;;  %27764 = vmatpush3.msra.mxu1 %v35745_v32  ;;  %v18445_v35 = vpop.xlane.xlu0 %18444  ;;  %27765 = vmatprep.mubr.msk.f32.mxu1 %vm28836_vm1, %v35375_v15  ;;  %v18312_v25 = vmul.f32 1.442695, %v18188_v59 }
0x1313   : > { %v18589_v31 = vmul.f32 %v28669_v3, %v33681_v16  ;;  %28674 = vrcp.f32 %v18445_v35  ;;  %27773 = vmatprep.subr.mxu1 %v35375_v15  ;;  %v18316_v59 = vmul.f32 1.442695, %v18190_v21  ;;  %v35760_v21 = vld [vmem:[#allocation43_spill] sm:$0xff] }
0x1314   : > { %27771 = vmatmul.mubr.msk.f32.vlgmr.msra.gmra.mrb[20].mxu0 %vm795_vm2, %v18591_v14  ;;  %28676 = vpow2.f32 %v18314_v56 }
0x1315   : > { %27766 = vmatmul.mubr.msk.f32.vlgmr.msra.gmra.mrb[8].mxu1 %vm795_vm2, %v18589_v31  ;;  %27779 = vmatpush3.msra.mxu0 %v35746_v24  ;;  %28678 = vpow2.f32 %v18312_v25 }
0x1316   : > { %v28671_v49 = vpop.eup %28670  ;;  %27774 = vmatpush3.msra.mxu1 %v35747_v60  ;;  %27775 = vmatprep.mubr.msk.f32.mxu1 %vm28836_vm1, %v35375_v15 }
0x1317   : > { %v18593_v34 = vmul.f32 %v28671_v49, %v33689_v6  ;;  %27783 = vmatprep.subr.mxu1 %v35375_v15  ;;  %27780 = vmatprep.mubr.msk.f32.mxu0 %vm28836_vm1, %v35375_v15  ;;  %v18454_v40 = vpop.xlane.xlu1 %18453 }
0x1318   : > { %27788 = vmatprep.subr.mxu0 %v35375_v15 }
0x1319   : > { %27776 = vmatmul.mubr.msk.f32.vlgmr.msra.gmra.mrb[10].mxu1 %vm795_vm2, %v18593_v34 }
0x131a   : > { %v28673_v16 = vpop.eup %28672  ;;  %27784 = vmatpush3.msra.mxu1 %v35748_v41  ;;  %27785 = vmatprep.mubr.msk.f32.mxu1 %vm28836_vm1, %v35375_v15 }
0x131b   : > { %v18597_v13 = vmul.f32 %v28673_v16, %v33700_v57  ;;  %27793 = vmatprep.subr.mxu1 %v35375_v15 }
0x131d   : > { %v28675_v6 = vpop.eup %28674  ;;  %27786 = vmatmul.mubr.msk.f32.vlgmr.msra.gmra.mrb[12].mxu1 %vm795_vm2, %v18597_v13 }
0x131e   : > { %v18595_v23 = vmul.f32 %v28675_v6, %v33711_v29  ;;  %v18451_v54 = vpop.xlane.xlu0 %18450  ;;  %27795 = vmatprep.mubr.msk.f32.mxu1 %vm28836_vm1, %v35375_v15  ;;  %v34055_v4 = vpop.eup %28676 }
0x131f   : > { %28680 = vrcp.f32 %v18451_v54  ;;  %v18503_v57 = vsel %vm795_vm2, %v34055_v4, 0.0  ;;  %v34064_v29 = vpop.eup %28678  ;;  %v18460_v0 = vpop.xlane.xlu1 %18459 }
0x1320   : > { %27781 = vmatmul.mubr.msk.f32.vlgmr.msra.gmra.mrb[22].mxu0 %vm795_vm2, %v18595_v23  ;;  %v18500_v5 = vsel %vm795_vm2, %v34064_v29, 0.0  ;;  %28682 = vrcp.f32 %v18454_v40 }
0x1321   : > { %27789 = vmatpush3.msra.mxu0 %v35749_v42  ;;  %27790 = vmatprep.mubr.msk.f32.mxu0 %vm28836_vm1, %v35375_v15 }
0x1322   : > { %27798 = vmatprep.subr.mxu0 %v35375_v15  ;;  %v18457_v33 = vpop.xlane.xlu0 %18456 }
0x1323   : > { %28684 = vrcp.f32 %v18457_v33 }
0x1324   : > { %18504 = vadd.xlane.f32.xlu0 %v18503_v57  ;;  %28686 = vpow2.f32 %v18318_v2  ;;  %v35758_v2 = vld [vmem:[#allocation107_spill] sm:$0xff] }
0x1325   : > { %28688 = vpow2.f32 %v18316_v59 }
0x1326   : > { %v34069_v22 = vpop.xlane.xlu0 %18462  ;;  %28690 = vrcp.f32 %v18460_v0 }
0x1327   : > { %28692 = vrcp.f32 %v34069_v22  ;;  %v35763_v22 = vld [vmem:[#allocation53_spill] sm:$0xff] }
0x1328   : > { %18501 = vadd.xlane.f32.xlu1 %v18500_v5  ;;  %v35754_v5 = vld [vmem:[#allocation88_spill] sm:$0xff] }
0x1329   : > { %v28681_v63 = vpop.eup %28680 }
0x132a   : > { %v18599_v12 = vmul.f32 %v28681_v63, %v33737_v7  ;;  %v34082_v7 = vpop.xlane.xlu1 %18465  ;;  %v28683_v10 = vpop.eup %28682  ;;  %v35755_v63 = vld [vmem:[#allocation89_spill] sm:$0xff] }
0x132b   : > { %v34074_v26 = vpop.xlane.xlu0 %18468  ;;  %v18601_v30 = vmul.f32 %v28683_v10, %v33717_v53  ;;  %v35759_v10 = vld [vmem:[#allocation92_spill] sm:$0xff]  ;;  %28694 = vrcp.f32 %v34082_v7 }
0x132c   : > { %27791 = vmatmul.mubr.msk.f32.vlgmr.msra.gmra.mrb[24].mxu0 %vm795_vm2, %v18599_v12  ;;  %28696 = vrcp.f32 %v34074_v26 }
0x132d   : > { %27800 = vmatprep.mubr.msk.f32.mxu0 %vm28836_vm1, %v35375_v15  ;;  %v28685_v32 = vpop.eup %28684 }
0x132e   : > { %v18603_v43 = vmul.f32 %v28685_v32, %v33735_v38  ;;  %v34118_v25 = vpop.eup %28686 }
0x132f   : > { %v34076_v28 = vpop.xlane.xlu0 %18474  ;;  %v34086_v58 = vpop.xlane.xlu1 %18471  ;;  %v18509_v38 = vsel %vm795_vm2, %v34118_v25, 0.0 }
0x1330   : > { %v34122_v60 = vpop.eup %28688  ;;  %28698 = vrcp.f32 %v34086_v58 }
0x1331   : > { %v18506_v41 = vsel %vm795_vm2, %v34122_v60, 0.0  ;;  %v28691_v59 = vpop.eup %28690  ;;  %28700 = vrcp.f32 %v34076_v28 }
0x1333   : > { %v34084_v11 = vpop.xlane.xlu0 %18480 }
0x1334   : > { %28702 = vrcp.f32 %v34084_v11 }
0x1339   : > { %22364 = vrot.lane.b32.xlu1 %v35750_v36, %s28837_s22  ;;  %v35756_v36 = vld [vmem:[#allocation91_spill] sm:$0xff] }
0x133a   : > { %22288 = vrot.lane.b32.xlu0 %v35751_v50, %s28837_s22  ;;  %v35757_v50 = vld [vmem:[#allocation90_spill] sm:$0xff] }
0x133b   : > { %v34092_v27 = vpop.xlane.xlu1 %18477 }
0x133c   : > { %28704 = vrcp.f32 %v34092_v27 }
0x133f   : > { %v34090_v17 = vpop.xlane.xlu0 %18486 }
0x1343   : > { %v34098_v20 = vpop.xlane.xlu1 %18483 }
0x1344   : > { %28706 = vrcp.f32 %v34098_v20 }
0x1345   : > { %28708 = vrcp.f32 %v34090_v17 }
0x1347   : > { %v34094_v1 = vpop.xlane.xlu0 %18492  ;;  %v34100_v9 = vpop.f32.mrb[238].mxu0 }
0x1348   : > { %v27582_v56 = vpop.f32.mrb[239].mxu0 }
0x1349   : > { %v35761_v56 = vld [vmem:[#allocation45_spill] sm:$0xff] }
0x134b   : > { %v21985_v3 = vpop.permute.xlu0 %21984  ;;  %v34103_v14 = vpop.xlane.xlu1 %18489 }
0x134c   : > { %27794 = vmatpush3.msra.mxu1 %v21985_v3  ;;  %28710 = vrcp.f32 %v34103_v14 }
0x134d   : > { %27796 = vmatmul.mubr.msk.f32.vlgmr.msra.gmra.mrb[14].mxu1 %vm795_vm2, %v18601_v30  ;;  %27803 = vmatprep.subr.mxu1 %v35375_v15  ;;  %28712 = vrcp.f32 %v34094_v1 }
0x134e   : > { %27805 = vmatprep.mubr.msk.f32.mxu1 %vm28836_vm1, %v35375_v15 }
0x134f   : > { %v34110_v35 = vpop.f32.mrb[226].mxu1  ;;  %v22061_v31 = vpop.permute.xlu1 %22060 }
0x1350   : > { %v27577_v53 = vpop.f32.mrb[227].mxu1  ;;  %27799 = vmatpush3.msra.mxu0 %v22061_v31 }
0x1351   : > { %27801 = vmatmul.mubr.msk.f32.vlgmr.msra.gmra.mrb[26].mxu0 %vm795_vm2, %v18603_v43  ;;  %27808 = vmatprep.subr.mxu0 %v35375_v15  ;;  %v35762_v43 = vld [vmem:[#allocation52_spill] sm:$0xff]  ;;  %v18605_v53 = vmul.f32 %v28691_v59, %v33739_v46 }
0x1352   : > { %v34114_v24 = vpop.f32.mrb[240].mxu0  ;;  %27810 = vmatprep.mubr.msk.f32.mxu0 %vm28836_vm1, %v35375_v15 }
0x1353   : > { %v27592_v49 = vpop.f32.mrb[241].mxu0 }
0x1359   : > { %18510 = vadd.xlane.f32.xlu0 %v18509_v38 }
0x135a   : > { %v34124_v34 = vpop.f32.mrb[228].mxu1 }
0x135b   : > { %v27587_v16 = vpop.f32.mrb[229].mxu1 }
0x135c   : > { %v28693_v16 = vpop.eup %28692 }
0x135d   : > { %18507 = vadd.xlane.f32.xlu1 %v18506_v41  ;;  %v18607_v46 = vmul.f32 %v28693_v16, %v33750_v55 }
0x135f   : > { %v34128_v13 = vpop.f32.mrb[242].mxu0 }
0x1360   : > { %v27602_v6 = vpop.f32.mrb[243].mxu0 }
0x1361   : > { %v35764_v6 = vld [vmem:[#allocation100_spill] sm:$0xff] }
0x1367   : > { %v34130_v23 = vpop.f32.mrb[230].mxu1 }
0x1368   : > { %v27597_v54 = vpop.f32.mrb[231].mxu1 }
0x1369   : > { %v35765_v54 = vld [vmem:[#allocation98_spill] sm:$0xff] }
0x136a   : > { %v34132_v42 = vpop.f32.mrb[244].mxu0 }
0x136b   : > { %v27612_v57 = vpop.f32.mrb[245].mxu0 }
0x136e   : > { %22516 = vrot.lane.b32.xlu1 %v35754_v5, %s28837_s22 }
0x136f   : > { %v34134_v33 = vpop.f32.mrb[232].mxu1  ;;  %22440 = vrot.lane.b32.xlu0 %v35755_v63, %s28837_s22 }
0x1370   : > { %v27607_v12 = vpop.f32.mrb[233].mxu1 }
0x1371   : > { %v35766_v12 = vld [vmem:[#allocation77_spill] sm:$0xff] }
0x1372   : > { %v34140_v40 = vpop.f32.mrb[246].mxu0  ;;  %22592 = vrot.lane.b32.xlu1 %v35756_v36, %s28837_s22 }
0x1373   : > { %22668 = vrot.lane.b32.xlu0 %v35757_v50, %s28837_s22  ;;  %v27622_v8 = vpop.f32.mrb[247].mxu0  ;;  %v35767_v50 = vld [vmem:[#allocation99_spill] sm:$0xff] }
0x1376   : > { %22744 = vrot.lane.b32.xlu1 %v35758_v2, %s28837_s22 }
0x1377   : > { %v34146_v52 = vpop.f32.mrb[234].mxu1  ;;  %22820 = vrot.lane.b32.xlu0 %v35759_v10, %s28837_s22 }
0x1378   : > { %v27617_v0 = vpop.f32.mrb[235].mxu1 }
0x137a   : > { %22896 = vrot.lane.b32.xlu1 %v35760_v21, %s28837_s22 }
0x137b   : > { %v34153_v37 = vpop.f32.mrb[248].mxu0  ;;  %22972 = vrot.lane.b32.xlu0 %v35761_v56, %s28837_s22 }
0x137c   : > { %v27632_v30 = vpop.f32.mrb[249].mxu0  ;;  %v34159_v3 = vpop.xlane.xlu0 %18498 }
0x137d   : > { %v34161_v32 = vpop.f32.mrb[236].mxu1 }
0x137e   : > { %23048 = vrot.lane.b32.xlu1 %v35762_v43, %s28837_s22  ;;  %v27627_v31 = vpop.f32.mrb[237].mxu1 }
0x137f   : > { %23124 = vrot.lane.b32.xlu0 %v35763_v22, %s28837_s22 }
0x1380   : > { %v22137_v49 = vpop.permute.xlu0 %22136  ;;  %v34168_v38 = vpop.xlane.xlu1 %18495 }
0x1381   : > { %27804 = vmatpush3.msra.mxu1 %v22137_v49  ;;  %28714 = vrcp.f32 %v34168_v38 }
0x1382   : > { %27806 = vmatmul.mubr.msk.f32.vlgmr.msra.gmra.mrb[16].mxu1 %vm795_vm2, %v18605_v53  ;;  %27813 = vmatprep.subr.mxu1 %v35375_v15  ;;  %28716 = vrcp.f32 %v34159_v3 }
0x1383   : > { %v34172_v41 = vpop.f32.mrb[250].mxu0  ;;  %23200 = vrot.lane.b32.xlu1 %v35764_v6, %s28837_s22  ;;  %23276 = vrot.lane.b32.xlu0 %v35765_v54, %s28837_s22 }
0x1384   : > { %v27642_v57 = vpop.f32.mrb[251].mxu0  ;;  %27815 = vmatprep.mubr.msk.f32.mxu1 %vm28836_vm1, %v35375_v15  ;;  %v22213_v5 = vpop.permute.xlu1 %22212 }
0x1385   : > { %27809 = vmatpush3.msra.mxu0 %v22213_v5 }
0x1386   : > { %27811 = vmatmul.mubr.msk.f32.vlgmr.msra.gmra.mrb[28].mxu0 %vm795_vm2, %v18607_v46  ;;  %27818 = vmatprep.subr.mxu0 %v35375_v15 }
0x1387   : > { %v34181_v63 = vpop.f32.mrb[238].mxu1  ;;  %23352 = vrot.lane.b32.xlu1 %v35766_v12, %s28837_s22  ;;  %23428 = vrot.lane.b32.xlu0 %v35767_v50, %s28837_s22 }
0x1388   : > { %v27637_v36 = vpop.f32.mrb[239].mxu1  ;;  %27820 = vmatprep.mubr.msk.f32.mxu0 %vm28836_vm1, %v35375_v15 }
0x138b   : > { %v34191_v8 = vpop.f32.mrb[240].mxu1  ;;  %v34193_v55 = vpop.f32.mrb[252].mxu0 }
0x138c   : > { %v27647_v2 = vpop.f32.mrb[241].mxu1  ;;  %v27652_v10 = vpop.f32.mrb[253].mxu0 }
0x138d   : > { %v28695_v10 = vpop.eup %28694 }
0x138e   : > { %v18609_v26 = vmul.f32 %v28695_v10, %v33758_v45 }
0x1399   : > { %v20004_v0 = vpop.f32.mrb[254].mxu0 }
0x139a   : > { %v27662_v21 = vpop.f32.mrb[255].mxu0  ;;  %23522 = vrot.lane.b32.xlu0 %v20004_v0, %s28842_s27 }
0x139d   : > { %v20156_v30 = vpop.f32.mrb[0].mxu0 }
0x139e   : > { %v19928_v56 = vpop.f32.mrb[242].mxu1  ;;  %v27672_v59 = vpop.f32.mrb[1].mxu0  ;;  %23526 = vrot.lane.b32.xlu0 %v20156_v30, %s28842_s27 }
0x139f   : > { %23520 = vrot.lane.b32.xlu1 %v19928_v56, %s28842_s27  ;;  %v27657_v43 = vpop.f32.mrb[243].mxu1  ;;  %v28697_v59 = vpop.eup %28696 }
0x13a2   : > { %v20080_v31 = vpop.f32.mrb[244].mxu1 }
0x13a3   : > { %23524 = vrot.lane.b32.xlu1 %v20080_v31, %s28842_s27  ;;  %v27667_v22 = vpop.f32.mrb[245].mxu1 }
0x13a4   : > { %v18611_v22 = vmul.f32 %v28697_v59, %v33768_v51 }
0x13a6   : > { %v20308_v53 = vpop.f32.mrb[2].mxu0  ;;  %v20232_v49 = vpop.f32.mrb[246].mxu1 }
0x13a7   : > { %23530 = vrot.lane.b32.xlu0 %v20308_v53, %s28842_s27  ;;  %v27682_v16 = vpop.f32.mrb[3].mxu0  ;;  %23528 = vrot.lane.b32.xlu1 %v20232_v49, %s28842_s27  ;;  %v27677_v6 = vpop.f32.mrb[247].mxu1 }
0x13aa   : > { %v20460_v54 = vpop.f32.mrb[4].mxu0  ;;  %v20384_v57 = vpop.f32.mrb[248].mxu1 }
0x13ab   : > { %23534 = vrot.lane.b32.xlu0 %v20460_v54, %s28842_s27  ;;  %v27692_v46 = vpop.f32.mrb[5].mxu0  ;;  %23532 = vrot.lane.b32.xlu1 %v20384_v57, %s28842_s27  ;;  %v27687_v5 = vpop.f32.mrb[249].mxu1 }
0x13ae   : > { %v20612_v12 = vpop.f32.mrb[6].mxu0  ;;  %v20536_v36 = vpop.f32.mrb[250].mxu1 }
0x13af   : > { %23538 = vrot.lane.b32.xlu0 %v20612_v12, %s28842_s27  ;;  %v27702_v7 = vpop.f32.mrb[7].mxu0  ;;  %23536 = vrot.lane.b32.xlu1 %v20536_v36, %s28842_s27  ;;  %v27697_v50 = vpop.f32.mrb[251].mxu1 }
0x13b1   : > { %v34207_v2 = vpop.xlane.xlu0 %18504 }
0x13b2   : > { %v20764_v0 = vpop.f32.mrb[8].mxu0  ;;  %28718 = vrcp.f32 %v34207_v2 }
0x13b3   : > { %23542 = vrot.lane.b32.xlu0 %v20764_v0, %s28842_s27  ;;  %v27712_v21 = vpop.f32.mrb[9].mxu0 }
0x13b5   : > { %v22289_v56 = vpop.permute.xlu0 %22288  ;;  %v34211_v30 = vpop.xlane.xlu1 %18501 }
0x13b6   : > { %27814 = vmatpush3.msra.mxu1 %v22289_v56  ;;  %v20688_v43 = vpop.f32.mrb[252].mxu1  ;;  %28720 = vrcp.f32 %v34211_v30  ;;  %v35768_v30 = vld [vmem:[#allocation23_spill] sm:$0xff] }
0x13b7   : > { %27816 = vmatmul.mubr.msk.f32.vlgmr.msra.gmra.mrb[18].mxu1 %vm795_vm2, %v18609_v26  ;;  %27823 = vmatprep.subr.mxu1 %v35375_v15  ;;  %v27707_v31 = vpop.f32.mrb[253].mxu1 }
0x13b8   : > { %23540 = vrot.lane.b32.xlu1 %v20688_v43, %s28842_s27  ;;  %27825 = vmatprep.mubr.msk.f32.mxu1 %vm28836_vm1, %v35375_v15  ;;  %v28699_v31 = vpop.eup %28698 }
0x13b9   : > { %v22365_v53 = vpop.permute.xlu1 %22364 }
0x13ba   : > { %27819 = vmatpush3.msra.mxu0 %v22365_v53 }
0x13bb   : > { %27821 = vmatmul.mubr.msk.f32.vlgmr.msra.gmra.mrb[30].mxu0 %vm795_vm2, %v18611_v22  ;;  %27828 = vmatprep.subr.mxu0 %v35375_v15 }
0x13bc   : > { %27830 = vmatprep.mubr.msk.f32.mxu0 %vm28836_vm1, %v35375_v15 }
0x13c3   : > { %v20916_v45 = vpop.f32.mrb[10].mxu0 }
0x13c4   : > { %23546 = vrot.lane.b32.xlu0 %v20916_v45, %s28842_s27  ;;  %v27722_v49 = vpop.f32.mrb[11].mxu0  ;;  %v18613_v45 = vmul.f32 %v28699_v31, %v33783_v48 }
0x13c6   : > { %v20840_v16 = vpop.f32.mrb[254].mxu1 }
0x13c7   : > { %23544 = vrot.lane.b32.xlu1 %v20840_v16, %s28842_s27  ;;  %v27717_v6 = vpop.f32.mrb[255].mxu1  ;;  %v28701_v16 = vpop.eup %28700 }
0x13c8   : > { %v18615_v17 = vmul.f32 %v28701_v16, %v33778_v62 }
0x13d3   : > { %v21068_v54 = vpop.f32.mrb[12].mxu0 }
0x13d4   : > { %23550 = vrot.lane.b32.xlu0 %v21068_v54, %s28842_s27  ;;  %v27732_v51 = vpop.f32.mrb[13].mxu0  ;;  %v28703_v54 = vpop.eup %28702 }
0x13d6   : > { %v20992_v57 = vpop.f32.mrb[0].mxu1 }
0x13d7   : > { %23548 = vrot.lane.b32.xlu1 %v20992_v57, %s28842_s27  ;;  %v27727_v46 = vpop.f32.mrb[1].mxu1  ;;  %v28705_v57 = vpop.eup %28704 }
0x13d8   : > { %v21220_v5 = vpop.f32.mrb[14].mxu0  ;;  %v18617_v62 = vmul.f32 %v28705_v57, %v33815_v61 }
0x13d9   : > { %23586 = vrot.lane.b32.xlu0 %v21220_v5, %s28843_s28  ;;  %v27742_v12 = vpop.f32.mrb[15].mxu0 }
0x13da   : > { %v18619_v12 = vmul.f32 %v28703_v54, %v33796_v19 }
0x13db   : > { %v21144_v36 = vpop.f32.mrb[2].mxu1 }
0x13dc   : > { %v21372_v7 = vpop.f32.mrb[16].mxu0  ;;  %23584 = vrot.lane.b32.xlu1 %v21144_v36, %s28843_s28  ;;  %v27737_v50 = vpop.f32.mrb[3].mxu1 }
0x13dd   : > { %23590 = vrot.lane.b32.xlu0 %v21372_v7, %s28843_s28  ;;  %v27752_v10 = vpop.f32.mrb[17].mxu0  ;;  %v28707_v36 = vpop.eup %28706 }
0x13de   : > { %v28709_v7 = vpop.eup %28708  ;;  %v18621_v61 = vmul.f32 %v28707_v36, %v33841_v18 }
0x13df   : > { %v28711_v10 = vpop.eup %28710 }
0x13e0   : > { %v21296_v0 = vpop.f32.mrb[4].mxu1  ;;  %v21524_v21 = vpop.f32.mrb[18].mxu0 }
0x13e1   : > { %23588 = vrot.lane.b32.xlu1 %v21296_v0, %s28843_s28  ;;  %v27747_v26 = vpop.f32.mrb[5].mxu1  ;;  %23594 = vrot.lane.b32.xlu0 %v21524_v21, %s28843_s28  ;;  %v27762_v56 = vpop.f32.mrb[19].mxu0  ;;  %v18623_v0 = vmul.f32 %v28709_v7, %v33827_v39  ;;  %v18625_v21 = vmul.f32 %v28711_v10, %v35768_v30 }
0x13e2   : > { %v28713_v2 = vpop.eup %28712  ;;  %v35769_v56 = vld [vmem:[#allocation73_spill] sm:$0xff] }
0x13e3   : > { %v28715_v26 = vpop.eup %28714 }
0x13e4   : > { %v21448_v58 = vpop.f32.mrb[6].mxu1  ;;  %v18629_v31 = vmul.f32 %v28715_v26, %v33961_v44 }
0x13e5   : > { %23592 = vrot.lane.b32.xlu1 %v21448_v58, %s28843_s28  ;;  %v27757_v59 = vpop.f32.mrb[7].mxu1  ;;  %v18627_v58 = vmul.f32 %v28713_v2, %v35769_v56 }
0x13e6   : > { %v34237_v43 = vpop.xlane.xlu0 %18510  ;;  %v28717_v59 = vpop.eup %28716 }
0x13e7   : > { %v21676_v22 = vpop.f32.mrb[20].mxu0  ;;  %28722 = vrcp.f32 %v34237_v43 }
0x13e8   : > { %v21600_v53 = vpop.f32.mrb[8].mxu1  ;;  %23598 = vrot.lane.b32.xlu0 %v21676_v22, %s28843_s28  ;;  %v27772_v28 = vpop.f32.mrb[21].mxu0 }
0x13e9   : > { %23596 = vrot.lane.b32.xlu1 %v21600_v53, %s28843_s28  ;;  %v27767_v11 = vpop.f32.mrb[9].mxu1  ;;  %v28719_v53 = vpop.eup %28718  ;;  %v18631_v28 = vmul.f32 %v28717_v59, %v33956_v47 }
0x13ea   : > { %v22441_v49 = vpop.permute.xlu0 %22440  ;;  %v18508_v27 = vpop.xlane.xlu1 %18507 }
0x13eb   : > { %27824 = vmatpush3.msra.mxu1 %v22441_v49  ;;  %28724 = vrcp.f32 %v18508_v27  ;;  %v28721_v11 = vpop.eup %28720  ;;  %v18635_v27 = vmul.f32 %v28719_v53, %v34055_v4 }
0x13ec   : > { %27826 = vmatmul.mubr.msk.f32.vlgmr.msra.gmra.mrb[20].mxu1 %vm795_vm2, %v18613_v45  ;;  %27833 = vmatprep.subr.mxu1 %v35375_v15  ;;  %v21752_v6 = vpop.f32.mrb[10].mxu1  ;;  %v18633_v16 = vmul.f32 %v28721_v11, %v34064_v29 }
0x13ed   : > { %27835 = vmatprep.mubr.msk.f32.mxu1 %vm28836_vm1, %v35375_v15  ;;  %23600 = vrot.lane.b32.xlu1 %v21752_v6, %s28843_s28  ;;  %v27777_v48 = vpop.f32.mrb[11].mxu1 }
0x13ee   : > { %v22669_v20 = vpop.permute.xlu0 %22668  ;;  %v22517_v51 = vpop.permute.xlu1 %22516 }
0x13ef   : > { %27829 = vmatpush3.msra.mxu0 %v22517_v51 }
0x13f0   : > { %v21904_v46 = vpop.f32.mrb[12].mxu1  ;;  %27831 = vmatmul.mubr.msk.f32.vlgmr.msra.gmra.mrb[32].mxu0 %vm795_vm2, %v18615_v17  ;;  %27838 = vmatprep.subr.mxu0 %v35375_v15 }
0x13f1   : > { %23604 = vrot.lane.b32.xlu1 %v21904_v46, %s28843_s28  ;;  %v27787_v14 = vpop.f32.mrb[13].mxu1  ;;  %27839 = vmatpush3.msra.mxu0 %v22669_v20  ;;  %v28723_v47 = vpop.eup %28722 }
0x13f2   : > { %v22821_v5 = vpop.permute.xlu0 %22820  ;;  %v22593_v1 = vpop.permute.xlu1 %22592  ;;  %27840 = vmatprep.mubr.msk.f32.mxu0 %vm28836_vm1, %v35375_v15  ;;  %27848 = vmatprep.subr.mxu0 %v35375_v15  ;;  %v18639_v4 = vmul.f32 %v28723_v47, %v34118_v25  ;;  %v12674_v47 = vld [vmem:[#allocation2 + $0xc0] sm:$0xff] }
0x13f3   : > { %27834 = vmatpush3.msra.mxu1 %v22593_v1  ;;  %v21828_v38 = vpop.f32.mrb[22].mxu0 }
0x13f4   : > { %27836 = vmatmul.mubr.msk.f32.vlgmr.msra.gmra.mrb[22].mxu1 %vm795_vm2, %v18617_v62  ;;  %27841 = vmatmul.mubr.msk.f32.vlgmr.msra.gmra.mrb[34].mxu0 %vm795_vm2, %v18619_v12  ;;  %v27782_v50 = vpop.f32.mrb[23].mxu0 }
0x13f5   : > { %27849 = vmatpush3.msra.mxu0 %v22821_v5  ;;  %23602 = vrot.lane.b32.xlu0 %v21828_v38, %s28843_s28  ;;  %v28725_v48 = vpop.eup %28724 }
0x13f6   : > { %v22973_v19 = vpop.permute.xlu0 %22972  ;;  %v22745_v3 = vpop.permute.xlu1 %22744  ;;  %27843 = vmatprep.subr.mxu1 %v35375_v15  ;;  %27845 = vmatprep.mubr.msk.f32.mxu1 %vm28836_vm1, %v35375_v15  ;;  %v18637_v29 = vmul.f32 %v28725_v48, %v34122_v60 }
0x13f7   : > { %27844 = vmatpush3.msra.mxu1 %v22745_v3  ;;  %27850 = vmatprep.mubr.msk.f32.mxu0 %vm28836_vm1, %v35375_v15 }
0x13f8   : > { %27858 = vmatprep.subr.mxu0 %v35375_v15  ;;  %27846 = vmatmul.mubr.msk.f32.vlgmr.msra.gmra.mrb[24].mxu1 %vm795_vm2, %v18621_v61 }
0x13f9   : > { %27851 = vmatmul.mubr.msk.f32.vlgmr.msra.gmra.mrb[36].mxu0 %vm795_vm2, %v18623_v0  ;;  %27853 = vmatprep.subr.mxu1 %v35375_v15 }
0x13fa   : > { %v23125_v18 = vpop.permute.xlu0 %23124  ;;  %27859 = vmatpush3.msra.mxu0 %v22973_v19  ;;  %v22897_v39 = vpop.permute.xlu1 %22896  ;;  %27855 = vmatprep.mubr.msk.f32.mxu1 %vm28836_vm1, %v35375_v15 }
0x13fb   : > { %27854 = vmatpush3.msra.mxu1 %v22897_v39  ;;  %27860 = vmatprep.mubr.msk.f32.mxu0 %vm28836_vm1, %v35375_v15 }
0x13fc   : > { %27868 = vmatprep.subr.mxu0 %v35375_v15  ;;  %27856 = vmatmul.mubr.msk.f32.vlgmr.msra.gmra.mrb[26].mxu1 %vm795_vm2, %v18625_v21 }
0x13fd   : > { %27861 = vmatmul.mubr.msk.f32.vlgmr.msra.gmra.mrb[38].mxu0 %vm795_vm2, %v18627_v58  ;;  %27863 = vmatprep.subr.mxu1 %v35375_v15 }
0x13fe   : > { %v23277_v43 = vpop.permute.xlu0 %23276  ;;  %27869 = vmatpush3.msra.mxu0 %v23125_v18  ;;  %v23049_v22 = vpop.permute.xlu1 %23048  ;;  %27865 = vmatprep.mubr.msk.f32.mxu1 %vm28836_vm1, %v35375_v15 }
0x13ff   : > { %27864 = vmatpush3.msra.mxu1 %v23049_v22  ;;  %27870 = vmatprep.mubr.msk.f32.mxu0 %vm28836_vm1, %v35375_v15  ;;  %v21980_v45 = vpop.f32.mrb[24].mxu0 }
0x1400   : > { %27878 = vmatprep.subr.mxu0 %v35375_v15  ;;  %27866 = vmatmul.mubr.msk.f32.vlgmr.msra.gmra.mrb[28].mxu1 %vm795_vm2, %v18629_v31  ;;  %v27792_v49 = vpop.f32.mrb[25].mxu0 }
0x1401   : > { %27871 = vmatmul.mubr.msk.f32.vlgmr.msra.gmra.mrb[40].mxu0 %vm795_vm2, %v18631_v28  ;;  %23606 = vrot.lane.b32.xlu0 %v21980_v45, %s28843_s28 }
0x1402   : > { %27879 = vmatpush3.msra.mxu0 %v23277_v43  ;;  %v23201_v44 = vpop.permute.xlu1 %23200  ;;  %27873 = vmatprep.subr.mxu1 %v35375_v15  ;;  %v23429_v6 = vpop.permute.xlu0 %23428 }
0x1403   : > { %27874 = vmatpush3.msra.mxu1 %v23201_v44  ;;  %27875 = vmatprep.mubr.msk.f32.mxu1 %vm28836_vm1, %v35375_v15 }
0x1404   : > { %27880 = vmatprep.mubr.msk.f32.mxu0 %vm28836_vm1, %v35375_v15  ;;  %27888 = vmatprep.subr.mxu0 %v35375_v15 }
0x1405   : > { %27876 = vmatmul.mubr.msk.f32.vlgmr.msra.gmra.mrb[30].mxu1 %vm795_vm2, %v18633_v16  ;;  %27881 = vmatmul.mubr.msk.f32.vlgmr.msra.gmra.mrb[42].mxu0 %vm795_vm2, %v18635_v27  ;;  %v12675_v27 = vld [vmem:[#allocation2 + $0xc8] sm:$0xff] }
0x1406   : > { %27889 = vmatpush3.msra.mxu0 %v23429_v6  ;;  %v23353_v20 = vpop.permute.xlu1 %23352  ;;  %27883 = vmatprep.subr.mxu1 %v35375_v15  ;;  %v28056_v16 = vpack.c.bf16 %v12675_v27, %v12674_v47 }
0x1407   : > { %27884 = vmatpush3.msra.mxu1 %v23353_v20  ;;  %27885 = vmatprep.mubr.msk.f32.mxu1 %vm28836_vm1, %v35375_v15 }
0x1408   : > { %27890 = vmatprep.mubr.msk.f32.mxu0 %vm28836_vm1, %v35375_v15  ;;  %28057 = vmatprep.subr.bf16.mxu1 %v28056_v16 }
0x1409   : > { %27886 = vmatmul.mubr.msk.f32.vlgmr.msra.gmra.mrb[32].mxu1 %vm795_vm2, %v18637_v29  ;;  %27891 = vmatmul.mubr.msk.f32.vlgmr.msra.gmra.mrb[44].mxu0 %vm795_vm2, %v18639_v4 }
0x140a   : > { %28059 = vmatpush3.bf16.msra.mxu1 %v28056_v16 }
0x140c   : > { %v34319_v51 = vpop.permute.xlu0 %23522 }
0x1410   : > { %v23527_v46 = vpop.permute.xlu0 %23526 }
0x1411   : > { %v34321_v57 = vpop.permute.xlu1 %23520  ;;  %v23699_v30 = vsel %vm795_vm2, %v34114_v24, %v23527_v46  ;;  %v12676_v46 = vld [vmem:[#allocation2 + $0xd0] sm:$0xff] }
0x1415   : > { %v23525_v14 = vpop.permute.xlu1 %23524 }
0x1419   : > { %v23531_v5 = vpop.permute.xlu0 %23530  ;;  %v23529_v15 = vpop.permute.xlu1 %23528 }
0x141a   : > { %v23701_v26 = vsel %vm795_vm2, %v34128_v13, %v23531_v5  ;;  %v23700_v31 = vsel %vm795_vm2, %v34130_v23, %v23529_v15 }
0x141d   : > { %v23535_v12 = vpop.permute.xlu0 %23534  ;;  %v23533_v62 = vpop.permute.xlu1 %23532 }
0x141e   : > { %v23703_v53 = vsel %vm795_vm2, %v34132_v42, %v23535_v12  ;;  %v23702_v11 = vsel %vm795_vm2, %v34134_v33, %v23533_v62 }
0x1420   : > { %v22056_v54 = vpop.f32.mrb[14].mxu1 }
0x1421   : > { %23608 = vrot.lane.b32.xlu1 %v22056_v54, %s28843_s28  ;;  %v27797_v17 = vpop.f32.mrb[15].mxu1  ;;  %v23539_v1 = vpop.permute.xlu0 %23538 }
0x1422   : > { %v23537_v36 = vpop.permute.xlu1 %23536  ;;  %v23705_v29 = vsel %vm795_vm2, %v34140_v40, %v23539_v1 }
0x1423   : > { %v23704_v42 = vsel %vm795_vm2, %v34146_v52, %v23537_v36 }
0x1424   : > { %v22132_v25 = vpop.f32.mrb[26].mxu0 }
0x1425   : > { %23610 = vrot.lane.b32.xlu0 %v22132_v25, %s28843_s28  ;;  %v27802_v60 = vpop.f32.mrb[27].mxu0  ;;  %v23543_v38 = vpop.permute.xlu0 %23542 }
0x1426   : > { %v23707_v52 = vsel %vm795_vm2, %v34153_v37, %v23543_v38 }
0x142a   : > { %v23541_v7 = vpop.permute.xlu1 %23540 }
0x142b   : > { %v23706_v33 = vsel %vm795_vm2, %v34161_v32, %v23541_v7  ;;  %v12677_v32 = vld [vmem:[#allocation2 + $0xd8] sm:$0xff] }
0x1436   : > { %v34324_v50 = vpop.permute.xlu0 %23546 }
0x1437   : > { %v23709_v36 = vsel %vm795_vm2, %v34172_v41, %v34324_v50 }
0x1439   : > { %v23545_v19 = vpop.permute.xlu1 %23544 }
0x143a   : > { %v23708_v37 = vsel %vm795_vm2, %v34181_v63, %v23545_v19 }
0x1446   : > { %v23551_v61 = vpop.permute.xlu0 %23550 }
0x1447   : > { %v34328_v3 = vsel %vm795_vm2, %v34193_v55, %v23551_v61  ;;  %v23698_v55 = vsel %vm795_vm2, %v34124_v34, %v23525_v14  ;;  %v28060_v14 = vpack.c.bf16 %v12677_v32, %v12676_v46  ;;  %v23697_v32 = vsel %vm795_vm2, %v34100_v9, %v34319_v51 }
0x1449   : > { %v23549_v10 = vpop.permute.xlu1 %23548  ;;  %28061 = vmatprep.subr.bf16.mxu1 %v28060_v14 }
0x144a   : > { %v34332_v0 = vsel %vm795_vm2, %v34191_v8, %v23549_v10  ;;  %28063 = vmatpush3.bf16.msra.mxu1 %v28060_v14 }
0x144b   : > { %v34334_v2 = vpop.permute.xlu0 %23586 }
0x144c   : > { %v23713_v14 = vsel %vm11498_vm4, %v23697_v32, %v34334_v2 }
0x144e   : > { %v34336_v18 = vpop.permute.xlu1 %23584 }
0x144f   : > { %v23591_v21 = vpop.permute.xlu0 %23590 }
0x1450   : > { %v34341_v39 = vsel %vm11498_vm4, %v23699_v30, %v23591_v21 }
0x1453   : > { %v23589_v56 = vpop.permute.xlu1 %23588  ;;  %v23595_v8 = vpop.permute.xlu0 %23594 }
0x1454   : > { %v34348_v58 = vsel %vm11498_vm4, %v23698_v55, %v23589_v56  ;;  %v34351_v59 = vsel %vm11498_vm4, %v23701_v26, %v23595_v8 }
0x1455   : > { %v22208_v43 = vpop.f32.mrb[16].mxu1 }
0x1456   : > { %23612 = vrot.lane.b32.xlu1 %v22208_v43, %s28843_s28  ;;  %v27807_v24 = vpop.f32.mrb[17].mxu1 }
0x1457   : > { %v23593_v22 = vpop.permute.xlu1 %23592 }
0x1458   : > { %v34357_v34 = vsel %vm11498_vm4, %v23700_v31, %v23593_v22 }
0x1459   : > { %v22284_v13 = vpop.f32.mrb[28].mxu0 }
0x145a   : > { %23614 = vrot.lane.b32.xlu0 %v22284_v13, %s28843_s28  ;;  %v27812_v28 = vpop.f32.mrb[29].mxu0  ;;  %v23599_v45 = vpop.permute.xlu0 %23598 }
0x145b   : > { %v23597_v49 = vpop.permute.xlu1 %23596  ;;  %v34365_v44 = vsel %vm11498_vm4, %v23703_v53, %v23599_v45 }
0x145c   : > { %v34368_v23 = vsel %vm11498_vm4, %v23702_v11, %v23597_v49 }
0x145f   : > { %v23601_v6 = vpop.permute.xlu1 %23600 }
0x1460   : > { %v34373_v48 = vsel %vm11498_vm4, %v23704_v42, %v23601_v6 }
0x1463   : > { %v23605_v20 = vpop.permute.xlu1 %23604 }
0x1464   : > { %v34378_v4 = vsel %vm11498_vm4, %v23706_v33, %v23605_v20 }
0x1467   : > { %v23603_v54 = vpop.permute.xlu0 %23602 }
0x1468   : > { %v34383_v17 = vsel %vm11498_vm4, %v23705_v29, %v23603_v54  ;;  %v23696_v54 = vsel %vm795_vm2, %v34110_v35, %v34321_v57 }
0x1473   : > { %v23607_v25 = vpop.permute.xlu0 %23606 }
0x1474   : > { %v34388_v60 = vsel %vm11498_vm4, %v23707_v52, %v23607_v25  ;;  %v23712_v52 = vsel %vm11498_vm4, %v23696_v54, %v34336_v18 }
0x148a   : > { %v22360_v5 = vpop.f32.mrb[18].mxu1 }
0x148b   : > { %23648 = vrot.lane.b32.xlu1 %v22360_v5, %s28844_s29  ;;  %v27817_v40 = vpop.f32.mrb[19].mxu1 }
0x148e   : > { %v22436_v15 = vpop.f32.mrb[30].mxu0 }
0x148f   : > { %23650 = vrot.lane.b32.xlu0 %v22436_v15, %s28844_s29  ;;  %v27822_v12 = vpop.f32.mrb[31].mxu0 }
0x1493   : > { %v23609_v62 = vpop.permute.xlu1 %23608 }
0x1494   : > { %v34395_v1 = vsel %vm11498_vm4, %v23708_v37, %v23609_v62 }
0x1497   : > { %v23611_v38 = vpop.permute.xlu0 %23610 }
0x1498   : > { %v34401_v7 = vsel %vm11498_vm4, %v23709_v36, %v23611_v38 }
0x14bf   : > { %v22512_v61 = vpop.f32.mrb[20].mxu1 }
0x14c0   : > { %23652 = vrot.lane.b32.xlu1 %v22512_v61, %s28844_s29  ;;  %v27827_v10 = vpop.f32.mrb[21].mxu1 }
0x14c3   : > { %v22588_v30 = vpop.f32.mrb[32].mxu0 }
0x14c4   : > { %23654 = vrot.lane.b32.xlu0 %v22588_v30, %s28844_s29  ;;  %v27832_v63 = vpop.f32.mrb[33].mxu0 }
0x14c7   : > { %v22664_v19 = vpop.f32.mrb[22].mxu1  ;;  %v22740_v21 = vpop.f32.mrb[34].mxu0 }
0x14c8   : > { %v23613_v55 = vpop.permute.xlu1 %23612  ;;  %23656 = vrot.lane.b32.xlu1 %v22664_v19, %s28844_s29  ;;  %v27837_v26 = vpop.f32.mrb[23].mxu1  ;;  %23658 = vrot.lane.b32.xlu0 %v22740_v21, %s28844_s29 }
0x14c9   : > { %v34409_v41 = vsel %vm11498_vm4, %v34332_v0, %v23613_v55  ;;  %v27842_v50 = vpop.f32.mrb[35].mxu0 }
0x14cb   : > { %v22816_v56 = vpop.f32.mrb[24].mxu1 }
0x14cc   : > { %v22892_v8 = vpop.f32.mrb[36].mxu0  ;;  %23660 = vrot.lane.b32.xlu1 %v22816_v56, %s28844_s29  ;;  %v27847_v43 = vpop.f32.mrb[25].mxu1  ;;  %v35770_v56 = vld [vmem:[#allocation41_spill] sm:$0xff] }
0x14cd   : > { %23662 = vrot.lane.b32.xlu0 %v22892_v8, %s28844_s29  ;;  %v27852_v24 = vpop.f32.mrb[37].mxu0  ;;  %v23615_v31 = vpop.permute.xlu0 %23614  ;;  %v35771_v8 = vld [vmem:[#allocation74_spill] sm:$0xff] }
0x14ce   : > { %v34415_v22 = vsel %vm11498_vm4, %v34328_v3, %v23615_v31 }
0x14cf   : > { %v22968_v13 = vpop.f32.mrb[26].mxu1 }
0x14d0   : > { %v23044_v53 = vpop.f32.mrb[38].mxu0  ;;  %23664 = vrot.lane.b32.xlu1 %v22968_v13, %s28844_s29  ;;  %v27857_v0 = vpop.f32.mrb[27].mxu1 }
0x14d1   : > { %23666 = vrot.lane.b32.xlu0 %v23044_v53, %s28844_s29  ;;  %v27862_v28 = vpop.f32.mrb[39].mxu0 }
0x14d2   : > { %v35772_v28 = vld [vmem:[#allocation82_spill] sm:$0xff] }
0x14d3   : > { %v23120_v45 = vpop.f32.mrb[28].mxu1 }
0x14d4   : > { %v23196_v11 = vpop.f32.mrb[40].mxu0  ;;  %23668 = vrot.lane.b32.xlu1 %v23120_v45, %s28844_s29  ;;  %v27867_v49 = vpop.f32.mrb[29].mxu1 }
0x14d5   : > { %23670 = vrot.lane.b32.xlu0 %v23196_v11, %s28844_s29  ;;  %v27872_v47 = vpop.f32.mrb[41].mxu0  ;;  %v35773_v11 = vld [vmem:[#allocation81_spill] sm:$0xff] }
0x14d8   : > { %v23272_v27 = vpop.f32.mrb[30].mxu1  ;;  %v23348_v16 = vpop.f32.mrb[42].mxu0 }
0x14d9   : > { %23672 = vrot.lane.b32.xlu1 %v23272_v27, %s28844_s29  ;;  %v27877_v3 = vpop.f32.mrb[31].mxu1  ;;  %23674 = vrot.lane.b32.xlu0 %v23348_v16, %s28844_s29  ;;  %v27882_v42 = vpop.f32.mrb[43].mxu0 }
0x14dc   : > { %v23424_v6 = vpop.f32.mrb[32].mxu1  ;;  %v23500_v33 = vpop.f32.mrb[44].mxu0 }
0x14dd   : > { %23676 = vrot.lane.b32.xlu1 %v23424_v6, %s28844_s29  ;;  %v27887_v20 = vpop.f32.mrb[33].mxu1  ;;  %23678 = vrot.lane.b32.xlu0 %v23500_v33, %s28844_s29  ;;  %v27892_v29 = vpop.f32.mrb[45].mxu0  ;;  %v35774_v33 = vld [vmem:[#allocation50_spill] sm:$0xff] }
0x14de   : > { %v35775_v29 = vld [vmem:[#allocation51_spill] sm:$0xff] }
0x14fd   : > { %v23649_v25 = vpop.permute.xlu1 %23648 }
0x14fe   : > { %v23728_v46 = vsel %vm11515_vm3, %v23712_v52, %v23649_v25 }
0x14ff   : > { %27901 = vmatprep.mubr.msk.f32.mxu1 %vm487_vm0, %v23728_v46 }
0x1501   : > { %v23651_v5 = vpop.permute.xlu0 %23650 }
0x1502   : > { %v23729_v40 = vsel %vm11515_vm3, %v23713_v14, %v23651_v5 }
0x1503   : > { %27902 = vmatmul.mubr.msk.f32.vlgmr.msra.gmra.mrb[34].mxu1 %vm487_vm0, %v23729_v40  ;;  %v35776_v40 = vld [vmem:[#allocation62_spill] sm:$0xff] }
0x1532   : > { %v23653_v35 = vpop.permute.xlu1 %23652 }
0x1533   : > { %v23730_v57 = vsel %vm11515_vm3, %v34348_v58, %v23653_v35 }
0x1534   : > { %27904 = vmatprep.mubr.msk.f32.mxu1 %vm487_vm0, %v23730_v57  ;;  %v35777_v57 = vld [vmem:[#allocation86_spill] sm:$0xff] }
0x1536   : > { %v23655_v18 = vpop.permute.xlu0 %23654 }
0x1537   : > { %v23731_v15 = vsel %vm11515_vm3, %v34341_v39, %v23655_v18 }
0x1538   : > { %27905 = vmatmul.mubr.msk.f32.gmra.mrb[36].mxu1 %vm487_vm0, %v23731_v15 }
0x153a   : > { %v23657_v9 = vpop.permute.xlu1 %23656  ;;  %v23659_v51 = vpop.permute.xlu0 %23658 }
0x153b   : > { %v23732_v2 = vsel %vm11515_vm3, %v34357_v34, %v23657_v9  ;;  %v23733_v12 = vsel %vm11515_vm3, %v34351_v59, %v23659_v51 }
0x153c   : > { %27907 = vmatprep.mubr.msk.f32.mxu1 %vm487_vm0, %v23732_v2 }
0x153d   : > { %27908 = vmatmul.mubr.msk.f32.gmra.mrb[38].mxu1 %vm487_vm0, %v23733_v12 }
0x153e   : > { %v23661_v58 = vpop.permute.xlu1 %23660 }
0x153f   : > { %v23734_v37 = vsel %vm11515_vm3, %v34368_v23, %v23661_v58  ;;  %v23663_v62 = vpop.permute.xlu0 %23662 }
0x1540   : > { %v23735_v39 = vsel %vm11515_vm3, %v34365_v44, %v23663_v62  ;;  %27910 = vmatprep.mubr.msk.f32.mxu1 %vm487_vm0, %v23734_v37  ;;  %v35778_v37 = vld [vmem:[#allocation85_spill] sm:$0xff] }
0x1541   : > { %27911 = vmatmul.mubr.msk.f32.gmra.mrb[40].mxu1 %vm487_vm0, %v23735_v39  ;;  %v35779_v39 = vld [vmem:[#allocation57_spill] sm:$0xff] }
0x1542   : > { %v23665_v34 = vpop.permute.xlu1 %23664 }
0x1543   : > { %v23736_v59 = vsel %vm11515_vm3, %v34373_v48, %v23665_v34  ;;  %v23667_v36 = vpop.permute.xlu0 %23666 }
0x1544   : > { %v23737_v38 = vsel %vm11515_vm3, %v34383_v17, %v23667_v36  ;;  %27913 = vmatprep.mubr.msk.f32.mxu1 %vm487_vm0, %v23736_v59 }
0x1545   : > { %27914 = vmatmul.mubr.msk.f32.gmra.mrb[42].mxu1 %vm487_vm0, %v23737_v38 }
0x1546   : > { %v23669_v23 = vpop.permute.xlu1 %23668 }
0x1547   : > { %v23738_v44 = vsel %vm11515_vm3, %v34378_v4, %v23669_v23  ;;  %v23671_v61 = vpop.permute.xlu0 %23670 }
0x1548   : > { %v23739_v10 = vsel %vm11515_vm3, %v34388_v60, %v23671_v61  ;;  %27916 = vmatprep.mubr.msk.f32.mxu1 %vm487_vm0, %v23738_v44 }
0x1549   : > { %27917 = vmatmul.mubr.msk.f32.gmra.mrb[44].mxu1 %vm487_vm0, %v23739_v10  ;;  %v35780_v10 = vld [vmem:[#allocation67_spill] sm:$0xff] }
0x154b   : > { %v23673_v48 = vpop.permute.xlu1 %23672  ;;  %v23675_v30 = vpop.permute.xlu0 %23674 }
0x154c   : > { %v23740_v17 = vsel %vm11515_vm3, %v34395_v1, %v23673_v48  ;;  %v23741_v63 = vsel %vm11515_vm3, %v34401_v7, %v23675_v30  ;;  %v34484_v1 = vld [vmem:[%s35139_s2 + $0x9] ss:$0 sm:$0xff] }
0x154d   : > { %27919 = vmatprep.mubr.msk.f32.mxu1 %vm487_vm0, %v23740_v17  ;;  %v35781_v30 = vld [vmem:[#allocation26_spill] sm:$0xff] }
0x154e   : > { %27920 = vmatmul.mubr.msk.f32.gmra.mrb[46].mxu1 %vm487_vm0, %v23741_v63 }
0x154f   : > { %v23677_v4 = vpop.permute.xlu1 %23676  ;;  %v23679_v19 = vpop.permute.xlu0 %23678 }
0x1550   : > { %v23742_v60 = vsel %vm11515_vm3, %v34409_v41, %v23677_v4  ;;  %v23743_v21 = vsel %vm11515_vm3, %v34415_v22, %v23679_v19 }
0x1551   : > { %27922 = vmatprep.mubr.msk.f32.mxu1 %vm487_vm0, %v23742_v60 }
0x1552   : > { %27923 = vmatmul.mubr.msk.f32.gmra.mrb[48].mxu1 %vm487_vm0, %v23743_v21 }
0x15d6   : > { %v27903_v7 = vpop.f32.mrb[34].mxu1 }
0x15d7   : > { %v23868_v55 = vadd.f32 %v27903_v7, %v34484_v1  ;;  %v23862_v26 = vpop.f32.mrb[35].mxu1 }
0x15d8   : > { %v23863_v50 = vadd.f32 %v34484_v1, %v23862_v26 }
0x15d9   : > { %v34489_v41 = vadd.f32 %v23868_v55, %v35770_v56  ;;  %v35782_v55 = vld [vmem:[#allocation21_spill] sm:$0xff] }
0x15da   : > { %v34492_v43 = vadd.f32 %v23863_v50, %v35771_v8  ;;  %v35783_v50 = vld [vmem:[#allocation66_spill] sm:$0xff] }
0x15db   : > { %v23960_v24 = vsel %vm487_vm0, %v34489_v41, 0.0 }
0x15dc   : > { %23961 = vadd.xlane.f32.xlu0 %v23960_v24  ;;  %v23957_v31 = vsel %vm487_vm0, %v34492_v43, 0.0 }
0x15dd   : > { %23958 = vadd.xlane.f32.xlu1 %v23957_v31 }
0x160b   : > { %v27906_v22 = vpop.f32.mrb[36].mxu1 }
0x160c   : > { %v23878_v13 = vadd.f32 %v27906_v22, %v34484_v1  ;;  %v23872_v53 = vpop.f32.mrb[37].mxu1 }
0x160d   : > { %v23873_v0 = vadd.f32 %v34484_v1, %v23872_v53 }
0x160e   : > { %v34501_v45 = vadd.f32 %v23878_v13, %v35772_v28 }
0x160f   : > { %v34504_v49 = vadd.f32 %v23873_v0, %v35773_v11  ;;  %v35784_v0 = vld [vmem:[#allocation78_spill] sm:$0xff]  ;;  %v35785_v11 = vld [vmem:[#allocation83_spill] sm:$0xff] }
0x1610   : > { %v27909_v47 = vpop.f32.mrb[38].mxu1  ;;  %v23966_v27 = vsel %vm487_vm0, %v34501_v45, 0.0 }
0x1611   : > { %v23888_v16 = vadd.f32 %v27909_v47, %v34484_v1  ;;  %23967 = vadd.xlane.f32.xlu1 %v23966_v27  ;;  %v23882_v3 = vpop.f32.mrb[39].mxu1  ;;  %v23963_v42 = vsel %vm487_vm0, %v34504_v49, 0.0 }
0x1612   : > { %v23883_v6 = vadd.f32 %v34484_v1, %v23882_v3  ;;  %23964 = vadd.xlane.f32.xlu0 %v23963_v42 }
0x1613   : > { %v34513_v20 = vadd.f32 %v23888_v16, %v35774_v33 }
0x1614   : > { %v34516_v54 = vadd.f32 %v23883_v6, %v35775_v29  ;;  %v27912_v52 = vpop.f32.mrb[40].mxu1 }
0x1615   : > { %v23898_v25 = vadd.f32 %v27912_v52, %v34484_v1  ;;  %v23892_v46 = vpop.f32.mrb[41].mxu1  ;;  %v23972_v32 = vsel %vm487_vm0, %v34513_v20, 0.0 }
0x1616   : > { %v23893_v14 = vadd.f32 %v34484_v1, %v23892_v46  ;;  %23973 = vadd.xlane.f32.xlu1 %v23972_v32  ;;  %v23969_v5 = vsel %vm487_vm0, %v34516_v54, 0.0 }
0x1617   : > { %v34525_v35 = vadd.f32 %v23898_v25, %v35776_v40  ;;  %23970 = vadd.xlane.f32.xlu0 %v23969_v5  ;;  %v12679_v5 = vld [vmem:[#allocation2 + $0xe8] sm:$0xff] }
0x1618   : > { %v34528_v18 = vadd.f32 %v23893_v14, %v35777_v57  ;;  %v27915_v15 = vpop.f32.mrb[42].mxu1  ;;  %v12678_v14 = vld [vmem:[#allocation2 + $0xe0] sm:$0xff] }
0x1619   : > { %v23908_v9 = vadd.f32 %v27915_v15, %v34484_v1  ;;  %v23902_v51 = vpop.f32.mrb[43].mxu1  ;;  %v23978_v2 = vsel %vm487_vm0, %v34525_v35, 0.0  ;;  %v28064_v40 = vpack.c.bf16 %v12679_v5, %v12678_v14 }
0x161a   : > { %v23903_v12 = vadd.f32 %v34484_v1, %v23902_v51  ;;  %23979 = vadd.xlane.f32.xlu1 %v23978_v2  ;;  %v23975_v58 = vsel %vm487_vm0, %v34528_v18, 0.0 }
0x161b   : > { %v34537_v62 = vadd.f32 %v23908_v9, %v35778_v37  ;;  %23976 = vadd.xlane.f32.xlu0 %v23975_v58  ;;  %28065 = vmatprep.subr.bf16.mxu0 %v28064_v40 }
0x161c   : > { %v34540_v34 = vadd.f32 %v23903_v12, %v35779_v39  ;;  %v27918_v59 = vpop.f32.mrb[44].mxu1  ;;  %28067 = vmatpush3.bf16.msra.mxu0 %v28064_v40 }
0x161d   : > { %v23918_v36 = vadd.f32 %v27918_v59, %v34484_v1  ;;  %v23912_v38 = vpop.f32.mrb[45].mxu1  ;;  %v23984_v23 = vsel %vm487_vm0, %v34537_v62, 0.0 }
0x161e   : > { %v23913_v44 = vadd.f32 %v34484_v1, %v23912_v38  ;;  %23985 = vadd.xlane.f32.xlu1 %v23984_v23  ;;  %v23981_v61 = vsel %vm487_vm0, %v34540_v34, 0.0 }
0x161f   : > { %v34549_v48 = vadd.f32 %v23918_v36, %v35780_v10  ;;  %23982 = vadd.xlane.f32.xlu0 %v23981_v61 }
0x1620   : > { %v34552_v17 = vadd.f32 %v23913_v44, %v35781_v30 }
0x1621   : > { %v27921_v63 = vpop.f32.mrb[46].mxu1  ;;  %v23990_v4 = vsel %vm487_vm0, %v34549_v48, 0.0 }
0x1622   : > { %v23928_v19 = vadd.f32 %v27921_v63, %v34484_v1  ;;  %v23922_v60 = vpop.f32.mrb[47].mxu1  ;;  %23991 = vadd.xlane.f32.xlu1 %v23990_v4  ;;  %v23987_v21 = vsel %vm487_vm0, %v34552_v17, 0.0 }
0x1623   : > { %v23923_v7 = vadd.f32 %v34484_v1, %v23922_v60  ;;  %23988 = vadd.xlane.f32.xlu0 %v23987_v21 }
0x1624   : > { %v34561_v26 = vadd.f32 %v23928_v19, %v35782_v55 }
0x1625   : > { %v34564_v56 = vadd.f32 %v23923_v7, %v35783_v50  ;;  %v27924_v8 = vpop.f32.mrb[48].mxu1 }
0x1626   : > { %v23938_v24 = vadd.f32 %v27924_v8, %v34484_v1  ;;  %v23932_v31 = vpop.f32.mrb[49].mxu1  ;;  %v23996_v22 = vsel %vm487_vm0, %v34561_v26, 0.0 }
0x1627   : > { %v23933_v13 = vadd.f32 %v34484_v1, %v23932_v31  ;;  %23997 = vadd.xlane.f32.xlu1 %v23996_v22  ;;  %v23993_v53 = vsel %vm487_vm0, %v34564_v56, 0.0 }
0x1628   : > { %v34573_v28 = vadd.f32 %v23938_v24, %v35784_v0  ;;  %23994 = vadd.xlane.f32.xlu0 %v23993_v53 }
0x1629   : > { %v34576_v47 = vadd.f32 %v23933_v13, %v35785_v11 }
0x162a   : > { %v24002_v27 = vsel %vm487_vm0, %v34573_v28, 0.0 }
0x162b   : > { %24003 = vadd.xlane.f32.xlu1 %v24002_v27  ;;  %v23999_v16 = vsel %vm487_vm0, %v34576_v47, 0.0 }
0x162c   : > { %24000 = vadd.xlane.f32.xlu0 %v23999_v16 }
0x1669   : > { %v23962_v1 = vpop.xlane.xlu0 %23961 }
0x166a   : > { %v24006_v3 = vmul.f32 0.03125, %v23962_v1  ;;  %v23959_v42 = vpop.xlane.xlu1 %23958 }
0x166b   : > { %v24005_v6 = vmul.f32 0.03125, %v23959_v42 }
0x166c   : > { %v34583_v33 = vsub.f32 %v34489_v41, %v24006_v3  ;;  %v12680_v41 = vld [vmem:[#allocation2 + $0xf0] sm:$0xff] }
0x166d   : > { %v34586_v29 = vsub.f32 %v34492_v43, %v24005_v6  ;;  %v12681_v43 = vld [vmem:[#allocation2 + $0xf8] sm:$0xff] }
0x166e   : > { %v24038_v52 = vmul.f32 %v34583_v33, %v34583_v33  ;;  %v28068_v57 = vpack.c.bf16 %v12681_v43, %v12680_v41 }
0x166f   : > { %v24037_v25 = vmul.f32 %v34586_v29, %v34586_v29 }
0x1670   : > { %v24056_v46 = vsel %vm487_vm0, %v24038_v52, 0.0  ;;  %28069 = vmatprep.subr.bf16.mxu0 %v28068_v57 }
0x1671   : > { %24057 = vadd.xlane.f32.xlu1 %v24056_v46  ;;  %v24053_v32 = vsel %vm487_vm0, %v24037_v25, 0.0  ;;  %28071 = vmatpush3.bf16.msra.mxu0 %v28068_v57 }
0x1672   : > { %24054 = vadd.xlane.f32.xlu0 %v24053_v32 }
0x169e   : > { %v23968_v15 = vpop.xlane.xlu1 %23967 }
0x169f   : > { %v24008_v9 = vmul.f32 0.03125, %v23968_v15  ;;  %v23965_v51 = vpop.xlane.xlu0 %23964 }
0x16a0   : > { %v24007_v2 = vmul.f32 0.03125, %v23965_v51 }
0x16a1   : > { %v34595_v12 = vsub.f32 %v34501_v45, %v24008_v9 }
0x16a2   : > { %v34598_v58 = vsub.f32 %v34504_v49, %v24007_v2 }
0x16a3   : > { %v23974_v37 = vpop.xlane.xlu1 %23973  ;;  %v24040_v39 = vmul.f32 %v34595_v12, %v34595_v12 }
0x16a4   : > { %v24010_v59 = vmul.f32 0.03125, %v23974_v37  ;;  %v23971_v36 = vpop.xlane.xlu0 %23970  ;;  %v24039_v38 = vmul.f32 %v34598_v58, %v34598_v58 }
0x16a5   : > { %v24009_v23 = vmul.f32 0.03125, %v23971_v36  ;;  %v24062_v44 = vsel %vm487_vm0, %v24040_v39, 0.0 }
0x16a6   : > { %v34606_v61 = vsub.f32 %v34513_v20, %v24010_v59  ;;  %24063 = vadd.xlane.f32.xlu1 %v24062_v44  ;;  %v24059_v45 = vsel %vm487_vm0, %v24039_v38, 0.0  ;;  %v12683_v44 = vld [vmem:[#allocation2 + $0x108] sm:$0xff] }
0x16a7   : > { %v34610_v49 = vsub.f32 %v34516_v54, %v24009_v23  ;;  %v23980_v10 = vpop.xlane.xlu1 %23979  ;;  %24060 = vadd.xlane.f32.xlu0 %v24059_v45  ;;  %v12682_v23 = vld [vmem:[#allocation2 + $0x100] sm:$0xff] }
0x16a8   : > { %v24012_v30 = vmul.f32 0.03125, %v23980_v10  ;;  %v23977_v63 = vpop.xlane.xlu0 %23976  ;;  %v24042_v4 = vmul.f32 %v34606_v61, %v34606_v61  ;;  %v28072_v45 = vpack.c.bf16 %v12683_v44, %v12682_v23  ;;  %v12685_v10 = vld [vmem:[#allocation2 + $0x118] sm:$0xff] }
0x16a9   : > { %v24011_v19 = vmul.f32 0.03125, %v23977_v63  ;;  %v24041_v60 = vmul.f32 %v34610_v49, %v34610_v49  ;;  %v12686_v63 = vld [vmem:[#allocation2 + $0x120] sm:$0xff] }
0x16aa   : > { %v34617_v20 = vsub.f32 %v34525_v35, %v24012_v30  ;;  %v24068_v21 = vsel %vm487_vm0, %v24042_v4, 0.0  ;;  %v12687_v4 = vld [vmem:[#allocation2 + $0x128] sm:$0xff]  ;;  %28073 = vmatprep.subr.bf16.mxu1 %v28072_v45 }
0x16ab   : > { %v34621_v7 = vsub.f32 %v34528_v18, %v24011_v19  ;;  %v23986_v54 = vpop.xlane.xlu1 %23985  ;;  %24069 = vadd.xlane.f32.xlu1 %v24068_v21  ;;  %v24065_v55 = vsel %vm487_vm0, %v24041_v60, 0.0  ;;  %28075 = vmatpush3.bf16.msra.mxu1 %v28072_v45  ;;  %v28080_v19 = vpack.c.bf16 %v12687_v4, %v12686_v63 }
0x16ac   : > { %v24014_v50 = vmul.f32 0.03125, %v23986_v54  ;;  %24066 = vadd.xlane.f32.xlu0 %v24065_v55  ;;  %v23983_v8 = vpop.xlane.xlu0 %23982  ;;  %v24044_v24 = vmul.f32 %v34617_v20, %v34617_v20 }
0x16ad   : > { %v24013_v31 = vmul.f32 0.03125, %v23983_v8  ;;  %v24043_v35 = vmul.f32 %v34621_v7, %v34621_v7 }
0x16ae   : > { %v34629_v22 = vsub.f32 %v34537_v62, %v24014_v50  ;;  %v24074_v18 = vsel %vm487_vm0, %v24044_v24, 0.0 }
0x16af   : > { %v34633_v13 = vsub.f32 %v34540_v34, %v24013_v31  ;;  %v23992_v53 = vpop.xlane.xlu1 %23991  ;;  %24075 = vadd.xlane.f32.xlu1 %v24074_v18  ;;  %v24071_v0 = vsel %vm487_vm0, %v24043_v35, 0.0  ;;  %v34681_v31 = vld [vmem:[%s35139_s2 + $0xa] ss:$0 sm:$0xff] }
0x16b0   : > { %v24016_v11 = vmul.f32 0.03125, %v23992_v53  ;;  %24072 = vadd.xlane.f32.xlu0 %v24071_v0  ;;  %v23989_v27 = vpop.xlane.xlu0 %23988  ;;  %v24046_v16 = vmul.f32 %v34629_v22, %v34629_v22  ;;  %v34688_v0 = vld [vmem:[%s35139_s2 + $0xb] ss:$0 sm:$0xff] }
0x16b1   : > { %v24015_v1 = vmul.f32 0.03125, %v23989_v27  ;;  %v24045_v62 = vmul.f32 %v34633_v13, %v34633_v13 }
0x16b2   : > { %v34641_v3 = vsub.f32 %v34549_v48, %v24016_v11  ;;  %v24080_v34 = vsel %vm487_vm0, %v24046_v16, 0.0 }
0x16b3   : > { %v34645_v42 = vsub.f32 %v34552_v17, %v24015_v1  ;;  %24081 = vadd.xlane.f32.xlu1 %v24080_v34  ;;  %v24077_v6 = vsel %vm487_vm0, %v24045_v62, 0.0 }
0x16b4   : > { %v23998_v52 = vpop.xlane.xlu1 %23997  ;;  %24078 = vadd.xlane.f32.xlu0 %v24077_v6  ;;  %v24048_v25 = vmul.f32 %v34641_v3, %v34641_v3 }
0x16b5   : > { %v24018_v46 = vmul.f32 0.03125, %v23998_v52  ;;  %v23995_v32 = vpop.xlane.xlu0 %23994  ;;  %v24047_v14 = vmul.f32 %v34645_v42, %v34645_v42 }
0x16b6   : > { %v24017_v48 = vmul.f32 0.03125, %v23995_v32  ;;  %v24086_v5 = vsel %vm487_vm0, %v24048_v25, 0.0 }
0x16b7   : > { %v34654_v40 = vsub.f32 %v34561_v26, %v24018_v46  ;;  %24087 = vadd.xlane.f32.xlu1 %v24086_v5  ;;  %v24083_v17 = vsel %vm487_vm0, %v24047_v14, 0.0 }
0x16b8   : > { %v34658_v41 = vsub.f32 %v34564_v56, %v24017_v48  ;;  %v24004_v43 = vpop.xlane.xlu1 %24003  ;;  %24084 = vadd.xlane.f32.xlu0 %v24083_v17 }
0x16b9   : > { %v24020_v57 = vmul.f32 0.03125, %v24004_v43  ;;  %v24001_v15 = vpop.xlane.xlu0 %24000  ;;  %v24050_v9 = vmul.f32 %v34654_v40, %v34654_v40 }
0x16ba   : > { %v24019_v51 = vmul.f32 0.03125, %v24001_v15  ;;  %v24049_v2 = vmul.f32 %v34658_v41, %v34658_v41 }
0x16bb   : > { %v34665_v26 = vsub.f32 %v34573_v28, %v24020_v57  ;;  %v24092_v37 = vsel %vm487_vm0, %v24050_v9, 0.0 }
0x16bc   : > { %v34669_v39 = vsub.f32 %v34576_v47, %v24019_v51  ;;  %24093 = vadd.xlane.f32.xlu1 %v24092_v37  ;;  %v24089_v56 = vsel %vm487_vm0, %v24049_v2, 0.0  ;;  %v12684_v47 = vld [vmem:[#allocation2 + $0x110] sm:$0xff] }
0x16bd   : > { %24090 = vadd.xlane.f32.xlu0 %v24089_v56  ;;  %v24052_v59 = vmul.f32 %v34665_v26, %v34665_v26  ;;  %v28076_v30 = vpack.c.bf16 %v12685_v10, %v12684_v47 }
0x16be   : > { %v24051_v36 = vmul.f32 %v34669_v39, %v34669_v39 }
0x16bf   : > { %v24098_v38 = vsel %vm487_vm0, %v24052_v59, 0.0  ;;  %28077 = vmatprep.subr.bf16.mxu1 %v28076_v30 }
0x16c0   : > { %24099 = vadd.xlane.f32.xlu1 %v24098_v38  ;;  %v24095_v28 = vsel %vm487_vm0, %v24051_v36, 0.0  ;;  %28079 = vmatpush3.bf16.msra.mxu1 %v28076_v30 }
0x16c1   : > { %24096 = vadd.xlane.f32.xlu0 %v24095_v28  ;;  %28081 = vmatprep.subr.bf16.mxu1 %v28080_v19 }
0x16c4   : > { %28083 = vmatpush3.bf16.msra.mxu1 %v28080_v19 }
0x16fe   : > { %v24058_v60 = vpop.xlane.xlu1 %24057 }
0x16ff   : > { %v24102_v21 = vmul.f32 0.03125, %v24058_v60  ;;  %v24055_v54 = vpop.xlane.xlu0 %24054 }
0x1700   : > { %v24101_v55 = vmul.f32 0.03125, %v24055_v54 }
0x1701   : > { %v24118_v50 = vadd.f32 1e-05, %v24102_v21 }
0x1702   : > { %v24117_v8 = vadd.f32 1e-05, %v24101_v55 }
0x1703   : > { %28726 = vrsqrt.f32 %v24118_v50 }
0x1704   : > { %28728 = vrsqrt.f32 %v24117_v8 }
0x170d   : > { %v28727_v24 = vpop.eup %28726 }
0x170e   : > { %v28729_v35 = vpop.eup %28728  ;;  %v24150_v18 = vmul.f32 %v28727_v24, %v34583_v33 }
0x170f   : > { %v24149_v53 = vmul.f32 %v28729_v35, %v34586_v29 }
0x1710   : > { %v24170_v11 = vmul.f32 %v34681_v31, %v24150_v18 }
0x1711   : > { %v24169_v27 = vmul.f32 %v34681_v31, %v24149_v53 }
0x1712   : > { %v34696_v1 = vadd.f32 %v34688_v0, %v24170_v11 }
0x1713   : > { %v34693_v16 = vadd.f32 %v34688_v0, %v24169_v27 }
0x1715   : > { %27933 = vmatprep.mubr.msk.f32.mxu0 %vm487_vm0, %v34693_v16 }
0x1716   : > { %27934 = vmatmul.mubr.msk.f32.vlgmr.msra.gmra.mrb[46].mxu0 %vm487_vm0, %v34696_v1 }
0x1733   : > { %v24064_v33 = vpop.xlane.xlu1 %24063 }
0x1734   : > { %v24104_v29 = vmul.f32 0.03125, %v24064_v33  ;;  %v24061_v62 = vpop.xlane.xlu0 %24060 }
0x1735   : > { %v24103_v34 = vmul.f32 0.03125, %v24061_v62 }
0x1736   : > { %v24120_v6 = vadd.f32 1e-05, %v24104_v29 }
0x1737   : > { %v24119_v52 = vadd.f32 1e-05, %v24103_v34 }
0x1738   : > { %28730 = vrsqrt.f32 %v24120_v6  ;;  %v24070_v25 = vpop.xlane.xlu1 %24069 }
0x1739   : > { %28732 = vrsqrt.f32 %v24119_v52  ;;  %v24106_v46 = vmul.f32 0.03125, %v24070_v25  ;;  %v24067_v32 = vpop.xlane.xlu0 %24066 }
0x173a   : > { %v24105_v14 = vmul.f32 0.03125, %v24067_v32 }
0x173b   : > { %v24122_v48 = vadd.f32 1e-05, %v24106_v46 }
0x173c   : > { %v24121_v5 = vadd.f32 1e-05, %v24105_v14  ;;  %v24076_v17 = vpop.xlane.xlu1 %24075 }
0x173d   : > { %28734 = vrsqrt.f32 %v24122_v48  ;;  %v24108_v43 = vmul.f32 0.03125, %v24076_v17  ;;  %v24073_v57 = vpop.xlane.xlu0 %24072 }
0x173e   : > { %28736 = vrsqrt.f32 %v24121_v5  ;;  %v24107_v15 = vmul.f32 0.03125, %v24073_v57 }
0x173f   : > { %v24124_v9 = vadd.f32 1e-05, %v24108_v43 }
0x1740   : > { %v24123_v51 = vadd.f32 1e-05, %v24107_v15  ;;  %v24082_v2 = vpop.xlane.xlu1 %24081 }
0x1741   : > { %28738 = vrsqrt.f32 %v24124_v9  ;;  %v24110_v37 = vmul.f32 0.03125, %v24082_v2  ;;  %v24079_v56 = vpop.xlane.xlu0 %24078 }
0x1742   : > { %v28731_v59 = vpop.eup %28730  ;;  %28740 = vrsqrt.f32 %v24123_v51  ;;  %v24109_v36 = vmul.f32 0.03125, %v24079_v56 }
0x1743   : > { %v28733_v38 = vpop.eup %28732  ;;  %v24152_v28 = vmul.f32 %v28731_v59, %v34595_v12  ;;  %v24126_v23 = vadd.f32 1e-05, %v24110_v37 }
0x1744   : > { %v24125_v44 = vadd.f32 1e-05, %v24109_v36  ;;  %v24088_v47 = vpop.xlane.xlu1 %24087  ;;  %v24151_v45 = vmul.f32 %v28733_v38, %v34598_v58 }
0x1745   : > { %v24172_v10 = vmul.f32 %v34681_v31, %v24152_v28  ;;  %28742 = vrsqrt.f32 %v24126_v23  ;;  %v24112_v30 = vmul.f32 0.03125, %v24088_v47  ;;  %v24085_v63 = vpop.xlane.xlu0 %24084 }
0x1746   : > { %28744 = vrsqrt.f32 %v24125_v44  ;;  %v24111_v4 = vmul.f32 0.03125, %v24085_v63  ;;  %v24171_v19 = vmul.f32 %v34681_v31, %v24151_v45 }
0x1747   : > { %v28735_v60 = vpop.eup %28734  ;;  %v24128_v21 = vadd.f32 1e-05, %v24112_v30  ;;  %v34711_v58 = vadd.f32 %v34688_v0, %v24172_v10 }
0x1748   : > { %v28737_v54 = vpop.eup %28736  ;;  %v24154_v55 = vmul.f32 %v28735_v60, %v34606_v61  ;;  %v24127_v12 = vadd.f32 1e-05, %v24111_v4  ;;  %v34708_v50 = vadd.f32 %v34688_v0, %v24171_v19 }
0x1749   : > { %28746 = vrsqrt.f32 %v24128_v21  ;;  %v24094_v8 = vpop.xlane.xlu1 %24093  ;;  %v24153_v24 = vmul.f32 %v28737_v54, %v34610_v49 }
0x174a   : > { %v24174_v35 = vmul.f32 %v34681_v31, %v24154_v55  ;;  %28748 = vrsqrt.f32 %v24127_v12  ;;  %v24114_v18 = vmul.f32 0.03125, %v24094_v8  ;;  %v24091_v53 = vpop.xlane.xlu0 %24090  ;;  %27936 = vmatprep.mubr.msk.f32.mxu0 %vm487_vm0, %v34708_v50  ;;  %v12689_v8 = vld [vmem:[#allocation2 + $0x138] sm:$0xff] }
0x174b   : > { %v28739_v61 = vpop.eup %28738  ;;  %v24113_v11 = vmul.f32 0.03125, %v24091_v53  ;;  %27937 = vmatmul.mubr.msk.f32.gmra.mrb[48].mxu0 %vm487_vm0, %v34711_v58  ;;  %v24173_v27 = vmul.f32 %v34681_v31, %v24153_v24 }
0x174c   : > { %v28741_v33 = vpop.eup %28740  ;;  %v24156_v29 = vmul.f32 %v28739_v61, %v34617_v20  ;;  %v24130_v62 = vadd.f32 1e-05, %v24114_v18  ;;  %v34726_v25 = vadd.f32 %v34688_v0, %v24174_v35 }
0x174d   : > { %v24129_v49 = vadd.f32 1e-05, %v24113_v11  ;;  %v24100_v34 = vpop.xlane.xlu1 %24099  ;;  %v34722_v6 = vadd.f32 %v34688_v0, %v24173_v27  ;;  %v24155_v52 = vmul.f32 %v28741_v33, %v34621_v7 }
0x174e   : > { %v24176_v46 = vmul.f32 %v34681_v31, %v24156_v29  ;;  %28750 = vrsqrt.f32 %v24130_v62  ;;  %v24116_v32 = vmul.f32 0.03125, %v24100_v34  ;;  %v24097_v14 = vpop.xlane.xlu0 %24096 }
0x174f   : > { %v28743_v48 = vpop.eup %28742  ;;  %28752 = vrsqrt.f32 %v24129_v49  ;;  %v24115_v5 = vmul.f32 0.03125, %v24097_v14  ;;  %27939 = vmatprep.mubr.msk.f32.mxu0 %vm487_vm0, %v34722_v6  ;;  %v24175_v20 = vmul.f32 %v34681_v31, %v24155_v52 }
0x1750   : > { %v28745_v17 = vpop.eup %28744  ;;  %v24158_v43 = vmul.f32 %v28743_v48, %v34629_v22  ;;  %v24132_v7 = vadd.f32 1e-05, %v24116_v32  ;;  %27940 = vmatmul.mubr.msk.f32.gmra.mrb[50].mxu0 %vm487_vm0, %v34726_v25  ;;  %v34740_v51 = vadd.f32 %v34688_v0, %v24176_v46 }
0x1751   : > { %v24131_v57 = vadd.f32 1e-05, %v24115_v5  ;;  %v34736_v15 = vadd.f32 %v34688_v0, %v24175_v20  ;;  %v24157_v9 = vmul.f32 %v28745_v17, %v34633_v13 }
0x1752   : > { %v24178_v2 = vmul.f32 %v34681_v31, %v24158_v43  ;;  %28754 = vrsqrt.f32 %v24132_v7 }
0x1753   : > { %v28747_v37 = vpop.eup %28746  ;;  %28756 = vrsqrt.f32 %v24131_v57  ;;  %27942 = vmatprep.mubr.msk.f32.mxu0 %vm487_vm0, %v34736_v15  ;;  %v24177_v22 = vmul.f32 %v34681_v31, %v24157_v9 }
0x1754   : > { %v28749_v56 = vpop.eup %28748  ;;  %v24160_v59 = vmul.f32 %v28747_v37, %v34641_v3  ;;  %27943 = vmatmul.mubr.msk.f32.gmra.mrb[52].mxu0 %vm487_vm0, %v34740_v51  ;;  %v34754_v38 = vadd.f32 %v34688_v0, %v24178_v2 }
0x1755   : > { %v34750_v13 = vadd.f32 %v34688_v0, %v24177_v22  ;;  %v24159_v36 = vmul.f32 %v28749_v56, %v34645_v42 }
0x1756   : > { %v24180_v28 = vmul.f32 %v34681_v31, %v24160_v59 }
0x1757   : > { %27945 = vmatprep.mubr.msk.f32.mxu0 %vm487_vm0, %v34750_v13  ;;  %v24179_v23 = vmul.f32 %v34681_v31, %v24159_v36 }
0x1758   : > { %v28751_v44 = vpop.eup %28750  ;;  %27946 = vmatmul.mubr.msk.f32.gmra.mrb[54].mxu0 %vm487_vm0, %v34754_v38  ;;  %v34767_v42 = vadd.f32 %v34688_v0, %v24180_v28 }
0x1759   : > { %v28753_v3 = vpop.eup %28752  ;;  %v24162_v47 = vmul.f32 %v28751_v44, %v34654_v40  ;;  %v34764_v45 = vadd.f32 %v34688_v0, %v24179_v23 }
0x175a   : > { %v24161_v10 = vmul.f32 %v28753_v3, %v34658_v41 }
0x175b   : > { %v24182_v30 = vmul.f32 %v34681_v31, %v24162_v47  ;;  %27948 = vmatprep.mubr.msk.f32.mxu0 %vm487_vm0, %v34764_v45 }
0x175c   : > { %v28755_v63 = vpop.eup %28754  ;;  %27949 = vmatmul.mubr.msk.f32.gmra.mrb[56].mxu0 %vm487_vm0, %v34767_v42  ;;  %v24181_v4 = vmul.f32 %v34681_v31, %v24161_v10 }
0x175d   : > { %v28757_v40 = vpop.eup %28756  ;;  %v24164_v19 = vmul.f32 %v28755_v63, %v34665_v26  ;;  %v34782_v41 = vadd.f32 %v34688_v0, %v24182_v30 }
0x175e   : > { %v34778_v60 = vadd.f32 %v34688_v0, %v24181_v4  ;;  %v24163_v21 = vmul.f32 %v28757_v40, %v34669_v39  ;;  %v12688_v39 = vld [vmem:[#allocation2 + $0x130] sm:$0xff] }
0x175f   : > { %v24184_v54 = vmul.f32 %v34681_v31, %v24164_v19  ;;  %v28084_v24 = vpack.c.bf16 %v12689_v8, %v12688_v39 }
0x1760   : > { %27951 = vmatprep.mubr.msk.f32.mxu0 %vm487_vm0, %v34778_v60  ;;  %v24183_v55 = vmul.f32 %v34681_v31, %v24163_v21  ;;  %v25718_v31 = vld [vmem:[%s35139_s2 + $0xc] ss:$0 sm:$0xff] }
0x1761   : > { %27952 = vmatmul.mubr.msk.f32.gmra.mrb[58].mxu0 %vm487_vm0, %v34782_v41  ;;  %v34794_v12 = vadd.f32 %v34688_v0, %v24184_v54  ;;  %28085 = vmatprep.subr.bf16.mxu1 %v28084_v24 }
0x1762   : > { %v34791_v26 = vadd.f32 %v34688_v0, %v24183_v55  ;;  %28087 = vmatpush3.bf16.msra.mxu1 %v28084_v24 }
0x1764   : > { %27954 = vmatprep.mubr.msk.f32.mxu0 %vm487_vm0, %v34791_v26 }
0x1765   : > { %27955 = vmatmul.mubr.msk.f32.gmra.mrb[60].mxu0 %vm487_vm0, %v34794_v12 }
0x17e9   : > { %v27935_v35 = vpop.f32.mrb[46].mxu0 }
0x17ea   : > { %v24329_v18 = vadd.f32 %v27935_v35, %v25718_v31  ;;  %v24323_v53 = vpop.f32.mrb[47].mxu0 }
0x17eb   : > { %v24324_v0 = vadd.f32 %v25718_v31, %v24323_v53 }
0x17ec   : > { %v24403_v11 = vmax.f32 %v24329_v18, 0.0  ;;  %v34822_v18 = vld [vmem:[%s35139_s2 + $0xd] ss:$0 sm:$0xff] }
0x17ed   : > { %v24402_v61 = vmax.f32 %v24324_v0, 0.0 }
0x17ef   : > { %27973 = vmatprep.mubr.msk.f32.mxu1 %vm12211_vm5, %v24402_v61 }
0x17f0   : > { %27974 = vmatmul.mubr.msk.f32.vlgmr.msra.gmra.mrb[50].mxu1 %vm12211_vm5, %v24403_v11 }
0x181e   : > { %v27938_v27 = vpop.f32.mrb[48].mxu0 }
0x181f   : > { %v24339_v33 = vadd.f32 %v27938_v27, %v25718_v31  ;;  %v24333_v29 = vpop.f32.mrb[49].mxu0 }
0x1820   : > { %v24334_v62 = vadd.f32 %v25718_v31, %v24333_v29 }
0x1821   : > { %v24405_v34 = vmax.f32 %v24339_v33, 0.0 }
0x1822   : > { %v24404_v49 = vmax.f32 %v24334_v62, 0.0 }
0x1823   : > { %v27941_v52 = vpop.f32.mrb[50].mxu0 }
0x1824   : > { %v24349_v46 = vadd.f32 %v27941_v52, %v25718_v31  ;;  %v24343_v32 = vpop.f32.mrb[51].mxu0  ;;  %27976 = vmatprep.mubr.msk.f32.mxu1 %vm12211_vm5, %v24404_v49 }
0x1825   : > { %v24344_v14 = vadd.f32 %v25718_v31, %v24343_v32  ;;  %27977 = vmatmul.mubr.msk.f32.gmra.mrb[52].mxu1 %vm12211_vm5, %v24405_v34 }
0x1826   : > { %v24407_v20 = vmax.f32 %v24349_v46, 0.0 }
0x1827   : > { %v24406_v48 = vmax.f32 %v24344_v14, 0.0  ;;  %v27944_v5 = vpop.f32.mrb[52].mxu0 }
0x1828   : > { %v24359_v17 = vadd.f32 %v27944_v5, %v25718_v31  ;;  %v24353_v43 = vpop.f32.mrb[53].mxu0 }
0x1829   : > { %v24354_v7 = vadd.f32 %v25718_v31, %v24353_v43  ;;  %27979 = vmatprep.mubr.msk.f32.mxu1 %vm12211_vm5, %v24406_v48 }
0x182a   : > { %27980 = vmatmul.mubr.msk.f32.gmra.mrb[54].mxu1 %vm12211_vm5, %v24407_v20  ;;  %v24409_v2 = vmax.f32 %v24359_v17, 0.0 }
0x182b   : > { %v24408_v57 = vmax.f32 %v24354_v7, 0.0  ;;  %v27947_v9 = vpop.f32.mrb[54].mxu0 }
0x182c   : > { %v24369_v37 = vadd.f32 %v27947_v9, %v25718_v31  ;;  %v24363_v22 = vpop.f32.mrb[55].mxu0 }
0x182d   : > { %v24364_v56 = vadd.f32 %v25718_v31, %v24363_v22  ;;  %27982 = vmatprep.mubr.msk.f32.mxu1 %vm12211_vm5, %v24408_v57 }
0x182e   : > { %27983 = vmatmul.mubr.msk.f32.gmra.mrb[56].mxu1 %vm12211_vm5, %v24409_v2  ;;  %v24411_v28 = vmax.f32 %v24369_v37, 0.0 }
0x182f   : > { %v24410_v59 = vmax.f32 %v24364_v56, 0.0  ;;  %v27950_v36 = vpop.f32.mrb[56].mxu0 }
0x1830   : > { %v24379_v23 = vadd.f32 %v27950_v36, %v25718_v31  ;;  %v24373_v44 = vpop.f32.mrb[57].mxu0 }
0x1831   : > { %v24374_v3 = vadd.f32 %v25718_v31, %v24373_v44  ;;  %27985 = vmatprep.mubr.msk.f32.mxu1 %vm12211_vm5, %v24410_v59 }
0x1832   : > { %27986 = vmatmul.mubr.msk.f32.gmra.mrb[58].mxu1 %vm12211_vm5, %v24411_v28  ;;  %v24413_v10 = vmax.f32 %v24379_v23, 0.0 }
0x1833   : > { %v24412_v47 = vmax.f32 %v24374_v3, 0.0 }
0x1834   : > { %v27953_v30 = vpop.f32.mrb[58].mxu0 }
0x1835   : > { %v24389_v63 = vadd.f32 %v27953_v30, %v25718_v31  ;;  %v24383_v4 = vpop.f32.mrb[59].mxu0  ;;  %27988 = vmatprep.mubr.msk.f32.mxu1 %vm12211_vm5, %v24412_v47 }
0x1836   : > { %v24384_v40 = vadd.f32 %v25718_v31, %v24383_v4  ;;  %27989 = vmatmul.mubr.msk.f32.gmra.mrb[60].mxu1 %vm12211_vm5, %v24413_v10 }
0x1837   : > { %v24415_v54 = vmax.f32 %v24389_v63, 0.0 }
0x1838   : > { %v24414_v19 = vmax.f32 %v24384_v40, 0.0  ;;  %v27956_v21 = vpop.f32.mrb[60].mxu0 }
0x1839   : > { %v24399_v55 = vadd.f32 %v27956_v21, %v25718_v31  ;;  %v24393_v39 = vpop.f32.mrb[61].mxu0 }
0x183a   : > { %v24394_v8 = vadd.f32 %v25718_v31, %v24393_v39  ;;  %27991 = vmatprep.mubr.msk.f32.mxu1 %vm12211_vm5, %v24414_v19 }
0x183b   : > { %27992 = vmatmul.mubr.msk.f32.gmra.mrb[62].mxu1 %vm12211_vm5, %v24415_v54  ;;  %v24417_v35 = vmax.f32 %v24399_v55, 0.0 }
0x183c   : > { %v24416_v24 = vmax.f32 %v24394_v8, 0.0 }
0x183e   : > { %27994 = vmatprep.mubr.msk.f32.mxu1 %vm12211_vm5, %v24416_v24 }
0x183f   : > { %27995 = vmatmul.mubr.msk.f32.gmra.mrb[64].mxu1 %vm12211_vm5, %v24417_v35 }
0x18c3   : > { %v27975_v53 = vpop.f32.mrb[50].mxu1 }
0x18c4   : > { %v24542_v0 = vadd.f32 %v27975_v53, %v34822_v18  ;;  %v24536_v61 = vpop.f32.mrb[51].mxu1 }
0x18c5   : > { %v24537_v31 = vadd.f32 %v34822_v18, %v24536_v61 }
0x18c6   : > { %v34827_v11 = vadd.f32 %v24542_v0, %v34696_v1 }
0x18c7   : > { %v34830_v27 = vadd.f32 %v24537_v31, %v34693_v16 }
0x18c8   : > { %v24634_v33 = vsel %vm487_vm0, %v34827_v11, 0.0 }
0x18c9   : > { %24635 = vadd.xlane.f32.xlu1 %v24634_v33  ;;  %v24631_v29 = vsel %vm487_vm0, %v34830_v27, 0.0 }
0x18ca   : > { %24632 = vadd.xlane.f32.xlu0 %v24631_v29 }
0x18f8   : > { %v27978_v62 = vpop.f32.mrb[52].mxu1 }
0x18f9   : > { %v24552_v49 = vadd.f32 %v27978_v62, %v34822_v18  ;;  %v24546_v34 = vpop.f32.mrb[53].mxu1 }
0x18fa   : > { %v24547_v52 = vadd.f32 %v34822_v18, %v24546_v34 }
0x18fb   : > { %v34839_v1 = vadd.f32 %v24552_v49, %v34711_v58 }
0x18fc   : > { %v34842_v16 = vadd.f32 %v24547_v52, %v34708_v50 }
0x18fd   : > { %v27981_v46 = vpop.f32.mrb[54].mxu1  ;;  %v24640_v32 = vsel %vm487_vm0, %v34839_v1, 0.0 }
0x18fe   : > { %v24562_v14 = vadd.f32 %v27981_v46, %v34822_v18  ;;  %24641 = vadd.xlane.f32.xlu1 %v24640_v32  ;;  %v24556_v48 = vpop.f32.mrb[55].mxu1  ;;  %v24637_v5 = vsel %vm487_vm0, %v34842_v16, 0.0 }
0x18ff   : > { %v24557_v20 = vadd.f32 %v34822_v18, %v24556_v48  ;;  %24638 = vadd.xlane.f32.xlu0 %v24637_v5 }
0x1900   : > { %v34851_v58 = vadd.f32 %v24562_v14, %v34726_v25 }
0x1901   : > { %v27984_v17 = vpop.f32.mrb[56].mxu1  ;;  %v34854_v50 = vadd.f32 %v24557_v20, %v34722_v6 }
0x1902   : > { %v24566_v43 = vpop.f32.mrb[57].mxu1  ;;  %v24646_v7 = vsel %vm487_vm0, %v34851_v58, 0.0  ;;  %v24572_v59 = vadd.f32 %v27984_v17, %v34822_v18 }
0x1903   : > { %v24567_v57 = vadd.f32 %v34822_v18, %v24566_v43  ;;  %24647 = vadd.xlane.f32.xlu1 %v24646_v7  ;;  %v24643_v25 = vsel %vm487_vm0, %v34854_v50, 0.0 }
0x1904   : > { %v34883_v10 = vadd.f32 %v24572_v59, %v34740_v51 }
0x1905   : > { %v27987_v9 = vpop.f32.mrb[58].mxu1  ;;  %v34860_v2 = vadd.f32 %v24567_v57, %v34736_v15 }
0x1906   : > { %v24582_v37 = vadd.f32 %v27987_v9, %v34822_v18  ;;  %v24576_v22 = vpop.f32.mrb[59].mxu1 }
0x1907   : > { %v24577_v6 = vadd.f32 %v34822_v18, %v24576_v22  ;;  %24644 = vadd.xlane.f32.xlu1 %v24643_v25  ;;  %v24649_v44 = vsel %vm487_vm0, %v34860_v2, 0.0 }
0x1908   : > { %v34867_v56 = vadd.f32 %v24582_v37, %v34754_v38 }
0x1909   : > { %v27990_v36 = vpop.f32.mrb[60].mxu1  ;;  %v34871_v28 = vadd.f32 %v24577_v6, %v34750_v13 }
0x190a   : > { %v24592_v15 = vadd.f32 %v27990_v36, %v34822_v18  ;;  %v24586_v23 = vpop.f32.mrb[61].mxu1  ;;  %v24658_v3 = vsel %vm487_vm0, %v34867_v56, 0.0 }
0x190b   : > { %v24587_v47 = vadd.f32 %v34822_v18, %v24586_v23  ;;  %24650 = vadd.xlane.f32.xlu1 %v24649_v44  ;;  %24659 = vadd.xlane.f32.xlu0 %v24658_v3  ;;  %v24655_v63 = vsel %vm487_vm0, %v34871_v28, 0.0 }
0x190c   : > { %v34880_v38 = vadd.f32 %v24592_v15, %v34767_v42 }
0x190d   : > { %v34886_v13 = vadd.f32 %v24587_v47, %v34764_v45  ;;  %v24652_v45 = vsel %vm487_vm0, %v34883_v10, 0.0 }
0x190e   : > { %v27993_v30 = vpop.f32.mrb[62].mxu1  ;;  %v24664_v4 = vsel %vm487_vm0, %v34880_v38, 0.0 }
0x190f   : > { %v24602_v40 = vadd.f32 %v27993_v30, %v34822_v18  ;;  %v24596_v19 = vpop.f32.mrb[63].mxu1  ;;  %24656 = vadd.xlane.f32.xlu1 %v24655_v63  ;;  %24665 = vadd.xlane.f32.xlu0 %v24664_v4  ;;  %v24661_v54 = vsel %vm487_vm0, %v34886_v13, 0.0 }
0x1910   : > { %v24597_v51 = vadd.f32 %v34822_v18, %v24596_v19 }
0x1911   : > { %v34894_v42 = vadd.f32 %v24602_v40, %v34782_v41 }
0x1912   : > { %v27996_v21 = vpop.f32.mrb[64].mxu1  ;;  %v34906_v41 = vadd.f32 %v24597_v51, %v34778_v60 }
0x1913   : > { %v24612_v55 = vadd.f32 %v27996_v21, %v34822_v18  ;;  %v24606_v39 = vpop.f32.mrb[65].mxu1  ;;  %24653 = vadd.xlane.f32.xlu1 %v24652_v45  ;;  %24662 = vadd.xlane.f32.xlu0 %v24661_v54  ;;  %v24670_v35 = vsel %vm487_vm0, %v34894_v42, 0.0 }
0x1914   : > { %v24607_v24 = vadd.f32 %v34822_v18, %v24606_v39 }
0x1915   : > { %v34903_v8 = vadd.f32 %v24612_v55, %v34794_v12  ;;  %v24667_v12 = vsel %vm487_vm0, %v34906_v41, 0.0 }
0x1916   : > { %v34914_v0 = vadd.f32 %v24607_v24, %v34791_v26 }
0x1917   : > { %24671 = vadd.xlane.f32.xlu0 %v24670_v35  ;;  %v24676_v53 = vsel %vm487_vm0, %v34903_v8, 0.0 }
0x1918   : > { %24677 = vadd.xlane.f32.xlu1 %v24676_v53  ;;  %v24673_v60 = vsel %vm487_vm0, %v34914_v0, 0.0 }
0x191b   : > { %24668 = vadd.xlane.f32.xlu0 %v24667_v12 }
0x191f   : > { %24674 = vadd.xlane.f32.xlu0 %v24673_v60 }
0x1956   : > { %v24636_v18 = vpop.xlane.xlu1 %24635 }
0x1957   : > { %v24680_v61 = vmul.f32 0.03125, %v24636_v18  ;;  %v24633_v31 = vpop.xlane.xlu0 %24632 }
0x1958   : > { %v24679_v33 = vmul.f32 0.03125, %v24633_v31 }
0x1959   : > { %v34921_v29 = vsub.f32 %v34827_v11, %v24680_v61 }
0x195a   : > { %v34924_v62 = vsub.f32 %v34830_v27, %v24679_v33 }
0x195b   : > { %v24712_v26 = vmul.f32 %v34921_v29, %v34921_v29 }
0x195c   : > { %v24711_v49 = vmul.f32 %v34924_v62, %v34924_v62 }
0x195d   : > { %v24730_v34 = vsel %vm487_vm0, %v24712_v26, 0.0 }
0x195e   : > { %24731 = vadd.xlane.f32.xlu1 %v24730_v34  ;;  %v24727_v52 = vsel %vm487_vm0, %v24711_v49, 0.0 }
0x195f   : > { %24728 = vadd.xlane.f32.xlu0 %v24727_v52 }
0x198b   : > { %v24642_v46 = vpop.xlane.xlu1 %24641 }
0x198c   : > { %v24682_v32 = vmul.f32 0.03125, %v24642_v46  ;;  %v24639_v14 = vpop.xlane.xlu0 %24638 }
0x198d   : > { %v24681_v11 = vmul.f32 0.03125, %v24639_v14 }
0x198e   : > { %v34933_v48 = vsub.f32 %v34839_v1, %v24682_v32 }
0x198f   : > { %v34936_v27 = vsub.f32 %v34842_v16, %v24681_v11 }
0x1990   : > { %v24648_v5 = vpop.xlane.xlu1 %24647  ;;  %v24714_v20 = vmul.f32 %v34933_v48, %v34933_v48 }
0x1991   : > { %v24684_v17 = vmul.f32 0.03125, %v24648_v5  ;;  %v24713_v43 = vmul.f32 %v34936_v27, %v34936_v27 }
0x1992   : > { %v24736_v7 = vsel %vm487_vm0, %v24714_v20, 0.0 }
0x1993   : > { %v34944_v57 = vsub.f32 %v34851_v58, %v24684_v17  ;;  %24737 = vadd.xlane.f32.xlu1 %v24736_v7  ;;  %v24733_v1 = vsel %vm487_vm0, %v24713_v43, 0.0 }
0x1994   : > { %v24645_v9 = vpop.xlane.xlu1 %24644  ;;  %24734 = vadd.xlane.f32.xlu0 %v24733_v1  ;;  %v25008_v1 = vld [vmem:[%s35140_s3 + $0x8] sm:$0xff] }
0x1995   : > { %v24683_v16 = vmul.f32 0.03125, %v24645_v9  ;;  %v24716_v37 = vmul.f32 %v34944_v57, %v34944_v57  ;;  %v25009_v9 = vld [vmem:[%s35140_s3 + $0x10] sm:$0xff] }
0x1997   : > { %v34950_v22 = vsub.f32 %v34854_v50, %v24683_v16  ;;  %v24742_v25 = vsel %vm487_vm0, %v24716_v37, 0.0  ;;  %v28088_v16 = vpack.c.bf16 %v25009_v9, %v25008_v1  ;;  %v25011_v37 = vld [vmem:[%s35140_s3 + $0x20] sm:$0xff] }
0x1998   : > { %v24651_v6 = vpop.xlane.xlu1 %24650  ;;  %24743 = vadd.xlane.f32.xlu1 %v24742_v25  ;;  %v24660_v59 = vpop.xlane.xlu0 %24659 }
0x1999   : > { %v24685_v36 = vmul.f32 0.03125, %v24651_v6  ;;  %v24688_v58 = vmul.f32 0.03125, %v24660_v59  ;;  %v24715_v15 = vmul.f32 %v34950_v22, %v34950_v22  ;;  %28089 = vmatprep.subr.bf16.mxu0 %v28088_v16 }
0x199a   : > { %28091 = vmatpush3.bf16.msra.mxu0 %v28088_v16 }
0x199b   : > { %v34956_v23 = vsub.f32 %v34860_v2, %v24685_v36  ;;  %v34959_v44 = vsub.f32 %v34867_v56, %v24688_v58  ;;  %v24739_v3 = vsel %vm487_vm0, %v24715_v15, 0.0 }
0x199c   : > { %v24657_v50 = vpop.xlane.xlu1 %24656  ;;  %24740 = vadd.xlane.f32.xlu1 %v24739_v3  ;;  %v24666_v47 = vpop.xlane.xlu0 %24665 }
0x199d   : > { %v24687_v30 = vmul.f32 0.03125, %v24657_v50  ;;  %v24690_v63 = vmul.f32 0.03125, %v24666_v47  ;;  %v24717_v4 = vmul.f32 %v34956_v23, %v34956_v23  ;;  %v24720_v40 = vmul.f32 %v34959_v44, %v34959_v44 }
0x199f   : > { %v34967_v19 = vsub.f32 %v34871_v28, %v24687_v30  ;;  %v34970_v2 = vsub.f32 %v34880_v38, %v24690_v63  ;;  %v24745_v56 = vsel %vm487_vm0, %v24717_v4, 0.0  ;;  %v24754_v51 = vsel %vm487_vm0, %v24720_v40, 0.0  ;;  %v35032_v63 = vld [vmem:[%s35139_s2 + $0xe] ss:$0 sm:$0xff] }
0x19a0   : > { %v24654_v21 = vpop.xlane.xlu1 %24653  ;;  %24746 = vadd.xlane.f32.xlu1 %v24745_v56  ;;  %24755 = vadd.xlane.f32.xlu0 %v24754_v51  ;;  %v24663_v45 = vpop.xlane.xlu0 %24662  ;;  %v35039_v56 = vld [vmem:[%s35139_s2 + $0xf] ss:$0 sm:$0xff] }
0x19a1   : > { %v24686_v54 = vmul.f32 0.03125, %v24654_v21  ;;  %v24689_v55 = vmul.f32 0.03125, %v24663_v45  ;;  %v24719_v39 = vmul.f32 %v34967_v19, %v34967_v19  ;;  %v24722_v28 = vmul.f32 %v34970_v2, %v34970_v2 }
0x19a3   : > { %v34979_v24 = vsub.f32 %v34883_v10, %v24686_v54  ;;  %v34982_v38 = vsub.f32 %v34886_v13, %v24689_v55  ;;  %v24751_v35 = vsel %vm487_vm0, %v24719_v39, 0.0  ;;  %v24760_v53 = vsel %vm487_vm0, %v24722_v28, 0.0 }
0x19a4   : > { %24752 = vadd.xlane.f32.xlu1 %v24751_v35  ;;  %24761 = vadd.xlane.f32.xlu0 %v24760_v53  ;;  %v24672_v12 = vpop.xlane.xlu0 %24671 }
0x19a5   : > { %v24678_v60 = vpop.xlane.xlu1 %24677  ;;  %v24692_v18 = vmul.f32 0.03125, %v24672_v12  ;;  %v24718_v61 = vmul.f32 %v34979_v24, %v34979_v24  ;;  %v24721_v31 = vmul.f32 %v34982_v38, %v34982_v38 }
0x19a6   : > { %v24694_v10 = vmul.f32 0.03125, %v24678_v60 }
0x19a7   : > { %v34991_v33 = vsub.f32 %v34894_v42, %v24692_v18  ;;  %v24748_v13 = vsel %vm487_vm0, %v24718_v61, 0.0  ;;  %v24757_v26 = vsel %vm487_vm0, %v24721_v31, 0.0 }
0x19a8   : > { %v34996_v49 = vsub.f32 %v34903_v8, %v24694_v10  ;;  %24749 = vadd.xlane.f32.xlu1 %v24748_v13  ;;  %24758 = vadd.xlane.f32.xlu0 %v24757_v26  ;;  %v24669_v34 = vpop.xlane.xlu0 %24668 }
0x19a9   : > { %v24691_v52 = vmul.f32 0.03125, %v24669_v34  ;;  %v24724_v46 = vmul.f32 %v34991_v33, %v34991_v33 }
0x19aa   : > { %v24726_v32 = vmul.f32 %v34996_v49, %v34996_v49 }
0x19ab   : > { %v35003_v42 = vsub.f32 %v34906_v41, %v24691_v52  ;;  %v24766_v14 = vsel %vm487_vm0, %v24724_v46, 0.0 }
0x19ac   : > { %v24772_v11 = vsel %vm487_vm0, %v24726_v32, 0.0  ;;  %24767 = vadd.xlane.f32.xlu0 %v24766_v14  ;;  %v24675_v8 = vpop.xlane.xlu0 %24674 }
0x19ad   : > { %24773 = vadd.xlane.f32.xlu1 %v24772_v11  ;;  %v24693_v5 = vmul.f32 0.03125, %v24675_v8  ;;  %v24723_v20 = vmul.f32 %v35003_v42, %v35003_v42 }
0x19af   : > { %v35010_v17 = vsub.f32 %v34914_v0, %v24693_v5  ;;  %v24763_v43 = vsel %vm487_vm0, %v24723_v20, 0.0  ;;  %v25010_v0 = vld [vmem:[%s35140_s3 + $0x18] sm:$0xff] }
0x19b0   : > { %24764 = vadd.xlane.f32.xlu0 %v24763_v43  ;;  %v28092_v25 = vpack.c.bf16 %v25011_v37, %v25010_v0 }
0x19b1   : > { %v24725_v41 = vmul.f32 %v35010_v17, %v35010_v17 }
0x19b2   : > { %28093 = vmatprep.subr.bf16.mxu0 %v28092_v25 }
0x19b3   : > { %v24769_v7 = vsel %vm487_vm0, %v24725_v41, 0.0  ;;  %28095 = vmatpush3.bf16.msra.mxu0 %v28092_v25 }
0x19b4   : > { %24770 = vadd.xlane.f32.xlu0 %v24769_v7 }
0x19eb   : > { %v24732_v6 = vpop.xlane.xlu1 %24731 }
0x19ec   : > { %v24776_v59 = vmul.f32 0.03125, %v24732_v6  ;;  %v24729_v36 = vpop.xlane.xlu0 %24728 }
0x19ed   : > { %v24775_v58 = vmul.f32 0.03125, %v24729_v36 }
0x19ee   : > { %v24792_v15 = vadd.f32 1e-05, %v24776_v59 }
0x19ef   : > { %v24791_v3 = vadd.f32 1e-05, %v24775_v58 }
0x19f0   : > { %28758 = vrsqrt.f32 %v24792_v15 }
0x19f1   : > { %28760 = vrsqrt.f32 %v24791_v3 }
0x19fa   : > { %v28759_v50 = vpop.eup %28758 }
0x19fb   : > { %v28761_v47 = vpop.eup %28760  ;;  %v24824_v30 = vmul.f32 %v28759_v50, %v34921_v29 }
0x19fc   : > { %v24823_v4 = vmul.f32 %v28761_v47, %v34924_v62 }
0x19fd   : > { %v24844_v40 = vmul.f32 %v35032_v63, %v24824_v30 }
0x19fe   : > { %v24843_v51 = vmul.f32 %v35032_v63, %v24823_v4 }
0x19ff   : > { %v24864_v21 = vadd.f32 %v35039_v56, %v24844_v40 }
0x1a00   : > { %v24863_v29 = vadd.f32 %v35039_v56, %v24843_v51 }
0x1a01   : > { %v24886_v45 = vsel %vm487_vm0, %v24864_v21, 0.0 }
0x1a02   : > { %v24887_v55 = vrot.slane %v24886_v45, 4  ;;  %v24879_v39 = vsel %vm487_vm0, %v24863_v29, 0.0 }
0x1a03   : > { %v24880_v12 = vrot.slane %v24879_v39, 4 }
0x1a04   : > { %v24888_v18 = vadd.f32 %v24887_v55, %v24886_v45 }
0x1a05   : > { %v24881_v10 = vadd.f32 %v24880_v12, %v24879_v39 }
0x1a06   : > { %v24889_v26 = vrot.slane %v24888_v18, 2 }
0x1a07   : > { %v24882_v46 = vrot.slane %v24881_v10, 2 }
0x1a08   : > { %v24890_v14 = vadd.f32 %v24889_v26, %v24888_v18 }
0x1a09   : > { %v24883_v7 = vadd.f32 %v24882_v46, %v24881_v10 }
0x1a0a   : > { %v24891_v16 = vrot.slane %v24890_v14, 1 }
0x1a0b   : > { %v24884_v50 = vrot.slane %v24883_v7, 1 }
0x1a0c   : > { %v24892_v21 = vadd.f32 %v24891_v16, %v24890_v14 }
0x1a20   : > { %v24738_v54 = vpop.xlane.xlu1 %24737 }
0x1a21   : > { %v24778_v62 = vmul.f32 0.03125, %v24738_v54  ;;  %v24735_v28 = vpop.xlane.xlu0 %24734 }
0x1a22   : > { %v24777_v35 = vmul.f32 0.03125, %v24735_v28 }
0x1a23   : > { %v24794_v53 = vadd.f32 1e-05, %v24778_v62 }
0x1a24   : > { %v24793_v60 = vadd.f32 1e-05, %v24777_v35 }
0x1a25   : > { %28762 = vrsqrt.f32 %v24794_v53  ;;  %v24744_v61 = vpop.xlane.xlu1 %24743 }
0x1a26   : > { %28764 = vrsqrt.f32 %v24793_v60  ;;  %v24780_v31 = vmul.f32 0.03125, %v24744_v61  ;;  %v24885_v60 = vadd.f32 %v24884_v50, %v24883_v7 }
0x1a28   : > { %v24796_v13 = vadd.f32 1e-05, %v24780_v31 }
0x1a29   : > { %v24741_v34 = vpop.xlane.xlu1 %24740 }
0x1a2a   : > { %28766 = vrsqrt.f32 %v24796_v13  ;;  %v24779_v52 = vmul.f32 0.03125, %v24741_v34 }
0x1a2c   : > { %v24795_v32 = vadd.f32 1e-05, %v24779_v52 }
0x1a2d   : > { %v24747_v11 = vpop.xlane.xlu1 %24746  ;;  %v24756_v8 = vpop.xlane.xlu0 %24755 }
0x1a2e   : > { %28768 = vrsqrt.f32 %v24795_v32  ;;  %v24781_v5 = vmul.f32 0.03125, %v24747_v11  ;;  %v24784_v20 = vmul.f32 0.03125, %v24756_v8  ;;  %v24992_v8 = vmul.f32 0.125, %v24885_v60 }
0x1a2f   : > { %v28763_v43 = vpop.eup %28762 }
0x1a30   : > { %v28765_v41 = vpop.eup %28764  ;;  %v24826_v1 = vmul.f32 %v28763_v43, %v34933_v48  ;;  %v24797_v9 = vadd.f32 1e-05, %v24781_v5  ;;  %v24800_v0 = vadd.f32 1e-05, %v24784_v20  ;;  %v24993_v5 = vmul.f32 0.125, %v24892_v21 }
0x1a31   : > { %v24825_v37 = vmul.f32 %v28765_v41, %v34936_v27  ;;  %v24753_v25 = vpop.xlane.xlu1 %24752  ;;  %v24762_v6 = vpop.xlane.xlu0 %24761 }
0x1a32   : > { %v24846_v59 = vmul.f32 %v35032_v63, %v24826_v1  ;;  %28770 = vrsqrt.f32 %v24797_v9  ;;  %v24783_v36 = vmul.f32 0.03125, %v24753_v25  ;;  %v24786_v58 = vmul.f32 0.03125, %v24762_v6 }
0x1a33   : > { %v24845_v15 = vmul.f32 %v35032_v63, %v24825_v37  ;;  %28772 = vrsqrt.f32 %v24800_v0 }
0x1a34   : > { %v28767_v3 = vpop.eup %28766  ;;  %v24866_v47 = vadd.f32 %v35039_v56, %v24846_v59  ;;  %v24799_v48 = vadd.f32 1e-05, %v24783_v36  ;;  %v24802_v30 = vadd.f32 1e-05, %v24786_v58 }
0x1a35   : > { %v24865_v4 = vadd.f32 %v35039_v56, %v24845_v15  ;;  %v24828_v27 = vmul.f32 %v28767_v3, %v34944_v57  ;;  %v24750_v40 = vpop.xlane.xlu1 %24749  ;;  %v24759_v51 = vpop.xlane.xlu0 %24758 }
0x1a36   : > { %v24900_v29 = vsel %vm487_vm0, %v24866_v47, 0.0  ;;  %28774 = vrsqrt.f32 %v24799_v48  ;;  %v24782_v45 = vmul.f32 0.03125, %v24750_v40  ;;  %v24785_v54 = vmul.f32 0.03125, %v24759_v51 }
0x1a37   : > { %v24901_v55 = vrot.slane %v24900_v29, 4  ;;  %v24893_v39 = vsel %vm487_vm0, %v24865_v4, 0.0  ;;  %v24848_v62 = vmul.f32 %v35032_v63, %v24828_v27  ;;  %28776 = vrsqrt.f32 %v24802_v30 }
0x1a38   : > { %v28769_v28 = vpop.eup %28768  ;;  %v24894_v35 = vrot.slane %v24893_v39, 4  ;;  %v24798_v53 = vadd.f32 1e-05, %v24782_v45  ;;  %v24801_v12 = vadd.f32 1e-05, %v24785_v54  ;;  %v35068_v48 = vsel %vm25033_vm6, %v24993_v5, %v24992_v8 }
0x1a39   : > { %v24902_v57 = vadd.f32 %v24901_v55, %v24900_v29  ;;  %v24827_v18 = vmul.f32 %v28769_v28, %v34950_v22  ;;  %v24768_v61 = vpop.xlane.xlu0 %24767  ;;  %v24868_v10 = vadd.f32 %v35039_v56, %v24848_v62 }
0x1a3a   : > { %v24895_v31 = vadd.f32 %v24894_v35, %v24893_v39  ;;  %28778 = vrsqrt.f32 %v24798_v53  ;;  %v24774_v13 = vpop.xlane.xlu1 %24773  ;;  %v24788_v26 = vmul.f32 0.03125, %v24768_v61 }
0x1a3b   : > { %v24847_v34 = vmul.f32 %v35032_v63, %v24827_v18  ;;  %28780 = vrsqrt.f32 %v24801_v12  ;;  %v24790_v52 = vmul.f32 0.03125, %v24774_v13  ;;  %v24903_v46 = vrot.slane %v24902_v57, 2 }
0x1a3c   : > { %v28771_v32 = vpop.eup %28770  ;;  %v24896_v14 = vrot.slane %v24895_v31, 2  ;;  %v24804_v11 = vadd.f32 1e-05, %v24788_v26  ;;  %v24914_v16 = vsel %vm487_vm0, %v24868_v10, 0.0 }
0x1a3d   : > { %v28773_v20 = vpop.eup %28772  ;;  %v24867_v22 = vadd.f32 %v35039_v56, %v24847_v34  ;;  %v24829_v43 = vmul.f32 %v28771_v32, %v34956_v23  ;;  %v24806_v41 = vadd.f32 1e-05, %v24790_v52  ;;  %v24765_v7 = vpop.xlane.xlu0 %24764  ;;  %v24904_v1 = vadd.f32 %v24903_v46, %v24902_v57 }
0x1a3e   : > { %v24832_v9 = vmul.f32 %v28773_v20, %v34959_v44  ;;  %28782 = vrsqrt.f32 %v24804_v11  ;;  %v24787_v0 = vmul.f32 0.03125, %v24765_v7  ;;  %v24897_v37 = vadd.f32 %v24896_v14, %v24895_v31 }
0x1a3f   : > { %v24907_v25 = vsel %vm487_vm0, %v24867_v22, 0.0  ;;  %28784 = vrsqrt.f32 %v24806_v41  ;;  %v24849_v36 = vmul.f32 %v35032_v63, %v24829_v43  ;;  %v24905_v44 = vrot.slane %v24904_v1, 1 }
0x1a40   : > { %v28775_v6 = vpop.eup %28774  ;;  %v24908_v59 = vrot.slane %v24907_v25, 4  ;;  %v24852_v58 = vmul.f32 %v35032_v63, %v24832_v9  ;;  %v24803_v23 = vadd.f32 1e-05, %v24787_v0  ;;  %v24915_v47 = vrot.slane %v24914_v16, 4 }
0x1a41   : > { %v28777_v15 = vpop.eup %28776  ;;  %v24831_v3 = vmul.f32 %v28775_v6, %v34967_v19  ;;  %v24771_v50 = vpop.xlane.xlu0 %24770  ;;  %v24898_v51 = vrot.slane %v24897_v37, 1  ;;  %v24869_v19 = vadd.f32 %v35039_v56, %v24849_v36  ;;  %v35081_v31 = vadd.f32 %v24905_v44, %v24904_v1 }
0x1a42   : > { %v24872_v30 = vadd.f32 %v35039_v56, %v24852_v58  ;;  %v24834_v4 = vmul.f32 %v28777_v15, %v34970_v2  ;;  %28786 = vrsqrt.f32 %v24803_v23  ;;  %v24789_v27 = vmul.f32 0.03125, %v24771_v50 }
0x1a43   : > { %v24851_v40 = vmul.f32 %v35032_v63, %v24831_v3  ;;  %v24909_v21 = vadd.f32 %v24908_v59, %v24907_v25  ;;  %v24916_v29 = vadd.f32 %v24915_v47, %v24914_v16  ;;  %v35086_v11 = vadd.f32 %v24898_v51, %v24897_v37 }
0x1a44   : > { %v28779_v45 = vpop.eup %28778  ;;  %v24942_v54 = vsel %vm487_vm0, %v24872_v30, 0.0  ;;  %v24854_v55 = vmul.f32 %v35032_v63, %v24834_v4  ;;  %v24805_v39 = vadd.f32 1e-05, %v24789_v27  ;;  %v24921_v15 = vsel %vm487_vm0, %v24869_v19, 0.0 }
0x1a45   : > { %v28781_v62 = vpop.eup %28780  ;;  %v24943_v28 = vrot.slane %v24942_v54, 4  ;;  %v24871_v35 = vadd.f32 %v35039_v56, %v24851_v40  ;;  %v24830_v2 = vmul.f32 %v28779_v45, %v34979_v24  ;;  %v24910_v53 = vrot.slane %v24909_v21, 2 }
0x1a46   : > { %v24874_v12 = vadd.f32 %v35039_v56, %v24854_v55  ;;  %v24833_v60 = vmul.f32 %v28781_v62, %v34982_v38  ;;  %28788 = vrsqrt.f32 %v24805_v39  ;;  %v24917_v57 = vrot.slane %v24916_v29, 2 }
0x1a47   : > { %v24944_v18 = vadd.f32 %v24943_v28, %v24942_v54  ;;  %v24935_v61 = vsel %vm487_vm0, %v24871_v35, 0.0  ;;  %v24911_v10 = vadd.f32 %v24910_v53, %v24909_v21  ;;  %v24850_v5 = vmul.f32 %v35032_v63, %v24830_v2 }
0x1a48   : > { %v28783_v13 = vpop.eup %28782  ;;  %v24936_v26 = vrot.slane %v24935_v61, 4  ;;  %v24956_v34 = vsel %vm487_vm0, %v24874_v12, 0.0  ;;  %v24853_v52 = vmul.f32 %v35032_v63, %v24833_v60  ;;  %v24918_v24 = vadd.f32 %v24917_v57, %v24916_v29 }
0x1a49   : > { %v28785_v46 = vpop.eup %28784  ;;  %v24945_v32 = vrot.slane %v24944_v18, 2  ;;  %v24957_v14 = vrot.slane %v24956_v34, 4  ;;  %v24836_v38 = vmul.f32 %v28783_v13, %v34991_v33  ;;  %v24912_v1 = vrot.slane %v24911_v10, 1 }
0x1a4a   : > { %v24937_v8 = vadd.f32 %v24936_v26, %v24935_v61  ;;  %v24873_v20 = vadd.f32 %v35039_v56, %v24853_v52  ;;  %v24838_v22 = vmul.f32 %v28785_v46, %v34996_v49  ;;  %v24919_v37 = vrot.slane %v24918_v24, 1 }
0x1a4b   : > { %v24946_v43 = vadd.f32 %v24945_v32, %v24944_v18  ;;  %v24958_v41 = vadd.f32 %v24957_v14, %v24956_v34  ;;  %v24856_v7 = vmul.f32 %v35032_v63, %v24836_v38  ;;  %v24870_v47 = vadd.f32 %v35039_v56, %v24850_v5 }
0x1a4c   : > { %v28787_v9 = vpop.eup %28786  ;;  %v24938_v0 = vrot.slane %v24937_v8, 2  ;;  %v24949_v16 = vsel %vm487_vm0, %v24873_v20, 0.0  ;;  %v24858_v33 = vmul.f32 %v35032_v63, %v24838_v22  ;;  %v24913_v45 = vadd.f32 %v24912_v1, %v24911_v10 }
0x1a4d   : > { %v24947_v25 = vrot.slane %v24946_v43, 1  ;;  %v24959_v6 = vrot.slane %v24958_v41, 2  ;;  %v24950_v59 = vrot.slane %v24949_v16, 4  ;;  %v24876_v36 = vadd.f32 %v35039_v56, %v24856_v7 }
0x1a4e   : > { %v24939_v58 = vadd.f32 %v24938_v0, %v24937_v8  ;;  %v24878_v49 = vadd.f32 %v35039_v56, %v24858_v33  ;;  %v24835_v23 = vmul.f32 %v28787_v9, %v35003_v42  ;;  %v24920_v54 = vadd.f32 %v24919_v37, %v24918_v24 }
0x1a4f   : > { %v24960_v3 = vadd.f32 %v24959_v6, %v24958_v41  ;;  %v24951_v50 = vadd.f32 %v24950_v59, %v24949_v16  ;;  %v24970_v44 = vsel %vm487_vm0, %v24876_v36, 0.0  ;;  %v24948_v4 = vadd.f32 %v24947_v25, %v24946_v43 }
0x1a50   : > { %v28789_v30 = vpop.eup %28788  ;;  %v24984_v27 = vsel %vm487_vm0, %v24878_v49, 0.0  ;;  %v24971_v40 = vrot.slane %v24970_v44, 4  ;;  %v24855_v51 = vmul.f32 %v35032_v63, %v24835_v23  ;;  %v24940_v21 = vrot.slane %v24939_v58, 1 }
0x1a51   : > { %v24952_v29 = vrot.slane %v24951_v50, 2  ;;  %v24985_v42 = vrot.slane %v24984_v27, 4  ;;  %v24837_v39 = vmul.f32 %v28789_v30, %v35010_v17  ;;  %v24961_v62 = vrot.slane %v24960_v3, 1 }
0x1a52   : > { %v24972_v55 = vadd.f32 %v24971_v40, %v24970_v44  ;;  %v24875_v19 = vadd.f32 %v35039_v56, %v24855_v51  ;;  %v24922_v35 = vrot.slane %v24921_v15, 4  ;;  %v24928_v2 = vsel %vm487_vm0, %v24870_v47, 0.0 }
0x1a53   : > { %v24953_v28 = vadd.f32 %v24952_v29, %v24951_v50  ;;  %v25001_v53 = vmul.f32 0.125, %v24948_v4  ;;  %v24857_v60 = vmul.f32 %v35032_v63, %v24837_v39  ;;  %v24929_v57 = vrot.slane %v24928_v2, 4 }
0x1a54   : > { %v24963_v12 = vsel %vm487_vm0, %v24875_v19, 0.0  ;;  %v24923_v10 = vadd.f32 %v24922_v35, %v24921_v15  ;;  %v24973_v13 = vrot.slane %v24972_v55, 2  ;;  %v24941_v26 = vadd.f32 %v24940_v21, %v24939_v58 }
0x1a55   : > { %v24954_v18 = vrot.slane %v24953_v28, 1  ;;  %v24964_v61 = vrot.slane %v24963_v12, 4  ;;  %v24877_v17 = vadd.f32 %v35039_v56, %v24857_v60  ;;  %v24930_v34 = vadd.f32 %v24929_v57, %v24928_v2  ;;  %v25754_v57 = vld [vmem:[%s35140_s3 + $0x1] ss:$0 sm:$0xff] }
0x1a56   : > { %v24986_v52 = vadd.f32 %v24985_v42, %v24984_v27  ;;  %v24924_v46 = vrot.slane %v24923_v10, 2  ;;  %v24962_v32 = vadd.f32 %v24961_v62, %v24960_v3  ;;  %v24974_v14 = vadd.f32 %v24973_v13, %v24972_v55 }
0x1a57   : > { %v24965_v24 = vadd.f32 %v24964_v61, %v24963_v12  ;;  %v24955_v38 = vadd.f32 %v24954_v18, %v24953_v28  ;;  %v24977_v63 = vsel %vm487_vm0, %v24877_v17, 0.0  ;;  %v24931_v8 = vrot.slane %v24930_v34, 2 }
0x1a58   : > { %v24987_v5 = vrot.slane %v24986_v52, 2  ;;  %v24978_v22 = vrot.slane %v24977_v63, 4  ;;  %v24925_v43 = vadd.f32 %v24924_v46, %v24923_v10  ;;  %v24975_v41 = vrot.slane %v24974_v14, 1 }
0x1a59   : > { %v24966_v20 = vrot.slane %v24965_v24, 2  ;;  %v25000_v7 = vmul.f32 0.125, %v24941_v26  ;;  %v24932_v56 = vadd.f32 %v24931_v8, %v24930_v34  ;;  %v24994_v9 = vmul.f32 0.125, %v35086_v11 }
0x1a5a   : > { %v24988_v1 = vadd.f32 %v24987_v5, %v24986_v52  ;;  %v24979_v16 = vadd.f32 %v24978_v22, %v24977_v63  ;;  %v24926_v33 = vrot.slane %v24925_v43, 1  ;;  %v24995_v37 = vmul.f32 0.125, %v35081_v31 }
0x1a5b   : > { %v24967_v0 = vadd.f32 %v24966_v20, %v24965_v24  ;;  %v24933_v25 = vrot.slane %v24932_v56, 1  ;;  %v24996_v6 = vmul.f32 0.125, %v24913_v45  ;;  %v24997_v59 = vmul.f32 0.125, %v24920_v54 }
0x1a5c   : > { %v25002_v36 = vmul.f32 0.125, %v24955_v38  ;;  %v24927_v58 = vadd.f32 %v24926_v33, %v24925_v43  ;;  %v24976_v23 = vadd.f32 %v24975_v41, %v24974_v14  ;;  %v24980_v15 = vrot.slane %v24979_v16, 2 }
0x1a5d   : > { %v24968_v49 = vrot.slane %v24967_v0, 1  ;;  %v24934_v3 = vadd.f32 %v24933_v25, %v24932_v56  ;;  %v24989_v50 = vrot.slane %v24988_v1, 1  ;;  %v25036_v44 = vsel %vm25035_vm7, %v24994_v9, %v35068_v48 }
0x1a5e   : > { %v25047_v11 = vsel %vm25033_vm6, %v25001_v53, %v25000_v7  ;;  %v24981_v30 = vadd.f32 %v24980_v15, %v24979_v16  ;;  %v24998_v4 = vmul.f32 0.125, %v24927_v58  ;;  %v25038_v31 = vsel %vm25037_vm8, %v24995_v37, %v25036_v44 }
0x1a5f   : > { %v24969_v47 = vadd.f32 %v24968_v49, %v24967_v0  ;;  %v24999_v27 = vmul.f32 0.125, %v24934_v3  ;;  %v25003_v40 = vmul.f32 0.125, %v24962_v32  ;;  %v25040_v51 = vsel %vm25039_vm9, %v24996_v6, %v25038_v31 }
0x1a60   : > { %v25048_v21 = vsel %vm25035_vm7, %v25002_v36, %v25047_v11  ;;  %v24982_v29 = vrot.slane %v24981_v30, 1  ;;  %v25042_v54 = vsel %vm25041_vm10, %v24997_v59, %v25040_v51  ;;  %v24990_v42 = vadd.f32 %v24989_v50, %v24988_v1 }
0x1a61   : > { %v25004_v45 = vmul.f32 0.125, %v24969_v47  ;;  %v25044_v48 = vsel %vm25043_vm11, %v24998_v4, %v25042_v54  ;;  %v25049_v55 = vsel %vm25037_vm8, %v25003_v40, %v25048_v21  ;;  %v25005_v28 = vmul.f32 0.125, %v24976_v23 }
0x1a62   : > { %v24983_v19 = vadd.f32 %v24982_v29, %v24981_v30  ;;  %v25046_v39 = vsel %vm25045_vm12, %v24999_v27, %v25044_v48  ;;  %v25007_v2 = vmul.f32 0.125, %v24990_v42 }
0x1a63   : > { %v25050_v62 = vsel %vm25039_vm9, %v25004_v45, %v25049_v55  ;;  %28005 = vmatprep.mubr.msk.f32.mxu0 %vm487_vm0, %v25046_v39 }
0x1a64   : > { %v25006_v35 = vmul.f32 0.125, %v24983_v19  ;;  %v25051_v53 = vsel %vm25041_vm10, %v25005_v28, %v25050_v62 }
0x1a66   : > { %v25052_v12 = vsel %vm25043_vm11, %v25006_v35, %v25051_v53 }
0x1a67   : > { %v25053_v60 = vsel %vm25045_vm12, %v25007_v2, %v25052_v12 }
0x1a68   : > { %28006 = vmatmul.mubr.msk.f32.vlgmr.msra.gmra.mrb[62].mxu0 %vm487_vm0, %v25053_v60 }
0x1b3b   : > { %v28007_v18 = vpop.f32.mrb[62].mxu0 }
0x1b3c   : > { %v25124_v61 = vpop.f32.mrb[63].mxu0  ;;  %v25130_v13 = vadd.f32 %v28007_v18, %v25754_v57 }
0x1b3d   : > { %v25125_v10 = vadd.f32 %v25754_v57, %v25124_v61 }
0x1b3e   : > { %25135 = vst.msk [vmem:[%s214_s26 + $0x8] sm:$0xff] %vm25133_vm13, %v25130_v13 }
0x1b3f   : > { %25134 = vst.msk [vmem:[%s214_s26] sm:$0xff] %vm25133_vm13, %v25125_v10 }
0x1b40 PF: > { %s15_s15 = sadd.s32 1, %s28828_s15  }
0x1b41   : > { %p12_p5 = scmp.ge.s32.totalorder %s15_s15, 4  }
0x1b43   :  { %14 = sbr.rel (!%p12_p5) target bundleno = 1 (0x1), region = 73 }
0x1b4a   :  { %25158 = vsyncpa [#allocation3], 1 }
0x1b4b   :  { %25160 = vsyncpa [#allocation3 + $0x1], 1 }

</bundles_post_ra>
